<compile_context>
chip_gen: v7x
topology: tpu7x:2x2x1
jax: 0.10.0
libtpu: 0.0.40
codegen_flags: <defaults>
</compile_context>

<pallas_src>
import math

import jax
import jax.numpy as jnp
from jax.experimental import pallas as pl
from jax.experimental.pallas import tpu as pltpu

LN_EPS = 1e-5  # torch.nn.LayerNorm default

_COMPILER_PARAMS = pltpu.CompilerParams(
    dimension_semantics=("parallel",),
    vmem_limit_bytes=64 * 1024 * 1024,
)


def _layernorm(x, w, b):
    mu = jnp.mean(x, axis=-1, keepdims=True)
    var = jnp.mean((x - mu) ** 2, axis=-1, keepdims=True)
    return (x - mu) * jax.lax.rsqrt(var + LN_EPS) * w + b


def _softmax_lastdim(s):
    m = jnp.max(s, axis=-1, keepdims=True)
    e = jnp.exp(s - m)
    return e * pl.reciprocal(jnp.sum(e, axis=-1, keepdims=True), approx=True)


# --------------------------------------------------------------------------
# Kernel 1: CLIP-style residual attention block with the VPT / CAVPT prompt
# rows appended in VMEM.  One batch element per grid step.
#   xf = [x ; prompt];  xf <- xf + MHA(LN1(xf));  xf <- xf + MLP(LN2(xf))
#   output = first L rows of xf   (the original slices the prompt off again)
# Weight layout (built in init_params, pure relayout of torch params):
#   wq/wk/wv : (H, D, dh) bf16   (= in_proj_weight split per head, transposed)
#   bq/bk/bv : (H, 1, dh) f32
#   wo       : (H, dh, D) bf16   (= out_proj.weight.T split per head)
# --------------------------------------------------------------------------
def _resblock_kernel(x_ref, p_ref, ln1w, ln1b, wq, bq, wk, bk, wv, bv,
                     wo, bo, ln2w, ln2b, wfc, bfc, wpr, bpr, o_ref):
    x = x_ref[0]                                  # (L, D)  f32
    prm = p_ref[0]                                # (P, D)  f32
    L = x.shape[0]
    xf = jnp.concatenate([x, prm], axis=0)        # (Lf, D) f32, built in VMEM

    H, _, dh = wq.shape
    scale = 1.0 / math.sqrt(dh)

    # --- multi-head self attention ---
    xn = _layernorm(xf, ln1w[...], ln1b[...])
    xn_b = xn.astype(jnp.bfloat16)

    attn_acc = jnp.zeros(xf.shape, jnp.float32)   # running sum over heads
    for h in range(H):                            # static loop, no lane slicing
        qh = jnp.dot(xn_b, wq[h], preferred_element_type=jnp.float32) + bq[h]
        kh = jnp.dot(xn_b, wk[h], preferred_element_type=jnp.float32) + bk[h]
        vh = jnp.dot(xn_b, wv[h], preferred_element_type=jnp.float32) + bv[h]
        # scores = (q * scale) @ k^T via dot_general (no explicit transpose)
        s = jax.lax.dot_general(
            (qh * scale).astype(jnp.bfloat16), kh.astype(jnp.bfloat16),
            dimension_numbers=(((1,), (1,)), ((), ())),
            preferred_element_type=jnp.float32)   # (Lf, Lf) f32
        p = _softmax_lastdim(s).astype(jnp.bfloat16)
        oh = jnp.dot(p, vh.astype(jnp.bfloat16),
                     preferred_element_type=jnp.float32)          # (Lf, dh)
        # per-head slice of the output projection, accumulated (== concat @ Wo)
        attn_acc = attn_acc + jnp.dot(oh.astype(jnp.bfloat16), wo[h],
                                      preferred_element_type=jnp.float32)
    xr = xf + attn_acc + bo[...]

    # --- MLP (QuickGELU, as in CLIP) ---
    xn2 = _layernorm(xr, ln2w[...], ln2b[...])
    hmid = jnp.dot(xn2.astype(jnp.bfloat16), wfc[...],
                   preferred_element_type=jnp.float32) + bfc[...]
    hmid = hmid * jax.nn.sigmoid(1.702 * hmid)    # QuickGELU in f32
    xr = xr + jnp.dot(hmid.astype(jnp.bfloat16), wpr[...],
                      preferred_element_type=jnp.float32) + bpr[...]

    o_ref[0] = xr[:L, :]                          # strip the prompt rows


def resblock_apply(x_bld, prompt_bpd, rp):
    """x_bld: (B, L, D) f32; prompt_bpd: (B, P, D) f32; rp: 16 weight arrays."""
    B, L, D = x_bld.shape
    P = prompt_bpd.shape[1]
    in_specs = [pl.BlockSpec((1, L, D), lambda b: (b, 0, 0)),
                pl.BlockSpec((1, P, D), lambda b: (b, 0, 0))]
    args = [x_bld, prompt_bpd]
    for w in rp:
        args.append(w)
        in_specs.append(pl.BlockSpec(w.shape, lambda b, nd=w.ndim: (0,) * nd))
    return pl.pallas_call(
        _resblock_kernel,
        out_shape=jax.ShapeDtypeStruct((B, L, D), jnp.float32),
        grid=(B,),
        in_specs=in_specs,
        out_specs=pl.BlockSpec((1, L, D), lambda b: (b, 0, 0)),
        input_output_aliases={0: 0},                # x is dead after the call
        compiler_params=_COMPILER_PARAMS,
    )(*args)


# --------------------------------------------------------------------------
# Kernel 2: CAVPT extractor (meta_net linear + single cross attention with
# 32-dim q/k projections + layernorms), one batch element per grid step.
# The tiny classifier matmul (n_classes-wide) is done outside the kernel so
# the kernel's outputs stay lane-dense in D.
# --------------------------------------------------------------------------
def _cavpt_kernel(tf_ref, x_ref, ctx_ref, wm, bm, wq, wk, wv,
                  ln1w, ln1b, ln2w, ln2b,
                  cp_out_ref, cp4l_ref, attn_ref):
    tf = tf_ref[0]                                              # (CPN, vis_dim)
    # meta_nets[i]: Linear(vis_dim -> D)
    cp = jnp.dot(tf.astype(jnp.bfloat16), wm[...],
                 preferred_element_type=jnp.float32) + bm[...]  # (CPN, D)

    x = x_ref[0]                                                # (L, D)
    kt = jnp.concatenate([x, ctx_ref[...]], axis=0)             # (Lk, D) f32
    kt_b = kt.astype(jnp.bfloat16)

    # Attention: qmlp/kmlp project to 32, scale 1/sqrt(32), values unprojected,
    # vmlp (D->D) applied afterwards — matches the torch Attention module.
    scale = 1.0 / math.sqrt(wq.shape[1])
    qp = jnp.dot((cp * scale).astype(jnp.bfloat16), wq[...],
                 preferred_element_type=jnp.float32)            # (CPN, 32)
    kp = jnp.dot(kt_b, wk[...], preferred_element_type=jnp.float32)  # (Lk, 32)
    u = jax.lax.dot_general(
        qp.astype(jnp.bfloat16), kp.astype(jnp.bfloat16),
        dimension_numbers=(((1,), (1,)), ((), ())),
        preferred_element_type=jnp.float32)                     # (CPN, Lk)
    attn = _softmax_lastdim(u)
    out = jnp.dot(attn.astype(jnp.bfloat16), kt_b,
                  preferred_element_type=jnp.float32)           # (CPN, D)
    out = jnp.dot(out.astype(jnp.bfloat16), wv[...],
                  preferred_element_type=jnp.float32)

    cp_out_ref[0] = _layernorm(out + cp, ln2w[...], ln2b[...])  # lns2 (next x)
    cp4l_ref[0] = _layernorm(out, ln1w[...], ln1b[...])         # lns (-> logits)
    attn_ref[0] = attn


def cavpt_apply(text_feature, x_bld, cp_params):
    """text_feature: (B, CPN, vis_dim);  x_bld: (B, L, D)."""
    B, L, D = x_bld.shape
    _, CPN, vis_dim = text_feature.shape
    ctx = cp_params["ctx"]                       # (10, D)
    Lk = L + ctx.shape[0]

    weight_list = [ctx, cp_params["wm"], cp_params["bm"],
                   cp_params["wq"], cp_params["wk"], cp_params["wv"],
                   cp_params["ln1w"], cp_params["ln1b"],
                   cp_params["ln2w"], cp_params["ln2b"]]
    in_specs = [pl.BlockSpec((1, CPN, vis_dim), lambda b: (b, 0, 0)),
                pl.BlockSpec((1, L, D), lambda b: (b, 0, 0))]
    for w in weight_list:
        in_specs.append(pl.BlockSpec(w.shape, lambda b, nd=w.ndim: (0,) * nd))

    out_shape = (jax.ShapeDtypeStruct((B, CPN, D), jnp.float32),
                 jax.ShapeDtypeStruct((B, CPN, D), jnp.float32),
                 jax.ShapeDtypeStruct((B, CPN, Lk), jnp.float32))
    out_specs = (pl.BlockSpec((1, CPN, D), lambda b: (b, 0, 0)),
                 pl.BlockSpec((1, CPN, D), lambda b: (b, 0, 0)),
                 pl.BlockSpec((1, CPN, Lk), lambda b: (b, 0, 0)))

    return pl.pallas_call(
        _cavpt_kernel,
        out_shape=out_shape,
        grid=(B,),
        in_specs=in_specs,
        out_specs=out_specs,
        compiler_params=_COMPILER_PARAMS,
    )(text_feature, x_bld, *weight_list)


# --------------------------------------------------------------------------
# Parameter construction (deterministic, synthetic).
# nn.Linear weights are stored pre-transposed (in_dim, out_dim), matmul weights
# in bf16; the joint MHA in_proj / out_proj weights are additionally pre-split
# per head ((H, D, dh) / (H, dh, D)) — a pure relayout of the same parameters.
# --------------------------------------------------------------------------
def init_params(key, *, D, n_heads, layers, bottom_limit, n_ctx_vpt,
                vis_dim, n_classes, cavpt_n=10):
    dh = D // n_heads
    mlp_h = 4 * D
    keys = iter(jax.random.split(key, 256))

    def nrm(shape, std=0.02, dtype=jnp.bfloat16):
        return (std * jax.random.normal(next(keys), shape, jnp.float32)).astype(dtype)

    def ones(shape):
        return jnp.ones(shape, jnp.float32)

    def zeros(shape):
        return jnp.zeros(shape, jnp.float32)

    params = {"vpt_ctx": nrm((bottom_limit, n_ctx_vpt, D), dtype=jnp.float32)}

    resblocks = []
    for _ in range(layers):
        resblocks.append([
            ones((1, D)), zeros((1, D)),                          # ln_1 w, b
            nrm((n_heads, D, dh)), zeros((n_heads, 1, dh)),       # Wq, bq (per head)
            nrm((n_heads, D, dh)), zeros((n_heads, 1, dh)),       # Wk, bk
            nrm((n_heads, D, dh)), zeros((n_heads, 1, dh)),       # Wv, bv
            nrm((n_heads, dh, D)), zeros((1, D)),                 # Wout (per head), bo
            ones((1, D)), zeros((1, D)),                          # ln_2 w, b
            nrm((D, mlp_h)), zeros((1, mlp_h)),                   # c_fc
            nrm((mlp_h, D)), zeros((1, D)),                       # c_proj
        ])
    params["resblocks"] = resblocks

    cavpt = []
    for _ in range(layers - bottom_limit):
        cavpt.append({
            "ctx": nrm((cavpt_n, D), dtype=jnp.float32),          # self.ctx[i]
            "wm": nrm((vis_dim, D)), "bm": zeros((1, D)),         # meta_net
            "wq": nrm((D, 32)), "wk": nrm((D, 32)), "wv": nrm((D, D)),
            "ln1w": ones((1, D)), "ln1b": zeros((1, D)),
            "wcls": nrm((D, n_classes)),                          # classifier (no bias)
            "ln2w": ones((1, D)), "ln2b": zeros((1, D)),
        })
    params["cavpt"] = cavpt
    return params


# --------------------------------------------------------------------------
# Transformer_VPTD.forward  (need_attn=False path; the need_attn=True branch in
# the source is buggy — `self.bottom_limit(x, True)` — and is not implemented)
# --------------------------------------------------------------------------
def transformer_vptd_forward(x_lbd, text_feature, params):
    _, B, D = x_lbd.shape
    bottom_limit, n_ctx_vpt, _ = params["vpt_ctx"].shape
    n_layers = len(params["resblocks"])

    x = jnp.transpose(x_lbd, (1, 0, 2))                  # -> (B, L, D)

    # bottom layers: VPT deep prompts appended inside the kernel, stripped on
    # write-back (no per-layer HBM concat/slice round-trip).
    for i in range(bottom_limit):
        ctx_i = jnp.broadcast_to(params["vpt_ctx"][i][None], (B, n_ctx_vpt, D))
        x = resblock_apply(x, ctx_i, params["resblocks"][i])

    layer_logits = []
    attn_map = None
    for i in range(n_layers - bottom_limit):
        cpp = params["cavpt"][i]
        cp, cp4logits, attn_map = cavpt_apply(text_feature, x, cpp)
        # classifier (tiny, lane-sparse output) done in plain XLA outside the kernel
        logits = jnp.einsum("bcd,dn->bcn", cp4logits.astype(jnp.bfloat16),
                            cpp["wcls"], preferred_element_type=jnp.float32)
        # torch shapes: logits (CPN, B, ncls).unsqueeze(0); attn_map (B, CPN, L+10)
        layer_logits.append(jnp.transpose(logits, (1, 0, 2))[None])
        # TODO(synk): CPN == 0 (keep full sequence) and the buggy need_attn=True
        # branch of the original are not supported by the fused prompt kernel.
        x = resblock_apply(x, cp, params["resblocks"][bottom_limit + i])

    x_out = jnp.transpose(x, (1, 0, 2))                  # back to (L, B, D)
    return x_out, layer_logits, attn_map


if __name__ == "__main__":
    # small, forward-consistent configuration
    B, L, D, H = 2, 8, 64, 4          # batch, seq, ctx_dim, attention heads
    vis_dim = 32                      # clip visual output_dim (meta_net input)
    n_ctx_vpt = 4                     # cfg.TRAINER.VPT.N_CTX
    layers = 3                        # visual transformer layers
    bottom_limit = 2                  # BOTTOMLIMIT - 1
    n_classes = 6                     # len(classnames)
    CPN = 5                           # class_prompt_num (< len(classnames))

    key = jax.random.PRNGKey(0)
    kx, kt, kp = jax.random.split(key, 3)
    x = jax.random.normal(kx, (L, B, D), jnp.float32)                # (L, B, D)
    text_feature = jax.random.normal(kt, (B, CPN, vis_dim), jnp.float32)

    params = init_params(kp, D=D, n_heads=H, layers=layers,
                         bottom_limit=bottom_limit, n_ctx_vpt=n_ctx_vpt,
                         vis_dim=vis_dim, n_classes=n_classes)

    fwd = jax.jit(transformer_vptd_forward)
    x_out, layer_logits, attn_map = fwd(x, text_feature, params)
    jax.block_until_ready((x_out, layer_logits, attn_map))

    assert x_out.shape == (L, B, D)
    assert len(layer_logits) == layers - bottom_limit
    assert layer_logits[0].shape == (1, CPN, B, n_classes)
    assert attn_map.shape == (B, CPN, L + 10)
    print("KERNEL_OK")
</pallas_src>

<mosaic_0001>
module attributes {stable_mosaic.version = 11 : i64} {
  func.func @_resblock_kernel(%arg0: i32, %arg1: memref<1x8x64xf32, #tpu.memory_space<vmem>>, %arg2: memref<1x4x64xf32, #tpu.memory_space<vmem>>, %arg3: memref<1x64xf32, #tpu.memory_space<vmem>>, %arg4: memref<1x64xf32, #tpu.memory_space<vmem>>, %arg5: memref<4x64x16xbf16, #tpu.memory_space<vmem>>, %arg6: memref<4x1x16xf32, #tpu.memory_space<vmem>>, %arg7: memref<4x64x16xbf16, #tpu.memory_space<vmem>>, %arg8: memref<4x1x16xf32, #tpu.memory_space<vmem>>, %arg9: memref<4x64x16xbf16, #tpu.memory_space<vmem>>, %arg10: memref<4x1x16xf32, #tpu.memory_space<vmem>>, %arg11: memref<4x16x64xbf16, #tpu.memory_space<vmem>>, %arg12: memref<1x64xf32, #tpu.memory_space<vmem>>, %arg13: memref<1x64xf32, #tpu.memory_space<vmem>>, %arg14: memref<1x64xf32, #tpu.memory_space<vmem>>, %arg15: memref<64x256xbf16, #tpu.memory_space<vmem>>, %arg16: memref<1x256xf32, #tpu.memory_space<vmem>>, %arg17: memref<256x64xbf16, #tpu.memory_space<vmem>>, %arg18: memref<1x64xf32, #tpu.memory_space<vmem>>, %arg19: memref<1x8x64xf32, #tpu.memory_space<vmem>>) attributes {dimension_semantics = [#tpu.dimension_semantics<parallel>], iteration_bounds = array<i64: 2>, scalar_prefetch = 0 : i64, scratch_operands = 0 : i64, tpu.core_type = #tpu.core_type<tc>, window_params = [{transform_indices = @transform_0, window_bounds = array<i64: 1, 8, 64>}, {transform_indices = @transform_1, window_bounds = array<i64: 1, 4, 64>}, {pipeline_mode = #tpu.pipeline_mode<synchronous>, transform_indices = @transform_2, window_bounds = array<i64: 1, 64>}, {pipeline_mode = #tpu.pipeline_mode<synchronous>, transform_indices = @transform_3, window_bounds = array<i64: 1, 64>}, {pipeline_mode = #tpu.pipeline_mode<synchronous>, transform_indices = @transform_4, window_bounds = array<i64: 4, 64, 16>}, {pipeline_mode = #tpu.pipeline_mode<synchronous>, transform_indices = @transform_5, window_bounds = array<i64: 4, 1, 16>}, {pipeline_mode = #tpu.pipeline_mode<synchronous>, transform_indices = @transform_6, window_bounds = array<i64: 4, 64, 16>}, {pipeline_mode = #tpu.pipeline_mode<synchronous>, transform_indices = @transform_7, window_bounds = array<i64: 4, 1, 16>}, {pipeline_mode = #tpu.pipeline_mode<synchronous>, transform_indices = @transform_8, window_bounds = array<i64: 4, 64, 16>}, {pipeline_mode = #tpu.pipeline_mode<synchronous>, transform_indices = @transform_9, window_bounds = array<i64: 4, 1, 16>}, {pipeline_mode = #tpu.pipeline_mode<synchronous>, transform_indices = @transform_10, window_bounds = array<i64: 4, 16, 64>}, {pipeline_mode = #tpu.pipeline_mode<synchronous>, transform_indices = @transform_11, window_bounds = array<i64: 1, 64>}, {pipeline_mode = #tpu.pipeline_mode<synchronous>, transform_indices = @transform_12, window_bounds = array<i64: 1, 64>}, {pipeline_mode = #tpu.pipeline_mode<synchronous>, transform_indices = @transform_13, window_bounds = array<i64: 1, 64>}, {pipeline_mode = #tpu.pipeline_mode<synchronous>, transform_indices = @transform_14, window_bounds = array<i64: 64, 256>}, {pipeline_mode = #tpu.pipeline_mode<synchronous>, transform_indices = @transform_15, window_bounds = array<i64: 1, 256>}, {pipeline_mode = #tpu.pipeline_mode<synchronous>, transform_indices = @transform_16, window_bounds = array<i64: 256, 64>}, {pipeline_mode = #tpu.pipeline_mode<synchronous>, transform_indices = @transform_17, window_bounds = array<i64: 1, 64>}, {transform_indices = @transform_18, window_bounds = array<i64: 1, 8, 64>}]} {
    %c0 = arith.constant 0 : index
    %c0_0 = arith.constant 0 : index
    %c0_1 = arith.constant 0 : index
    %0 = vector.load %arg1[%c0, %c0_0, %c0_1] : memref<1x8x64xf32, #tpu.memory_space<vmem>>, vector<1x8x64xf32>
    %1 = vector.shape_cast %0 : vector<1x8x64xf32> to vector<8x64xf32>
    %c0_2 = arith.constant 0 : index
    %c0_3 = arith.constant 0 : index
    %c0_4 = arith.constant 0 : index
    %2 = vector.load %arg2[%c0_2, %c0_3, %c0_4] : memref<1x4x64xf32, #tpu.memory_space<vmem>>, vector<1x4x64xf32>
    %3 = vector.shape_cast %2 : vector<1x4x64xf32> to vector<4x64xf32>
    %4 = tpu.concatenate %1, %3 in 0 : vector<8x64xf32>, vector<4x64xf32> -> vector<12x64xf32>
    %c0_5 = arith.constant 0 : index
    %c0_6 = arith.constant 0 : index
    %5 = vector.load %arg3[%c0_5, %c0_6] : memref<1x64xf32, #tpu.memory_space<vmem>>, vector<1x64xf32>
    %c0_7 = arith.constant 0 : index
    %c0_8 = arith.constant 0 : index
    %6 = vector.load %arg4[%c0_7, %c0_8] : memref<1x64xf32, #tpu.memory_space<vmem>>, vector<1x64xf32>
    %cst = arith.constant dense<0.000000e+00> : vector<12xf32>
    %7 = vector.multi_reduction <add>, %4, %cst [1] : vector<12x64xf32> to vector<12xf32>
    %8 = vector.shape_cast %7 : vector<12xf32> to vector<12x1xf32>
    %cst_9 = arith.constant 6.400000e+01 : f32
    %9 = vector.broadcast %cst_9 : f32 to vector<12x1xf32>
    %10 = arith.divf %8, %9 : vector<12x1xf32>
    %11 = vector.broadcast %10 : vector<12x1xf32> to vector<12x64xf32>
    %12 = arith.subf %4, %11 : vector<12x64xf32>
    %13 = arith.mulf %12, %12 : vector<12x64xf32>
    %cst_10 = arith.constant dense<0.000000e+00> : vector<12xf32>
    %14 = vector.multi_reduction <add>, %13, %cst_10 [1] : vector<12x64xf32> to vector<12xf32>
    %15 = vector.shape_cast %14 : vector<12xf32> to vector<12x1xf32>
    %cst_11 = arith.constant 6.400000e+01 : f32
    %16 = vector.broadcast %cst_11 : f32 to vector<12x1xf32>
    %17 = arith.divf %15, %16 : vector<12x1xf32>
    %18 = vector.broadcast %10 : vector<12x1xf32> to vector<12x64xf32>
    %19 = arith.subf %4, %18 : vector<12x64xf32>
    %cst_12 = arith.constant 9.99999974E-6 : f32
    %20 = vector.broadcast %cst_12 : f32 to vector<12x1xf32>
    %21 = arith.addf %17, %20 : vector<12x1xf32>
    %22 = math.rsqrt %21 : vector<12x1xf32>
    %23 = vector.broadcast %22 : vector<12x1xf32> to vector<12x64xf32>
    %24 = arith.mulf %19, %23 : vector<12x64xf32>
    %25 = vector.broadcast %5 : vector<1x64xf32> to vector<12x64xf32>
    %26 = arith.mulf %24, %25 : vector<12x64xf32>
    %27 = vector.broadcast %6 : vector<1x64xf32> to vector<12x64xf32>
    %28 = arith.addf %26, %27 : vector<12x64xf32>
    %29 = arith.truncf %28 : vector<12x64xf32> to vector<12x64xbf16>
    %cst_13 = arith.constant 0.000000e+00 : f32
    %30 = vector.broadcast %cst_13 : f32 to vector<12x64xf32>
    %c0_14 = arith.constant 0 : index
    %c0_15 = arith.constant 0 : index
    %c0_16 = arith.constant 0 : index
    %31 = vector.load %arg5[%c0_14, %c0_15, %c0_16] : memref<4x64x16xbf16, #tpu.memory_space<vmem>>, vector<1x64x16xbf16>
    %32 = vector.shape_cast %31 : vector<1x64x16xbf16> to vector<64x16xbf16>
    %cst_17 = arith.constant dense<0.000000e+00> : vector<12x16xf32>
    %33 = tpu.matmul %29, %32, %cst_17 {dimension_numbers = #tpu.dot_dimension_numbers<[1], [0], [0], [1], [0, 0, 1, 1], [], []>} : vector<12x64xbf16>, vector<64x16xbf16>, vector<12x16xf32> -> vector<12x16xf32>
    %c0_18 = arith.constant 0 : index
    %c0_19 = arith.constant 0 : index
    %c0_20 = arith.constant 0 : index
    %34 = vector.load %arg6[%c0_18, %c0_19, %c0_20] : memref<4x1x16xf32, #tpu.memory_space<vmem>>, vector<1x1x16xf32>
    %35 = vector.shape_cast %34 : vector<1x1x16xf32> to vector<1x16xf32>
    %36 = vector.broadcast %35 : vector<1x16xf32> to vector<12x16xf32>
    %37 = arith.addf %33, %36 : vector<12x16xf32>
    %c0_21 = arith.constant 0 : index
    %c0_22 = arith.constant 0 : index
    %c0_23 = arith.constant 0 : index
    %38 = vector.load %arg7[%c0_21, %c0_22, %c0_23] : memref<4x64x16xbf16, #tpu.memory_space<vmem>>, vector<1x64x16xbf16>
    %39 = vector.shape_cast %38 : vector<1x64x16xbf16> to vector<64x16xbf16>
    %cst_24 = arith.constant dense<0.000000e+00> : vector<12x16xf32>
    %40 = tpu.matmul %29, %39, %cst_24 {dimension_numbers = #tpu.dot_dimension_numbers<[1], [0], [0], [1], [0, 0, 1, 1], [], []>} : vector<12x64xbf16>, vector<64x16xbf16>, vector<12x16xf32> -> vector<12x16xf32>
    %c0_25 = arith.constant 0 : index
    %c0_26 = arith.constant 0 : index
    %c0_27 = arith.constant 0 : index
    %41 = vector.load %arg8[%c0_25, %c0_26, %c0_27] : memref<4x1x16xf32, #tpu.memory_space<vmem>>, vector<1x1x16xf32>
    %42 = vector.shape_cast %41 : vector<1x1x16xf32> to vector<1x16xf32>
    %43 = vector.broadcast %42 : vector<1x16xf32> to vector<12x16xf32>
    %44 = arith.addf %40, %43 : vector<12x16xf32>
    %c0_28 = arith.constant 0 : index
    %c0_29 = arith.constant 0 : index
    %c0_30 = arith.constant 0 : index
    %45 = vector.load %arg9[%c0_28, %c0_29, %c0_30] : memref<4x64x16xbf16, #tpu.memory_space<vmem>>, vector<1x64x16xbf16>
    %46 = vector.shape_cast %45 : vector<1x64x16xbf16> to vector<64x16xbf16>
    %cst_31 = arith.constant dense<0.000000e+00> : vector<12x16xf32>
    %47 = tpu.matmul %29, %46, %cst_31 {dimension_numbers = #tpu.dot_dimension_numbers<[1], [0], [0], [1], [0, 0, 1, 1], [], []>} : vector<12x64xbf16>, vector<64x16xbf16>, vector<12x16xf32> -> vector<12x16xf32>
    %c0_32 = arith.constant 0 : index
    %c0_33 = arith.constant 0 : index
    %c0_34 = arith.constant 0 : index
    %48 = vector.load %arg10[%c0_32, %c0_33, %c0_34] : memref<4x1x16xf32, #tpu.memory_space<vmem>>, vector<1x1x16xf32>
    %49 = vector.shape_cast %48 : vector<1x1x16xf32> to vector<1x16xf32>
    %50 = vector.broadcast %49 : vector<1x16xf32> to vector<12x16xf32>
    %51 = arith.addf %47, %50 : vector<12x16xf32>
    %cst_35 = arith.constant 2.500000e-01 : f32
    %52 = vector.broadcast %cst_35 : f32 to vector<12x16xf32>
    %53 = arith.mulf %37, %52 : vector<12x16xf32>
    %54 = arith.truncf %53 : vector<12x16xf32> to vector<12x16xbf16>
    %55 = arith.truncf %44 : vector<12x16xf32> to vector<12x16xbf16>
    %cst_36 = arith.constant dense<0.000000e+00> : vector<12x12xf32>
    %56 = tpu.matmul %54, %55, %cst_36 {dimension_numbers = #tpu.dot_dimension_numbers<[1], [1], [0], [0], [0, 0, 1, 0], [], []>} : vector<12x16xbf16>, vector<12x16xbf16>, vector<12x12xf32> -> vector<12x12xf32>
    %cst_37 = arith.constant dense<0xFF800000> : vector<12xf32>
    %57 = vector.multi_reduction <maximumf>, %56, %cst_37 [1] : vector<12x12xf32> to vector<12xf32>
    %58 = vector.shape_cast %57 : vector<12xf32> to vector<12x1xf32>
    %59 = vector.broadcast %58 : vector<12x1xf32> to vector<12x12xf32>
    %60 = arith.subf %56, %59 : vector<12x12xf32>
    %61 = math.exp %60 : vector<12x12xf32>
    %cst_38 = arith.constant dense<0.000000e+00> : vector<12xf32>
    %62 = vector.multi_reduction <add>, %61, %cst_38 [1] : vector<12x12xf32> to vector<12xf32>
    %63 = vector.shape_cast %62 : vector<12xf32> to vector<12x1xf32>
    %64 = tpu.reciprocal %63 {approx = true} : vector<12x1xf32> -> vector<12x1xf32>
    %65 = vector.broadcast %64 : vector<12x1xf32> to vector<12x12xf32>
    %66 = arith.mulf %61, %65 : vector<12x12xf32>
    %67 = arith.truncf %66 : vector<12x12xf32> to vector<12x12xbf16>
    %68 = arith.truncf %51 : vector<12x16xf32> to vector<12x16xbf16>
    %cst_39 = arith.constant dense<0.000000e+00> : vector<12x16xf32>
    %69 = tpu.matmul %67, %68, %cst_39 {dimension_numbers = #tpu.dot_dimension_numbers<[1], [0], [0], [1], [0, 0, 1, 1], [], []>} : vector<12x12xbf16>, vector<12x16xbf16>, vector<12x16xf32> -> vector<12x16xf32>
    %70 = arith.truncf %69 : vector<12x16xf32> to vector<12x16xbf16>
    %c0_40 = arith.constant 0 : index
    %c0_41 = arith.constant 0 : index
    %c0_42 = arith.constant 0 : index
    %71 = vector.load %arg11[%c0_40, %c0_41, %c0_42] : memref<4x16x64xbf16, #tpu.memory_space<vmem>>, vector<1x16x64xbf16>
    %72 = vector.shape_cast %71 : vector<1x16x64xbf16> to vector<16x64xbf16>
    %cst_43 = arith.constant dense<0.000000e+00> : vector<12x64xf32>
    %73 = tpu.matmul %70, %72, %cst_43 {dimension_numbers = #tpu.dot_dimension_numbers<[1], [0], [0], [1], [0, 0, 1, 1], [], []>} : vector<12x16xbf16>, vector<16x64xbf16>, vector<12x64xf32> -> vector<12x64xf32>
    %74 = arith.addf %30, %73 : vector<12x64xf32>
    %c1 = arith.constant 1 : index
    %c0_44 = arith.constant 0 : index
    %c0_45 = arith.constant 0 : index
    %75 = vector.load %arg5[%c1, %c0_44, %c0_45] : memref<4x64x16xbf16, #tpu.memory_space<vmem>>, vector<1x64x16xbf16>
    %76 = vector.shape_cast %75 : vector<1x64x16xbf16> to vector<64x16xbf16>
    %cst_46 = arith.constant dense<0.000000e+00> : vector<12x16xf32>
    %77 = tpu.matmul %29, %76, %cst_46 {dimension_numbers = #tpu.dot_dimension_numbers<[1], [0], [0], [1], [0, 0, 1, 1], [], []>} : vector<12x64xbf16>, vector<64x16xbf16>, vector<12x16xf32> -> vector<12x16xf32>
    %c1_47 = arith.constant 1 : index
    %c0_48 = arith.constant 0 : index
    %c0_49 = arith.constant 0 : index
    %78 = vector.load %arg6[%c1_47, %c0_48, %c0_49] : memref<4x1x16xf32, #tpu.memory_space<vmem>>, vector<1x1x16xf32>
    %79 = vector.shape_cast %78 : vector<1x1x16xf32> to vector<1x16xf32>
    %80 = vector.broadcast %79 : vector<1x16xf32> to vector<12x16xf32>
    %81 = arith.addf %77, %80 : vector<12x16xf32>
    %c1_50 = arith.constant 1 : index
    %c0_51 = arith.constant 0 : index
    %c0_52 = arith.constant 0 : index
    %82 = vector.load %arg7[%c1_50, %c0_51, %c0_52] : memref<4x64x16xbf16, #tpu.memory_space<vmem>>, vector<1x64x16xbf16>
    %83 = vector.shape_cast %82 : vector<1x64x16xbf16> to vector<64x16xbf16>
    %cst_53 = arith.constant dense<0.000000e+00> : vector<12x16xf32>
    %84 = tpu.matmul %29, %83, %cst_53 {dimension_numbers = #tpu.dot_dimension_numbers<[1], [0], [0], [1], [0, 0, 1, 1], [], []>} : vector<12x64xbf16>, vector<64x16xbf16>, vector<12x16xf32> -> vector<12x16xf32>
    %c1_54 = arith.constant 1 : index
    %c0_55 = arith.constant 0 : index
    %c0_56 = arith.constant 0 : index
    %85 = vector.load %arg8[%c1_54, %c0_55, %c0_56] : memref<4x1x16xf32, #tpu.memory_space<vmem>>, vector<1x1x16xf32>
    %86 = vector.shape_cast %85 : vector<1x1x16xf32> to vector<1x16xf32>
    %87 = vector.broadcast %86 : vector<1x16xf32> to vector<12x16xf32>
    %88 = arith.addf %84, %87 : vector<12x16xf32>
    %c1_57 = arith.constant 1 : index
    %c0_58 = arith.constant 0 : index
    %c0_59 = arith.constant 0 : index
    %89 = vector.load %arg9[%c1_57, %c0_58, %c0_59] : memref<4x64x16xbf16, #tpu.memory_space<vmem>>, vector<1x64x16xbf16>
    %90 = vector.shape_cast %89 : vector<1x64x16xbf16> to vector<64x16xbf16>
    %cst_60 = arith.constant dense<0.000000e+00> : vector<12x16xf32>
    %91 = tpu.matmul %29, %90, %cst_60 {dimension_numbers = #tpu.dot_dimension_numbers<[1], [0], [0], [1], [0, 0, 1, 1], [], []>} : vector<12x64xbf16>, vector<64x16xbf16>, vector<12x16xf32> -> vector<12x16xf32>
    %c1_61 = arith.constant 1 : index
    %c0_62 = arith.constant 0 : index
    %c0_63 = arith.constant 0 : index
    %92 = vector.load %arg10[%c1_61, %c0_62, %c0_63] : memref<4x1x16xf32, #tpu.memory_space<vmem>>, vector<1x1x16xf32>
    %93 = vector.shape_cast %92 : vector<1x1x16xf32> to vector<1x16xf32>
    %94 = vector.broadcast %93 : vector<1x16xf32> to vector<12x16xf32>
    %95 = arith.addf %91, %94 : vector<12x16xf32>
    %cst_64 = arith.constant 2.500000e-01 : f32
    %96 = vector.broadcast %cst_64 : f32 to vector<12x16xf32>
    %97 = arith.mulf %81, %96 : vector<12x16xf32>
    %98 = arith.truncf %97 : vector<12x16xf32> to vector<12x16xbf16>
    %99 = arith.truncf %88 : vector<12x16xf32> to vector<12x16xbf16>
    %cst_65 = arith.constant dense<0.000000e+00> : vector<12x12xf32>
    %100 = tpu.matmul %98, %99, %cst_65 {dimension_numbers = #tpu.dot_dimension_numbers<[1], [1], [0], [0], [0, 0, 1, 0], [], []>} : vector<12x16xbf16>, vector<12x16xbf16>, vector<12x12xf32> -> vector<12x12xf32>
    %cst_66 = arith.constant dense<0xFF800000> : vector<12xf32>
    %101 = vector.multi_reduction <maximumf>, %100, %cst_66 [1] : vector<12x12xf32> to vector<12xf32>
    %102 = vector.shape_cast %101 : vector<12xf32> to vector<12x1xf32>
    %103 = vector.broadcast %102 : vector<12x1xf32> to vector<12x12xf32>
    %104 = arith.subf %100, %103 : vector<12x12xf32>
    %105 = math.exp %104 : vector<12x12xf32>
    %cst_67 = arith.constant dense<0.000000e+00> : vector<12xf32>
    %106 = vector.multi_reduction <add>, %105, %cst_67 [1] : vector<12x12xf32> to vector<12xf32>
    %107 = vector.shape_cast %106 : vector<12xf32> to vector<12x1xf32>
    %108 = tpu.reciprocal %107 {approx = true} : vector<12x1xf32> -> vector<12x1xf32>
    %109 = vector.broadcast %108 : vector<12x1xf32> to vector<12x12xf32>
    %110 = arith.mulf %105, %109 : vector<12x12xf32>
    %111 = arith.truncf %110 : vector<12x12xf32> to vector<12x12xbf16>
    %112 = arith.truncf %95 : vector<12x16xf32> to vector<12x16xbf16>
    %cst_68 = arith.constant dense<0.000000e+00> : vector<12x16xf32>
    %113 = tpu.matmul %111, %112, %cst_68 {dimension_numbers = #tpu.dot_dimension_numbers<[1], [0], [0], [1], [0, 0, 1, 1], [], []>} : vector<12x12xbf16>, vector<12x16xbf16>, vector<12x16xf32> -> vector<12x16xf32>
    %114 = arith.truncf %113 : vector<12x16xf32> to vector<12x16xbf16>
    %c1_69 = arith.constant 1 : index
    %c0_70 = arith.constant 0 : index
    %c0_71 = arith.constant 0 : index
    %115 = vector.load %arg11[%c1_69, %c0_70, %c0_71] : memref<4x16x64xbf16, #tpu.memory_space<vmem>>, vector<1x16x64xbf16>
    %116 = vector.shape_cast %115 : vector<1x16x64xbf16> to vector<16x64xbf16>
    %cst_72 = arith.constant dense<0.000000e+00> : vector<12x64xf32>
    %117 = tpu.matmul %114, %116, %cst_72 {dimension_numbers = #tpu.dot_dimension_numbers<[1], [0], [0], [1], [0, 0, 1, 1], [], []>} : vector<12x16xbf16>, vector<16x64xbf16>, vector<12x64xf32> -> vector<12x64xf32>
    %118 = arith.addf %74, %117 : vector<12x64xf32>
    %c2 = arith.constant 2 : index
    %c0_73 = arith.constant 0 : index
    %c0_74 = arith.constant 0 : index
    %119 = vector.load %arg5[%c2, %c0_73, %c0_74] : memref<4x64x16xbf16, #tpu.memory_space<vmem>>, vector<1x64x16xbf16>
    %120 = vector.shape_cast %119 : vector<1x64x16xbf16> to vector<64x16xbf16>
    %cst_75 = arith.constant dense<0.000000e+00> : vector<12x16xf32>
    %121 = tpu.matmul %29, %120, %cst_75 {dimension_numbers = #tpu.dot_dimension_numbers<[1], [0], [0], [1], [0, 0, 1, 1], [], []>} : vector<12x64xbf16>, vector<64x16xbf16>, vector<12x16xf32> -> vector<12x16xf32>
    %c2_76 = arith.constant 2 : index
    %c0_77 = arith.constant 0 : index
    %c0_78 = arith.constant 0 : index
    %122 = vector.load %arg6[%c2_76, %c0_77, %c0_78] : memref<4x1x16xf32, #tpu.memory_space<vmem>>, vector<1x1x16xf32>
    %123 = vector.shape_cast %122 : vector<1x1x16xf32> to vector<1x16xf32>
    %124 = vector.broadcast %123 : vector<1x16xf32> to vector<12x16xf32>
    %125 = arith.addf %121, %124 : vector<12x16xf32>
    %c2_79 = arith.constant 2 : index
    %c0_80 = arith.constant 0 : index
    %c0_81 = arith.constant 0 : index
    %126 = vector.load %arg7[%c2_79, %c0_80, %c0_81] : memref<4x64x16xbf16, #tpu.memory_space<vmem>>, vector<1x64x16xbf16>
    %127 = vector.shape_cast %126 : vector<1x64x16xbf16> to vector<64x16xbf16>
    %cst_82 = arith.constant dense<0.000000e+00> : vector<12x16xf32>
    %128 = tpu.matmul %29, %127, %cst_82 {dimension_numbers = #tpu.dot_dimension_numbers<[1], [0], [0], [1], [0, 0, 1, 1], [], []>} : vector<12x64xbf16>, vector<64x16xbf16>, vector<12x16xf32> -> vector<12x16xf32>
    %c2_83 = arith.constant 2 : index
    %c0_84 = arith.constant 0 : index
    %c0_85 = arith.constant 0 : index
    %129 = vector.load %arg8[%c2_83, %c0_84, %c0_85] : memref<4x1x16xf32, #tpu.memory_space<vmem>>, vector<1x1x16xf32>
    %130 = vector.shape_cast %129 : vector<1x1x16xf32> to vector<1x16xf32>
    %131 = vector.broadcast %130 : vector<1x16xf32> to vector<12x16xf32>
    %132 = arith.addf %128, %131 : vector<12x16xf32>
    %c2_86 = arith.constant 2 : index
    %c0_87 = arith.constant 0 : index
    %c0_88 = arith.constant 0 : index
    %133 = vector.load %arg9[%c2_86, %c0_87, %c0_88] : memref<4x64x16xbf16, #tpu.memory_space<vmem>>, vector<1x64x16xbf16>
    %134 = vector.shape_cast %133 : vector<1x64x16xbf16> to vector<64x16xbf16>
    %cst_89 = arith.constant dense<0.000000e+00> : vector<12x16xf32>
    %135 = tpu.matmul %29, %134, %cst_89 {dimension_numbers = #tpu.dot_dimension_numbers<[1], [0], [0], [1], [0, 0, 1, 1], [], []>} : vector<12x64xbf16>, vector<64x16xbf16>, vector<12x16xf32> -> vector<12x16xf32>
    %c2_90 = arith.constant 2 : index
    %c0_91 = arith.constant 0 : index
    %c0_92 = arith.constant 0 : index
    %136 = vector.load %arg10[%c2_90, %c0_91, %c0_92] : memref<4x1x16xf32, #tpu.memory_space<vmem>>, vector<1x1x16xf32>
    %137 = vector.shape_cast %136 : vector<1x1x16xf32> to vector<1x16xf32>
    %138 = vector.broadcast %137 : vector<1x16xf32> to vector<12x16xf32>
    %139 = arith.addf %135, %138 : vector<12x16xf32>
    %cst_93 = arith.constant 2.500000e-01 : f32
    %140 = vector.broadcast %cst_93 : f32 to vector<12x16xf32>
    %141 = arith.mulf %125, %140 : vector<12x16xf32>
    %142 = arith.truncf %141 : vector<12x16xf32> to vector<12x16xbf16>
    %143 = arith.truncf %132 : vector<12x16xf32> to vector<12x16xbf16>
    %cst_94 = arith.constant dense<0.000000e+00> : vector<12x12xf32>
    %144 = tpu.matmul %142, %143, %cst_94 {dimension_numbers = #tpu.dot_dimension_numbers<[1], [1], [0], [0], [0, 0, 1, 0], [], []>} : vector<12x16xbf16>, vector<12x16xbf16>, vector<12x12xf32> -> vector<12x12xf32>
    %cst_95 = arith.constant dense<0xFF800000> : vector<12xf32>
    %145 = vector.multi_reduction <maximumf>, %144, %cst_95 [1] : vector<12x12xf32> to vector<12xf32>
    %146 = vector.shape_cast %145 : vector<12xf32> to vector<12x1xf32>
    %147 = vector.broadcast %146 : vector<12x1xf32> to vector<12x12xf32>
    %148 = arith.subf %144, %147 : vector<12x12xf32>
    %149 = math.exp %148 : vector<12x12xf32>
    %cst_96 = arith.constant dense<0.000000e+00> : vector<12xf32>
    %150 = vector.multi_reduction <add>, %149, %cst_96 [1] : vector<12x12xf32> to vector<12xf32>
    %151 = vector.shape_cast %150 : vector<12xf32> to vector<12x1xf32>
    %152 = tpu.reciprocal %151 {approx = true} : vector<12x1xf32> -> vector<12x1xf32>
    %153 = vector.broadcast %152 : vector<12x1xf32> to vector<12x12xf32>
    %154 = arith.mulf %149, %153 : vector<12x12xf32>
    %155 = arith.truncf %154 : vector<12x12xf32> to vector<12x12xbf16>
    %156 = arith.truncf %139 : vector<12x16xf32> to vector<12x16xbf16>
    %cst_97 = arith.constant dense<0.000000e+00> : vector<12x16xf32>
    %157 = tpu.matmul %155, %156, %cst_97 {dimension_numbers = #tpu.dot_dimension_numbers<[1], [0], [0], [1], [0, 0, 1, 1], [], []>} : vector<12x12xbf16>, vector<12x16xbf16>, vector<12x16xf32> -> vector<12x16xf32>
    %158 = arith.truncf %157 : vector<12x16xf32> to vector<12x16xbf16>
    %c2_98 = arith.constant 2 : index
    %c0_99 = arith.constant 0 : index
    %c0_100 = arith.constant 0 : index
    %159 = vector.load %arg11[%c2_98, %c0_99, %c0_100] : memref<4x16x64xbf16, #tpu.memory_space<vmem>>, vector<1x16x64xbf16>
    %160 = vector.shape_cast %159 : vector<1x16x64xbf16> to vector<16x64xbf16>
    %cst_101 = arith.constant dense<0.000000e+00> : vector<12x64xf32>
    %161 = tpu.matmul %158, %160, %cst_101 {dimension_numbers = #tpu.dot_dimension_numbers<[1], [0], [0], [1], [0, 0, 1, 1], [], []>} : vector<12x16xbf16>, vector<16x64xbf16>, vector<12x64xf32> -> vector<12x64xf32>
    %162 = arith.addf %118, %161 : vector<12x64xf32>
    %c3 = arith.constant 3 : index
    %c0_102 = arith.constant 0 : index
    %c0_103 = arith.constant 0 : index
    %163 = vector.load %arg5[%c3, %c0_102, %c0_103] : memref<4x64x16xbf16, #tpu.memory_space<vmem>>, vector<1x64x16xbf16>
    %164 = vector.shape_cast %163 : vector<1x64x16xbf16> to vector<64x16xbf16>
    %cst_104 = arith.constant dense<0.000000e+00> : vector<12x16xf32>
    %165 = tpu.matmul %29, %164, %cst_104 {dimension_numbers = #tpu.dot_dimension_numbers<[1], [0], [0], [1], [0, 0, 1, 1], [], []>} : vector<12x64xbf16>, vector<64x16xbf16>, vector<12x16xf32> -> vector<12x16xf32>
    %c3_105 = arith.constant 3 : index
    %c0_106 = arith.constant 0 : index
    %c0_107 = arith.constant 0 : index
    %166 = vector.load %arg6[%c3_105, %c0_106, %c0_107] : memref<4x1x16xf32, #tpu.memory_space<vmem>>, vector<1x1x16xf32>
    %167 = vector.shape_cast %166 : vector<1x1x16xf32> to vector<1x16xf32>
    %168 = vector.broadcast %167 : vector<1x16xf32> to vector<12x16xf32>
    %169 = arith.addf %165, %168 : vector<12x16xf32>
    %c3_108 = arith.constant 3 : index
    %c0_109 = arith.constant 0 : index
    %c0_110 = arith.constant 0 : index
    %170 = vector.load %arg7[%c3_108, %c0_109, %c0_110] : memref<4x64x16xbf16, #tpu.memory_space<vmem>>, vector<1x64x16xbf16>
    %171 = vector.shape_cast %170 : vector<1x64x16xbf16> to vector<64x16xbf16>
    %cst_111 = arith.constant dense<0.000000e+00> : vector<12x16xf32>
    %172 = tpu.matmul %29, %171, %cst_111 {dimension_numbers = #tpu.dot_dimension_numbers<[1], [0], [0], [1], [0, 0, 1, 1], [], []>} : vector<12x64xbf16>, vector<64x16xbf16>, vector<12x16xf32> -> vector<12x16xf32>
    %c3_112 = arith.constant 3 : index
    %c0_113 = arith.constant 0 : index
    %c0_114 = arith.constant 0 : index
    %173 = vector.load %arg8[%c3_112, %c0_113, %c0_114] : memref<4x1x16xf32, #tpu.memory_space<vmem>>, vector<1x1x16xf32>
    %174 = vector.shape_cast %173 : vector<1x1x16xf32> to vector<1x16xf32>
    %175 = vector.broadcast %174 : vector<1x16xf32> to vector<12x16xf32>
    %176 = arith.addf %172, %175 : vector<12x16xf32>
    %c3_115 = arith.constant 3 : index
    %c0_116 = arith.constant 0 : index
    %c0_117 = arith.constant 0 : index
    %177 = vector.load %arg9[%c3_115, %c0_116, %c0_117] : memref<4x64x16xbf16, #tpu.memory_space<vmem>>, vector<1x64x16xbf16>
    %178 = vector.shape_cast %177 : vector<1x64x16xbf16> to vector<64x16xbf16>
    %cst_118 = arith.constant dense<0.000000e+00> : vector<12x16xf32>
    %179 = tpu.matmul %29, %178, %cst_118 {dimension_numbers = #tpu.dot_dimension_numbers<[1], [0], [0], [1], [0, 0, 1, 1], [], []>} : vector<12x64xbf16>, vector<64x16xbf16>, vector<12x16xf32> -> vector<12x16xf32>
    %c3_119 = arith.constant 3 : index
    %c0_120 = arith.constant 0 : index
    %c0_121 = arith.constant 0 : index
    %180 = vector.load %arg10[%c3_119, %c0_120, %c0_121] : memref<4x1x16xf32, #tpu.memory_space<vmem>>, vector<1x1x16xf32>
    %181 = vector.shape_cast %180 : vector<1x1x16xf32> to vector<1x16xf32>
    %182 = vector.broadcast %181 : vector<1x16xf32> to vector<12x16xf32>
    %183 = arith.addf %179, %182 : vector<12x16xf32>
    %cst_122 = arith.constant 2.500000e-01 : f32
    %184 = vector.broadcast %cst_122 : f32 to vector<12x16xf32>
    %185 = arith.mulf %169, %184 : vector<12x16xf32>
    %186 = arith.truncf %185 : vector<12x16xf32> to vector<12x16xbf16>
    %187 = arith.truncf %176 : vector<12x16xf32> to vector<12x16xbf16>
    %cst_123 = arith.constant dense<0.000000e+00> : vector<12x12xf32>
    %188 = tpu.matmul %186, %187, %cst_123 {dimension_numbers = #tpu.dot_dimension_numbers<[1], [1], [0], [0], [0, 0, 1, 0], [], []>} : vector<12x16xbf16>, vector<12x16xbf16>, vector<12x12xf32> -> vector<12x12xf32>
    %cst_124 = arith.constant dense<0xFF800000> : vector<12xf32>
    %189 = vector.multi_reduction <maximumf>, %188, %cst_124 [1] : vector<12x12xf32> to vector<12xf32>
    %190 = vector.shape_cast %189 : vector<12xf32> to vector<12x1xf32>
    %191 = vector.broadcast %190 : vector<12x1xf32> to vector<12x12xf32>
    %192 = arith.subf %188, %191 : vector<12x12xf32>
    %193 = math.exp %192 : vector<12x12xf32>
    %cst_125 = arith.constant dense<0.000000e+00> : vector<12xf32>
    %194 = vector.multi_reduction <add>, %193, %cst_125 [1] : vector<12x12xf32> to vector<12xf32>
    %195 = vector.shape_cast %194 : vector<12xf32> to vector<12x1xf32>
    %196 = tpu.reciprocal %195 {approx = true} : vector<12x1xf32> -> vector<12x1xf32>
    %197 = vector.broadcast %196 : vector<12x1xf32> to vector<12x12xf32>
    %198 = arith.mulf %193, %197 : vector<12x12xf32>
    %199 = arith.truncf %198 : vector<12x12xf32> to vector<12x12xbf16>
    %200 = arith.truncf %183 : vector<12x16xf32> to vector<12x16xbf16>
    %cst_126 = arith.constant dense<0.000000e+00> : vector<12x16xf32>
    %201 = tpu.matmul %199, %200, %cst_126 {dimension_numbers = #tpu.dot_dimension_numbers<[1], [0], [0], [1], [0, 0, 1, 1], [], []>} : vector<12x12xbf16>, vector<12x16xbf16>, vector<12x16xf32> -> vector<12x16xf32>
    %202 = arith.truncf %201 : vector<12x16xf32> to vector<12x16xbf16>
    %c3_127 = arith.constant 3 : index
    %c0_128 = arith.constant 0 : index
    %c0_129 = arith.constant 0 : index
    %203 = vector.load %arg11[%c3_127, %c0_128, %c0_129] : memref<4x16x64xbf16, #tpu.memory_space<vmem>>, vector<1x16x64xbf16>
    %204 = vector.shape_cast %203 : vector<1x16x64xbf16> to vector<16x64xbf16>
    %cst_130 = arith.constant dense<0.000000e+00> : vector<12x64xf32>
    %205 = tpu.matmul %202, %204, %cst_130 {dimension_numbers = #tpu.dot_dimension_numbers<[1], [0], [0], [1], [0, 0, 1, 1], [], []>} : vector<12x16xbf16>, vector<16x64xbf16>, vector<12x64xf32> -> vector<12x64xf32>
    %206 = arith.addf %162, %205 : vector<12x64xf32>
    %207 = arith.addf %4, %206 : vector<12x64xf32>
    %c0_131 = arith.constant 0 : index
    %c0_132 = arith.constant 0 : index
    %208 = vector.load %arg12[%c0_131, %c0_132] : memref<1x64xf32, #tpu.memory_space<vmem>>, vector<1x64xf32>
    %209 = vector.broadcast %208 : vector<1x64xf32> to vector<12x64xf32>
    %210 = arith.addf %207, %209 : vector<12x64xf32>
    %c0_133 = arith.constant 0 : index
    %c0_134 = arith.constant 0 : index
    %211 = vector.load %arg13[%c0_133, %c0_134] : memref<1x64xf32, #tpu.memory_space<vmem>>, vector<1x64xf32>
    %c0_135 = arith.constant 0 : index
    %c0_136 = arith.constant 0 : index
    %212 = vector.load %arg14[%c0_135, %c0_136] : memref<1x64xf32, #tpu.memory_space<vmem>>, vector<1x64xf32>
    %cst_137 = arith.constant dense<0.000000e+00> : vector<12xf32>
    %213 = vector.multi_reduction <add>, %210, %cst_137 [1] : vector<12x64xf32> to vector<12xf32>
    %214 = vector.shape_cast %213 : vector<12xf32> to vector<12x1xf32>
    %cst_138 = arith.constant 6.400000e+01 : f32
    %215 = vector.broadcast %cst_138 : f32 to vector<12x1xf32>
    %216 = arith.divf %214, %215 : vector<12x1xf32>
    %217 = vector.broadcast %216 : vector<12x1xf32> to vector<12x64xf32>
    %218 = arith.subf %210, %217 : vector<12x64xf32>
    %219 = arith.mulf %218, %218 : vector<12x64xf32>
    %cst_139 = arith.constant dense<0.000000e+00> : vector<12xf32>
    %220 = vector.multi_reduction <add>, %219, %cst_139 [1] : vector<12x64xf32> to vector<12xf32>
    %221 = vector.shape_cast %220 : vector<12xf32> to vector<12x1xf32>
    %cst_140 = arith.constant 6.400000e+01 : f32
    %222 = vector.broadcast %cst_140 : f32 to vector<12x1xf32>
    %223 = arith.divf %221, %222 : vector<12x1xf32>
    %224 = vector.broadcast %216 : vector<12x1xf32> to vector<12x64xf32>
    %225 = arith.subf %210, %224 : vector<12x64xf32>
    %cst_141 = arith.constant 9.99999974E-6 : f32
    %226 = vector.broadcast %cst_141 : f32 to vector<12x1xf32>
    %227 = arith.addf %223, %226 : vector<12x1xf32>
    %228 = math.rsqrt %227 : vector<12x1xf32>
    %229 = vector.broadcast %228 : vector<12x1xf32> to vector<12x64xf32>
    %230 = arith.mulf %225, %229 : vector<12x64xf32>
    %231 = vector.broadcast %211 : vector<1x64xf32> to vector<12x64xf32>
    %232 = arith.mulf %230, %231 : vector<12x64xf32>
    %233 = vector.broadcast %212 : vector<1x64xf32> to vector<12x64xf32>
    %234 = arith.addf %232, %233 : vector<12x64xf32>
    %235 = arith.truncf %234 : vector<12x64xf32> to vector<12x64xbf16>
    %c0_142 = arith.constant 0 : index
    %c0_143 = arith.constant 0 : index
    %236 = vector.load %arg15[%c0_142, %c0_143] : memref<64x256xbf16, #tpu.memory_space<vmem>>, vector<64x256xbf16>
    %cst_144 = arith.constant dense<0.000000e+00> : vector<12x256xf32>
    %237 = tpu.matmul %235, %236, %cst_144 {dimension_numbers = #tpu.dot_dimension_numbers<[1], [0], [0], [1], [0, 0, 1, 1], [], []>} : vector<12x64xbf16>, vector<64x256xbf16>, vector<12x256xf32> -> vector<12x256xf32>
    %c0_145 = arith.constant 0 : index
    %c0_146 = arith.constant 0 : index
    %238 = vector.load %arg16[%c0_145, %c0_146] : memref<1x256xf32, #tpu.memory_space<vmem>>, vector<1x256xf32>
    %239 = vector.broadcast %238 : vector<1x256xf32> to vector<12x256xf32>
    %240 = arith.addf %237, %239 : vector<12x256xf32>
    %cst_147 = arith.constant 1.702000e+00 : f32
    %241 = vector.broadcast %cst_147 : f32 to vector<12x256xf32>
    %242 = arith.mulf %241, %240 : vector<12x256xf32>
    %243 = arith.negf %242 : vector<12x256xf32>
    %244 = math.exp %243 : vector<12x256xf32>
    %cst_148 = arith.constant 1.000000e+00 : f32
    %245 = vector.broadcast %cst_148 : f32 to vector<12x256xf32>
    %246 = arith.addf %245, %244 : vector<12x256xf32>
    %247 = arith.divf %245, %246 : vector<12x256xf32>
    %248 = arith.mulf %240, %247 : vector<12x256xf32>
    %249 = arith.truncf %248 : vector<12x256xf32> to vector<12x256xbf16>
    %c0_149 = arith.constant 0 : index
    %c0_150 = arith.constant 0 : index
    %250 = vector.load %arg17[%c0_149, %c0_150] : memref<256x64xbf16, #tpu.memory_space<vmem>>, vector<256x64xbf16>
    %cst_151 = arith.constant dense<0.000000e+00> : vector<12x64xf32>
    %251 = tpu.matmul %249, %250, %cst_151 {dimension_numbers = #tpu.dot_dimension_numbers<[1], [0], [0], [1], [0, 0, 1, 1], [], []>} : vector<12x256xbf16>, vector<256x64xbf16>, vector<12x64xf32> -> vector<12x64xf32>
    %252 = arith.addf %210, %251 : vector<12x64xf32>
    %c0_152 = arith.constant 0 : index
    %c0_153 = arith.constant 0 : index
    %253 = vector.load %arg18[%c0_152, %c0_153] : memref<1x64xf32, #tpu.memory_space<vmem>>, vector<1x64xf32>
    %254 = vector.broadcast %253 : vector<1x64xf32> to vector<12x64xf32>
    %255 = arith.addf %252, %254 : vector<12x64xf32>
    %256 = vector.extract_strided_slice %255 {offsets = [0, 0], sizes = [8, 64], strides = [1, 1]} : vector<12x64xf32> to vector<8x64xf32>
    %c0_154 = arith.constant 0 : index
    %c0_155 = arith.constant 0 : index
    %c0_156 = arith.constant 0 : index
    %257 = vector.load %arg19[%c0_154, %c0_155, %c0_156] : memref<1x8x64xf32, #tpu.memory_space<vmem>>, vector<1x8x64xf32>
    %258 = vector.shape_cast %257 : vector<1x8x64xf32> to vector<8x64xf32>
    %259 = vector.shape_cast %256 : vector<8x64xf32> to vector<1x8x64xf32>
    tpu.vector_store %arg19[%c0_154, %c0_155, %c0_156], %259 {strides = array<i32>} : memref<1x8x64xf32, #tpu.memory_space<vmem>>, vector<1x8x64xf32>,
    return
  }
  func.func @transform_0(%arg0: i32) -> (i32, i32, i32) {
    %c0_i32 = arith.constant 0 : i32
    %c0_i32_0 = arith.constant 0 : i32
    %c0_i32_1 = arith.constant 0 : i32
    return %arg0, %c0_i32, %c0_i32_0 : i32, i32, i32
  }
  func.func @transform_1(%arg0: i32) -> (i32, i32, i32) {
    %c0_i32 = arith.constant 0 : i32
    %c0_i32_0 = arith.constant 0 : i32
    %c0_i32_1 = arith.constant 0 : i32
    return %arg0, %c0_i32, %c0_i32_0 : i32, i32, i32
  }
  func.func @transform_2(%arg0: i32) -> (i32, i32) {
    %c0_i32 = arith.constant 0 : i32
    %c0_i32_0 = arith.constant 0 : i32
    %c0_i32_1 = arith.constant 0 : i32
    return %c0_i32, %c0_i32_0 : i32, i32
  }
  func.func @transform_3(%arg0: i32) -> (i32, i32) {
    %c0_i32 = arith.constant 0 : i32
    %c0_i32_0 = arith.constant 0 : i32
    %c0_i32_1 = arith.constant 0 : i32
    return %c0_i32, %c0_i32_0 : i32, i32
  }
  func.func @transform_4(%arg0: i32) -> (i32, i32, i32) {
    %c0_i32 = arith.constant 0 : i32
    %c0_i32_0 = arith.constant 0 : i32
    %c0_i32_1 = arith.constant 0 : i32
    %c0_i32_2 = arith.constant 0 : i32
    return %c0_i32, %c0_i32_0, %c0_i32_1 : i32, i32, i32
  }
  func.func @transform_5(%arg0: i32) -> (i32, i32, i32) {
    %c0_i32 = arith.constant 0 : i32
    %c0_i32_0 = arith.constant 0 : i32
    %c0_i32_1 = arith.constant 0 : i32
    %c0_i32_2 = arith.constant 0 : i32
    return %c0_i32, %c0_i32_0, %c0_i32_1 : i32, i32, i32
  }
  func.func @transform_6(%arg0: i32) -> (i32, i32, i32) {
    %c0_i32 = arith.constant 0 : i32
    %c0_i32_0 = arith.constant 0 : i32
    %c0_i32_1 = arith.constant 0 : i32
    %c0_i32_2 = arith.constant 0 : i32
    return %c0_i32, %c0_i32_0, %c0_i32_1 : i32, i32, i32
  }
  func.func @transform_7(%arg0: i32) -> (i32, i32, i32) {
    %c0_i32 = arith.constant 0 : i32
    %c0_i32_0 = arith.constant 0 : i32
    %c0_i32_1 = arith.constant 0 : i32
    %c0_i32_2 = arith.constant 0 : i32
    return %c0_i32, %c0_i32_0, %c0_i32_1 : i32, i32, i32
  }
  func.func @transform_8(%arg0: i32) -> (i32, i32, i32) {
    %c0_i32 = arith.constant 0 : i32
    %c0_i32_0 = arith.constant 0 : i32
    %c0_i32_1 = arith.constant 0 : i32
    %c0_i32_2 = arith.constant 0 : i32
    return %c0_i32, %c0_i32_0, %c0_i32_1 : i32, i32, i32
  }
  func.func @transform_9(%arg0: i32) -> (i32, i32, i32) {
    %c0_i32 = arith.constant 0 : i32
    %c0_i32_0 = arith.constant 0 : i32
    %c0_i32_1 = arith.constant 0 : i32
    %c0_i32_2 = arith.constant 0 : i32
    return %c0_i32, %c0_i32_0, %c0_i32_1 : i32, i32, i32
  }
  func.func @transform_10(%arg0: i32) -> (i32, i32, i32) {
    %c0_i32 = arith.constant 0 : i32
    %c0_i32_0 = arith.constant 0 : i32
    %c0_i32_1 = arith.constant 0 : i32
    %c0_i32_2 = arith.constant 0 : i32
    return %c0_i32, %c0_i32_0, %c0_i32_1 : i32, i32, i32
  }
  func.func @transform_11(%arg0: i32) -> (i32, i32) {
    %c0_i32 = arith.constant 0 : i32
    %c0_i32_0 = arith.constant 0 : i32
    %c0_i32_1 = arith.constant 0 : i32
    return %c0_i32, %c0_i32_0 : i32, i32
  }
  func.func @transform_12(%arg0: i32) -> (i32, i32) {
    %c0_i32 = arith.constant 0 : i32
    %c0_i32_0 = arith.constant 0 : i32
    %c0_i32_1 = arith.constant 0 : i32
    return %c0_i32, %c0_i32_0 : i32, i32
  }
  func.func @transform_13(%arg0: i32) -> (i32, i32) {
    %c0_i32 = arith.constant 0 : i32
    %c0_i32_0 = arith.constant 0 : i32
    %c0_i32_1 = arith.constant 0 : i32
    return %c0_i32, %c0_i32_0 : i32, i32
  }
  func.func @transform_14(%arg0: i32) -> (i32, i32) {
    %c0_i32 = arith.constant 0 : i32
    %c0_i32_0 = arith.constant 0 : i32
    %c0_i32_1 = arith.constant 0 : i32
    return %c0_i32, %c0_i32_0 : i32, i32
  }
  func.func @transform_15(%arg0: i32) -> (i32, i32) {
    %c0_i32 = arith.constant 0 : i32
    %c0_i32_0 = arith.constant 0 : i32
    %c0_i32_1 = arith.constant 0 : i32
    return %c0_i32, %c0_i32_0 : i32, i32
  }
  func.func @transform_16(%arg0: i32) -> (i32, i32) {
    %c0_i32 = arith.constant 0 : i32
    %c0_i32_0 = arith.constant 0 : i32
    %c0_i32_1 = arith.constant 0 : i32
    return %c0_i32, %c0_i32_0 : i32, i32
  }
  func.func @transform_17(%arg0: i32) -> (i32, i32) {
    %c0_i32 = arith.constant 0 : i32
    %c0_i32_0 = arith.constant 0 : i32
    %c0_i32_1 = arith.constant 0 : i32
    return %c0_i32, %c0_i32_0 : i32, i32
  }
  func.func @transform_18(%arg0: i32) -> (i32, i32, i32) {
    %c0_i32 = arith.constant 0 : i32
    %c0_i32_0 = arith.constant 0 : i32
    %c0_i32_1 = arith.constant 0 : i32
    return %arg0, %c0_i32, %c0_i32_0 : i32, i32, i32
  }
}

module attributes {stable_mosaic.version = 11 : i64} {
  func.func @_cavpt_kernel(%arg0: i32, %arg1: memref<1x5x32xf32, #tpu.memory_space<vmem>>, %arg2: memref<1x8x64xf32, #tpu.memory_space<vmem>>, %arg3: memref<10x64xf32, #tpu.memory_space<vmem>>, %arg4: memref<32x64xbf16, #tpu.memory_space<vmem>>, %arg5: memref<1x64xf32, #tpu.memory_space<vmem>>, %arg6: memref<64x32xbf16, #tpu.memory_space<vmem>>, %arg7: memref<64x32xbf16, #tpu.memory_space<vmem>>, %arg8: memref<64x64xbf16, #tpu.memory_space<vmem>>, %arg9: memref<1x64xf32, #tpu.memory_space<vmem>>, %arg10: memref<1x64xf32, #tpu.memory_space<vmem>>, %arg11: memref<1x64xf32, #tpu.memory_space<vmem>>, %arg12: memref<1x64xf32, #tpu.memory_space<vmem>>, %arg13: memref<1x5x64xf32, #tpu.memory_space<vmem>>, %arg14: memref<1x5x64xf32, #tpu.memory_space<vmem>>, %arg15: memref<1x5x18xf32, #tpu.memory_space<vmem>>) attributes {dimension_semantics = [#tpu.dimension_semantics<parallel>], iteration_bounds = array<i64: 2>, scalar_prefetch = 0 : i64, scratch_operands = 0 : i64, tpu.core_type = #tpu.core_type<tc>, window_params = [{transform_indices = @transform_0, window_bounds = array<i64: 1, 5, 32>}, {transform_indices = @transform_1, window_bounds = array<i64: 1, 8, 64>}, {pipeline_mode = #tpu.pipeline_mode<synchronous>, transform_indices = @transform_2, window_bounds = array<i64: 10, 64>}, {pipeline_mode = #tpu.pipeline_mode<synchronous>, transform_indices = @transform_3, window_bounds = array<i64: 32, 64>}, {pipeline_mode = #tpu.pipeline_mode<synchronous>, transform_indices = @transform_4, window_bounds = array<i64: 1, 64>}, {pipeline_mode = #tpu.pipeline_mode<synchronous>, transform_indices = @transform_5, window_bounds = array<i64: 64, 32>}, {pipeline_mode = #tpu.pipeline_mode<synchronous>, transform_indices = @transform_6, window_bounds = array<i64: 64, 32>}, {pipeline_mode = #tpu.pipeline_mode<synchronous>, transform_indices = @transform_7, window_bounds = array<i64: 64, 64>}, {pipeline_mode = #tpu.pipeline_mode<synchronous>, transform_indices = @transform_8, window_bounds = array<i64: 1, 64>}, {pipeline_mode = #tpu.pipeline_mode<synchronous>, transform_indices = @transform_9, window_bounds = array<i64: 1, 64>}, {pipeline_mode = #tpu.pipeline_mode<synchronous>, transform_indices = @transform_10, window_bounds = array<i64: 1, 64>}, {pipeline_mode = #tpu.pipeline_mode<synchronous>, transform_indices = @transform_11, window_bounds = array<i64: 1, 64>}, {transform_indices = @transform_12, window_bounds = array<i64: 1, 5, 64>}, {transform_indices = @transform_13, window_bounds = array<i64: 1, 5, 64>}, {transform_indices = @transform_14, window_bounds = array<i64: 1, 5, 18>}]} {
    %c0 = arith.constant 0 : index
    %c0_0 = arith.constant 0 : index
    %c0_1 = arith.constant 0 : index
    %0 = vector.load %arg1[%c0, %c0_0, %c0_1] : memref<1x5x32xf32, #tpu.memory_space<vmem>>, vector<1x5x32xf32>
    %1 = vector.shape_cast %0 : vector<1x5x32xf32> to vector<5x32xf32>
    %2 = arith.truncf %1 : vector<5x32xf32> to vector<5x32xbf16>
    %c0_2 = arith.constant 0 : index
    %c0_3 = arith.constant 0 : index
    %3 = vector.load %arg4[%c0_2, %c0_3] : memref<32x64xbf16, #tpu.memory_space<vmem>>, vector<32x64xbf16>
    %cst = arith.constant dense<0.000000e+00> : vector<5x64xf32>
    %4 = tpu.matmul %2, %3, %cst {dimension_numbers = #tpu.dot_dimension_numbers<[1], [0], [0], [1], [0, 0, 1, 1], [], []>} : vector<5x32xbf16>, vector<32x64xbf16>, vector<5x64xf32> -> vector<5x64xf32>
    %c0_4 = arith.constant 0 : index
    %c0_5 = arith.constant 0 : index
    %5 = vector.load %arg5[%c0_4, %c0_5] : memref<1x64xf32, #tpu.memory_space<vmem>>, vector<1x64xf32>
    %6 = vector.broadcast %5 : vector<1x64xf32> to vector<5x64xf32>
    %7 = arith.addf %4, %6 : vector<5x64xf32>
    %c0_6 = arith.constant 0 : index
    %c0_7 = arith.constant 0 : index
    %c0_8 = arith.constant 0 : index
    %8 = vector.load %arg2[%c0_6, %c0_7, %c0_8] : memref<1x8x64xf32, #tpu.memory_space<vmem>>, vector<1x8x64xf32>
    %9 = vector.shape_cast %8 : vector<1x8x64xf32> to vector<8x64xf32>
    %c0_9 = arith.constant 0 : index
    %c0_10 = arith.constant 0 : index
    %10 = vector.load %arg3[%c0_9, %c0_10] : memref<10x64xf32, #tpu.memory_space<vmem>>, vector<10x64xf32>
    %11 = tpu.concatenate %9, %10 in 0 : vector<8x64xf32>, vector<10x64xf32> -> vector<18x64xf32>
    %12 = arith.truncf %11 : vector<18x64xf32> to vector<18x64xbf16>
    %cst_11 = arith.constant 0.176776692 : f32
    %13 = vector.broadcast %cst_11 : f32 to vector<5x64xf32>
    %14 = arith.mulf %7, %13 : vector<5x64xf32>
    %15 = arith.truncf %14 : vector<5x64xf32> to vector<5x64xbf16>
    %c0_12 = arith.constant 0 : index
    %c0_13 = arith.constant 0 : index
    %16 = vector.load %arg6[%c0_12, %c0_13] : memref<64x32xbf16, #tpu.memory_space<vmem>>, vector<64x32xbf16>
    %cst_14 = arith.constant dense<0.000000e+00> : vector<5x32xf32>
    %17 = tpu.matmul %15, %16, %cst_14 {dimension_numbers = #tpu.dot_dimension_numbers<[1], [0], [0], [1], [0, 0, 1, 1], [], []>} : vector<5x64xbf16>, vector<64x32xbf16>, vector<5x32xf32> -> vector<5x32xf32>
    %c0_15 = arith.constant 0 : index
    %c0_16 = arith.constant 0 : index
    %18 = vector.load %arg7[%c0_15, %c0_16] : memref<64x32xbf16, #tpu.memory_space<vmem>>, vector<64x32xbf16>
    %cst_17 = arith.constant dense<0.000000e+00> : vector<18x32xf32>
    %19 = tpu.matmul %12, %18, %cst_17 {dimension_numbers = #tpu.dot_dimension_numbers<[1], [0], [0], [1], [0, 0, 1, 1], [], []>} : vector<18x64xbf16>, vector<64x32xbf16>, vector<18x32xf32> -> vector<18x32xf32>
    %20 = arith.truncf %17 : vector<5x32xf32> to vector<5x32xbf16>
    %21 = arith.truncf %19 : vector<18x32xf32> to vector<18x32xbf16>
    %cst_18 = arith.constant dense<0.000000e+00> : vector<5x18xf32>
    %22 = tpu.matmul %20, %21, %cst_18 {dimension_numbers = #tpu.dot_dimension_numbers<[1], [1], [0], [0], [0, 0, 1, 0], [], []>} : vector<5x32xbf16>, vector<18x32xbf16>, vector<5x18xf32> -> vector<5x18xf32>
    %cst_19 = arith.constant dense<0xFF800000> : vector<5xf32>
    %23 = vector.multi_reduction <maximumf>, %22, %cst_19 [1] : vector<5x18xf32> to vector<5xf32>
    %24 = vector.shape_cast %23 : vector<5xf32> to vector<5x1xf32>
    %25 = vector.broadcast %24 : vector<5x1xf32> to vector<5x18xf32>
    %26 = arith.subf %22, %25 : vector<5x18xf32>
    %27 = math.exp %26 : vector<5x18xf32>
    %cst_20 = arith.constant dense<0.000000e+00> : vector<5xf32>
    %28 = vector.multi_reduction <add>, %27, %cst_20 [1] : vector<5x18xf32> to vector<5xf32>
    %29 = vector.shape_cast %28 : vector<5xf32> to vector<5x1xf32>
    %30 = tpu.reciprocal %29 {approx = true} : vector<5x1xf32> -> vector<5x1xf32>
    %31 = vector.broadcast %30 : vector<5x1xf32> to vector<5x18xf32>
    %32 = arith.mulf %27, %31 : vector<5x18xf32>
    %33 = arith.truncf %32 : vector<5x18xf32> to vector<5x18xbf16>
    %cst_21 = arith.constant dense<0.000000e+00> : vector<5x64xf32>
    %34 = tpu.matmul %33, %12, %cst_21 {dimension_numbers = #tpu.dot_dimension_numbers<[1], [0], [0], [1], [0, 0, 1, 1], [], []>} : vector<5x18xbf16>, vector<18x64xbf16>, vector<5x64xf32> -> vector<5x64xf32>
    %35 = arith.truncf %34 : vector<5x64xf32> to vector<5x64xbf16>
    %c0_22 = arith.constant 0 : index
    %c0_23 = arith.constant 0 : index
    %36 = vector.load %arg8[%c0_22, %c0_23] : memref<64x64xbf16, #tpu.memory_space<vmem>>, vector<64x64xbf16>
    %cst_24 = arith.constant dense<0.000000e+00> : vector<5x64xf32>
    %37 = tpu.matmul %35, %36, %cst_24 {dimension_numbers = #tpu.dot_dimension_numbers<[1], [0], [0], [1], [0, 0, 1, 1], [], []>} : vector<5x64xbf16>, vector<64x64xbf16>, vector<5x64xf32> -> vector<5x64xf32>
    %38 = arith.addf %37, %7 : vector<5x64xf32>
    %c0_25 = arith.constant 0 : index
    %c0_26 = arith.constant 0 : index
    %39 = vector.load %arg11[%c0_25, %c0_26] : memref<1x64xf32, #tpu.memory_space<vmem>>, vector<1x64xf32>
    %c0_27 = arith.constant 0 : index
    %c0_28 = arith.constant 0 : index
    %40 = vector.load %arg12[%c0_27, %c0_28] : memref<1x64xf32, #tpu.memory_space<vmem>>, vector<1x64xf32>
    %cst_29 = arith.constant dense<0.000000e+00> : vector<5xf32>
    %41 = vector.multi_reduction <add>, %38, %cst_29 [1] : vector<5x64xf32> to vector<5xf32>
    %42 = vector.shape_cast %41 : vector<5xf32> to vector<5x1xf32>
    %cst_30 = arith.constant 6.400000e+01 : f32
    %43 = vector.broadcast %cst_30 : f32 to vector<5x1xf32>
    %44 = arith.divf %42, %43 : vector<5x1xf32>
    %45 = vector.broadcast %44 : vector<5x1xf32> to vector<5x64xf32>
    %46 = arith.subf %38, %45 : vector<5x64xf32>
    %47 = arith.mulf %46, %46 : vector<5x64xf32>
    %cst_31 = arith.constant dense<0.000000e+00> : vector<5xf32>
    %48 = vector.multi_reduction <add>, %47, %cst_31 [1] : vector<5x64xf32> to vector<5xf32>
    %49 = vector.shape_cast %48 : vector<5xf32> to vector<5x1xf32>
    %cst_32 = arith.constant 6.400000e+01 : f32
    %50 = vector.broadcast %cst_32 : f32 to vector<5x1xf32>
    %51 = arith.divf %49, %50 : vector<5x1xf32>
    %52 = vector.broadcast %44 : vector<5x1xf32> to vector<5x64xf32>
    %53 = arith.subf %38, %52 : vector<5x64xf32>
    %cst_33 = arith.constant 9.99999974E-6 : f32
    %54 = vector.broadcast %cst_33 : f32 to vector<5x1xf32>
    %55 = arith.addf %51, %54 : vector<5x1xf32>
    %56 = math.rsqrt %55 : vector<5x1xf32>
    %57 = vector.broadcast %56 : vector<5x1xf32> to vector<5x64xf32>
    %58 = arith.mulf %53, %57 : vector<5x64xf32>
    %59 = vector.broadcast %39 : vector<1x64xf32> to vector<5x64xf32>
    %60 = arith.mulf %58, %59 : vector<5x64xf32>
    %61 = vector.broadcast %40 : vector<1x64xf32> to vector<5x64xf32>
    %62 = arith.addf %60, %61 : vector<5x64xf32>
    %c0_34 = arith.constant 0 : index
    %c0_35 = arith.constant 0 : index
    %c0_36 = arith.constant 0 : index
    %63 = vector.load %arg13[%c0_34, %c0_35, %c0_36] : memref<1x5x64xf32, #tpu.memory_space<vmem>>, vector<1x5x64xf32>
    %64 = vector.shape_cast %63 : vector<1x5x64xf32> to vector<5x64xf32>
    %65 = vector.shape_cast %62 : vector<5x64xf32> to vector<1x5x64xf32>
    tpu.vector_store %arg13[%c0_34, %c0_35, %c0_36], %65 {strides = array<i32>} : memref<1x5x64xf32, #tpu.memory_space<vmem>>, vector<1x5x64xf32>,
    %c0_37 = arith.constant 0 : index
    %c0_38 = arith.constant 0 : index
    %66 = vector.load %arg9[%c0_37, %c0_38] : memref<1x64xf32, #tpu.memory_space<vmem>>, vector<1x64xf32>
    %c0_39 = arith.constant 0 : index
    %c0_40 = arith.constant 0 : index
    %67 = vector.load %arg10[%c0_39, %c0_40] : memref<1x64xf32, #tpu.memory_space<vmem>>, vector<1x64xf32>
    %cst_41 = arith.constant dense<0.000000e+00> : vector<5xf32>
    %68 = vector.multi_reduction <add>, %37, %cst_41 [1] : vector<5x64xf32> to vector<5xf32>
    %69 = vector.shape_cast %68 : vector<5xf32> to vector<5x1xf32>
    %cst_42 = arith.constant 6.400000e+01 : f32
    %70 = vector.broadcast %cst_42 : f32 to vector<5x1xf32>
    %71 = arith.divf %69, %70 : vector<5x1xf32>
    %72 = vector.broadcast %71 : vector<5x1xf32> to vector<5x64xf32>
    %73 = arith.subf %37, %72 : vector<5x64xf32>
    %74 = arith.mulf %73, %73 : vector<5x64xf32>
    %cst_43 = arith.constant dense<0.000000e+00> : vector<5xf32>
    %75 = vector.multi_reduction <add>, %74, %cst_43 [1] : vector<5x64xf32> to vector<5xf32>
    %76 = vector.shape_cast %75 : vector<5xf32> to vector<5x1xf32>
    %cst_44 = arith.constant 6.400000e+01 : f32
    %77 = vector.broadcast %cst_44 : f32 to vector<5x1xf32>
    %78 = arith.divf %76, %77 : vector<5x1xf32>
    %79 = vector.broadcast %71 : vector<5x1xf32> to vector<5x64xf32>
    %80 = arith.subf %37, %79 : vector<5x64xf32>
    %cst_45 = arith.constant 9.99999974E-6 : f32
    %81 = vector.broadcast %cst_45 : f32 to vector<5x1xf32>
    %82 = arith.addf %78, %81 : vector<5x1xf32>
    %83 = math.rsqrt %82 : vector<5x1xf32>
    %84 = vector.broadcast %83 : vector<5x1xf32> to vector<5x64xf32>
    %85 = arith.mulf %80, %84 : vector<5x64xf32>
    %86 = vector.broadcast %66 : vector<1x64xf32> to vector<5x64xf32>
    %87 = arith.mulf %85, %86 : vector<5x64xf32>
    %88 = vector.broadcast %67 : vector<1x64xf32> to vector<5x64xf32>
    %89 = arith.addf %87, %88 : vector<5x64xf32>
    %c0_46 = arith.constant 0 : index
    %c0_47 = arith.constant 0 : index
    %c0_48 = arith.constant 0 : index
    %90 = vector.load %arg14[%c0_46, %c0_47, %c0_48] : memref<1x5x64xf32, #tpu.memory_space<vmem>>, vector<1x5x64xf32>
    %91 = vector.shape_cast %90 : vector<1x5x64xf32> to vector<5x64xf32>
    %92 = vector.shape_cast %89 : vector<5x64xf32> to vector<1x5x64xf32>
    tpu.vector_store %arg14[%c0_46, %c0_47, %c0_48], %92 {strides = array<i32>} : memref<1x5x64xf32, #tpu.memory_space<vmem>>, vector<1x5x64xf32>,
    %c0_49 = arith.constant 0 : index
    %c0_50 = arith.constant 0 : index
    %c0_51 = arith.constant 0 : index
    %93 = vector.load %arg15[%c0_49, %c0_50, %c0_51] : memref<1x5x18xf32, #tpu.memory_space<vmem>>, vector<1x5x18xf32>
    %94 = vector.shape_cast %93 : vector<1x5x18xf32> to vector<5x18xf32>
    %95 = vector.shape_cast %32 : vector<5x18xf32> to vector<1x5x18xf32>
    tpu.vector_store %arg15[%c0_49, %c0_50, %c0_51], %95 {strides = array<i32>} : memref<1x5x18xf32, #tpu.memory_space<vmem>>, vector<1x5x18xf32>,
    return
  }
  func.func @transform_0(%arg0: i32) -> (i32, i32, i32) {
    %c0_i32 = arith.constant 0 : i32
    %c0_i32_0 = arith.constant 0 : i32
    %c0_i32_1 = arith.constant 0 : i32
    return %arg0, %c0_i32, %c0_i32_0 : i32, i32, i32
  }
  func.func @transform_1(%arg0: i32) -> (i32, i32, i32) {
    %c0_i32 = arith.constant 0 : i32
    %c0_i32_0 = arith.constant 0 : i32
    %c0_i32_1 = arith.constant 0 : i32
    return %arg0, %c0_i32, %c0_i32_0 : i32, i32, i32
  }
  func.func @transform_2(%arg0: i32) -> (i32, i32) {
    %c0_i32 = arith.constant 0 : i32
    %c0_i32_0 = arith.constant 0 : i32
    %c0_i32_1 = arith.constant 0 : i32
    return %c0_i32, %c0_i32_0 : i32, i32
  }
  func.func @transform_3(%arg0: i32) -> (i32, i32) {
    %c0_i32 = arith.constant 0 : i32
    %c0_i32_0 = arith.constant 0 : i32
    %c0_i32_1 = arith.constant 0 : i32
    return %c0_i32, %c0_i32_0 : i32, i32
  }
  func.func @transform_4(%arg0: i32) -> (i32, i32) {
    %c0_i32 = arith.constant 0 : i32
    %c0_i32_0 = arith.constant 0 : i32
    %c0_i32_1 = arith.constant 0 : i32
    return %c0_i32, %c0_i32_0 : i32, i32
  }
  func.func @transform_5(%arg0: i32) -> (i32, i32) {
    %c0_i32 = arith.constant 0 : i32
    %c0_i32_0 = arith.constant 0 : i32
    %c0_i32_1 = arith.constant 0 : i32
    return %c0_i32, %c0_i32_0 : i32, i32
  }
  func.func @transform_6(%arg0: i32) -> (i32, i32) {
    %c0_i32 = arith.constant 0 : i32
    %c0_i32_0 = arith.constant 0 : i32
    %c0_i32_1 = arith.constant 0 : i32
    return %c0_i32, %c0_i32_0 : i32, i32
  }
  func.func @transform_7(%arg0: i32) -> (i32, i32) {
    %c0_i32 = arith.constant 0 : i32
    %c0_i32_0 = arith.constant 0 : i32
    %c0_i32_1 = arith.constant 0 : i32
    return %c0_i32, %c0_i32_0 : i32, i32
  }
  func.func @transform_8(%arg0: i32) -> (i32, i32) {
    %c0_i32 = arith.constant 0 : i32
    %c0_i32_0 = arith.constant 0 : i32
    %c0_i32_1 = arith.constant 0 : i32
    return %c0_i32, %c0_i32_0 : i32, i32
  }
  func.func @transform_9(%arg0: i32) -> (i32, i32) {
    %c0_i32 = arith.constant 0 : i32
    %c0_i32_0 = arith.constant 0 : i32
    %c0_i32_1 = arith.constant 0 : i32
    return %c0_i32, %c0_i32_0 : i32, i32
  }
  func.func @transform_10(%arg0: i32) -> (i32, i32) {
    %c0_i32 = arith.constant 0 : i32
    %c0_i32_0 = arith.constant 0 : i32
    %c0_i32_1 = arith.constant 0 : i32
    return %c0_i32, %c0_i32_0 : i32, i32
  }
  func.func @transform_11(%arg0: i32) -> (i32, i32) {
    %c0_i32 = arith.constant 0 : i32
    %c0_i32_0 = arith.constant 0 : i32
    %c0_i32_1 = arith.constant 0 : i32
    return %c0_i32, %c0_i32_0 : i32, i32
  }
  func.func @transform_12(%arg0: i32) -> (i32, i32, i32) {
    %c0_i32 = arith.constant 0 : i32
    %c0_i32_0 = arith.constant 0 : i32
    %c0_i32_1 = arith.constant 0 : i32
    return %arg0, %c0_i32, %c0_i32_0 : i32, i32, i32
  }
  func.func @transform_13(%arg0: i32) -> (i32, i32, i32) {
    %c0_i32 = arith.constant 0 : i32
    %c0_i32_0 = arith.constant 0 : i32
    %c0_i32_1 = arith.constant 0 : i32
    return %arg0, %c0_i32, %c0_i32_0 : i32, i32, i32
  }
  func.func @transform_14(%arg0: i32) -> (i32, i32, i32) {
    %c0_i32 = arith.constant 0 : i32
    %c0_i32_0 = arith.constant 0 : i32
    %c0_i32_1 = arith.constant 0 : i32
    return %arg0, %c0_i32, %c0_i32_0 : i32, i32, i32
  }
}

module attributes {stable_mosaic.version = 11 : i64} {
  func.func @_resblock_kernel(%arg0: i32, %arg1: memref<1x8x64xf32, #tpu.memory_space<vmem>>, %arg2: memref<1x5x64xf32, #tpu.memory_space<vmem>>, %arg3: memref<1x64xf32, #tpu.memory_space<vmem>>, %arg4: memref<1x64xf32, #tpu.memory_space<vmem>>, %arg5: memref<4x64x16xbf16, #tpu.memory_space<vmem>>, %arg6: memref<4x1x16xf32, #tpu.memory_space<vmem>>, %arg7: memref<4x64x16xbf16, #tpu.memory_space<vmem>>, %arg8: memref<4x1x16xf32, #tpu.memory_space<vmem>>, %arg9: memref<4x64x16xbf16, #tpu.memory_space<vmem>>, %arg10: memref<4x1x16xf32, #tpu.memory_space<vmem>>, %arg11: memref<4x16x64xbf16, #tpu.memory_space<vmem>>, %arg12: memref<1x64xf32, #tpu.memory_space<vmem>>, %arg13: memref<1x64xf32, #tpu.memory_space<vmem>>, %arg14: memref<1x64xf32, #tpu.memory_space<vmem>>, %arg15: memref<64x256xbf16, #tpu.memory_space<vmem>>, %arg16: memref<1x256xf32, #tpu.memory_space<vmem>>, %arg17: memref<256x64xbf16, #tpu.memory_space<vmem>>, %arg18: memref<1x64xf32, #tpu.memory_space<vmem>>, %arg19: memref<1x8x64xf32, #tpu.memory_space<vmem>>) attributes {dimension_semantics = [#tpu.dimension_semantics<parallel>], iteration_bounds = array<i64: 2>, scalar_prefetch = 0 : i64, scratch_operands = 0 : i64, tpu.core_type = #tpu.core_type<tc>, window_params = [{transform_indices = @transform_0, window_bounds = array<i64: 1, 8, 64>}, {transform_indices = @transform_1, window_bounds = array<i64: 1, 5, 64>}, {pipeline_mode = #tpu.pipeline_mode<synchronous>, transform_indices = @transform_2, window_bounds = array<i64: 1, 64>}, {pipeline_mode = #tpu.pipeline_mode<synchronous>, transform_indices = @transform_3, window_bounds = array<i64: 1, 64>}, {pipeline_mode = #tpu.pipeline_mode<synchronous>, transform_indices = @transform_4, window_bounds = array<i64: 4, 64, 16>}, {pipeline_mode = #tpu.pipeline_mode<synchronous>, transform_indices = @transform_5, window_bounds = array<i64: 4, 1, 16>}, {pipeline_mode = #tpu.pipeline_mode<synchronous>, transform_indices = @transform_6, window_bounds = array<i64: 4, 64, 16>}, {pipeline_mode = #tpu.pipeline_mode<synchronous>, transform_indices = @transform_7, window_bounds = array<i64: 4, 1, 16>}, {pipeline_mode = #tpu.pipeline_mode<synchronous>, transform_indices = @transform_8, window_bounds = array<i64: 4, 64, 16>}, {pipeline_mode = #tpu.pipeline_mode<synchronous>, transform_indices = @transform_9, window_bounds = array<i64: 4, 1, 16>}, {pipeline_mode = #tpu.pipeline_mode<synchronous>, transform_indices = @transform_10, window_bounds = array<i64: 4, 16, 64>}, {pipeline_mode = #tpu.pipeline_mode<synchronous>, transform_indices = @transform_11, window_bounds = array<i64: 1, 64>}, {pipeline_mode = #tpu.pipeline_mode<synchronous>, transform_indices = @transform_12, window_bounds = array<i64: 1, 64>}, {pipeline_mode = #tpu.pipeline_mode<synchronous>, transform_indices = @transform_13, window_bounds = array<i64: 1, 64>}, {pipeline_mode = #tpu.pipeline_mode<synchronous>, transform_indices = @transform_14, window_bounds = array<i64: 64, 256>}, {pipeline_mode = #tpu.pipeline_mode<synchronous>, transform_indices = @transform_15, window_bounds = array<i64: 1, 256>}, {pipeline_mode = #tpu.pipeline_mode<synchronous>, transform_indices = @transform_16, window_bounds = array<i64: 256, 64>}, {pipeline_mode = #tpu.pipeline_mode<synchronous>, transform_indices = @transform_17, window_bounds = array<i64: 1, 64>}, {transform_indices = @transform_18, window_bounds = array<i64: 1, 8, 64>}]} {
    %c0 = arith.constant 0 : index
    %c0_0 = arith.constant 0 : index
    %c0_1 = arith.constant 0 : index
    %0 = vector.load %arg1[%c0, %c0_0, %c0_1] : memref<1x8x64xf32, #tpu.memory_space<vmem>>, vector<1x8x64xf32>
    %1 = vector.shape_cast %0 : vector<1x8x64xf32> to vector<8x64xf32>
    %c0_2 = arith.constant 0 : index
    %c0_3 = arith.constant 0 : index
    %c0_4 = arith.constant 0 : index
    %2 = vector.load %arg2[%c0_2, %c0_3, %c0_4] : memref<1x5x64xf32, #tpu.memory_space<vmem>>, vector<1x5x64xf32>
    %3 = vector.shape_cast %2 : vector<1x5x64xf32> to vector<5x64xf32>
    %4 = tpu.concatenate %1, %3 in 0 : vector<8x64xf32>, vector<5x64xf32> -> vector<13x64xf32>
    %c0_5 = arith.constant 0 : index
    %c0_6 = arith.constant 0 : index
    %5 = vector.load %arg3[%c0_5, %c0_6] : memref<1x64xf32, #tpu.memory_space<vmem>>, vector<1x64xf32>
    %c0_7 = arith.constant 0 : index
    %c0_8 = arith.constant 0 : index
    %6 = vector.load %arg4[%c0_7, %c0_8] : memref<1x64xf32, #tpu.memory_space<vmem>>, vector<1x64xf32>
    %cst = arith.constant dense<0.000000e+00> : vector<13xf32>
    %7 = vector.multi_reduction <add>, %4, %cst [1] : vector<13x64xf32> to vector<13xf32>
    %8 = vector.shape_cast %7 : vector<13xf32> to vector<13x1xf32>
    %cst_9 = arith.constant 6.400000e+01 : f32
    %9 = vector.broadcast %cst_9 : f32 to vector<13x1xf32>
    %10 = arith.divf %8, %9 : vector<13x1xf32>
    %11 = vector.broadcast %10 : vector<13x1xf32> to vector<13x64xf32>
    %12 = arith.subf %4, %11 : vector<13x64xf32>
    %13 = arith.mulf %12, %12 : vector<13x64xf32>
    %cst_10 = arith.constant dense<0.000000e+00> : vector<13xf32>
    %14 = vector.multi_reduction <add>, %13, %cst_10 [1] : vector<13x64xf32> to vector<13xf32>
    %15 = vector.shape_cast %14 : vector<13xf32> to vector<13x1xf32>
    %cst_11 = arith.constant 6.400000e+01 : f32
    %16 = vector.broadcast %cst_11 : f32 to vector<13x1xf32>
    %17 = arith.divf %15, %16 : vector<13x1xf32>
    %18 = vector.broadcast %10 : vector<13x1xf32> to vector<13x64xf32>
    %19 = arith.subf %4, %18 : vector<13x64xf32>
    %cst_12 = arith.constant 9.99999974E-6 : f32
    %20 = vector.broadcast %cst_12 : f32 to vector<13x1xf32>
    %21 = arith.addf %17, %20 : vector<13x1xf32>
    %22 = math.rsqrt %21 : vector<13x1xf32>
    %23 = vector.broadcast %22 : vector<13x1xf32> to vector<13x64xf32>
    %24 = arith.mulf %19, %23 : vector<13x64xf32>
    %25 = vector.broadcast %5 : vector<1x64xf32> to vector<13x64xf32>
    %26 = arith.mulf %24, %25 : vector<13x64xf32>
    %27 = vector.broadcast %6 : vector<1x64xf32> to vector<13x64xf32>
    %28 = arith.addf %26, %27 : vector<13x64xf32>
    %29 = arith.truncf %28 : vector<13x64xf32> to vector<13x64xbf16>
    %cst_13 = arith.constant 0.000000e+00 : f32
    %30 = vector.broadcast %cst_13 : f32 to vector<13x64xf32>
    %c0_14 = arith.constant 0 : index
    %c0_15 = arith.constant 0 : index
    %c0_16 = arith.constant 0 : index
    %31 = vector.load %arg5[%c0_14, %c0_15, %c0_16] : memref<4x64x16xbf16, #tpu.memory_space<vmem>>, vector<1x64x16xbf16>
    %32 = vector.shape_cast %31 : vector<1x64x16xbf16> to vector<64x16xbf16>
    %cst_17 = arith.constant dense<0.000000e+00> : vector<13x16xf32>
    %33 = tpu.matmul %29, %32, %cst_17 {dimension_numbers = #tpu.dot_dimension_numbers<[1], [0], [0], [1], [0, 0, 1, 1], [], []>} : vector<13x64xbf16>, vector<64x16xbf16>, vector<13x16xf32> -> vector<13x16xf32>
    %c0_18 = arith.constant 0 : index
    %c0_19 = arith.constant 0 : index
    %c0_20 = arith.constant 0 : index
    %34 = vector.load %arg6[%c0_18, %c0_19, %c0_20] : memref<4x1x16xf32, #tpu.memory_space<vmem>>, vector<1x1x16xf32>
    %35 = vector.shape_cast %34 : vector<1x1x16xf32> to vector<1x16xf32>
    %36 = vector.broadcast %35 : vector<1x16xf32> to vector<13x16xf32>
    %37 = arith.addf %33, %36 : vector<13x16xf32>
    %c0_21 = arith.constant 0 : index
    %c0_22 = arith.constant 0 : index
    %c0_23 = arith.constant 0 : index
    %38 = vector.load %arg7[%c0_21, %c0_22, %c0_23] : memref<4x64x16xbf16, #tpu.memory_space<vmem>>, vector<1x64x16xbf16>
    %39 = vector.shape_cast %38 : vector<1x64x16xbf16> to vector<64x16xbf16>
    %cst_24 = arith.constant dense<0.000000e+00> : vector<13x16xf32>
    %40 = tpu.matmul %29, %39, %cst_24 {dimension_numbers = #tpu.dot_dimension_numbers<[1], [0], [0], [1], [0, 0, 1, 1], [], []>} : vector<13x64xbf16>, vector<64x16xbf16>, vector<13x16xf32> -> vector<13x16xf32>
    %c0_25 = arith.constant 0 : index
    %c0_26 = arith.constant 0 : index
    %c0_27 = arith.constant 0 : index
    %41 = vector.load %arg8[%c0_25, %c0_26, %c0_27] : memref<4x1x16xf32, #tpu.memory_space<vmem>>, vector<1x1x16xf32>
    %42 = vector.shape_cast %41 : vector<1x1x16xf32> to vector<1x16xf32>
    %43 = vector.broadcast %42 : vector<1x16xf32> to vector<13x16xf32>
    %44 = arith.addf %40, %43 : vector<13x16xf32>
    %c0_28 = arith.constant 0 : index
    %c0_29 = arith.constant 0 : index
    %c0_30 = arith.constant 0 : index
    %45 = vector.load %arg9[%c0_28, %c0_29, %c0_30] : memref<4x64x16xbf16, #tpu.memory_space<vmem>>, vector<1x64x16xbf16>
    %46 = vector.shape_cast %45 : vector<1x64x16xbf16> to vector<64x16xbf16>
    %cst_31 = arith.constant dense<0.000000e+00> : vector<13x16xf32>
    %47 = tpu.matmul %29, %46, %cst_31 {dimension_numbers = #tpu.dot_dimension_numbers<[1], [0], [0], [1], [0, 0, 1, 1], [], []>} : vector<13x64xbf16>, vector<64x16xbf16>, vector<13x16xf32> -> vector<13x16xf32>
    %c0_32 = arith.constant 0 : index
    %c0_33 = arith.constant 0 : index
    %c0_34 = arith.constant 0 : index
    %48 = vector.load %arg10[%c0_32, %c0_33, %c0_34] : memref<4x1x16xf32, #tpu.memory_space<vmem>>, vector<1x1x16xf32>
    %49 = vector.shape_cast %48 : vector<1x1x16xf32> to vector<1x16xf32>
    %50 = vector.broadcast %49 : vector<1x16xf32> to vector<13x16xf32>
    %51 = arith.addf %47, %50 : vector<13x16xf32>
    %cst_35 = arith.constant 2.500000e-01 : f32
    %52 = vector.broadcast %cst_35 : f32 to vector<13x16xf32>
    %53 = arith.mulf %37, %52 : vector<13x16xf32>
    %54 = arith.truncf %53 : vector<13x16xf32> to vector<13x16xbf16>
    %55 = arith.truncf %44 : vector<13x16xf32> to vector<13x16xbf16>
    %cst_36 = arith.constant dense<0.000000e+00> : vector<13x13xf32>
    %56 = tpu.matmul %54, %55, %cst_36 {dimension_numbers = #tpu.dot_dimension_numbers<[1], [1], [0], [0], [0, 0, 1, 0], [], []>} : vector<13x16xbf16>, vector<13x16xbf16>, vector<13x13xf32> -> vector<13x13xf32>
    %cst_37 = arith.constant dense<0xFF800000> : vector<13xf32>
    %57 = vector.multi_reduction <maximumf>, %56, %cst_37 [1] : vector<13x13xf32> to vector<13xf32>
    %58 = vector.shape_cast %57 : vector<13xf32> to vector<13x1xf32>
    %59 = vector.broadcast %58 : vector<13x1xf32> to vector<13x13xf32>
    %60 = arith.subf %56, %59 : vector<13x13xf32>
    %61 = math.exp %60 : vector<13x13xf32>
    %cst_38 = arith.constant dense<0.000000e+00> : vector<13xf32>
    %62 = vector.multi_reduction <add>, %61, %cst_38 [1] : vector<13x13xf32> to vector<13xf32>
    %63 = vector.shape_cast %62 : vector<13xf32> to vector<13x1xf32>
    %64 = tpu.reciprocal %63 {approx = true} : vector<13x1xf32> -> vector<13x1xf32>
    %65 = vector.broadcast %64 : vector<13x1xf32> to vector<13x13xf32>
    %66 = arith.mulf %61, %65 : vector<13x13xf32>
    %67 = arith.truncf %66 : vector<13x13xf32> to vector<13x13xbf16>
    %68 = arith.truncf %51 : vector<13x16xf32> to vector<13x16xbf16>
    %cst_39 = arith.constant dense<0.000000e+00> : vector<13x16xf32>
    %69 = tpu.matmul %67, %68, %cst_39 {dimension_numbers = #tpu.dot_dimension_numbers<[1], [0], [0], [1], [0, 0, 1, 1], [], []>} : vector<13x13xbf16>, vector<13x16xbf16>, vector<13x16xf32> -> vector<13x16xf32>
    %70 = arith.truncf %69 : vector<13x16xf32> to vector<13x16xbf16>
    %c0_40 = arith.constant 0 : index
    %c0_41 = arith.constant 0 : index
    %c0_42 = arith.constant 0 : index
    %71 = vector.load %arg11[%c0_40, %c0_41, %c0_42] : memref<4x16x64xbf16, #tpu.memory_space<vmem>>, vector<1x16x64xbf16>
    %72 = vector.shape_cast %71 : vector<1x16x64xbf16> to vector<16x64xbf16>
    %cst_43 = arith.constant dense<0.000000e+00> : vector<13x64xf32>
    %73 = tpu.matmul %70, %72, %cst_43 {dimension_numbers = #tpu.dot_dimension_numbers<[1], [0], [0], [1], [0, 0, 1, 1], [], []>} : vector<13x16xbf16>, vector<16x64xbf16>, vector<13x64xf32> -> vector<13x64xf32>
    %74 = arith.addf %30, %73 : vector<13x64xf32>
    %c1 = arith.constant 1 : index
    %c0_44 = arith.constant 0 : index
    %c0_45 = arith.constant 0 : index
    %75 = vector.load %arg5[%c1, %c0_44, %c0_45] : memref<4x64x16xbf16, #tpu.memory_space<vmem>>, vector<1x64x16xbf16>
    %76 = vector.shape_cast %75 : vector<1x64x16xbf16> to vector<64x16xbf16>
    %cst_46 = arith.constant dense<0.000000e+00> : vector<13x16xf32>
    %77 = tpu.matmul %29, %76, %cst_46 {dimension_numbers = #tpu.dot_dimension_numbers<[1], [0], [0], [1], [0, 0, 1, 1], [], []>} : vector<13x64xbf16>, vector<64x16xbf16>, vector<13x16xf32> -> vector<13x16xf32>
    %c1_47 = arith.constant 1 : index
    %c0_48 = arith.constant 0 : index
    %c0_49 = arith.constant 0 : index
    %78 = vector.load %arg6[%c1_47, %c0_48, %c0_49] : memref<4x1x16xf32, #tpu.memory_space<vmem>>, vector<1x1x16xf32>
    %79 = vector.shape_cast %78 : vector<1x1x16xf32> to vector<1x16xf32>
    %80 = vector.broadcast %79 : vector<1x16xf32> to vector<13x16xf32>
    %81 = arith.addf %77, %80 : vector<13x16xf32>
    %c1_50 = arith.constant 1 : index
    %c0_51 = arith.constant 0 : index
    %c0_52 = arith.constant 0 : index
    %82 = vector.load %arg7[%c1_50, %c0_51, %c0_52] : memref<4x64x16xbf16, #tpu.memory_space<vmem>>, vector<1x64x16xbf16>
    %83 = vector.shape_cast %82 : vector<1x64x16xbf16> to vector<64x16xbf16>
    %cst_53 = arith.constant dense<0.000000e+00> : vector<13x16xf32>
    %84 = tpu.matmul %29, %83, %cst_53 {dimension_numbers = #tpu.dot_dimension_numbers<[1], [0], [0], [1], [0, 0, 1, 1], [], []>} : vector<13x64xbf16>, vector<64x16xbf16>, vector<13x16xf32> -> vector<13x16xf32>
    %c1_54 = arith.constant 1 : index
    %c0_55 = arith.constant 0 : index
    %c0_56 = arith.constant 0 : index
    %85 = vector.load %arg8[%c1_54, %c0_55, %c0_56] : memref<4x1x16xf32, #tpu.memory_space<vmem>>, vector<1x1x16xf32>
    %86 = vector.shape_cast %85 : vector<1x1x16xf32> to vector<1x16xf32>
    %87 = vector.broadcast %86 : vector<1x16xf32> to vector<13x16xf32>
    %88 = arith.addf %84, %87 : vector<13x16xf32>
    %c1_57 = arith.constant 1 : index
    %c0_58 = arith.constant 0 : index
    %c0_59 = arith.constant 0 : index
    %89 = vector.load %arg9[%c1_57, %c0_58, %c0_59] : memref<4x64x16xbf16, #tpu.memory_space<vmem>>, vector<1x64x16xbf16>
    %90 = vector.shape_cast %89 : vector<1x64x16xbf16> to vector<64x16xbf16>
    %cst_60 = arith.constant dense<0.000000e+00> : vector<13x16xf32>
    %91 = tpu.matmul %29, %90, %cst_60 {dimension_numbers = #tpu.dot_dimension_numbers<[1], [0], [0], [1], [0, 0, 1, 1], [], []>} : vector<13x64xbf16>, vector<64x16xbf16>, vector<13x16xf32> -> vector<13x16xf32>
    %c1_61 = arith.constant 1 : index
    %c0_62 = arith.constant 0 : index
    %c0_63 = arith.constant 0 : index
    %92 = vector.load %arg10[%c1_61, %c0_62, %c0_63] : memref<4x1x16xf32, #tpu.memory_space<vmem>>, vector<1x1x16xf32>
    %93 = vector.shape_cast %92 : vector<1x1x16xf32> to vector<1x16xf32>
    %94 = vector.broadcast %93 : vector<1x16xf32> to vector<13x16xf32>
    %95 = arith.addf %91, %94 : vector<13x16xf32>
    %cst_64 = arith.constant 2.500000e-01 : f32
    %96 = vector.broadcast %cst_64 : f32 to vector<13x16xf32>
    %97 = arith.mulf %81, %96 : vector<13x16xf32>
    %98 = arith.truncf %97 : vector<13x16xf32> to vector<13x16xbf16>
    %99 = arith.truncf %88 : vector<13x16xf32> to vector<13x16xbf16>
    %cst_65 = arith.constant dense<0.000000e+00> : vector<13x13xf32>
    %100 = tpu.matmul %98, %99, %cst_65 {dimension_numbers = #tpu.dot_dimension_numbers<[1], [1], [0], [0], [0, 0, 1, 0], [], []>} : vector<13x16xbf16>, vector<13x16xbf16>, vector<13x13xf32> -> vector<13x13xf32>
    %cst_66 = arith.constant dense<0xFF800000> : vector<13xf32>
    %101 = vector.multi_reduction <maximumf>, %100, %cst_66 [1] : vector<13x13xf32> to vector<13xf32>
    %102 = vector.shape_cast %101 : vector<13xf32> to vector<13x1xf32>
    %103 = vector.broadcast %102 : vector<13x1xf32> to vector<13x13xf32>
    %104 = arith.subf %100, %103 : vector<13x13xf32>
    %105 = math.exp %104 : vector<13x13xf32>
    %cst_67 = arith.constant dense<0.000000e+00> : vector<13xf32>
    %106 = vector.multi_reduction <add>, %105, %cst_67 [1] : vector<13x13xf32> to vector<13xf32>
    %107 = vector.shape_cast %106 : vector<13xf32> to vector<13x1xf32>
    %108 = tpu.reciprocal %107 {approx = true} : vector<13x1xf32> -> vector<13x1xf32>
    %109 = vector.broadcast %108 : vector<13x1xf32> to vector<13x13xf32>
    %110 = arith.mulf %105, %109 : vector<13x13xf32>
    %111 = arith.truncf %110 : vector<13x13xf32> to vector<13x13xbf16>
    %112 = arith.truncf %95 : vector<13x16xf32> to vector<13x16xbf16>
    %cst_68 = arith.constant dense<0.000000e+00> : vector<13x16xf32>
    %113 = tpu.matmul %111, %112, %cst_68 {dimension_numbers = #tpu.dot_dimension_numbers<[1], [0], [0], [1], [0, 0, 1, 1], [], []>} : vector<13x13xbf16>, vector<13x16xbf16>, vector<13x16xf32> -> vector<13x16xf32>
    %114 = arith.truncf %113 : vector<13x16xf32> to vector<13x16xbf16>
    %c1_69 = arith.constant 1 : index
    %c0_70 = arith.constant 0 : index
    %c0_71 = arith.constant 0 : index
    %115 = vector.load %arg11[%c1_69, %c0_70, %c0_71] : memref<4x16x64xbf16, #tpu.memory_space<vmem>>, vector<1x16x64xbf16>
    %116 = vector.shape_cast %115 : vector<1x16x64xbf16> to vector<16x64xbf16>
    %cst_72 = arith.constant dense<0.000000e+00> : vector<13x64xf32>
    %117 = tpu.matmul %114, %116, %cst_72 {dimension_numbers = #tpu.dot_dimension_numbers<[1], [0], [0], [1], [0, 0, 1, 1], [], []>} : vector<13x16xbf16>, vector<16x64xbf16>, vector<13x64xf32> -> vector<13x64xf32>
    %118 = arith.addf %74, %117 : vector<13x64xf32>
    %c2 = arith.constant 2 : index
    %c0_73 = arith.constant 0 : index
    %c0_74 = arith.constant 0 : index
    %119 = vector.load %arg5[%c2, %c0_73, %c0_74] : memref<4x64x16xbf16, #tpu.memory_space<vmem>>, vector<1x64x16xbf16>
    %120 = vector.shape_cast %119 : vector<1x64x16xbf16> to vector<64x16xbf16>
    %cst_75 = arith.constant dense<0.000000e+00> : vector<13x16xf32>
    %121 = tpu.matmul %29, %120, %cst_75 {dimension_numbers = #tpu.dot_dimension_numbers<[1], [0], [0], [1], [0, 0, 1, 1], [], []>} : vector<13x64xbf16>, vector<64x16xbf16>, vector<13x16xf32> -> vector<13x16xf32>
    %c2_76 = arith.constant 2 : index
    %c0_77 = arith.constant 0 : index
    %c0_78 = arith.constant 0 : index
    %122 = vector.load %arg6[%c2_76, %c0_77, %c0_78] : memref<4x1x16xf32, #tpu.memory_space<vmem>>, vector<1x1x16xf32>
    %123 = vector.shape_cast %122 : vector<1x1x16xf32> to vector<1x16xf32>
    %124 = vector.broadcast %123 : vector<1x16xf32> to vector<13x16xf32>
    %125 = arith.addf %121, %124 : vector<13x16xf32>
    %c2_79 = arith.constant 2 : index
    %c0_80 = arith.constant 0 : index
    %c0_81 = arith.constant 0 : index
    %126 = vector.load %arg7[%c2_79, %c0_80, %c0_81] : memref<4x64x16xbf16, #tpu.memory_space<vmem>>, vector<1x64x16xbf16>
    %127 = vector.shape_cast %126 : vector<1x64x16xbf16> to vector<64x16xbf16>
    %cst_82 = arith.constant dense<0.000000e+00> : vector<13x16xf32>
    %128 = tpu.matmul %29, %127, %cst_82 {dimension_numbers = #tpu.dot_dimension_numbers<[1], [0], [0], [1], [0, 0, 1, 1], [], []>} : vector<13x64xbf16>, vector<64x16xbf16>, vector<13x16xf32> -> vector<13x16xf32>
    %c2_83 = arith.constant 2 : index
    %c0_84 = arith.constant 0 : index
    %c0_85 = arith.constant 0 : index
    %129 = vector.load %arg8[%c2_83, %c0_84, %c0_85] : memref<4x1x16xf32, #tpu.memory_space<vmem>>, vector<1x1x16xf32>
    %130 = vector.shape_cast %129 : vector<1x1x16xf32> to vector<1x16xf32>
    %131 = vector.broadcast %130 : vector<1x16xf32> to vector<13x16xf32>
    %132 = arith.addf %128, %131 : vector<13x16xf32>
    %c2_86 = arith.constant 2 : index
    %c0_87 = arith.constant 0 : index
    %c0_88 = arith.constant 0 : index
    %133 = vector.load %arg9[%c2_86, %c0_87, %c0_88] : memref<4x64x16xbf16, #tpu.memory_space<vmem>>, vector<1x64x16xbf16>
    %134 = vector.shape_cast %133 : vector<1x64x16xbf16> to vector<64x16xbf16>
    %cst_89 = arith.constant dense<0.000000e+00> : vector<13x16xf32>
    %135 = tpu.matmul %29, %134, %cst_89 {dimension_numbers = #tpu.dot_dimension_numbers<[1], [0], [0], [1], [0, 0, 1, 1], [], []>} : vector<13x64xbf16>, vector<64x16xbf16>, vector<13x16xf32> -> vector<13x16xf32>
    %c2_90 = arith.constant 2 : index
    %c0_91 = arith.constant 0 : index
    %c0_92 = arith.constant 0 : index
    %136 = vector.load %arg10[%c2_90, %c0_91, %c0_92] : memref<4x1x16xf32, #tpu.memory_space<vmem>>, vector<1x1x16xf32>
    %137 = vector.shape_cast %136 : vector<1x1x16xf32> to vector<1x16xf32>
    %138 = vector.broadcast %137 : vector<1x16xf32> to vector<13x16xf32>
    %139 = arith.addf %135, %138 : vector<13x16xf32>
    %cst_93 = arith.constant 2.500000e-01 : f32
    %140 = vector.broadcast %cst_93 : f32 to vector<13x16xf32>
    %141 = arith.mulf %125, %140 : vector<13x16xf32>
    %142 = arith.truncf %141 : vector<13x16xf32> to vector<13x16xbf16>
    %143 = arith.truncf %132 : vector<13x16xf32> to vector<13x16xbf16>
    %cst_94 = arith.constant dense<0.000000e+00> : vector<13x13xf32>
    %144 = tpu.matmul %142, %143, %cst_94 {dimension_numbers = #tpu.dot_dimension_numbers<[1], [1], [0], [0], [0, 0, 1, 0], [], []>} : vector<13x16xbf16>, vector<13x16xbf16>, vector<13x13xf32> -> vector<13x13xf32>
    %cst_95 = arith.constant dense<0xFF800000> : vector<13xf32>
    %145 = vector.multi_reduction <maximumf>, %144, %cst_95 [1] : vector<13x13xf32> to vector<13xf32>
    %146 = vector.shape_cast %145 : vector<13xf32> to vector<13x1xf32>
    %147 = vector.broadcast %146 : vector<13x1xf32> to vector<13x13xf32>
    %148 = arith.subf %144, %147 : vector<13x13xf32>
    %149 = math.exp %148 : vector<13x13xf32>
    %cst_96 = arith.constant dense<0.000000e+00> : vector<13xf32>
    %150 = vector.multi_reduction <add>, %149, %cst_96 [1] : vector<13x13xf32> to vector<13xf32>
    %151 = vector.shape_cast %150 : vector<13xf32> to vector<13x1xf32>
    %152 = tpu.reciprocal %151 {approx = true} : vector<13x1xf32> -> vector<13x1xf32>
    %153 = vector.broadcast %152 : vector<13x1xf32> to vector<13x13xf32>
    %154 = arith.mulf %149, %153 : vector<13x13xf32>
    %155 = arith.truncf %154 : vector<13x13xf32> to vector<13x13xbf16>
    %156 = arith.truncf %139 : vector<13x16xf32> to vector<13x16xbf16>
    %cst_97 = arith.constant dense<0.000000e+00> : vector<13x16xf32>
    %157 = tpu.matmul %155, %156, %cst_97 {dimension_numbers = #tpu.dot_dimension_numbers<[1], [0], [0], [1], [0, 0, 1, 1], [], []>} : vector<13x13xbf16>, vector<13x16xbf16>, vector<13x16xf32> -> vector<13x16xf32>
    %158 = arith.truncf %157 : vector<13x16xf32> to vector<13x16xbf16>
    %c2_98 = arith.constant 2 : index
    %c0_99 = arith.constant 0 : index
    %c0_100 = arith.constant 0 : index
    %159 = vector.load %arg11[%c2_98, %c0_99, %c0_100] : memref<4x16x64xbf16, #tpu.memory_space<vmem>>, vector<1x16x64xbf16>
    %160 = vector.shape_cast %159 : vector<1x16x64xbf16> to vector<16x64xbf16>
    %cst_101 = arith.constant dense<0.000000e+00> : vector<13x64xf32>
    %161 = tpu.matmul %158, %160, %cst_101 {dimension_numbers = #tpu.dot_dimension_numbers<[1], [0], [0], [1], [0, 0, 1, 1], [], []>} : vector<13x16xbf16>, vector<16x64xbf16>, vector<13x64xf32> -> vector<13x64xf32>
    %162 = arith.addf %118, %161 : vector<13x64xf32>
    %c3 = arith.constant 3 : index
    %c0_102 = arith.constant 0 : index
    %c0_103 = arith.constant 0 : index
    %163 = vector.load %arg5[%c3, %c0_102, %c0_103] : memref<4x64x16xbf16, #tpu.memory_space<vmem>>, vector<1x64x16xbf16>
    %164 = vector.shape_cast %163 : vector<1x64x16xbf16> to vector<64x16xbf16>
    %cst_104 = arith.constant dense<0.000000e+00> : vector<13x16xf32>
    %165 = tpu.matmul %29, %164, %cst_104 {dimension_numbers = #tpu.dot_dimension_numbers<[1], [0], [0], [1], [0, 0, 1, 1], [], []>} : vector<13x64xbf16>, vector<64x16xbf16>, vector<13x16xf32> -> vector<13x16xf32>
    %c3_105 = arith.constant 3 : index
    %c0_106 = arith.constant 0 : index
    %c0_107 = arith.constant 0 : index
    %166 = vector.load %arg6[%c3_105, %c0_106, %c0_107] : memref<4x1x16xf32, #tpu.memory_space<vmem>>, vector<1x1x16xf32>
    %167 = vector.shape_cast %166 : vector<1x1x16xf32> to vector<1x16xf32>
    %168 = vector.broadcast %167 : vector<1x16xf32> to vector<13x16xf32>
    %169 = arith.addf %165, %168 : vector<13x16xf32>
    %c3_108 = arith.constant 3 : index
    %c0_109 = arith.constant 0 : index
    %c0_110 = arith.constant 0 : index
    %170 = vector.load %arg7[%c3_108, %c0_109, %c0_110] : memref<4x64x16xbf16, #tpu.memory_space<vmem>>, vector<1x64x16xbf16>
    %171 = vector.shape_cast %170 : vector<1x64x16xbf16> to vector<64x16xbf16>
    %cst_111 = arith.constant dense<0.000000e+00> : vector<13x16xf32>
    %172 = tpu.matmul %29, %171, %cst_111 {dimension_numbers = #tpu.dot_dimension_numbers<[1], [0], [0], [1], [0, 0, 1, 1], [], []>} : vector<13x64xbf16>, vector<64x16xbf16>, vector<13x16xf32> -> vector<13x16xf32>
    %c3_112 = arith.constant 3 : index
    %c0_113 = arith.constant 0 : index
    %c0_114 = arith.constant 0 : index
    %173 = vector.load %arg8[%c3_112, %c0_113, %c0_114] : memref<4x1x16xf32, #tpu.memory_space<vmem>>, vector<1x1x16xf32>
    %174 = vector.shape_cast %173 : vector<1x1x16xf32> to vector<1x16xf32>
    %175 = vector.broadcast %174 : vector<1x16xf32> to vector<13x16xf32>
    %176 = arith.addf %172, %175 : vector<13x16xf32>
    %c3_115 = arith.constant 3 : index
    %c0_116 = arith.constant 0 : index
    %c0_117 = arith.constant 0 : index
    %177 = vector.load %arg9[%c3_115, %c0_116, %c0_117] : memref<4x64x16xbf16, #tpu.memory_space<vmem>>, vector<1x64x16xbf16>
    %178 = vector.shape_cast %177 : vector<1x64x16xbf16> to vector<64x16xbf16>
    %cst_118 = arith.constant dense<0.000000e+00> : vector<13x16xf32>
    %179 = tpu.matmul %29, %178, %cst_118 {dimension_numbers = #tpu.dot_dimension_numbers<[1], [0], [0], [1], [0, 0, 1, 1], [], []>} : vector<13x64xbf16>, vector<64x16xbf16>, vector<13x16xf32> -> vector<13x16xf32>
    %c3_119 = arith.constant 3 : index
    %c0_120 = arith.constant 0 : index
    %c0_121 = arith.constant 0 : index
    %180 = vector.load %arg10[%c3_119, %c0_120, %c0_121] : memref<4x1x16xf32, #tpu.memory_space<vmem>>, vector<1x1x16xf32>
    %181 = vector.shape_cast %180 : vector<1x1x16xf32> to vector<1x16xf32>
    %182 = vector.broadcast %181 : vector<1x16xf32> to vector<13x16xf32>
    %183 = arith.addf %179, %182 : vector<13x16xf32>
    %cst_122 = arith.constant 2.500000e-01 : f32
    %184 = vector.broadcast %cst_122 : f32 to vector<13x16xf32>
    %185 = arith.mulf %169, %184 : vector<13x16xf32>
    %186 = arith.truncf %185 : vector<13x16xf32> to vector<13x16xbf16>
    %187 = arith.truncf %176 : vector<13x16xf32> to vector<13x16xbf16>
    %cst_123 = arith.constant dense<0.000000e+00> : vector<13x13xf32>
    %188 = tpu.matmul %186, %187, %cst_123 {dimension_numbers = #tpu.dot_dimension_numbers<[1], [1], [0], [0], [0, 0, 1, 0], [], []>} : vector<13x16xbf16>, vector<13x16xbf16>, vector<13x13xf32> -> vector<13x13xf32>
    %cst_124 = arith.constant dense<0xFF800000> : vector<13xf32>
    %189 = vector.multi_reduction <maximumf>, %188, %cst_124 [1] : vector<13x13xf32> to vector<13xf32>
    %190 = vector.shape_cast %189 : vector<13xf32> to vector<13x1xf32>
    %191 = vector.broadcast %190 : vector<13x1xf32> to vector<13x13xf32>
    %192 = arith.subf %188, %191 : vector<13x13xf32>
    %193 = math.exp %192 : vector<13x13xf32>
    %cst_125 = arith.constant dense<0.000000e+00> : vector<13xf32>
    %194 = vector.multi_reduction <add>, %193, %cst_125 [1] : vector<13x13xf32> to vector<13xf32>
    %195 = vector.shape_cast %194 : vector<13xf32> to vector<13x1xf32>
    %196 = tpu.reciprocal %195 {approx = true} : vector<13x1xf32> -> vector<13x1xf32>
    %197 = vector.broadcast %196 : vector<13x1xf32> to vector<13x13xf32>
    %198 = arith.mulf %193, %197 : vector<13x13xf32>
    %199 = arith.truncf %198 : vector<13x13xf32> to vector<13x13xbf16>
    %200 = arith.truncf %183 : vector<13x16xf32> to vector<13x16xbf16>
    %cst_126 = arith.constant dense<0.000000e+00> : vector<13x16xf32>
    %201 = tpu.matmul %199, %200, %cst_126 {dimension_numbers = #tpu.dot_dimension_numbers<[1], [0], [0], [1], [0, 0, 1, 1], [], []>} : vector<13x13xbf16>, vector<13x16xbf16>, vector<13x16xf32> -> vector<13x16xf32>
    %202 = arith.truncf %201 : vector<13x16xf32> to vector<13x16xbf16>
    %c3_127 = arith.constant 3 : index
    %c0_128 = arith.constant 0 : index
    %c0_129 = arith.constant 0 : index
    %203 = vector.load %arg11[%c3_127, %c0_128, %c0_129] : memref<4x16x64xbf16, #tpu.memory_space<vmem>>, vector<1x16x64xbf16>
    %204 = vector.shape_cast %203 : vector<1x16x64xbf16> to vector<16x64xbf16>
    %cst_130 = arith.constant dense<0.000000e+00> : vector<13x64xf32>
    %205 = tpu.matmul %202, %204, %cst_130 {dimension_numbers = #tpu.dot_dimension_numbers<[1], [0], [0], [1], [0, 0, 1, 1], [], []>} : vector<13x16xbf16>, vector<16x64xbf16>, vector<13x64xf32> -> vector<13x64xf32>
    %206 = arith.addf %162, %205 : vector<13x64xf32>
    %207 = arith.addf %4, %206 : vector<13x64xf32>
    %c0_131 = arith.constant 0 : index
    %c0_132 = arith.constant 0 : index
    %208 = vector.load %arg12[%c0_131, %c0_132] : memref<1x64xf32, #tpu.memory_space<vmem>>, vector<1x64xf32>
    %209 = vector.broadcast %208 : vector<1x64xf32> to vector<13x64xf32>
    %210 = arith.addf %207, %209 : vector<13x64xf32>
    %c0_133 = arith.constant 0 : index
    %c0_134 = arith.constant 0 : index
    %211 = vector.load %arg13[%c0_133, %c0_134] : memref<1x64xf32, #tpu.memory_space<vmem>>, vector<1x64xf32>
    %c0_135 = arith.constant 0 : index
    %c0_136 = arith.constant 0 : index
    %212 = vector.load %arg14[%c0_135, %c0_136] : memref<1x64xf32, #tpu.memory_space<vmem>>, vector<1x64xf32>
    %cst_137 = arith.constant dense<0.000000e+00> : vector<13xf32>
    %213 = vector.multi_reduction <add>, %210, %cst_137 [1] : vector<13x64xf32> to vector<13xf32>
    %214 = vector.shape_cast %213 : vector<13xf32> to vector<13x1xf32>
    %cst_138 = arith.constant 6.400000e+01 : f32
    %215 = vector.broadcast %cst_138 : f32 to vector<13x1xf32>
    %216 = arith.divf %214, %215 : vector<13x1xf32>
    %217 = vector.broadcast %216 : vector<13x1xf32> to vector<13x64xf32>
    %218 = arith.subf %210, %217 : vector<13x64xf32>
    %219 = arith.mulf %218, %218 : vector<13x64xf32>
    %cst_139 = arith.constant dense<0.000000e+00> : vector<13xf32>
    %220 = vector.multi_reduction <add>, %219, %cst_139 [1] : vector<13x64xf32> to vector<13xf32>
    %221 = vector.shape_cast %220 : vector<13xf32> to vector<13x1xf32>
    %cst_140 = arith.constant 6.400000e+01 : f32
    %222 = vector.broadcast %cst_140 : f32 to vector<13x1xf32>
    %223 = arith.divf %221, %222 : vector<13x1xf32>
    %224 = vector.broadcast %216 : vector<13x1xf32> to vector<13x64xf32>
    %225 = arith.subf %210, %224 : vector<13x64xf32>
    %cst_141 = arith.constant 9.99999974E-6 : f32
    %226 = vector.broadcast %cst_141 : f32 to vector<13x1xf32>
    %227 = arith.addf %223, %226 : vector<13x1xf32>
    %228 = math.rsqrt %227 : vector<13x1xf32>
    %229 = vector.broadcast %228 : vector<13x1xf32> to vector<13x64xf32>
    %230 = arith.mulf %225, %229 : vector<13x64xf32>
    %231 = vector.broadcast %211 : vector<1x64xf32> to vector<13x64xf32>
    %232 = arith.mulf %230, %231 : vector<13x64xf32>
    %233 = vector.broadcast %212 : vector<1x64xf32> to vector<13x64xf32>
    %234 = arith.addf %232, %233 : vector<13x64xf32>
    %235 = arith.truncf %234 : vector<13x64xf32> to vector<13x64xbf16>
    %c0_142 = arith.constant 0 : index
    %c0_143 = arith.constant 0 : index
    %236 = vector.load %arg15[%c0_142, %c0_143] : memref<64x256xbf16, #tpu.memory_space<vmem>>, vector<64x256xbf16>
    %cst_144 = arith.constant dense<0.000000e+00> : vector<13x256xf32>
    %237 = tpu.matmul %235, %236, %cst_144 {dimension_numbers = #tpu.dot_dimension_numbers<[1], [0], [0], [1], [0, 0, 1, 1], [], []>} : vector<13x64xbf16>, vector<64x256xbf16>, vector<13x256xf32> -> vector<13x256xf32>
    %c0_145 = arith.constant 0 : index
    %c0_146 = arith.constant 0 : index
    %238 = vector.load %arg16[%c0_145, %c0_146] : memref<1x256xf32, #tpu.memory_space<vmem>>, vector<1x256xf32>
    %239 = vector.broadcast %238 : vector<1x256xf32> to vector<13x256xf32>
    %240 = arith.addf %237, %239 : vector<13x256xf32>
    %cst_147 = arith.constant 1.702000e+00 : f32
    %241 = vector.broadcast %cst_147 : f32 to vector<13x256xf32>
    %242 = arith.mulf %241, %240 : vector<13x256xf32>
    %243 = arith.negf %242 : vector<13x256xf32>
    %244 = math.exp %243 : vector<13x256xf32>
    %cst_148 = arith.constant 1.000000e+00 : f32
    %245 = vector.broadcast %cst_148 : f32 to vector<13x256xf32>
    %246 = arith.addf %245, %244 : vector<13x256xf32>
    %247 = arith.divf %245, %246 : vector<13x256xf32>
    %248 = arith.mulf %240, %247 : vector<13x256xf32>
    %249 = arith.truncf %248 : vector<13x256xf32> to vector<13x256xbf16>
    %c0_149 = arith.constant 0 : index
    %c0_150 = arith.constant 0 : index
    %250 = vector.load %arg17[%c0_149, %c0_150] : memref<256x64xbf16, #tpu.memory_space<vmem>>, vector<256x64xbf16>
    %cst_151 = arith.constant dense<0.000000e+00> : vector<13x64xf32>
    %251 = tpu.matmul %249, %250, %cst_151 {dimension_numbers = #tpu.dot_dimension_numbers<[1], [0], [0], [1], [0, 0, 1, 1], [], []>} : vector<13x256xbf16>, vector<256x64xbf16>, vector<13x64xf32> -> vector<13x64xf32>
    %252 = arith.addf %210, %251 : vector<13x64xf32>
    %c0_152 = arith.constant 0 : index
    %c0_153 = arith.constant 0 : index
    %253 = vector.load %arg18[%c0_152, %c0_153] : memref<1x64xf32, #tpu.memory_space<vmem>>, vector<1x64xf32>
    %254 = vector.broadcast %253 : vector<1x64xf32> to vector<13x64xf32>
    %255 = arith.addf %252, %254 : vector<13x64xf32>
    %256 = vector.extract_strided_slice %255 {offsets = [0, 0], sizes = [8, 64], strides = [1, 1]} : vector<13x64xf32> to vector<8x64xf32>
    %c0_154 = arith.constant 0 : index
    %c0_155 = arith.constant 0 : index
    %c0_156 = arith.constant 0 : index
    %257 = vector.load %arg19[%c0_154, %c0_155, %c0_156] : memref<1x8x64xf32, #tpu.memory_space<vmem>>, vector<1x8x64xf32>
    %258 = vector.shape_cast %257 : vector<1x8x64xf32> to vector<8x64xf32>
    %259 = vector.shape_cast %256 : vector<8x64xf32> to vector<1x8x64xf32>
    tpu.vector_store %arg19[%c0_154, %c0_155, %c0_156], %259 {strides = array<i32>} : memref<1x8x64xf32, #tpu.memory_space<vmem>>, vector<1x8x64xf32>,
    return
  }
  func.func @transform_0(%arg0: i32) -> (i32, i32, i32) {
    %c0_i32 = arith.constant 0 : i32
    %c0_i32_0 = arith.constant 0 : i32
    %c0_i32_1 = arith.constant 0 : i32
    return %arg0, %c0_i32, %c0_i32_0 : i32, i32, i32
  }
  func.func @transform_1(%arg0: i32) -> (i32, i32, i32) {
    %c0_i32 = arith.constant 0 : i32
    %c0_i32_0 = arith.constant 0 : i32
    %c0_i32_1 = arith.constant 0 : i32
    return %arg0, %c0_i32, %c0_i32_0 : i32, i32, i32
  }
  func.func @transform_2(%arg0: i32) -> (i32, i32) {
    %c0_i32 = arith.constant 0 : i32
    %c0_i32_0 = arith.constant 0 : i32
    %c0_i32_1 = arith.constant 0 : i32
    return %c0_i32, %c0_i32_0 : i32, i32
  }
  func.func @transform_3(%arg0: i32) -> (i32, i32) {
    %c0_i32 = arith.constant 0 : i32
    %c0_i32_0 = arith.constant 0 : i32
    %c0_i32_1 = arith.constant 0 : i32
    return %c0_i32, %c0_i32_0 : i32, i32
  }
  func.func @transform_4(%arg0: i32) -> (i32, i32, i32) {
    %c0_i32 = arith.constant 0 : i32
    %c0_i32_0 = arith.constant 0 : i32
    %c0_i32_1 = arith.constant 0 : i32
    %c0_i32_2 = arith.constant 0 : i32
    return %c0_i32, %c0_i32_0, %c0_i32_1 : i32, i32, i32
  }
  func.func @transform_5(%arg0: i32) -> (i32, i32, i32) {
    %c0_i32 = arith.constant 0 : i32
    %c0_i32_0 = arith.constant 0 : i32
    %c0_i32_1 = arith.constant 0 : i32
    %c0_i32_2 = arith.constant 0 : i32
    return %c0_i32, %c0_i32_0, %c0_i32_1 : i32, i32, i32
  }
  func.func @transform_6(%arg0: i32) -> (i32, i32, i32) {
    %c0_i32 = arith.constant 0 : i32
    %c0_i32_0 = arith.constant 0 : i32
    %c0_i32_1 = arith.constant 0 : i32
    %c0_i32_2 = arith.constant 0 : i32
    return %c0_i32, %c0_i32_0, %c0_i32_1 : i32, i32, i32
  }
  func.func @transform_7(%arg0: i32) -> (i32, i32, i32) {
    %c0_i32 = arith.constant 0 : i32
    %c0_i32_0 = arith.constant 0 : i32
    %c0_i32_1 = arith.constant 0 : i32
    %c0_i32_2 = arith.constant 0 : i32
    return %c0_i32, %c0_i32_0, %c0_i32_1 : i32, i32, i32
  }
  func.func @transform_8(%arg0: i32) -> (i32, i32, i32) {
    %c0_i32 = arith.constant 0 : i32
    %c0_i32_0 = arith.constant 0 : i32
    %c0_i32_1 = arith.constant 0 : i32
    %c0_i32_2 = arith.constant 0 : i32
    return %c0_i32, %c0_i32_0, %c0_i32_1 : i32, i32, i32
  }
  func.func @transform_9(%arg0: i32) -> (i32, i32, i32) {
    %c0_i32 = arith.constant 0 : i32
    %c0_i32_0 = arith.constant 0 : i32
    %c0_i32_1 = arith.constant 0 : i32
    %c0_i32_2 = arith.constant 0 : i32
    return %c0_i32, %c0_i32_0, %c0_i32_1 : i32, i32, i32
  }
  func.func @transform_10(%arg0: i32) -> (i32, i32, i32) {
    %c0_i32 = arith.constant 0 : i32
    %c0_i32_0 = arith.constant 0 : i32
    %c0_i32_1 = arith.constant 0 : i32
    %c0_i32_2 = arith.constant 0 : i32
    return %c0_i32, %c0_i32_0, %c0_i32_1 : i32, i32, i32
  }
  func.func @transform_11(%arg0: i32) -> (i32, i32) {
    %c0_i32 = arith.constant 0 : i32
    %c0_i32_0 = arith.constant 0 : i32
    %c0_i32_1 = arith.constant 0 : i32
    return %c0_i32, %c0_i32_0 : i32, i32
  }
  func.func @transform_12(%arg0: i32) -> (i32, i32) {
    %c0_i32 = arith.constant 0 : i32
    %c0_i32_0 = arith.constant 0 : i32
    %c0_i32_1 = arith.constant 0 : i32
    return %c0_i32, %c0_i32_0 : i32, i32
  }
  func.func @transform_13(%arg0: i32) -> (i32, i32) {
    %c0_i32 = arith.constant 0 : i32
    %c0_i32_0 = arith.constant 0 : i32
    %c0_i32_1 = arith.constant 0 : i32
    return %c0_i32, %c0_i32_0 : i32, i32
  }
  func.func @transform_14(%arg0: i32) -> (i32, i32) {
    %c0_i32 = arith.constant 0 : i32
    %c0_i32_0 = arith.constant 0 : i32
    %c0_i32_1 = arith.constant 0 : i32
    return %c0_i32, %c0_i32_0 : i32, i32
  }
  func.func @transform_15(%arg0: i32) -> (i32, i32) {
    %c0_i32 = arith.constant 0 : i32
    %c0_i32_0 = arith.constant 0 : i32
    %c0_i32_1 = arith.constant 0 : i32
    return %c0_i32, %c0_i32_0 : i32, i32
  }
  func.func @transform_16(%arg0: i32) -> (i32, i32) {
    %c0_i32 = arith.constant 0 : i32
    %c0_i32_0 = arith.constant 0 : i32
    %c0_i32_1 = arith.constant 0 : i32
    return %c0_i32, %c0_i32_0 : i32, i32
  }
  func.func @transform_17(%arg0: i32) -> (i32, i32) {
    %c0_i32 = arith.constant 0 : i32
    %c0_i32_0 = arith.constant 0 : i32
    %c0_i32_1 = arith.constant 0 : i32
    return %c0_i32, %c0_i32_0 : i32, i32
  }
  func.func @transform_18(%arg0: i32) -> (i32, i32, i32) {
    %c0_i32 = arith.constant 0 : i32
    %c0_i32_0 = arith.constant 0 : i32
    %c0_i32_1 = arith.constant 0 : i32
    return %arg0, %c0_i32, %c0_i32_0 : i32, i32, i32
  }
}

</mosaic_0001>

<bundles_post_ra>
// kernel: transformer_vptd_forward.6
= control target key start
LH: loop header
LB: loop body
LE: loop exit
PB: predicated region body
PF: predicated region fallthrough
CT: control target
= control target key end

     0   :  { %s2975_s0 = inlined_call_operand.hbm [shape: f32[2,5,32], index: 0, kind: input, shape index: {}]   ;;  %s2976_s1 = inlined_call_operand.hbm [shape: f32[2,8,64], index: 1, kind: input, shape index: {}]   ;;  %s2977_s2 = inlined_call_operand.hbm [shape: f32[10,64], index: 2, kind: input, shape index: {}]   ;;  %s2978_s3 = inlined_call_operand.hbm [shape: bf16[32,64], index: 3, kind: input, shape index: {}]   ;;  %s2979_s4 = inlined_call_operand.hbm [shape: f32[1,64], index: 4, kind: input, shape index: {}]   ;;  %s2980_s5 = inlined_call_operand.hbm [shape: bf16[64,32], index: 5, kind: input, shape index: {}]   ;;  %s2981_s6 = inlined_call_operand.hbm [shape: bf16[64,32], index: 6, kind: input, shape index: {}]   ;;  %s2982_s7 = inlined_call_operand.hbm [shape: bf16[64,64], index: 7, kind: input, shape index: {}]   ;;  %s2983_s8 = inlined_call_operand.hbm [shape: f32[1,64], index: 8, kind: input, shape index: {}]   ;;  %s2984_s9 = inlined_call_operand.hbm [shape: f32[1,64], index: 9, kind: input, shape index: {}]   ;;  %s2985_s10 = inlined_call_operand.hbm [shape: f32[1,64], index: 10, kind: input, shape index: {}]   ;;  %s2986_s11 = inlined_call_operand.hbm [shape: f32[1,64], index: 11, kind: input, shape index: {}]   ;;  %s2987_s12 = inlined_call_operand.hbm [shape: f32[2,5,64], index: 12, kind: output, shape index: {0}]   ;;  %s2988_s13 = inlined_call_operand.hbm [shape: f32[2,5,64], index: 13, kind: output, shape index: {1}]   ;;  %s2989_s14 = inlined_call_operand.hbm [shape: f32[2,5,18], index: 14, kind: output, shape index: {2}]  }
   0x1   :  { %3004 = sst [smem:[#allocation37_spill]] %s2975_s0 }
   0x2   :  { %3005 = sst [smem:[#allocation38_spill]] %s2976_s1 }
   0x3   :  { %3006 = sst [smem:[#allocation39_spill]] %s2977_s2 }
   0x4   :  { %3007 = sst [smem:[#allocation40_spill]] %s2978_s3 }
   0x5   :  { %3008 = sst [smem:[#allocation41_spill]] %s2979_s4 }
   0x6   :  { %3009 = sst [smem:[#allocation42_spill]] %s2980_s5 }
   0x7   :  { %3010 = sst [smem:[#allocation43_spill]] %s2981_s6 }
   0x8   :  { %3011 = sst [smem:[#allocation44_spill]] %s2982_s7 }
   0x9   :  { %3012 = sst [smem:[#allocation45_spill]] %s2983_s8 }
   0xa   :  { %3013 = sst [smem:[#allocation46_spill]] %s2984_s9 }
   0xb   :  { %3014 = sst [smem:[#allocation47_spill]] %s2985_s10 }
   0xc   :  { %3015 = sst [smem:[#allocation48_spill]] %s2986_s11 }
   0xd   :  { %3016 = sst [smem:[#allocation49_spill]] %s2987_s12 }
   0xe   :  { %3017 = sst [smem:[#allocation50_spill]] %s2988_s13 }
   0xf   :  { %3018 = sst [smem:[#allocation51_spill]] %s2989_s14 }
  0x10   :  { %20 = vsyncpa [#allocation3], 0 }
  0x11   :  { %22 = vsyncpa [#allocation3 + $0x1], 0 }
  0x12   :  { %23 = vsyncpa [#allocation6], 0 }
  0x13   :  { %25 = vsyncpa [#allocation6 + $0x1], 0 }
  0x14   :  { %26 = vsyncpa [#allocation9], 0 }
  0x15   :  { %27 = vsyncpa [#allocation12], 0 }
  0x16   :  { %28 = vsyncpa [#allocation15], 0 }
  0x17   :  { %29 = vsyncpa [#allocation18], 0 }
  0x18   :  { %30 = vsyncpa [#allocation21], 0 }
  0x19   :  { %31 = vsyncpa [#allocation4], 0 }
  0x1a   :  { %33 = vsyncpa [#allocation4 + $0x1], 0 }
  0x1b   :  { %34 = vsyncpa [#allocation24], 0 }
  0x1c   :  { %36 = vsyncpa [#allocation24 + $0x1], 0  ;;  %s2397_s29 = smov 0   ;;  %s2399_s30 = smov 0  }
  0x1d   :  { %s2401_s15 = smov 0   ;;  %s2403_s16 = smov 0  }
  0x1e LB: > { %s2301_s17 = smov [#allocation7]   ;;  %s2418_s19 = sadd.s32 4294967295, %s2299_s16   ;;  %s2299_s16 = sphi %s2403_s16, %s3068_s16   ;;  %s2295_s15 = sphi %s2401_s15, %s3067_s15   ;;  %s2291_s30 = sphi %s2399_s30, %s3066_s30   ;;  %s2287_s29 = sphi %s2397_s29, %s3065_s29  }
  0x1f   : > { %s399_s18 = sshll.u32 %s2301_s17, 4  ;;  %p1464_p0 = scmp.ge.s32.totalorder %s2299_s16, 1  ;;  %s2423_s18 = int_to_ptr.vmem [resolvable:$true] %s399_s18 }
  0x20   : > { %p2996_p1 = scmp.eq.s32.totalorder %s2418_s19, 0  ;;  %p387_p2 = scmp.lt.s32.totalorder %s2299_s16, 3 }
  0x21   : > { %s2302_s21 = smov [#allocation8]   ;;  %s2303_s24 = smov [#allocation11]  }
  0x22   : > { %p2425_p3 = pnand %p1464_p0, %p387_p2  ;;  %s412_s22 = sshll.u32 %s2302_s21, 4  ;;  %s2438_s22 = int_to_ptr.vmem [resolvable:$true] %s412_s22 }
  0x23   : > { %s2440_s25 = sshll.u32 %s2303_s24, 4  ;;  %s3022_s2 = sld [smem:[#allocation39_spill]]  ;;  %s437_s25 = int_to_ptr.vmem [resolvable:$true] %s2440_s25 }
  0x24   : > { %s3019_s20 = scalar_select %p2425_p3, 1, 0 }
  0x25   : > { %p1665_p5 = pneg %p2425_p3 }
  0x26   : > { %3020 = sst [smem:[#allocation36_spill]] %s3019_s20 }
  0x27   : > { %p2434_p6 = pnand %p1665_p5, %p2996_p1 }
  0x29   : > { %s1805_s28 = scalar_lea.hbm %s3022_s2, 256  ;;  %p2450_p8 = pneg %p2434_p6 }
  0x2a   : > { %p1806_p7 = scmp.ne.s32.totalorder %s3022_s2, %s1805_s28  ;;  %p1812_p11 = scmp.lt.u32.totalorder %s1805_s28, %s3022_s2 }
  0x2c   : > { %p1808_p9 = pnand %p2450_p8, %p1806_p7 }
  0x2e   : > { %p1809_p10 = pneg %p1808_p9 }
  0x30   : > { %p1814_p12 = pnand %p1812_p11, %p1809_p10 }
  0x32   : > { %1817 = shalt.err (!%p1814_p12)
}
  0x33   : > { %s1818_s12 = scalar_lea.vmem %s2423_s18, 256  ;;  %p1826_p5 = scmp.lt.s32.totalorder %s2423_s18, %s2423_s18 }
  0x34   : > { %p1819_p13 = scmp.ne.s32.totalorder %s2423_s18, %s1818_s12  ;;  %p1827_p4 = scmp.lt.s32.totalorder %s1818_s12, %s1818_s12 }
  0x36   : > { %p1821_p0 = pnand %p1819_p13, %p2450_p8  ;;  %p1828_p7 = por %p1827_p4, %p1826_p5 }
  0x38   : > { %p1822_p2 = pneg %p1821_p0 }
  0x3a   : > { %p1829_p9 = pnand %p1828_p7, %p1822_p2 }
  0x3c   : > { %1832 = shalt.err (!%p1829_p9)
}
  0x3d   : > { %s2304_s26 = smov 128   ;;  %s2305_s14 = smov 8  }
  0x3e   : > { %1668 = dma.hbm_to_vmem [thread:$0]  (!%p2434_p6), %s3022_s2, 256, %s2423_s18, [#allocation6], %s2304_s26, %s2304_s26, %s2305_s14  }
  0x3f   : > { %s3024_s3 = sld [smem:[#allocation40_spill]] }
  0x45   : > { %s1833_s13 = scalar_lea.hbm %s3024_s3, 256 }
  0x46   : > { %p1834_p4 = scmp.ne.s32.totalorder %s3024_s3, %s1833_s13  ;;  %p1840_p12 = scmp.lt.u32.totalorder %s1833_s13, %s3024_s3 }
  0x48   : > { %p1836_p10 = pnand %p1834_p4, %p2450_p8 }
  0x4a   : > { %p1837_p11 = pneg %p1836_p10 }
  0x4c   : > { %p1842_p13 = pnand %p1840_p12, %p1837_p11 }
  0x4e   : > { %1845 = shalt.err (!%p1842_p13)
}
  0x4f   : > { %s1846_s18 = scalar_lea.vmem %s2438_s22, 256  ;;  %p1854_p7 = scmp.lt.s32.totalorder %s2438_s22, %s2438_s22 }
  0x50   : > { %p1847_p0 = scmp.ne.s32.totalorder %s2438_s22, %s1846_s18  ;;  %p1855_p9 = scmp.lt.s32.totalorder %s1846_s18, %s1846_s18 }
  0x52   : > { %p1849_p2 = pnand %p1847_p0, %p2450_p8  ;;  %p1856_p4 = por %p1855_p9, %p1854_p7 }
  0x54   : > { %p1850_p5 = pneg %p1849_p2 }
  0x56   : > { %p1857_p10 = pnand %p1856_p4, %p1850_p5 }
  0x58   : > { %1860 = shalt.err (!%p1857_p10)
}
  0x59   : > { %s2306_s1 = smov 64   ;;  %s2307_s0 = smov 4  }
  0x5a   : > { %1671 = dma.hbm_to_vmem [thread:$0]  (!%p2434_p6), %s3024_s3, 256, %s2438_s22, [#allocation9], %s2306_s1, %s2306_s1, %s2307_s0  }
  0x5b   : > { %s3025_s5 = sld [smem:[#allocation42_spill]] }
  0x61   : > { %s1861_s27 = scalar_lea.hbm %s3025_s5, 512 }
  0x62   : > { %p1862_p11 = scmp.ne.s32.totalorder %s3025_s5, %s1861_s27  ;;  %p1868_p0 = scmp.lt.u32.totalorder %s1861_s27, %s3025_s5 }
  0x64   : > { %p1864_p12 = pnand %p1862_p11, %p2450_p8 }
  0x66   : > { %p1865_p13 = pneg %p1864_p12 }
  0x68   : > { %p1870_p2 = pnand %p1868_p0, %p1865_p13 }
  0x6a   : > { %1873 = shalt.err (!%p1870_p2)
}
  0x6b   : > { %s1874_s18 = scalar_lea.vmem %s437_s25, 512  ;;  %p1882_p4 = scmp.lt.s32.totalorder %s437_s25, %s437_s25 }
  0x6c   : > { %p1875_p5 = scmp.ne.s32.totalorder %s437_s25, %s1874_s18  ;;  %p1883_p10 = scmp.lt.s32.totalorder %s1874_s18, %s1874_s18 }
  0x6e   : > { %p1877_p7 = pnand %p1875_p5, %p2450_p8  ;;  %p1884_p1 = por %p1883_p10, %p1882_p4 }
  0x70   : > { %p1878_p9 = pneg %p1877_p7 }
  0x72   : > { %p1885_p3 = pnand %p1884_p1, %p1878_p9 }
  0x74   : > { %1888 = shalt.err (!%p1885_p3)
}
  0x75   : > { %1677 = dma.hbm_to_vmem [thread:$0]  (!%p2434_p6), %s3025_s5, 512, %s437_s25, [#allocation12], %s2306_s1, %s2306_s1, %s2307_s0  }
  0x76   : > { %s2308_s20 = smov [#allocation14]   ;;  %s2309_s14 = smov [#allocation17]  }
  0x77   : > { %s462_s26 = sshll.u32 %s2308_s20, 4  ;;  %s487_s27 = sshll.u32 %s2309_s14, 4  ;;  %s463_s26 = int_to_ptr.vmem [resolvable:$true] %s462_s26  ;;  %s488_s27 = int_to_ptr.vmem [resolvable:$true] %s487_s27 }
  0x78   : > { %s3026_s7 = sld [smem:[#allocation44_spill]] }
  0x7e   : > { %s1889_s24 = scalar_lea.hbm %s3026_s7, 512 }
  0x7f   : > { %p1890_p1 = scmp.ne.s32.totalorder %s3026_s7, %s1889_s24  ;;  %p1896_p12 = scmp.lt.u32.totalorder %s1889_s24, %s3026_s7 }
  0x81   : > { %p1892_p3 = pnand %p1890_p1, %p2450_p8 }
  0x83   : > { %p1893_p11 = pneg %p1892_p3 }
  0x85   : > { %p1898_p13 = pnand %p1896_p12, %p1893_p11 }
  0x87   : > { %1901 = shalt.err (!%p1898_p13)
}
  0x88   : > { %s1902_s25 = scalar_lea.vmem %s463_s26, 512  ;;  %p1910_p7 = scmp.lt.s32.totalorder %s463_s26, %s463_s26 }
  0x89   : > { %p1903_p0 = scmp.ne.s32.totalorder %s463_s26, %s1902_s25  ;;  %p1911_p9 = scmp.lt.s32.totalorder %s1902_s25, %s1902_s25 }
  0x8b   : > { %p1905_p2 = pnand %p1903_p0, %p2450_p8  ;;  %p1912_p4 = por %p1911_p9, %p1910_p7 }
  0x8d   : > { %p1906_p5 = pneg %p1905_p2 }
  0x8f   : > { %p1913_p10 = pnand %p1912_p4, %p1906_p5 }
  0x91   : > { %1916 = shalt.err (!%p1913_p10)
}
  0x92   : > { %1683 = dma.hbm_to_vmem [thread:$0]  (!%p2434_p6), %s3026_s7, 512, %s463_s26, [#allocation15], %s2306_s1, %s2306_s1, %s2307_s0  }
  0x93   : > { %s3027_s9 = sld [smem:[#allocation46_spill]] }
  0x99   : > { %s1917_s28 = scalar_lea.hbm %s3027_s9, 16 }
  0x9a   : > { %p1918_p1 = scmp.ne.s32.totalorder %s3027_s9, %s1917_s28  ;;  %p1924_p12 = scmp.lt.u32.totalorder %s1917_s28, %s3027_s9 }
  0x9c   : > { %p1920_p3 = pnand %p1918_p1, %p2450_p8 }
  0x9e   : > { %p1921_p11 = pneg %p1920_p3 }
  0xa0   : > { %p1926_p13 = pnand %p1924_p12, %p1921_p11 }
  0xa2   : > { %1929 = shalt.err (!%p1926_p13)
}
  0xa3   : > { %s1930_s22 = scalar_lea.vmem %s488_s27, 16  ;;  %s1937_s26 = scalar_lea.vmem %s488_s27, 32 }
  0xa4   : > { %p1931_p0 = scmp.ne.s32.totalorder %s488_s27, %s1930_s22  ;;  %p1938_p7 = scmp.lt.s32.totalorder %s488_s27, %s488_s27 }
  0xa5   : > { %p1939_p9 = scmp.lt.s32.totalorder %s1937_s26, %s1930_s22 }
  0xa6   : > { %p1933_p2 = pnand %p1931_p0, %p2450_p8 }
  0xa7   : > { %p1940_p4 = por %p1939_p9, %p1938_p7 }
  0xa8   : > { %p1934_p5 = pneg %p1933_p2 }
  0xaa   : > { %p1941_p10 = pnand %p1940_p4, %p1934_p5 }
  0xac   : > { %1944 = shalt.err (!%p1941_p10)
}
  0xad   : > { %1689 = dma.hbm_to_vmem [thread:$0]  (!%p2434_p6), %s3027_s9, 16, %s488_s27, [#allocation18]  }
  0xae   : > { %s2310_s13 = smov [#allocation10]   ;;  %s2311_s14 = smov [#allocation13]  }
  0xaf   : > { %s426_s20 = sshll.u32 %s2310_s13, 4  ;;  %s449_s28 = sshll.u32 %s2311_s14, 4  ;;  %s427_s20 = int_to_ptr.vmem [resolvable:$true] %s426_s20  ;;  %s450_s28 = int_to_ptr.vmem [resolvable:$true] %s449_s28 }
  0xb0   : > { %s3028_s4 = sld [smem:[#allocation41_spill]] }
  0xb6   : > { %s1945_s12 = scalar_lea.hbm %s3028_s4, 16 }
  0xb7   : > { %p1946_p1 = scmp.ne.s32.totalorder %s3028_s4, %s1945_s12  ;;  %p1952_p12 = scmp.lt.u32.totalorder %s1945_s12, %s3028_s4 }
  0xb9   : > { %p1948_p3 = pnand %p1946_p1, %p2450_p8 }
  0xbb   : > { %p1949_p11 = pneg %p1948_p3 }
  0xbd   : > { %p1954_p13 = pnand %p1952_p12, %p1949_p11 }
  0xbf   : > { %1957 = shalt.err (!%p1954_p13)
}
  0xc0   : > { %s1958_s27 = scalar_lea.vmem %s427_s20, 16  ;;  %s1965_s2 = scalar_lea.vmem %s427_s20, 32 }
  0xc1   : > { %p1959_p0 = scmp.ne.s32.totalorder %s427_s20, %s1958_s27  ;;  %p1966_p7 = scmp.lt.s32.totalorder %s427_s20, %s427_s20 }
  0xc2   : > { %p1967_p9 = scmp.lt.s32.totalorder %s1965_s2, %s1958_s27 }
  0xc3   : > { %p1961_p2 = pnand %p1959_p0, %p2450_p8 }
  0xc4   : > { %p1968_p4 = por %p1967_p9, %p1966_p7 }
  0xc5   : > { %p1962_p5 = pneg %p1961_p2 }
  0xc7   : > { %p1969_p10 = pnand %p1968_p4, %p1962_p5 }
  0xc9   : > { %1972 = shalt.err (!%p1969_p10)
}
  0xca   : > { %1674 = dma.hbm_to_vmem [thread:$0]  (!%p2434_p6), %s3028_s4, 16, %s427_s20, [#allocation9]  }
  0xcb   : > { %s3029_s6 = sld [smem:[#allocation43_spill]] }
  0xd1   : > { %s1973_s12 = scalar_lea.hbm %s3029_s6, 512 }
  0xd2   : > { %p1974_p1 = scmp.ne.s32.totalorder %s3029_s6, %s1973_s12  ;;  %p1980_p12 = scmp.lt.u32.totalorder %s1973_s12, %s3029_s6 }
  0xd4   : > { %p1976_p3 = pnand %p1974_p1, %p2450_p8 }
  0xd6   : > { %p1977_p11 = pneg %p1976_p3 }
  0xd8   : > { %p1982_p13 = pnand %p1980_p12, %p1977_p11 }
  0xda   : > { %1985 = shalt.err (!%p1982_p13)
}
  0xdb   : > { %s1986_s27 = scalar_lea.vmem %s450_s28, 512  ;;  %p1994_p7 = scmp.lt.s32.totalorder %s450_s28, %s450_s28 }
  0xdc   : > { %p1987_p0 = scmp.ne.s32.totalorder %s450_s28, %s1986_s27  ;;  %p1995_p9 = scmp.lt.s32.totalorder %s1986_s27, %s1986_s27 }
  0xde   : > { %p1989_p2 = pnand %p1987_p0, %p2450_p8  ;;  %p1996_p4 = por %p1995_p9, %p1994_p7 }
  0xe0   : > { %p1990_p5 = pneg %p1989_p2 }
  0xe2   : > { %p1997_p10 = pnand %p1996_p4, %p1990_p5 }
  0xe4   : > { %2000 = shalt.err (!%p1997_p10)
}
  0xe5   : > { %1680 = dma.hbm_to_vmem [thread:$0]  (!%p2434_p6), %s3029_s6, 512, %s450_s28, [#allocation12], %s2306_s1, %s2306_s1, %s2307_s0  }
  0xe6   : > { %s2312_s13 = smov [#allocation16]   ;;  %s2313_s17 = smov [#allocation19]  }
  0xe7   : > { %s476_s14 = sshll.u32 %s2312_s13, 4  ;;  %s498_s24 = sshll.u32 %s2313_s17, 4  ;;  %s477_s14 = int_to_ptr.vmem [resolvable:$true] %s476_s14  ;;  %s499_s24 = int_to_ptr.vmem [resolvable:$true] %s498_s24 }
  0xe8   : > { %s3030_s8 = sld [smem:[#allocation45_spill]] }
  0xee   : > { %s2001_s22 = scalar_lea.hbm %s3030_s8, 16 }
  0xef   : > { %p2002_p1 = scmp.ne.s32.totalorder %s3030_s8, %s2001_s22  ;;  %p2008_p12 = scmp.lt.u32.totalorder %s2001_s22, %s3030_s8 }
  0xf1   : > { %p2004_p3 = pnand %p2002_p1, %p2450_p8 }
  0xf3   : > { %p2005_p11 = pneg %p2004_p3 }
  0xf5   : > { %p2010_p13 = pnand %p2008_p12, %p2005_p11 }
  0xf7   : > { %2013 = shalt.err (!%p2010_p13)
}
  0xf8   : > { %s2014_s1 = scalar_lea.vmem %s477_s14, 16  ;;  %s2021_s0 = scalar_lea.vmem %s477_s14, 32 }
  0xf9   : > { %p2015_p0 = scmp.ne.s32.totalorder %s477_s14, %s2014_s1  ;;  %p2022_p7 = scmp.lt.s32.totalorder %s477_s14, %s477_s14 }
  0xfa   : > { %p2023_p9 = scmp.lt.s32.totalorder %s2021_s0, %s2014_s1 }
  0xfb   : > { %p2017_p2 = pnand %p2015_p0, %p2450_p8 }
  0xfc   : > { %p2024_p4 = por %p2023_p9, %p2022_p7 }
  0xfd   : > { %p2018_p5 = pneg %p2017_p2 }
  0xff   : > { %p2025_p10 = pnand %p2024_p4, %p2018_p5 }
 0x101   : > { %2028 = shalt.err (!%p2025_p10)
}
 0x102   : > { %1686 = dma.hbm_to_vmem [thread:$0]  (!%p2434_p6), %s3030_s8, 16, %s477_s14, [#allocation15]  }
 0x103   : > { %s3031_s10 = sld [smem:[#allocation47_spill]] }
 0x109   : > { %s2029_s12 = scalar_lea.hbm %s3031_s10, 16 }
 0x10a   : > { %p2030_p1 = scmp.ne.s32.totalorder %s3031_s10, %s2029_s12  ;;  %p2036_p12 = scmp.lt.u32.totalorder %s2029_s12, %s3031_s10 }
 0x10c   : > { %p2032_p3 = pnand %p2030_p1, %p2450_p8 }
 0x10e   : > { %p2033_p11 = pneg %p2032_p3 }
 0x110   : > { %p2038_p13 = pnand %p2036_p12, %p2033_p11 }
 0x112   : > { %2041 = shalt.err (!%p2038_p13)
}
 0x113   : > { %s2042_s27 = scalar_lea.vmem %s499_s24, 16  ;;  %s2049_s14 = scalar_lea.vmem %s499_s24, 32 }
 0x114   : > { %p2043_p0 = scmp.ne.s32.totalorder %s499_s24, %s2042_s27  ;;  %p2050_p7 = scmp.lt.s32.totalorder %s499_s24, %s499_s24 }
 0x115   : > { %p2051_p9 = scmp.lt.s32.totalorder %s2049_s14, %s2042_s27 }
 0x116   : > { %p2045_p2 = pnand %p2043_p0, %p2450_p8 }
 0x117   : > { %p2052_p4 = por %p2051_p9, %p2050_p7 }
 0x118   : > { %p2046_p5 = pneg %p2045_p2 }
 0x11a   : > { %p2053_p10 = pnand %p2052_p4, %p2046_p5 }
 0x11c   : > { %2056 = shalt.err (!%p2053_p10)
}
 0x11d   : > { %1692 = dma.hbm_to_vmem [thread:$0]  (!%p2434_p6), %s3031_s10, 16, %s499_s24, [#allocation18]  }
 0x11e   : > { %s2314_s0 = smov [#allocation20]   ;;  %s3032_s11 = sld [smem:[#allocation48_spill]] }
 0x11f   : > { %s509_s28 = sshll.u32 %s2314_s0, 4  ;;  %s510_s28 = int_to_ptr.vmem [resolvable:$true] %s509_s28 }
 0x124   : > { %s2057_s17 = scalar_lea.hbm %s3032_s11, 16 }
 0x125   : > { %p2058_p1 = scmp.ne.s32.totalorder %s3032_s11, %s2057_s17  ;;  %p2064_p12 = scmp.lt.u32.totalorder %s2057_s17, %s3032_s11 }
 0x127   : > { %p2060_p3 = pnand %p2058_p1, %p2450_p8 }
 0x129   : > { %p2061_p11 = pneg %p2060_p3 }
 0x12b   : > { %p2066_p13 = pnand %p2064_p12, %p2061_p11 }
 0x12d   : > { %2069 = shalt.err (!%p2066_p13)
}
 0x12e   : > { %s2070_s24 = scalar_lea.vmem %s510_s28, 16  ;;  %s2077_s25 = scalar_lea.vmem %s510_s28, 32 }
 0x12f   : > { %p2071_p0 = scmp.ne.s32.totalorder %s510_s28, %s2070_s24  ;;  %p2078_p7 = scmp.lt.s32.totalorder %s510_s28, %s510_s28 }
 0x130   : > { %p2079_p9 = scmp.lt.s32.totalorder %s2077_s25, %s2070_s24 }
 0x131   : > { %p2073_p2 = pnand %p2071_p0, %p2450_p8 }
 0x132   : > { %p2080_p4 = por %p2079_p9, %p2078_p7 }
 0x133   : > { %p2074_p5 = pneg %p2073_p2 }
 0x135   : > { %p2081_p10 = pnand %p2080_p4, %p2074_p5 }
 0x137   : > { %2084 = shalt.err (!%p2081_p10)
}
 0x138   : > { %1695 = dma.hbm_to_vmem [thread:$0]  (!%p2434_p6), %s3032_s11, 16, %s510_s28, [#allocation21]  }
 0x139   : > { %s2998_s23 = sadd.s32 4294967294, %s2299_s16   ;;  %s2653_s21 = sadd.s32 1, %s2299_s16  }
 0x13a   : > { %s46_s20 = ssub.s32 %s2299_s16, %s2653_s21  ;;  %s49_s1 = sadd.s32 1, %s2295_s15 }
 0x13b   : > { %p47_p8 = scmp.eq.s32.totalorder %s46_s20, 0  ;;  %p56_p1 = scmp.ne.s32.totalorder %s2295_s15, %s2291_s30 }
 0x13c   : > { %p57_p3 = scmp.eq.s32.totalorder %s2299_s16, 0  ;;  %p62_p11 = scmp.ne.s32.totalorder %s2291_s30, %s2287_s29 }
 0x13d   : > { %s2664_s0 = scalar_select %p47_p8, %s2295_s15, %s49_s1  }
 0x13e   : > { %p2666_p12 = por %p57_p3, %p56_p1  ;;  %p3034_p13 = scmp.eq.s32.totalorder %s2418_s19, 0 }
 0x13f   : > { %p322_p0 = scmp.eq.s32.totalorder %s2418_s19, 1  ;;  %p328_p2 = scmp.eq.s32.totalorder %s2998_s23, 1 }
 0x140   : > { %p2672_p6 = por %p3034_p13, %p62_p11  ;;  %p1723_p5 = scmp.lt.s32.totalorder %s2299_s16, 2 }
 0x141   : > { %s520_s13 = sand.u32 1, %s2295_s15   ;;  %p2681_p7 = por %p322_p0, %p56_p1 }
 0x142   : > { %s3035_s28 = scalar_select %p2672_p6, 1, 0 }
 0x143   : > { %s3036_s17 = scalar_select %p2681_p7, 1, 0 }
 0x144   : > { %p2685_p9 = por %p328_p2, %p62_p11  ;;  %s2689_s18 = sshll.u32 %s520_s13, 3 }
 0x145   : > { %s1477_s22 = sshll.u32 %s2299_s16, 7  ;;  %s3038_s25 = sld [smem:[#allocation37_spill]] }
 0x146   : > { %s3037_s12 = scalar_select %p2685_p9, 1, 0 }
 0x147   : > { %s524_s14 = scalar_lea.vmem [#allocation2], %s2689_s18  ;;  %p2702_p4 = pnand %p1723_p5, %p2666_p12 }
 0x148   : > { %s531_s20 = sshll.u32 %s524_s14, 4  ;;  %s3040_s4 = sld [smem:[#allocation38_spill]]  ;;  %s2698_s20 = int_to_ptr.vmem [resolvable:$true] %s531_s20 }
 0x149   : > { %s538_s24 = sand.u32 1, %s2299_s16   ;;  %s521_s5 = scalar_lea.sflag [#allocation3], %s520_s13 }
 0x14a   : > { %p2087_p8 = pneg %p2702_p4 }
 0x14b   : > { %s2695_s27 = scalar_lea.hbm %s3038_s25, %s1477_s22  ;;  %s2090_s7 = scalar_lea.hbm %s3038_s25, 256 }
 0x14c   : > { %s2085_s6 = scalar_lea.hbm %s2695_s27, 128  ;;  %p2091_p11 = scmp.lt.u32.totalorder %s2695_s27, %s3038_s25 }
 0x14d   : > { %p2086_p10 = scmp.ne.s32.totalorder %s2695_s27, %s2085_s6  ;;  %p2092_p12 = scmp.lt.u32.totalorder %s2090_s7, %s2085_s6 }
 0x14e   : > { %s2709_s26 = scalar_lea.hbm %s3040_s4, %s1477_s22  ;;  %p2094_p0 = scmp.lt.u32.totalorder %s2085_s6, %s2695_s27 }
 0x14f   : > { %p2088_p1 = pnand %p2087_p8, %p2086_p10  ;;  %p2093_p13 = por %p2092_p12, %p2091_p11 }
 0x151   : > { %p2089_p3 = pneg %p2088_p1  ;;  %p2095_p2 = por %p2094_p0, %p2093_p13 }
 0x153   : > { %p2096_p5 = pnand %p2095_p2, %p2089_p3 }
 0x155   : > { %2099 = shalt.err (!%p2096_p5)
}
 0x156   : > { %s2100_s23 = scalar_lea.vmem %s2698_s20, 128  ;;  %s2315_s13 = smov [#allocation2]  }
 0x157   : > { %p2101_p10 = scmp.ne.s32.totalorder %s2698_s20, %s2100_s23  ;;  %s2105_s22 = sshll.u32 %s2315_s13, 4  ;;  %s2106_s22 = int_to_ptr.vmem [resolvable:$false] %s2105_s22 }
 0x158   : > { %s2107_s8 = scalar_lea.vmem %s2106_s22, 256  ;;  %p2108_p7 = scmp.lt.s32.totalorder %s2698_s20, %s2106_s22 }
 0x159   : > { %p2103_p1 = pnand %p2101_p10, %p2087_p8  ;;  %p2109_p11 = scmp.lt.s32.totalorder %s2107_s8, %s2100_s23 }
 0x15b   : > { %p2104_p9 = pneg %p2103_p1  ;;  %p2110_p12 = por %p2109_p11, %p2108_p7 }
 0x15d   : > { %p2111_p13 = pnand %p2110_p12, %p2104_p9 }
 0x15f   : > { %2114 = shalt.err (!%p2111_p13)
}
 0x160   : > { %1699 = dma.hbm_to_vmem [thread:$0]  (!%p2702_p4), %s2695_s27, 128, %s2698_s20, %s521_s5  }
 0x161   : > { %s542_s6 = scalar_lea.vmem [#allocation5], %s2689_s18  ;;  %s539_s2 = scalar_lea.sflag [#allocation6], %s538_s24 }
 0x162   : > { %s549_s7 = sshll.u32 %s542_s6, 4  ;;  %s2115_s14 = scalar_lea.hbm %s2709_s26, 128  ;;  %s550_s7 = int_to_ptr.vmem [resolvable:$true] %s549_s7 }
 0x163   : > { %p2116_p7 = scmp.ne.s32.totalorder %s2709_s26, %s2115_s14  ;;  %s2120_s13 = scalar_lea.hbm %s3040_s4, 256 }
 0x164   : > { %p2121_p0 = scmp.lt.u32.totalorder %s2709_s26, %s3040_s4  ;;  %p2122_p2 = scmp.lt.u32.totalorder %s2120_s13, %s2115_s14 }
 0x165   : > { %p2118_p9 = pnand %p2116_p7, %p2087_p8  ;;  %p2124_p10 = scmp.lt.u32.totalorder %s2115_s14, %s2709_s26 }
 0x166   : > { %p2123_p5 = por %p2122_p2, %p2121_p0 }
 0x167   : > { %p2119_p3 = pneg %p2118_p9 }
 0x168   : > { %p2125_p1 = por %p2124_p10, %p2123_p5 }
 0x16a   : > { %p2126_p11 = pnand %p2125_p1, %p2119_p3 }
 0x16c   : > { %2129 = shalt.err (!%p2126_p11)
}
 0x16d   : > { %s2130_s5 = scalar_lea.vmem %s550_s7, 128  ;;  %s2316_s18 = smov [#allocation5]  }
 0x16e   : > { %p2131_p12 = scmp.ne.s32.totalorder %s550_s7, %s2130_s5  ;;  %s2135_s27 = sshll.u32 %s2316_s18, 4  ;;  %s2136_s27 = int_to_ptr.vmem [resolvable:$false] %s2135_s27 }
 0x16f   : > { %s2137_s20 = scalar_lea.vmem %s2136_s27, 256  ;;  %p2138_p9 = scmp.lt.s32.totalorder %s550_s7, %s2136_s27 }
 0x170   : > { %p2133_p13 = pnand %p2131_p12, %p2087_p8  ;;  %p2139_p6 = scmp.lt.s32.totalorder %s2137_s20, %s2130_s5 }
 0x172   : > { %p2134_p7 = pneg %p2133_p13  ;;  %p2140_p0 = por %p2139_p6, %p2138_p9 }
 0x174   : > { %p2141_p2 = pnand %p2140_p0, %p2134_p7 }
 0x176   : > { %2144 = shalt.err (!%p2141_p2)
}
 0x177   : > { %1702 = dma.hbm_to_vmem [thread:$0]  (!%p2702_p4), %s2709_s26, 128, %s550_s7, %s539_s2  }
 0x178   : > { %s3041_s24 = sld [smem:[#allocation36_spill]] }
 0x17e   : > { %p3042_p3 = scmp.ne.s32.totalorder %s3041_s24, 0 }
 0x17f   : > { %s2762_s6 = sand.u32 (!%p3042_p3), 1, %s2291_s30   ;;  %p3043_p6 = scmp.ne.s32.totalorder (!%p3042_p3), %s3035_s28, 0 }
 0x180   : > { %558 = sbr.rel (%p3042_p3) target bundleno = 2180 (0x884), region = 68  ;;  %s2765_s14 = sshll.u32 (!%p3042_p3), %s2762_s6, 3 }
 0x181   : > { %s561_s3 = scalar_lea.sflag (!%p3042_p3), [#allocation3], %s2762_s6  ;;  %s564_s23 = scalar_lea.vmem (!%p3042_p3), [#allocation2], %s2765_s14 }
 0x187   : > { %2246 = dma.done.wait (%p3043_p6), %s561_s3, 128  }
 0x188   : > { %2248 = vsyncadd (%p3043_p6), %s561_s3, 4294967168  ;;  %s3002_s1 = sand.u32 1, %s2418_s19   ;;  %s573_s7 = scalar_lea.vmem [#allocation5], %s2765_s14 }
 0x189   : > { %s570_s26 = scalar_lea.sflag [#allocation6], %s3002_s1 }
 0x18a   : > { %2250 = dma.done.wait (%p3043_p6), %s570_s26, 128  }
 0x18b   : > { %2252 = vsyncadd (%p3043_p6), %s570_s26, 4294967168  ;;  %p3044_p4 = scmp.eq.s32.totalorder %s2418_s19, 0 }
 0x18d   : > { %2254 = dma.done.wait (%p3044_p4), [#allocation6], 256   ;;  %p3045_p8 = pmov %p3044_p4 }
 0x18e   : > { %p3046_p5 = pmov %p3044_p4 }
 0x18f   : > { %2256 = vsyncadd (%p3045_p8), [#allocation6], 4294967040 }
 0x190   : > { %2258 = dma.done.wait (%p3046_p5), [#allocation9], 272   ;;  %p3047_p10 = pmov %p3044_p4 }
 0x191   : > { %p3048_p1 = pmov %p3044_p4 }
 0x192   : > { %2260 = vsyncadd (%p3047_p10), [#allocation9], 4294967024 }
 0x193   : > { %2262 = dma.done.wait (%p3048_p1), [#allocation12], 1024   ;;  %p3049_p11 = pmov %p3048_p1 }
 0x194   : > { %p3050_p12 = pmov %p3048_p1 }
 0x195   : > { %2264 = vsyncadd (%p3049_p11), [#allocation12], 4294966272 }
 0x196   : > { %2266 = dma.done.wait (%p3050_p12), [#allocation15], 528   ;;  %p3051_p13 = pmov %p3048_p1 }
 0x197   : > { %p3052_p7 = pmov %p3048_p1 }
 0x198   : > { %2268 = vsyncadd (%p3051_p13), [#allocation15], 4294966768 }
 0x199   : > { %2270 = dma.done.wait (%p3052_p7), [#allocation18], 32   ;;  %p3053_p9 = pmov %p3048_p1 }
 0x19a   : > { %p3054_p0 = pmov %p3048_p1 }
 0x19b   : > { %2272 = vsyncadd (%p3053_p9), [#allocation18], 4294967264 }
 0x19c   : > { %2274 = dma.done.wait (%p3054_p0), [#allocation21], 16   ;;  %p3055_p2 = pmov %p3054_p0 }
 0x19d   : > { %v2317_v0 = vmov 0.0   ;;  %vm2318_vm0 = vmmov 0   ;;  %v1783_v1 = vld [vmem:[#allocation8] sm:$0xff]   ;;  %v1784_v2 = vld [vmem:[#allocation8 + $0x8] sm:$0xff]   ;;  %v674_v3 = vld [vmem:[%s564_s23] sm:$0x1f] }
 0x19e   : > { %2276 = vsyncadd (%p3055_p2), [#allocation21], 4294967280  ;;  %1555 = vmatprep.subr.bf16.mxu1 %v2317_v0  ;;  %1559 = vmatprep.mubr.msk.bf16.mxu1 %vm2318_vm0, %v2317_v0  ;;  %v1785_v4 = vld [vmem:[#allocation13] sm:$0xff]   ;;  %v1786_v5 = vld [vmem:[#allocation13 + $0x8] sm:$0xff]   ;;  %v675_v6 = vpack.c.bf16 %v674_v3, %v674_v3  ;;  %vm699_vm1 = vcmask 261120   ;;  %vm782_vm2 = vcmask 523264  }
 0x19f   : > { %1556 = vmatpush3.bf16.msra.mxu1 %v1783_v1  ;;  %1575 = vmatprep.subr.bf16.mxu0 %v1785_v4  ;;  %v743_v7 = vld [vmem:[%s573_s7] sm:$0xff]  ;;  %v744_v8 = vld [vmem:[#allocation7] sm:$0xff]  ;;  %v745_v14 = vld [vmem:[#allocation7 + $0x8] sm:$0x3]  ;;  %vm964_vm3 = vcmask 143360   ;;  %vm981_vm4 = vcmask 1040384  }
 0x1a0   : > { %1557 = vmatprep.subr.bf16.mxu1 %v2317_v0  ;;  %1576 = vmatpush3.bf16.msra.mxu0 %v1785_v4  ;;  %v1787_v9 = vld [vmem:[#allocation13 + $0x10] sm:$0xff]   ;;  %v746_v10 = vpack.c.bf16 %v744_v8, %v743_v7  ;;  %v1789_v11 = vld [vmem:[#allocation11] sm:$0xff]   ;;  %v1788_v12 = vld [vmem:[#allocation13 + $0x18] sm:$0xff]   ;;  %v747_v15 = vpack.c.bf16 %v745_v14, %v745_v14  ;;  %vm977_vm5 = vcmask 146432   ;;  %s672_s28 = scalar_lea.vmem [#allocation25], %s2765_s14  ;;  %vm1103_vm6 = vcmask 520192  }
 0x1a1   : > { %1577 = vmatprep.subr.bf16.mxu0 %v1786_v5  ;;  %v1790_v13 = vld [vmem:[#allocation11 + $0x8] sm:$0xff]   ;;  %v1791_v16 = vld [vmem:[#allocation11 + $0x10] sm:$0xff]   ;;  %v1792_v17 = vld [vmem:[#allocation11 + $0x18] sm:$0xff]   ;;  %s1525_s2 = sshll.u32 %s2418_s19, 7  ;;  %s665_s13 = scalar_lea.vmem [#allocation23], %s2765_s14 }
 0x1a2   : > { %1583 = vmatprep.mubr.msk.bf16.mxu0 %vm782_vm2, %v746_v10  ;;  %v1496_v18 = vld [vmem:[#allocation10] ss:$0 sm:$0xff]  ;;  %v982_v49 = vsel %vm981_vm4, %v747_v15, 0  ;;  %v1793_v53 = vld [vmem:[#allocation14] sm:$0xff]   ;;  %v1794_v55 = vld [vmem:[#allocation14 + $0x8] sm:$0xff]   ;;  %s1201_s22 = sshll.u32 %s665_s13, 4  ;;  %s2865_s22 = int_to_ptr.vmem [resolvable:$true] %s1201_s22 }
 0x1a3   : > { %1558 = vmatpush3.bf16.msra.mxu1 %v1784_v2  ;;  %v1795_v56 = vld [vmem:[#allocation14 + $0x10] sm:$0xff]   ;;  %v1796_v57 = vld [vmem:[#allocation14 + $0x18] sm:$0xff]   ;;  %s1214_s8 = sshll.u32 %s672_s28, 4  ;;  %s3056_s27 = sld [smem:[#allocation50_spill]]  ;;  %s2872_s8 = int_to_ptr.vmem [resolvable:$true] %s1214_s8 }
 0x1a4   : > { %1563 = vmatprep.subr.bf16.mxu1 %v2317_v0  ;;  %1578 = vmatpush3.bf16.msra.mxu0 %v1786_v5  ;;  %s3001_s24 = scalar_lea.vmem [#allocation22], %s2765_s14  ;;  %s3057_s7 = sld [smem:[#allocation51_spill]] }
 0x1a5   : > { %1579 = vmatprep.subr.bf16.mxu0 %v1787_v9  ;;  %s1188_s3 = sshll.u32 %s3001_s24, 4  ;;  %s3058_s24 = sld [smem:[#allocation49_spill]]  ;;  %s2880_s3 = int_to_ptr.vmem [resolvable:$true] %s1188_s3 }
 0x1a6   : > { %1560 = vmatmul.mubr.msk.bf16.vlgmr.msra.gmra.mrb[0].mxu1 %vm699_vm1, %v675_v6  ;;  %s3059_s4 = sand.u32 1, %s2418_s19   ;;  %s2145_s10 = scalar_lea.vmem %s2865_s22, 128 }
 0x1a7   : > { %1564 = vmatpush3.bf16.msra.mxu1 %v1789_v11  ;;  %1571 = vmatprep.mubr.msk.bf16.mxu1 %vm2318_vm0, %v2317_v0  ;;  %s2884_s9 = scalar_lea.sflag [#allocation24], %s3059_s4  ;;  %p2146_p3 = scmp.ne.s32.totalorder %s2865_s22, %s2145_s10 }
 0x1a8   : > { %1565 = vmatprep.subr.bf16.mxu1 %v2317_v0  ;;  %1580 = vmatpush3.bf16.msra.mxu0 %v1787_v9  ;;  %p3060_p6 = scmp.ne.s32.totalorder %s3036_s17, 0  ;;  %s2319_s23 = smov [#allocation23]  }
 0x1a9   : > { %1581 = vmatprep.subr.bf16.mxu0 %v1788_v12  ;;  %s2860_s20 = scalar_lea.hbm %s3056_s27, %s1525_s2  ;;  %s2149_s26 = sshll.u32 %s2319_s23, 4  ;;  %s2150_s26 = int_to_ptr.vmem [resolvable:$false] %s2149_s26 }
 0x1aa   : > { %p2147_p4 = pnand %p2146_p3, %p3060_p6  ;;  %s2151_s11 = scalar_lea.vmem %s2150_s26, 256 }
 0x1ab   : > { %1566 = vmatpush3.bf16.msra.mxu1 %v1790_v13  ;;  %s2878_s1 = scalar_lea.hbm %s3058_s24, %s1525_s2  ;;  %p2152_p5 = scmp.lt.s32.totalorder %s2865_s22, %s2150_s26 }
 0x1ac   : > { %1567 = vmatprep.subr.bf16.mxu1 %v2317_v0  ;;  %1582 = vmatpush3.bf16.msra.mxu0 %v1788_v12  ;;  %p2148_p8 = pneg %p2147_p4  ;;  %p2153_p10 = scmp.lt.s32.totalorder %s2151_s11, %s2145_s10 }
 0x1ad   : > { %1595 = vmatprep.subr.bf16.mxu0 %v2317_v0 }
 0x1ae   : > { %p2154_p1 = por %p2153_p10, %p2152_p5 }
 0x1af   : > { %1584 = vmatmul.mubr.msk.bf16.vlgmr.msra.gmra.mrb[0].mxu0 %vm782_vm2, %v747_v15  ;;  %1568 = vmatpush3.bf16.msra.mxu1 %v1791_v16 }
 0x1b0   : > { %1596 = vmatpush3.bf16.msra.mxu0 %v746_v10  ;;  %1599 = vmatprep.mubr.msk.bf16.mxu0 %vm2318_vm0, %v2317_v0  ;;  %p2155_p11 = pnand %p2154_p1, %p2148_p8 }
 0x1b1   : > { %1597 = vmatprep.subr.bf16.mxu0 %v2317_v0  ;;  %1569 = vmatprep.subr.bf16.mxu1 %v2317_v0 }
 0x1b3   : > { %1570 = vmatpush3.bf16.msra.mxu1 %v1792_v17 }
 0x1b4   : > { %1587 = vmatprep.subr.bf16.mxu1 %v2317_v0  ;;  %1598 = vmatpush3.bf16.msra.mxu0 %v982_v49 }
 0x1b5   : > { %1603 = vmatprep.subr.bf16.mxu0 %v2317_v0 }
 0x279   : > { %v737_v19 = vpop.f32.mrb[0].mxu1 }
 0x27a   : > { %v2825_v20 = vadd.f32 %v1496_v18, %v737_v19  ;;  %v1561_v21 = vpop.f32.mrb[1].mxu1 }
 0x27b   : > { %v740_v22 = vpop.f32.mrb[2].mxu1 }
 0x27c   : > { %v748_v23 = vmul.f32 0.17677669, %v2825_v20  ;;  %v1562_v24 = vpop.f32.mrb[3].mxu1 }
 0x27e   : > { %v749_v25 = vpack.c.bf16 %v748_v23, %v748_v23  ;;  %v1520_v23 = vld [vmem:[#allocation16] ss:$0 sm:$0xff] }
 0x280   : > { %1572 = vmatmul.mubr.msk.bf16.vlgmr.msra.gmra.mrb[4].mxu1 %vm782_vm2, %v749_v25  ;;  %v1521_v25 = vld [vmem:[#allocation17] ss:$0 sm:$0xff] }
 0x281   : > { %1591 = vmatprep.mubr.msk.bf16.mxu1 %vm2318_vm0, %v2317_v0 }
 0x282   : > { %v1585_v26 = vpop.f32.mrb[0].mxu0 }
 0x283   : > { %v898_v27 = vpop.f32.mrb[1].mxu0  ;;  %v914_v32 = vpack.c.bf16 %v1585_v26, %v1585_v26 }
 0x284   : > { %v1586_v28 = vpop.f32.mrb[2].mxu0 }
 0x285   : > { %v901_v29 = vpop.f32.mrb[3].mxu0  ;;  %v922_v33 = vsel %vm699_vm1, %v914_v32, 0  ;;  %v1518_v28 = vld [vmem:[#allocation19] ss:$0 sm:$0xff] }
 0x286   : > { %v913_v30 = vpack.c.bf16 %v901_v29, %v898_v27 }
 0x288   : > { %v919_v31 = vsel %vm699_vm1, %v913_v30, 0 }
 0x289   : > { %1588 = vmatpush3.bf16.xpose.msra.mxu1 %v919_v31  ;;  %v1519_v31 = vld [vmem:[#allocation20] ss:$0 sm:$0xff] }
 0x28a   : > { %1589 = vmatprep.subr.bf16.mxu1 %v2317_v0 }
 0x291   : > { %1590 = vmatpush3.bf16.xpose.msra.mxu1 %v922_v33 }
 0x353   : > { %v820_v34 = vpop.f32.mrb[4].mxu1 }
 0x354   : > { %v912_v35 = vpack.c.bf16 %v820_v34, %v820_v34  ;;  %v1573_v36 = vpop.f32.mrb[5].mxu1 }
 0x355   : > { %v823_v37 = vpop.f32.mrb[6].mxu1 }
 0x356   : > { %v1574_v38 = vpop.f32.mrb[7].mxu1  ;;  %1592 = vmatmul.mubr.msk.bf16.vlgmr.msra.gmra.mrb[8].mxu1 %vm699_vm1, %v912_v35 }
 0x429   : > { %v958_v39 = vpop.f32.mrb[8].mxu1 }
 0x42a   : > { %v1593_v40 = vpop.f32.mrb[9].mxu1  ;;  %v965_v41 = vsel %vm964_vm3, %v958_v39, -inf }
 0x42b   : > { %966 = vmax.xlane.f32.xlu0 %v965_v41  ;;  %v961_v42 = vpop.f32.mrb[10].mxu1 }
 0x42c   : > { %v1594_v43 = vpop.f32.mrb[11].mxu1 }
 0x4b8   : > { %v967_v44 = vpop.xlane.xlu0 %966 }
 0x4b9   : > { %v968_v45 = vsub.f32 %v958_v39, %v967_v44 }
 0x4bb   : > { %v969_v46 = vmul.f32 1.442695, %v968_v45 }
 0x4bd   : > { %1797 = vpow2.f32 %v969_v46 }
 0x4c7   : > { %v1798_v47 = vpop.eup %1797 }
 0x4c8   : > { %v971_v48 = vsel %vm964_vm3, %v1798_v47, 0.0 }
 0x4c9   : > { %972 = vadd.xlane.f32.xlu0 %v971_v48 }
 0x556   : > { %v973_v50 = vpop.xlane.xlu0 %972 }
 0x557   : > { %1799 = vrcp.f32 %v973_v50 }
 0x561   : > { %v1800_v51 = vpop.eup %1799 }
 0x562   : > { %v975_v52 = vmul.f32 %v1800_v51, %v1798_v47 }
 0x564   : > { %v976_v54 = vpack.c.bf16 %v975_v52, %v975_v52  ;;  %1163 = vst.msk [vmem:[%s672_s28] sm:$0x1f] %vm964_vm3, %v975_v52  ;;  %s2870_s28 = scalar_lea.hbm %s3057_s7, %s1525_s2 }
 0x566   : > { %1600 = vmatmul.mubr.msk.bf16.vlgmr.msra.gmra.mrb[4].mxu0 %vm977_vm5, %v976_v54 }
 0x567   : > { %1604 = vmatpush3.bf16.msra.mxu0 %v1793_v53  ;;  %1611 = vmatprep.mubr.msk.bf16.mxu0 %vm2318_vm0, %v2317_v0 }
 0x568   : > { %1605 = vmatprep.subr.bf16.mxu0 %v2317_v0 }
 0x56b   : > { %1606 = vmatpush3.bf16.msra.mxu0 %v1794_v55 }
 0x56c   : > { %1607 = vmatprep.subr.bf16.mxu0 %v2317_v0 }
 0x56f   : > { %1608 = vmatpush3.bf16.msra.mxu0 %v1795_v56 }
 0x570   : > { %1609 = vmatprep.subr.bf16.mxu0 %v2317_v0 }
 0x573   : > { %1610 = vmatpush3.bf16.msra.mxu0 %v1796_v57 }
 0x639   : > { %v1018_v58 = vpop.f32.mrb[4].mxu0 }
 0x63a   : > { %v1024_v59 = vpack.c.bf16 %v1018_v58, %v1018_v58  ;;  %v1601_v60 = vpop.f32.mrb[5].mxu0 }
 0x63b   : > { %v1021_v61 = vpop.f32.mrb[6].mxu0 }
 0x63c   : > { %v1602_v62 = vpop.f32.mrb[7].mxu0  ;;  %1612 = vmatmul.mubr.msk.bf16.vlgmr.msra.gmra.mrb[8].mxu0 %vm782_vm2, %v1024_v59 }
 0x70f   : > { %v1094_v63 = vpop.f32.mrb[8].mxu0 }
 0x710   : > { %v1613_v1 = vpop.f32.mrb[9].mxu0  ;;  %v1135_v2 = vsel %vm1103_vm6, %v1094_v63, 0.0  ;;  %v1100_v3 = vadd.f32 %v1094_v63, %v2825_v20 }
 0x711   : > { %1136 = vadd.xlane.f32.xlu1 %v1135_v2  ;;  %v1097_v4 = vpop.f32.mrb[10].mxu0 }
 0x712   : > { %v1614_v5 = vpop.f32.mrb[11].mxu0  ;;  %v1104_v0 = vsel %vm1103_vm6, %v1100_v3, 0.0 }
 0x715   : > { %1105 = vadd.xlane.f32.xlu1 %v1104_v0 }
 0x79e   : > { %v1137_v6 = vpop.xlane.xlu1 %1136 }
 0x79f   : > { %v1138_v7 = vmul.f32 0.015625, %v1137_v6 }
 0x7a1   : > { %v1139_v8 = vsub.f32 %v1094_v63, %v1138_v7 }
 0x7a2   : > { %v1106_v9 = vpop.xlane.xlu1 %1105 }
 0x7a3   : > { %v1108_v10 = vmul.f32 0.015625, %v1106_v9  ;;  %v1140_v11 = vmul.f32 %v1139_v8, %v1139_v8 }
 0x7a5   : > { %v1109_v12 = vsub.f32 %v1100_v3, %v1108_v10  ;;  %v1141_v13 = vsel %vm1103_vm6, %v1140_v11, 0.0 }
 0x7a6   : > { %1142 = vadd.xlane.f32.xlu0 %v1141_v13 }
 0x7a7   : > { %v1110_v14 = vmul.f32 %v1109_v12, %v1109_v12 }
 0x7a9   : > { %v1111_v15 = vsel %vm1103_vm6, %v1110_v14, 0.0 }
 0x7aa   : > { %1112 = vadd.xlane.f32.xlu1 %v1111_v15 }
 0x833   : > { %v1143_v16 = vpop.xlane.xlu0 %1142 }
 0x834   : > { %v1144_v17 = vmul.f32 0.015625, %v1143_v16 }
 0x836   : > { %v1145_v18 = vadd.f32 1e-05, %v1144_v17 }
 0x837   : > { %v1113_v19 = vpop.xlane.xlu1 %1112 }
 0x838   : > { %1801 = vrsqrt.f32 %v1145_v18  ;;  %v1114_v20 = vmul.f32 0.015625, %v1113_v19 }
 0x83a   : > { %v1115_v21 = vadd.f32 1e-05, %v1114_v20 }
 0x83c   : > { %1803 = vrsqrt.f32 %v1115_v21 }
 0x842   : > { %v1802_v22 = vpop.eup %1801 }
 0x843   : > { %v1147_v24 = vmul.f32 %v1802_v22, %v1139_v8 }
 0x845   : > { %v1154_v26 = vmul.f32 %v1520_v23, %v1147_v24 }
 0x846   : > { %v1804_v27 = vpop.eup %1803 }
 0x847   : > { %v1117_v29 = vmul.f32 %v1804_v27, %v1109_v12  ;;  %v1161_v30 = vadd.f32 %v1521_v25, %v1154_v26 }
 0x849   : > { %v1124_v32 = vmul.f32 %v1518_v28, %v1117_v29  ;;  %1162 = vst.msk [vmem:[%s665_s13] sm:$0x1f] %vm1103_vm6, %v1161_v30 }
 0x84a   : > { %2158 = shalt.err (!%p2155_p11)
}
 0x84b   : > { %s2159_s4 = scalar_lea.hbm %s2860_s20, 128  ;;  %s2163_s13 = scalar_lea.hbm %s3056_s27, 256 }
 0x84c   : > { %p2160_p12 = scmp.ne.s32.totalorder %s2860_s20, %s2159_s4  ;;  %p2164_p9 = scmp.lt.u32.totalorder %s2860_s20, %s3056_s27 }
 0x84d   : > { %p2165_p0 = scmp.lt.u32.totalorder %s2163_s13, %s2159_s4  ;;  %p2167_p3 = scmp.lt.u32.totalorder %s2159_s4, %s2860_s20 }
 0x84e   : > { %p2161_p13 = pnand %p2160_p12, %p3060_p6 }
 0x84f   : > { %p2166_p2 = por %p2165_p0, %p2164_p9 }
 0x850   : > { %p2162_p7 = pneg %p2161_p13 }
 0x851   : > { %p2168_p4 = por %p2167_p3, %p2166_p2 }
 0x853   : > { %p2169_p8 = pnand %p2168_p4, %p2162_p7 }
 0x855   : > { %2172 = shalt.err (!%p2169_p8)
}
 0x856   : > { %1660 = dma.vmem_to_hbm [thread:$0]  (%p3060_p6), %s2865_s22, 128, %s2860_s20, %s2884_s9   ;;  %v1131_v33 = vadd.f32 %v1519_v31, %v1124_v32 }
 0x857   : > { %s2173_s10 = scalar_lea.vmem %s2872_s8, 128  ;;  %s2320_s11 = smov [#allocation25]  }
 0x858   : > { %p2174_p5 = scmp.ne.s32.totalorder %s2872_s8, %s2173_s10  ;;  %s2177_s23 = sshll.u32 %s2320_s11, 4  ;;  %s2178_s23 = int_to_ptr.vmem [resolvable:$false] %s2177_s23 }
 0x859   : > { %s2179_s26 = scalar_lea.vmem %s2178_s23, 256  ;;  %p2180_p11 = scmp.lt.s32.totalorder %s2872_s8, %s2178_s23 }
 0x85a   : > { %p2175_p10 = pnand %p2174_p5, %p3060_p6  ;;  %p2181_p12 = scmp.lt.s32.totalorder %s2179_s26, %s2173_s10 }
 0x85c   : > { %p2176_p1 = pneg %p2175_p10  ;;  %p2182_p13 = por %p2181_p12, %p2180_p11 }
 0x85e   : > { %p2183_p7 = pnand %p2182_p13, %p2176_p1 }
 0x860   : > { %2186 = shalt.err (!%p2183_p7)
}
 0x861   : > { %s2187_s22 = scalar_lea.hbm %s2870_s28, 128  ;;  %s2191_s19 = scalar_lea.hbm %s3057_s7, 256 }
 0x862   : > { %p2188_p9 = scmp.ne.s32.totalorder %s2870_s28, %s2187_s22  ;;  %p2192_p3 = scmp.lt.u32.totalorder %s2870_s28, %s3057_s7 }
 0x863   : > { %p2193_p4 = scmp.lt.u32.totalorder %s2191_s19, %s2187_s22  ;;  %p2195_p5 = scmp.lt.u32.totalorder %s2187_s22, %s2870_s28 }
 0x864   : > { %p2189_p0 = pnand %p2188_p9, %p3060_p6 }
 0x865   : > { %p2194_p8 = por %p2193_p4, %p2192_p3 }
 0x866   : > { %p2190_p2 = pneg %p2189_p0 }
 0x867   : > { %p2196_p10 = por %p2195_p5, %p2194_p8 }
 0x869   : > { %p2197_p1 = pnand %p2196_p10, %p2190_p2 }
 0x86b   : > { %2200 = shalt.err (!%p2197_p1)
}
 0x86c   : > { %1661 = dma.vmem_to_hbm [thread:$0]  (%p3060_p6), %s2872_s8, 128, %s2870_s28, %s2884_s9  }
 0x86d   : > { %s3061_s5 = scalar_lea.vmem [#allocation22], %s2765_s14  ;;  %s1165_s18 = scalar_lea.sflag [#allocation4], %s2762_s6 }
 0x86e   : > { %1132 = vst.msk [vmem:[%s3061_s5] sm:$0x1f] %vm1103_vm6, %v1131_v33  ;;  %s2201_s10 = scalar_lea.vmem %s2880_s3, 128  ;;  %s2321_s11 = smov [#allocation22]  }
 0x86f   : > { %p2202_p11 = scmp.ne.s32.totalorder %s2880_s3, %s2201_s10  ;;  %s2205_s23 = sshll.u32 %s2321_s11, 4  ;;  %s2206_s23 = int_to_ptr.vmem [resolvable:$false] %s2205_s23 }
 0x870   : > { %s2207_s26 = scalar_lea.vmem %s2206_s23, 256  ;;  %p2208_p7 = scmp.lt.s32.totalorder %s2880_s3, %s2206_s23 }
 0x871   : > { %p2203_p12 = pnand %p2202_p11, %p3060_p6  ;;  %p2209_p9 = scmp.lt.s32.totalorder %s2207_s26, %s2201_s10 }
 0x873   : > { %p2204_p13 = pneg %p2203_p12  ;;  %p2210_p0 = por %p2209_p9, %p2208_p7 }
 0x875   : > { %p2211_p2 = pnand %p2210_p0, %p2204_p13 }
 0x877   : > { %2214 = shalt.err (!%p2211_p2)
}
 0x878   : > { %s2215_s9 = scalar_lea.hbm %s2878_s1, 128  ;;  %s2219_s8 = scalar_lea.hbm %s3058_s24, 256 }
 0x879   : > { %p2216_p3 = scmp.ne.s32.totalorder %s2878_s1, %s2215_s9  ;;  %p2220_p5 = scmp.lt.u32.totalorder %s2878_s1, %s3058_s24 }
 0x87a   : > { %p2221_p10 = scmp.lt.u32.totalorder %s2219_s8, %s2215_s9  ;;  %p2223_p11 = scmp.lt.u32.totalorder %s2215_s9, %s2878_s1 }
 0x87b   : > { %p2217_p4 = pnand %p2216_p3, %p3060_p6 }
 0x87c   : > { %p2222_p1 = por %p2221_p10, %p2220_p5 }
 0x87d   : > { %p2218_p8 = pneg %p2217_p4 }
 0x87e   : > { %p2224_p12 = por %p2223_p11, %p2222_p1 }
 0x880   : > { %p2225_p13 = pnand %p2224_p12, %p2218_p8 }
 0x882   : > { %2228 = shalt.err (!%p2225_p13)
}
 0x883   : > { %1659 = dma.vmem_to_hbm [thread:$0]  (%p3060_p6), %s2880_s3, 128, %s2878_s1, %s1165_s18  }
 0x884 PF: > { %s1226_s20 = sand.u32 1, %s2287_s29   ;;  %p3062_p7 = scmp.ne.s32.totalorder %s3037_s12, 0 }
 0x885   : > { %p3063_p9 = scmp.ge.s32.totalorder %s2299_s16, 2  ;;  %s1227_s4 = scalar_lea.sflag [#allocation4], %s1226_s20 }
 0x887   : > { %p1704_p0 = pnand %p3063_p9, %p3062_p7 }
 0x889   : > { %2278 = dma.done.wait (!%p1704_p0), %s1227_s4, 128  }
 0x88a   : > { %2280 = vsyncadd (!%p1704_p0), %s1227_s4, 4294967168  ;;  %s3064_s19 = sadd.s32 4294967294, %s2299_s16  }
 0x88b   : > { %s1235_s2 = sand.u32 1, %s3064_s19  }
 0x88c   : > { %s1236_s13 = scalar_lea.sflag [#allocation24], %s1235_s2 }
 0x88d   : > { %2282 = dma.done.wait (!%p1704_p0), %s1236_s13, 256  }
 0x88e   : > { %2284 = vsyncadd (!%p1704_p0), %s1236_s13, 4294967040  ;;  %p39_p6 = scmp.ge.s32.totalorder %s2653_s21, 4   ;;  %s3065_s29 = smov %s2291_s30 }
 0x88f   : > { %s3066_s30 = smov %s2295_s15  ;;  %s3067_s15 = smov %s2664_s0 }
 0x890   : > { %s3068_s16 = smov %s2653_s21  ;;  %41 = sbr.rel (!%p39_p6) target bundleno = 30 (0x1e), region = 198 }
 0x897   :  { %1250 = vsyncpa [#allocation3], 1 }
 0x898   :  { %1252 = vsyncpa [#allocation3 + $0x1], 1 }
 0x899   :  { %1253 = vsyncpa [#allocation6], 1 }
 0x89a   :  { %1255 = vsyncpa [#allocation6 + $0x1], 1 }
 0x89b   :  { %1256 = vsyncpa [#allocation9], 1 }
 0x89c   :  { %1257 = vsyncpa [#allocation12], 1 }
 0x89d   :  { %1258 = vsyncpa [#allocation15], 1 }
 0x89e   :  { %1259 = vsyncpa [#allocation18], 1 }
 0x89f   :  { %1260 = vsyncpa [#allocation21], 1 }
 0x8a0   :  { %1261 = vsyncpa [#allocation4], 1 }
 0x8a1   :  { %1263 = vsyncpa [#allocation4 + $0x1], 1 }
 0x8a2   :  { %1264 = vsyncpa [#allocation24], 1 }
 0x8a3   :  { %1266 = vsyncpa [#allocation24 + $0x1], 1 }

// kernel: transformer_vptd_forward.4
= control target key start
LH: loop header
LB: loop body
LE: loop exit
PB: predicated region body
PF: predicated region fallthrough
CT: control target
= control target key end

     0   :  { %s5626_s0 = inlined_call_operand.hbm [shape: f32[2,8,64], index: 0, kind: input, shape index: {}, may-alias: {0,18}]   ;;  %s5627_s1 = inlined_call_operand.hbm [shape: f32[2,4,64], index: 1, kind: input, shape index: {}]   ;;  %s5628_s2 = inlined_call_operand.hbm [shape: f32[1,64], index: 2, kind: input, shape index: {}]   ;;  %s5629_s3 = inlined_call_operand.hbm [shape: f32[1,64], index: 3, kind: input, shape index: {}]   ;;  %s5630_s4 = inlined_call_operand.hbm [shape: bf16[4,64,16], index: 4, kind: input, shape index: {}]   ;;  %s5631_s5 = inlined_call_operand.hbm [shape: f32[4,1,16], index: 5, kind: input, shape index: {}]   ;;  %s5632_s6 = inlined_call_operand.hbm [shape: bf16[4,64,16], index: 6, kind: input, shape index: {}]   ;;  %s5633_s7 = inlined_call_operand.hbm [shape: f32[4,1,16], index: 7, kind: input, shape index: {}]   ;;  %s5634_s8 = inlined_call_operand.hbm [shape: bf16[4,64,16], index: 8, kind: input, shape index: {}]   ;;  %s5635_s9 = inlined_call_operand.hbm [shape: f32[4,1,16], index: 9, kind: input, shape index: {}]   ;;  %s5636_s10 = inlined_call_operand.hbm [shape: bf16[4,16,64], index: 10, kind: input, shape index: {}]   ;;  %s5637_s11 = inlined_call_operand.hbm [shape: f32[1,64], index: 11, kind: input, shape index: {}]   ;;  %s5638_s12 = inlined_call_operand.hbm [shape: f32[1,64], index: 12, kind: input, shape index: {}]   ;;  %s5639_s13 = inlined_call_operand.hbm [shape: f32[1,64], index: 13, kind: input, shape index: {}]   ;;  %s5640_s14 = inlined_call_operand.hbm [shape: bf16[64,256], index: 14, kind: input, shape index: {}]   ;;  %s5641_s15 = inlined_call_operand.hbm [shape: f32[1,256], index: 15, kind: input, shape index: {}]   ;;  %s5642_s16 = inlined_call_operand.hbm [shape: bf16[256,64], index: 16, kind: input, shape index: {}]   ;;  %s5643_s17 = inlined_call_operand.hbm [shape: f32[1,64], index: 17, kind: input, shape index: {}]   ;;  %s5644_s18 = inlined_call_operand.hbm [shape: f32[2,8,64], index: 18, kind: output, shape index: {}, may-alias: {0,18}]  }
   0x1   :  { %5664 = sst [smem:[#allocation50_spill]] %s5626_s0 }
   0x2   :  { %5665 = sst [smem:[#allocation51_spill]] %s5627_s1 }
   0x3   :  { %5666 = sst [smem:[#allocation52_spill]] %s5628_s2 }
   0x4   :  { %5667 = sst [smem:[#allocation53_spill]] %s5629_s3 }
   0x5   :  { %5668 = sst [smem:[#allocation54_spill]] %s5630_s4 }
   0x6   :  { %5669 = sst [smem:[#allocation55_spill]] %s5631_s5 }
   0x7   :  { %5670 = sst [smem:[#allocation56_spill]] %s5632_s6 }
   0x8   :  { %5671 = sst [smem:[#allocation57_spill]] %s5633_s7 }
   0x9   :  { %5672 = sst [smem:[#allocation58_spill]] %s5634_s8 }
   0xa   :  { %5673 = sst [smem:[#allocation59_spill]] %s5643_s17 }
   0xb   :  { %5674 = sst [smem:[#allocation60_spill]] %s5644_s18 }
   0xc   :  { %23 = vsyncpa [#allocation3], 0 }
   0xd   :  { %25 = vsyncpa [#allocation3 + $0x1], 0 }
   0xe   :  { %26 = vsyncpa [#allocation6], 0 }
   0xf   :  { %28 = vsyncpa [#allocation6 + $0x1], 0 }
  0x10   :  { %29 = vsyncpa [#allocation9], 0 }
  0x11   :  { %30 = vsyncpa [#allocation12], 0 }
  0x12   :  { %31 = vsyncpa [#allocation15], 0 }
  0x13   :  { %32 = vsyncpa [#allocation18], 0 }
  0x14   :  { %33 = vsyncpa [#allocation21], 0 }
  0x15   :  { %34 = vsyncpa [#allocation24], 0 }
  0x16   :  { %35 = vsyncpa [#allocation27], 0 }
  0x17   :  { %36 = vsyncpa [#allocation30], 0 }
  0x18   :  { %37 = vsyncpa [#allocation4], 0 }
  0x19   :  { %39 = vsyncpa [#allocation4 + $0x1], 0  ;;  %s4812_s27 = smov 0   ;;  %s4814_s28 = smov 0  }
  0x1a   :  { %s4816_s29 = smov 0   ;;  %s4818_s30 = smov 0  }
  0x1b LB: > { %5675 = sst [smem:[#allocation44_spill]] %s4675_s27  ;;  %s4689_s0 = smov [#allocation7]   ;;  %s4687_s30 = sphi %s4818_s30, %s5202_s30   ;;  %s4683_s29 = sphi %s4816_s29, %s5740_s29   ;;  %s4679_s28 = sphi %s4814_s28, %s5737_s28   ;;  %s4675_s27 = sphi %s4812_s27, %s5739_s27  }
  0x1c   : > { %5676 = sst [smem:[#allocation45_spill]] %s4679_s28  ;;  %s477_s19 = sshll.u32 %s4689_s0, 4  ;;  %s4838_s19 = int_to_ptr.vmem [resolvable:$true] %s477_s19 }
  0x1d   : > { %5677 = sst [smem:[#allocation46_spill]] %s4683_s29  ;;  %s4833_s1 = sadd.s32 4294967295, %s4687_s30  }
  0x1e   : > { %5678 = sst [smem:[#allocation47_spill]] %s4687_s30  ;;  %p3223_p0 = scmp.ge.s32.totalorder %s4687_s30, 1 }
  0x1f   : > { %5679 = sst [smem:[#allocation48_spill]] %s4833_s1  ;;  %p5659_p1 = scmp.eq.s32.totalorder %s4833_s1, 0 }
  0x20   : > { %p464_p2 = scmp.lt.s32.totalorder %s4687_s30, 3  ;;  %s4690_s21 = smov [#allocation8]  }
  0x21   : > { %s488_s22 = sshll.u32 %s4690_s21, 4  ;;  %s4691_s2 = smov [#allocation11]   ;;  %s4847_s22 = int_to_ptr.vmem [resolvable:$true] %s488_s22 }
  0x22   : > { %p4840_p3 = pnand %p3223_p0, %p464_p2  ;;  %s511_s23 = sshll.u32 %s4691_s2, 4  ;;  %s4855_s23 = int_to_ptr.vmem [resolvable:$true] %s511_s23 }
  0x23   : > { %s5683_s0 = sld [smem:[#allocation52_spill]] }
  0x24   : > { %s5680_s20 = scalar_select %p4840_p3, 1, 0 }
  0x25   : > { %p3784_p5 = pneg %p4840_p3 }
  0x26   : > { %5681 = sst [smem:[#allocation49_spill]] %s5680_s20 }
  0x27   : > { %p4851_p6 = pnand %p3784_p5, %p5659_p1 }
  0x29   : > { %s4073_s18 = scalar_lea.hbm %s5683_s0, 16  ;;  %p4865_p8 = pneg %p4851_p6 }
  0x2a   : > { %p4074_p7 = scmp.ne.s32.totalorder %s5683_s0, %s4073_s18  ;;  %p4080_p11 = scmp.lt.u32.totalorder %s4073_s18, %s5683_s0 }
  0x2c   : > { %p4076_p9 = pnand %p4865_p8, %p4074_p7 }
  0x2e   : > { %p4077_p10 = pneg %p4076_p9 }
  0x30   : > { %p4082_p12 = pnand %p4080_p11, %p4077_p10 }
  0x32   : > { %4085 = shalt.err (!%p4082_p12)
}
  0x33   : > { %s4086_s27 = scalar_lea.vmem %s4838_s19, 16  ;;  %s4093_s20 = scalar_lea.vmem %s4838_s19, 32 }
  0x34   : > { %p4087_p13 = scmp.ne.s32.totalorder %s4838_s19, %s4086_s27  ;;  %p4094_p5 = scmp.lt.s32.totalorder %s4838_s19, %s4838_s19 }
  0x35   : > { %p4095_p7 = scmp.lt.s32.totalorder %s4093_s20, %s4086_s27 }
  0x36   : > { %p4089_p0 = pnand %p4087_p13, %p4865_p8 }
  0x37   : > { %p4096_p9 = por %p4095_p7, %p4094_p5 }
  0x38   : > { %p4090_p2 = pneg %p4089_p0 }
  0x3a   : > { %p4097_p4 = pnand %p4096_p9, %p4090_p2 }
  0x3c   : > { %4100 = shalt.err (!%p4097_p4)
}
  0x3d   : > { %3787 = dma.hbm_to_vmem [thread:$0]  (!%p4851_p6), %s5683_s0, 16, %s4838_s19, [#allocation6]  }
  0x3e   : > { %s5685_s3 = sld [smem:[#allocation53_spill]] }
  0x44   : > { %s4101_s2 = scalar_lea.hbm %s5685_s3, 16 }
  0x45   : > { %p4102_p10 = scmp.ne.s32.totalorder %s5685_s3, %s4101_s2  ;;  %p4108_p4 = scmp.lt.u32.totalorder %s4101_s2, %s5685_s3 }
  0x47   : > { %p4104_p11 = pnand %p4102_p10, %p4865_p8 }
  0x49   : > { %p4105_p12 = pneg %p4104_p11 }
  0x4b   : > { %p4110_p13 = pnand %p4108_p4, %p4105_p12 }
  0x4d   : > { %4113 = shalt.err (!%p4110_p13)
}
  0x4e   : > { %s4114_s19 = scalar_lea.vmem %s4847_s22, 16  ;;  %s4121_s28 = scalar_lea.vmem %s4847_s22, 32 }
  0x4f   : > { %p4115_p0 = scmp.ne.s32.totalorder %s4847_s22, %s4114_s19  ;;  %p4122_p7 = scmp.lt.s32.totalorder %s4847_s22, %s4847_s22 }
  0x50   : > { %p4123_p9 = scmp.lt.s32.totalorder %s4121_s28, %s4114_s19 }
  0x51   : > { %p4117_p2 = pnand %p4115_p0, %p4865_p8 }
  0x52   : > { %p4124_p10 = por %p4123_p9, %p4122_p7 }
  0x53   : > { %p4118_p5 = pneg %p4117_p2 }
  0x55   : > { %p4125_p11 = pnand %p4124_p10, %p4118_p5 }
  0x57   : > { %4128 = shalt.err (!%p4125_p11)
}
  0x58   : > { %3790 = dma.hbm_to_vmem [thread:$0]  (!%p4851_p6), %s5685_s3, 16, %s4847_s22, [#allocation9]  }
  0x59   : > { %s5686_s5 = sld [smem:[#allocation55_spill]] }
  0x5f   : > { %s4129_s26 = scalar_lea.hbm %s5686_s5, 64 }
  0x60   : > { %p4130_p12 = scmp.ne.s32.totalorder %s5686_s5, %s4129_s26  ;;  %p4136_p0 = scmp.lt.u32.totalorder %s4129_s26, %s5686_s5 }
  0x62   : > { %p4132_p4 = pnand %p4130_p12, %p4865_p8 }
  0x64   : > { %p4133_p13 = pneg %p4132_p4 }
  0x66   : > { %p4138_p2 = pnand %p4136_p0, %p4133_p13 }
  0x68   : > { %4141 = shalt.err (!%p4138_p2)
}
  0x69   : > { %s4142_s22 = scalar_lea.vmem %s4855_s23, 64  ;;  %p4150_p10 = scmp.lt.s32.totalorder %s4855_s23, %s4855_s23 }
  0x6a   : > { %p4143_p5 = scmp.ne.s32.totalorder %s4855_s23, %s4142_s22  ;;  %p4151_p11 = scmp.lt.s32.totalorder %s4142_s22, %s4142_s22 }
  0x6c   : > { %p4145_p7 = pnand %p4143_p5, %p4865_p8  ;;  %p4152_p12 = por %p4151_p11, %p4150_p10 }
  0x6e   : > { %p4146_p9 = pneg %p4145_p7 }
  0x70   : > { %p4153_p4 = pnand %p4152_p12, %p4146_p9 }
  0x72   : > { %4156 = shalt.err (!%p4153_p4)
}
  0x73   : > { %s4692_s28 = smov 16   ;;  %s4693_s29 = smov 1  }
  0x74   : > { %3796 = dma.hbm_to_vmem [thread:$0]  (!%p4851_p6), %s5686_s5, 64, %s4855_s23, [#allocation12], %s4692_s28, %s4692_s28, %s4693_s29  }
  0x75   : > { %s4694_s25 = smov [#allocation14]   ;;  %s4695_s2 = smov [#allocation17]  }
  0x76   : > { %s537_s26 = sshll.u32 %s4694_s25, 4  ;;  %s563_s27 = sshll.u32 %s4695_s2, 4  ;;  %s538_s26 = int_to_ptr.vmem [resolvable:$true] %s537_s26  ;;  %s564_s27 = int_to_ptr.vmem [resolvable:$true] %s563_s27 }
  0x77   : > { %s5687_s7 = sld [smem:[#allocation57_spill]] }
  0x7d   : > { %s4157_s22 = scalar_lea.hbm %s5687_s7, 64 }
  0x7e   : > { %p4158_p13 = scmp.ne.s32.totalorder %s5687_s7, %s4157_s22  ;;  %p4164_p5 = scmp.lt.u32.totalorder %s4157_s22, %s5687_s7 }
  0x80   : > { %p4160_p0 = pnand %p4158_p13, %p4865_p8 }
  0x82   : > { %p4161_p2 = pneg %p4160_p0 }
  0x84   : > { %p4166_p7 = pnand %p4164_p5, %p4161_p2 }
  0x86   : > { %4169 = shalt.err (!%p4166_p7)
}
  0x87   : > { %s4170_s23 = scalar_lea.vmem %s538_s26, 64  ;;  %p4178_p12 = scmp.lt.s32.totalorder %s538_s26, %s538_s26 }
  0x88   : > { %p4171_p9 = scmp.ne.s32.totalorder %s538_s26, %s4170_s23  ;;  %p4179_p4 = scmp.lt.s32.totalorder %s4170_s23, %s4170_s23 }
  0x8a   : > { %p4173_p10 = pnand %p4171_p9, %p4865_p8  ;;  %p4180_p1 = por %p4179_p4, %p4178_p12 }
  0x8c   : > { %p4174_p11 = pneg %p4173_p10 }
  0x8e   : > { %p4181_p3 = pnand %p4180_p1, %p4174_p11 }
  0x90   : > { %4184 = shalt.err (!%p4181_p3)
}
  0x91   : > { %3802 = dma.hbm_to_vmem [thread:$0]  (!%p4851_p6), %s5687_s7, 64, %s538_s26, [#allocation15], %s4692_s28, %s4692_s28, %s4693_s29  }
  0x92   : > { %s4185_s18 = scalar_lea.hbm %s5635_s9, 64 }
  0x93   : > { %p4186_p1 = scmp.ne.s32.totalorder %s5635_s9, %s4185_s18  ;;  %p4192_p0 = scmp.lt.u32.totalorder %s4185_s18, %s5635_s9 }
  0x95   : > { %p4188_p3 = pnand %p4186_p1, %p4865_p8 }
  0x97   : > { %p4189_p13 = pneg %p4188_p3 }
  0x99   : > { %p4194_p2 = pnand %p4192_p0, %p4189_p13 }
  0x9b   : > { %4197 = shalt.err (!%p4194_p2)
}
  0x9c   : > { %s4198_s19 = scalar_lea.vmem %s564_s27, 64  ;;  %p4206_p10 = scmp.lt.s32.totalorder %s564_s27, %s564_s27 }
  0x9d   : > { %p4199_p5 = scmp.ne.s32.totalorder %s564_s27, %s4198_s19  ;;  %p4207_p11 = scmp.lt.s32.totalorder %s4198_s19, %s4198_s19 }
  0x9f   : > { %p4201_p7 = pnand %p4199_p5, %p4865_p8  ;;  %p4208_p12 = por %p4207_p11, %p4206_p10 }
  0xa1   : > { %p4202_p9 = pneg %p4201_p7 }
  0xa3   : > { %p4209_p4 = pnand %p4208_p12, %p4202_p9 }
  0xa5   : > { %4212 = shalt.err (!%p4209_p4)
}
  0xa6   : > { %3808 = dma.hbm_to_vmem [thread:$0]  (!%p4851_p6), %s5635_s9, 64, %s564_s27, [#allocation18], %s4692_s28, %s4692_s28, %s4693_s29  }
  0xa7   : > { %s4696_s23 = smov [#allocation20]   ;;  %s4697_s17 = smov [#allocation23]  }
  0xa8   : > { %s590_s3 = sshll.u32 %s4696_s23, 4  ;;  %s612_s30 = sshll.u32 %s4697_s17, 4  ;;  %s591_s3 = int_to_ptr.vmem [resolvable:$true] %s590_s3  ;;  %s613_s30 = int_to_ptr.vmem [resolvable:$true] %s612_s30 }
  0xa9   : > { %s4213_s1 = scalar_lea.hbm %s5637_s11, 16 }
  0xaa   : > { %p4214_p1 = scmp.ne.s32.totalorder %s5637_s11, %s4213_s1  ;;  %p4220_p0 = scmp.lt.u32.totalorder %s4213_s1, %s5637_s11 }
  0xac   : > { %p4216_p3 = pnand %p4214_p1, %p4865_p8 }
  0xae   : > { %p4217_p13 = pneg %p4216_p3 }
  0xb0   : > { %p4222_p2 = pnand %p4220_p0, %p4217_p13 }
  0xb2   : > { %4225 = shalt.err (!%p4222_p2)
}
  0xb3   : > { %s4226_s28 = scalar_lea.vmem %s591_s3, 16  ;;  %s4233_s29 = scalar_lea.vmem %s591_s3, 32 }
  0xb4   : > { %p4227_p5 = scmp.ne.s32.totalorder %s591_s3, %s4226_s28  ;;  %p4234_p10 = scmp.lt.s32.totalorder %s591_s3, %s591_s3 }
  0xb5   : > { %p4235_p11 = scmp.lt.s32.totalorder %s4233_s29, %s4226_s28 }
  0xb6   : > { %p4229_p7 = pnand %p4227_p5, %p4865_p8 }
  0xb7   : > { %p4236_p12 = por %p4235_p11, %p4234_p10 }
  0xb8   : > { %p4230_p9 = pneg %p4229_p7 }
  0xba   : > { %p4237_p4 = pnand %p4236_p12, %p4230_p9 }
  0xbc   : > { %4240 = shalt.err (!%p4237_p4)
}
  0xbd   : > { %3814 = dma.hbm_to_vmem [thread:$0]  (!%p4851_p6), %s5637_s11, 16, %s591_s3, [#allocation21]  }
  0xbe   : > { %s4241_s17 = scalar_lea.hbm %s5639_s13, 16 }
  0xbf   : > { %p4242_p1 = scmp.ne.s32.totalorder %s5639_s13, %s4241_s17  ;;  %p4248_p0 = scmp.lt.u32.totalorder %s4241_s17, %s5639_s13 }
  0xc1   : > { %p4244_p3 = pnand %p4242_p1, %p4865_p8 }
  0xc3   : > { %p4245_p13 = pneg %p4244_p3 }
  0xc5   : > { %p4250_p2 = pnand %p4248_p0, %p4245_p13 }
  0xc7   : > { %4253 = shalt.err (!%p4250_p2)
}
  0xc8   : > { %s4254_s2 = scalar_lea.vmem %s613_s30, 16  ;;  %s4261_s3 = scalar_lea.vmem %s613_s30, 32 }
  0xc9   : > { %p4255_p5 = scmp.ne.s32.totalorder %s613_s30, %s4254_s2  ;;  %p4262_p10 = scmp.lt.s32.totalorder %s613_s30, %s613_s30 }
  0xca   : > { %p4263_p11 = scmp.lt.s32.totalorder %s4261_s3, %s4254_s2 }
  0xcb   : > { %p4257_p7 = pnand %p4255_p5, %p4865_p8 }
  0xcc   : > { %p4264_p12 = por %p4263_p11, %p4262_p10 }
  0xcd   : > { %p4258_p9 = pneg %p4257_p7 }
  0xcf   : > { %p4265_p4 = pnand %p4264_p12, %p4258_p9 }
  0xd1   : > { %4268 = shalt.err (!%p4265_p4)
}
  0xd2   : > { %3820 = dma.hbm_to_vmem [thread:$0]  (!%p4851_p6), %s5639_s13, 16, %s613_s30, [#allocation24]  }
  0xd3   : > { %s4698_s28 = smov [#allocation26]   ;;  %s4699_s27 = smov [#allocation10]  }
  0xd4   : > { %s636_s29 = sshll.u32 %s4698_s28, 4  ;;  %s498_s26 = sshll.u32 %s4699_s27, 4  ;;  %s637_s29 = int_to_ptr.vmem [resolvable:$true] %s636_s29  ;;  %s499_s26 = int_to_ptr.vmem [resolvable:$true] %s498_s26 }
  0xd5   : > { %s4269_s17 = scalar_lea.hbm %s5641_s15, 32 }
  0xd6   : > { %p4270_p1 = scmp.ne.s32.totalorder %s5641_s15, %s4269_s17  ;;  %p4276_p0 = scmp.lt.u32.totalorder %s4269_s17, %s5641_s15 }
  0xd8   : > { %p4272_p3 = pnand %p4270_p1, %p4865_p8 }
  0xda   : > { %p4273_p13 = pneg %p4272_p3 }
  0xdc   : > { %p4278_p2 = pnand %p4276_p0, %p4273_p13 }
  0xde   : > { %4281 = shalt.err (!%p4278_p2)
}
  0xdf   : > { %s4282_s30 = scalar_lea.vmem %s637_s29, 32  ;;  %p4290_p10 = scmp.lt.s32.totalorder %s637_s29, %s637_s29 }
  0xe0   : > { %p4283_p5 = scmp.ne.s32.totalorder %s637_s29, %s4282_s30  ;;  %p4291_p11 = scmp.lt.s32.totalorder %s4282_s30, %s4282_s30 }
  0xe2   : > { %p4285_p7 = pnand %p4283_p5, %p4865_p8  ;;  %p4292_p12 = por %p4291_p11, %p4290_p10 }
  0xe4   : > { %p4286_p9 = pneg %p4285_p7 }
  0xe6   : > { %p4293_p4 = pnand %p4292_p12, %p4286_p9 }
  0xe8   : > { %4296 = shalt.err (!%p4293_p4)
}
  0xe9   : > { %3826 = dma.hbm_to_vmem [thread:$0]  (!%p4851_p6), %s5641_s15, 32, %s637_s29, [#allocation27]  }
  0xea   : > { %s5688_s4 = sld [smem:[#allocation54_spill]] }
  0xf0   : > { %s4297_s28 = scalar_lea.hbm %s5688_s4, 2048 }
  0xf1   : > { %p4298_p1 = scmp.ne.s32.totalorder %s5688_s4, %s4297_s28  ;;  %p4304_p0 = scmp.lt.u32.totalorder %s4297_s28, %s5688_s4 }
  0xf3   : > { %p4300_p3 = pnand %p4298_p1, %p4865_p8 }
  0xf5   : > { %p4301_p13 = pneg %p4300_p3 }
  0xf7   : > { %p4306_p2 = pnand %p4304_p0, %p4301_p13 }
  0xf9   : > { %4309 = shalt.err (!%p4306_p2)
}
  0xfa   : > { %s4310_s0 = scalar_lea.vmem %s499_s26, 2048  ;;  %p4318_p10 = scmp.lt.s32.totalorder %s499_s26, %s499_s26 }
  0xfb   : > { %p4311_p5 = scmp.ne.s32.totalorder %s499_s26, %s4310_s0  ;;  %p4319_p11 = scmp.lt.s32.totalorder %s4310_s0, %s4310_s0 }
  0xfd   : > { %p4313_p7 = pnand %p4311_p5, %p4865_p8  ;;  %p4320_p12 = por %p4319_p11, %p4318_p10 }
  0xff   : > { %p4314_p9 = pneg %p4313_p7 }
 0x101   : > { %p4321_p4 = pnand %p4320_p12, %p4314_p9 }
 0x103   : > { %4324 = shalt.err (!%p4321_p4)
}
 0x104   : > { %s4700_s29 = smov 64   ;;  %s4701_s18 = smov 4  }
 0x105   : > { %3793 = dma.hbm_to_vmem [thread:$0]  (!%p4851_p6), %s5688_s4, 2048, %s499_s26, [#allocation9], %s4700_s29, %s4700_s29, %s4701_s18  }
 0x106   : > { %s4702_s30 = smov [#allocation13]   ;;  %s4703_s3 = smov [#allocation16]  }
 0x107   : > { %s524_s2 = sshll.u32 %s4702_s30, 4  ;;  %s550_s20 = sshll.u32 %s4703_s3, 4  ;;  %s525_s2 = int_to_ptr.vmem [resolvable:$true] %s524_s2  ;;  %s551_s20 = int_to_ptr.vmem [resolvable:$true] %s550_s20 }
 0x108   : > { %s5689_s6 = sld [smem:[#allocation56_spill]] }
 0x10e   : > { %s4325_s27 = scalar_lea.hbm %s5689_s6, 2048 }
 0x10f   : > { %p4326_p1 = scmp.ne.s32.totalorder %s5689_s6, %s4325_s27  ;;  %p4332_p0 = scmp.lt.u32.totalorder %s4325_s27, %s5689_s6 }
 0x111   : > { %p4328_p3 = pnand %p4326_p1, %p4865_p8 }
 0x113   : > { %p4329_p13 = pneg %p4328_p3 }
 0x115   : > { %p4334_p2 = pnand %p4332_p0, %p4329_p13 }
 0x117   : > { %4337 = shalt.err (!%p4334_p2)
}
 0x118   : > { %s4338_s26 = scalar_lea.vmem %s525_s2, 2048  ;;  %p4346_p10 = scmp.lt.s32.totalorder %s525_s2, %s525_s2 }
 0x119   : > { %p4339_p5 = scmp.ne.s32.totalorder %s525_s2, %s4338_s26  ;;  %p4347_p11 = scmp.lt.s32.totalorder %s4338_s26, %s4338_s26 }
 0x11b   : > { %p4341_p7 = pnand %p4339_p5, %p4865_p8  ;;  %p4348_p12 = por %p4347_p11, %p4346_p10 }
 0x11d   : > { %p4342_p9 = pneg %p4341_p7 }
 0x11f   : > { %p4349_p4 = pnand %p4348_p12, %p4342_p9 }
 0x121   : > { %4352 = shalt.err (!%p4349_p4)
}
 0x122   : > { %3799 = dma.hbm_to_vmem [thread:$0]  (!%p4851_p6), %s5689_s6, 2048, %s525_s2, [#allocation12], %s4700_s29, %s4700_s29, %s4701_s18  }
 0x123   : > { %s5690_s8 = sld [smem:[#allocation58_spill]] }
 0x129   : > { %s4353_s19 = scalar_lea.hbm %s5690_s8, 2048 }
 0x12a   : > { %p4354_p1 = scmp.ne.s32.totalorder %s5690_s8, %s4353_s19  ;;  %p4360_p0 = scmp.lt.u32.totalorder %s4353_s19, %s5690_s8 }
 0x12c   : > { %p4356_p3 = pnand %p4354_p1, %p4865_p8 }
 0x12e   : > { %p4357_p13 = pneg %p4356_p3 }
 0x130   : > { %p4362_p2 = pnand %p4360_p0, %p4357_p13 }
 0x132   : > { %4365 = shalt.err (!%p4362_p2)
}
 0x133   : > { %s4366_s17 = scalar_lea.vmem %s551_s20, 2048  ;;  %p4374_p10 = scmp.lt.s32.totalorder %s551_s20, %s551_s20 }
 0x134   : > { %p4367_p5 = scmp.ne.s32.totalorder %s551_s20, %s4366_s17  ;;  %p4375_p11 = scmp.lt.s32.totalorder %s4366_s17, %s4366_s17 }
 0x136   : > { %p4369_p7 = pnand %p4367_p5, %p4865_p8  ;;  %p4376_p12 = por %p4375_p11, %p4374_p10 }
 0x138   : > { %p4370_p9 = pneg %p4369_p7 }
 0x13a   : > { %p4377_p4 = pnand %p4376_p12, %p4370_p9 }
 0x13c   : > { %4380 = shalt.err (!%p4377_p4)
}
 0x13d   : > { %3805 = dma.hbm_to_vmem [thread:$0]  (!%p4851_p6), %s5690_s8, 2048, %s551_s20, [#allocation15], %s4700_s29, %s4700_s29, %s4701_s18  }
 0x13e   : > { %s4704_s26 = smov [#allocation19]   ;;  %s4705_s25 = smov [#allocation22]  }
 0x13f   : > { %s576_s1 = sshll.u32 %s4704_s26, 4  ;;  %s601_s30 = sshll.u32 %s4705_s25, 4  ;;  %s577_s1 = int_to_ptr.vmem [resolvable:$true] %s576_s1  ;;  %s602_s30 = int_to_ptr.vmem [resolvable:$true] %s601_s30 }
 0x140   : > { %s4381_s28 = scalar_lea.hbm %s5636_s10, 512 }
 0x141   : > { %p4382_p1 = scmp.ne.s32.totalorder %s5636_s10, %s4381_s28  ;;  %p4388_p0 = scmp.lt.u32.totalorder %s4381_s28, %s5636_s10 }
 0x143   : > { %p4384_p3 = pnand %p4382_p1, %p4865_p8 }
 0x145   : > { %p4385_p13 = pneg %p4384_p3 }
 0x147   : > { %p4390_p2 = pnand %p4388_p0, %p4385_p13 }
 0x149   : > { %4393 = shalt.err (!%p4390_p2)
}
 0x14a   : > { %s4394_s20 = scalar_lea.vmem %s577_s1, 512  ;;  %p4402_p10 = scmp.lt.s32.totalorder %s577_s1, %s577_s1 }
 0x14b   : > { %p4395_p5 = scmp.ne.s32.totalorder %s577_s1, %s4394_s20  ;;  %p4403_p11 = scmp.lt.s32.totalorder %s4394_s20, %s4394_s20 }
 0x14d   : > { %p4397_p7 = pnand %p4395_p5, %p4865_p8  ;;  %p4404_p12 = por %p4403_p11, %p4402_p10 }
 0x14f   : > { %p4398_p9 = pneg %p4397_p7 }
 0x151   : > { %p4405_p4 = pnand %p4404_p12, %p4398_p9 }
 0x153   : > { %4408 = shalt.err (!%p4405_p4)
}
 0x154   : > { %3811 = dma.hbm_to_vmem [thread:$0]  (!%p4851_p6), %s5636_s10, 512, %s577_s1, [#allocation18], %s4700_s29, %s4700_s29, %s4701_s18  }
 0x155   : > { %s4409_s3 = scalar_lea.hbm %s5638_s12, 16 }
 0x156   : > { %p4410_p1 = scmp.ne.s32.totalorder %s5638_s12, %s4409_s3  ;;  %p4416_p0 = scmp.lt.u32.totalorder %s4409_s3, %s5638_s12 }
 0x158   : > { %p4412_p3 = pnand %p4410_p1, %p4865_p8 }
 0x15a   : > { %p4413_p13 = pneg %p4412_p3 }
 0x15c   : > { %p4418_p2 = pnand %p4416_p0, %p4413_p13 }
 0x15e   : > { %4421 = shalt.err (!%p4418_p2)
}
 0x15f   : > { %s4422_s23 = scalar_lea.vmem %s602_s30, 16  ;;  %s4429_s1 = scalar_lea.vmem %s602_s30, 32 }
 0x160   : > { %p4423_p5 = scmp.ne.s32.totalorder %s602_s30, %s4422_s23  ;;  %p4430_p10 = scmp.lt.s32.totalorder %s602_s30, %s602_s30 }
 0x161   : > { %p4431_p11 = scmp.lt.s32.totalorder %s4429_s1, %s4422_s23 }
 0x162   : > { %p4425_p7 = pnand %p4423_p5, %p4865_p8 }
 0x163   : > { %p4432_p12 = por %p4431_p11, %p4430_p10 }
 0x164   : > { %p4426_p9 = pneg %p4425_p7 }
 0x166   : > { %p4433_p4 = pnand %p4432_p12, %p4426_p9 }
 0x168   : > { %4436 = shalt.err (!%p4433_p4)
}
 0x169   : > { %3817 = dma.hbm_to_vmem [thread:$0]  (!%p4851_p6), %s5638_s12, 16, %s602_s30, [#allocation21]  }
 0x16a   : > { %s4706_s2 = smov [#allocation25]   ;;  %s4437_s3 = scalar_lea.hbm %s5640_s14, 1024 }
 0x16b   : > { %s622_s0 = sshll.u32 %s4706_s2, 4  ;;  %p4438_p1 = scmp.ne.s32.totalorder %s5640_s14, %s4437_s3  ;;  %s623_s0 = int_to_ptr.vmem [resolvable:$true] %s622_s0 }
 0x16c   : > { %p4444_p0 = scmp.lt.u32.totalorder %s4437_s3, %s5640_s14 }
 0x16d   : > { %p4440_p3 = pnand %p4438_p1, %p4865_p8 }
 0x16f   : > { %p4441_p13 = pneg %p4440_p3 }
 0x171   : > { %p4446_p2 = pnand %p4444_p0, %p4441_p13 }
 0x173   : > { %4449 = shalt.err (!%p4446_p2)
}
 0x174   : > { %s4450_s30 = scalar_lea.vmem %s623_s0, 1024  ;;  %p4458_p10 = scmp.lt.s32.totalorder %s623_s0, %s623_s0 }
 0x175   : > { %p4451_p5 = scmp.ne.s32.totalorder %s623_s0, %s4450_s30  ;;  %p4459_p11 = scmp.lt.s32.totalorder %s4450_s30, %s4450_s30 }
 0x177   : > { %p4453_p7 = pnand %p4451_p5, %p4865_p8  ;;  %p4460_p12 = por %p4459_p11, %p4458_p10 }
 0x179   : > { %p4454_p9 = pneg %p4453_p7 }
 0x17b   : > { %p4461_p4 = pnand %p4460_p12, %p4454_p9 }
 0x17d   : > { %4464 = shalt.err (!%p4461_p4)
}
 0x17e   : > { %s4707_s23 = smov 128   ;;  %s4708_s1 = smov 8  }
 0x17f   : > { %3823 = dma.hbm_to_vmem [thread:$0]  (!%p4851_p6), %s5640_s14, 1024, %s623_s0, [#allocation24], %s4707_s23, %s4707_s23, %s4708_s1  }
 0x180   : > { %s4709_s2 = smov [#allocation28]   ;;  %s4710_s25 = smov [#allocation29]  }
 0x181   : > { %s646_s26 = sshll.u32 %s4709_s2, 4  ;;  %s660_s3 = sshll.u32 %s4710_s25, 4  ;;  %s647_s26 = int_to_ptr.vmem [resolvable:$true] %s646_s26  ;;  %s5153_s3 = int_to_ptr.vmem [resolvable:$true] %s660_s3 }
 0x182   : > { %s4465_s27 = scalar_lea.hbm %s5642_s16, 2048 }
 0x183   : > { %p4466_p1 = scmp.ne.s32.totalorder %s5642_s16, %s4465_s27  ;;  %p4472_p0 = scmp.lt.u32.totalorder %s4465_s27, %s5642_s16 }
 0x185   : > { %p4468_p3 = pnand %p4466_p1, %p4865_p8 }
 0x187   : > { %p4469_p13 = pneg %p4468_p3 }
 0x189   : > { %p4474_p2 = pnand %p4472_p0, %p4469_p13 }
 0x18b   : > { %4477 = shalt.err (!%p4474_p2)
}
 0x18c   : > { %s4478_s23 = scalar_lea.vmem %s647_s26, 2048  ;;  %p4486_p10 = scmp.lt.s32.totalorder %s647_s26, %s647_s26 }
 0x18d   : > { %p4479_p5 = scmp.ne.s32.totalorder %s647_s26, %s4478_s23  ;;  %p4487_p11 = scmp.lt.s32.totalorder %s4478_s23, %s4478_s23 }
 0x18f   : > { %p4481_p7 = pnand %p4479_p5, %p4865_p8  ;;  %p4488_p12 = por %p4487_p11, %p4486_p10 }
 0x191   : > { %p4482_p9 = pneg %p4481_p7 }
 0x193   : > { %p4489_p4 = pnand %p4488_p12, %p4482_p9 }
 0x195   : > { %4492 = shalt.err (!%p4489_p4)
}
 0x196   : > { %3829 = dma.hbm_to_vmem [thread:$0]  (!%p4851_p6), %s5642_s16, 2048, %s647_s26, [#allocation27], %s4700_s29, %s4700_s29, %s4701_s18  }
 0x197   : > { %s5691_s19 = sld [smem:[#allocation59_spill]] }
 0x19d   : > { %s4493_s28 = scalar_lea.hbm %s5691_s19, 16 }
 0x19e   : > { %p4494_p1 = scmp.ne.s32.totalorder %s5691_s19, %s4493_s28  ;;  %p4500_p0 = scmp.lt.u32.totalorder %s4493_s28, %s5691_s19 }
 0x1a0   : > { %p4496_p3 = pnand %p4494_p1, %p4865_p8 }
 0x1a2   : > { %p4497_p13 = pneg %p4496_p3 }
 0x1a4   : > { %p4502_p2 = pnand %p4500_p0, %p4497_p13 }
 0x1a6   : > { %4505 = shalt.err (!%p4502_p2)
}
 0x1a7   : > { %s4506_s29 = scalar_lea.vmem %s5153_s3, 16  ;;  %s4513_s18 = scalar_lea.vmem %s5153_s3, 32 }
 0x1a8   : > { %p4507_p5 = scmp.ne.s32.totalorder %s5153_s3, %s4506_s29  ;;  %p4514_p10 = scmp.lt.s32.totalorder %s5153_s3, %s5153_s3 }
 0x1a9   : > { %p4515_p11 = scmp.lt.s32.totalorder %s4513_s18, %s4506_s29 }
 0x1aa   : > { %p4509_p7 = pnand %p4507_p5, %p4865_p8 }
 0x1ab   : > { %p4516_p12 = por %p4515_p11, %p4514_p10 }
 0x1ac   : > { %p4510_p9 = pneg %p4509_p7 }
 0x1ae   : > { %p4517_p4 = pnand %p4516_p12, %p4510_p9 }
 0x1b0   : > { %4520 = shalt.err (!%p4517_p4)
}
 0x1b1   : > { %s5692_s23 = sld [smem:[#allocation47_spill]]  ;;  %s5693_s1 = sld [smem:[#allocation46_spill]] }
 0x1b2   : > { %s5694_s21 = sld [smem:[#allocation45_spill]]  ;;  %s5695_s20 = sld [smem:[#allocation44_spill]] }
 0x1b3   : > { %s5696_s2 = sld [smem:[#allocation48_spill]] }
 0x1b4   : > { %3832 = dma.hbm_to_vmem [thread:$0]  (!%p4851_p6), %s5691_s19, 16, %s5153_s3, [#allocation30]  }
 0x1b7   : > { %s3222_s24 = sadd.s32 4294967294, %s5692_s23   ;;  %s5202_s30 = sadd.s32 1, %s5692_s23  }
 0x1b8   : > { %s49_s25 = ssub.s32 %s5692_s23, %s5202_s30  ;;  %s52_s28 = sadd.s32 1, %s5693_s1 }
 0x1b9   : > { %p50_p8 = scmp.eq.s32.totalorder %s49_s25, 0  ;;  %p59_p1 = scmp.ne.s32.totalorder %s5693_s1, %s5694_s21 }
 0x1ba   : > { %p60_p3 = scmp.eq.s32.totalorder %s5692_s23, 0  ;;  %p65_p13 = scmp.ne.s32.totalorder %s5694_s21, %s5695_s20 }
 0x1bb   : > { %s5213_s27 = scalar_select %p50_p8, %s5693_s1, %s52_s28  }
 0x1bc   : > { %p5215_p0 = por %p60_p3, %p59_p1  ;;  %p5698_p2 = scmp.eq.s32.totalorder %s5696_s2, 0 }
 0x1bd   : > { %p451_p5 = scmp.eq.s32.totalorder %s5696_s2, 1  ;;  %p457_p7 = scmp.eq.s32.totalorder %s3222_s24, 1 }
 0x1be   : > { %p5221_p6 = por %p5698_p2, %p65_p13  ;;  %p3860_p9 = scmp.lt.s32.totalorder %s5692_s23, 2 }
 0x1bf   : > { %s5228_s17 = sand.u32 1, %s5693_s1   ;;  %p5230_p10 = por %p451_p5, %p59_p1 }
 0x1c0   : > { %s5699_s3 = scalar_select %p5221_p6, 1, 0 }
 0x1c1   : > { %s5700_s29 = scalar_select %p5230_p10, 1, 0 }
 0x1c2   : > { %p5234_p11 = por %p457_p7, %p65_p13  ;;  %s3241_s26 = sshll.u32 %s5228_s17, 3 }
 0x1c3   : > { %s3242_s0 = sshll.u32 %s5692_s23, 7  ;;  %s5702_s2 = sld [smem:[#allocation50_spill]] }
 0x1c4   : > { %s5701_s18 = scalar_select %p5234_p11, 1, 0 }
 0x1c5   : > { %s675_s1 = scalar_lea.vmem [#allocation2], %s3241_s26  ;;  %p5249_p12 = pnand %p3860_p9, %p5215_p0 }
 0x1c6   : > { %s682_s25 = sshll.u32 %s675_s1, 4  ;;  %s672_s21 = scalar_lea.sflag [#allocation3], %s5228_s17  ;;  %s5245_s25 = int_to_ptr.vmem [resolvable:$true] %s682_s25 }
 0x1c7   : > { %p4523_p8 = pneg %p5249_p12 }
 0x1c9   : > { %s5243_s24 = scalar_lea.hbm %s5702_s2, %s3242_s0  ;;  %s4526_s22 = scalar_lea.hbm %s5702_s2, 256 }
 0x1ca   : > { %s4521_s0 = scalar_lea.hbm %s5243_s24, 128  ;;  %p4527_p13 = scmp.lt.u32.totalorder %s5243_s24, %s5702_s2 }
 0x1cb   : > { %p4522_p4 = scmp.ne.s32.totalorder %s5243_s24, %s4521_s0  ;;  %p4528_p0 = scmp.lt.u32.totalorder %s4526_s22, %s4521_s0 }
 0x1cc   : > { %p4530_p5 = scmp.lt.u32.totalorder %s4521_s0, %s5243_s24 }
 0x1cd   : > { %p4524_p1 = pnand %p4523_p8, %p4522_p4  ;;  %p4529_p2 = por %p4528_p0, %p4527_p13 }
 0x1cf   : > { %p4525_p3 = pneg %p4524_p1  ;;  %p4531_p7 = por %p4530_p5, %p4529_p2 }
 0x1d1   : > { %p4532_p9 = pnand %p4531_p7, %p4525_p3 }
 0x1d3   : > { %4535 = shalt.err (!%p4532_p9)
}
 0x1d4   : > { %s4536_s4 = scalar_lea.vmem %s5245_s25, 128  ;;  %s4711_s26 = smov [#allocation2]  }
 0x1d5   : > { %p4537_p4 = scmp.ne.s32.totalorder %s5245_s25, %s4536_s4  ;;  %s4541_s20 = sshll.u32 %s4711_s26, 4  ;;  %s4542_s20 = int_to_ptr.vmem [resolvable:$false] %s4541_s20 }
 0x1d6   : > { %s4543_s6 = scalar_lea.vmem %s4542_s20, 256  ;;  %p4544_p10 = scmp.lt.s32.totalorder %s5245_s25, %s4542_s20 }
 0x1d7   : > { %p4539_p1 = pnand %p4537_p4, %p4523_p8  ;;  %p4545_p13 = scmp.lt.s32.totalorder %s4543_s6, %s4536_s4 }
 0x1d9   : > { %p4540_p11 = pneg %p4539_p1  ;;  %p4546_p0 = por %p4545_p13, %p4544_p10 }
 0x1db   : > { %p4547_p2 = pnand %p4546_p0, %p4540_p11 }
 0x1dd   : > { %4550 = shalt.err (!%p4547_p2)
}
 0x1de   : > { %3836 = dma.hbm_to_vmem [thread:$0]  (!%p5249_p12), %s5243_s24, 128, %s5245_s25, %s672_s21  }
 0x1df   : > { %s3244_s0 = sshll.u32 %s5692_s23, 6  ;;  %s5704_s26 = sld [smem:[#allocation51_spill]] }
 0x1e0   : > { %s5705_s20 = sshll.u32 %s5228_s17, 2  ;;  %s5706_s2 = sand.u32 1, %s5692_s23  }
 0x1e1   : > { %s693_s4 = scalar_lea.vmem [#allocation5], %s5705_s20  ;;  %s690_s7 = scalar_lea.sflag [#allocation6], %s5706_s2 }
 0x1e2   : > { %s700_s6 = sshll.u32 %s693_s4, 4  ;;  %s701_s6 = int_to_ptr.vmem [resolvable:$true] %s700_s6 }
 0x1e5   : > { %s5285_s5 = scalar_lea.hbm %s5704_s26, %s3244_s0  ;;  %s4556_s21 = scalar_lea.hbm %s5704_s26, 128 }
 0x1e6   : > { %s4551_s8 = scalar_lea.hbm %s5285_s5, 64  ;;  %p4557_p5 = scmp.lt.u32.totalorder %s5285_s5, %s5704_s26 }
 0x1e7   : > { %p4552_p10 = scmp.ne.s32.totalorder %s5285_s5, %s4551_s8  ;;  %p4558_p7 = scmp.lt.u32.totalorder %s4556_s21, %s4551_s8 }
 0x1e8   : > { %p4560_p4 = scmp.lt.u32.totalorder %s4551_s8, %s5285_s5 }
 0x1e9   : > { %p4554_p11 = pnand %p4552_p10, %p4523_p8  ;;  %p4559_p9 = por %p4558_p7, %p4557_p5 }
 0x1eb   : > { %p4555_p3 = pneg %p4554_p11  ;;  %p4561_p1 = por %p4560_p4, %p4559_p9 }
 0x1ed   : > { %p4562_p13 = pnand %p4561_p1, %p4555_p3 }
 0x1ef   : > { %4565 = shalt.err (!%p4562_p13)
}
 0x1f0   : > { %s4566_s23 = scalar_lea.vmem %s701_s6, 64  ;;  %s4712_s2 = smov [#allocation5]  }
 0x1f1   : > { %p4567_p0 = scmp.ne.s32.totalorder %s701_s6, %s4566_s23  ;;  %s4571_s22 = sshll.u32 %s4712_s2, 4  ;;  %s4572_s22 = int_to_ptr.vmem [resolvable:$false] %s4571_s22 }
 0x1f2   : > { %s4573_s1 = scalar_lea.vmem %s4572_s22, 128  ;;  %p4574_p11 = scmp.lt.s32.totalorder %s701_s6, %s4572_s22 }
 0x1f3   : > { %p4569_p2 = pnand %p4567_p0, %p4523_p8  ;;  %p4575_p6 = scmp.lt.s32.totalorder %s4573_s1, %s4566_s23 }
 0x1f5   : > { %p4570_p10 = pneg %p4569_p2  ;;  %p4576_p5 = por %p4575_p6, %p4574_p11 }
 0x1f7   : > { %p4577_p7 = pnand %p4576_p5, %p4570_p10 }
 0x1f9   : > { %4580 = shalt.err (!%p4577_p7)
}
 0x1fa   : > { %3839 = dma.hbm_to_vmem [thread:$0]  (!%p5249_p12), %s5285_s5, 64, %s701_s6, %s690_s7  }
 0x1fb   : > { %s5707_s8 = sld [smem:[#allocation49_spill]] }
 0x201   : > { %p5708_p3 = scmp.ne.s32.totalorder %s5707_s8, 0 }
 0x202   : > { %s5709_s20 = sld [smem:[#allocation45_spill]] (!%p5708_p3)  ;;  %p5710_p6 = scmp.ne.s32.totalorder (!%p5708_p3), %s5699_s3, 0 }
 0x203   : > { %709 = sbr.rel (%p5708_p3) target bundleno = 5613 (0x15ed), region = 92 }
 0x208   : > { %s5313_s4 = sand.u32 (!%p5708_p3), 1, %s5709_s20  }
 0x209   : > { %s3246_s24 = sshll.u32 (!%p5708_p3), %s5313_s4, 3  ;;  %s712_s25 = scalar_lea.sflag (!%p5708_p3), [#allocation3], %s5313_s4 }
 0x20a   : > { %s5319_s21 = scalar_lea.vmem [#allocation2], %s3246_s24 }
 0x20b   : > { %4626 = dma.done.wait (%p5710_p6), %s712_s25, 128  }
 0x20c   : > { %4628 = vsyncadd (%p5710_p6), %s712_s25, 4294967168  ;;  %s5711_s5 = sld [smem:[#allocation48_spill]]  ;;  %s3247_s28 = sshll.u32 %s5313_s4, 2 }
 0x20d   : > { %s5327_s17 = scalar_lea.vmem [#allocation5], %s3247_s28 }
 0x212   : > { %s720_s7 = sand.u32 1, %s5711_s5  }
 0x213   : > { %s721_s6 = scalar_lea.sflag [#allocation6], %s720_s7 }
 0x214   : > { %4630 = dma.done.wait (%p5710_p6), %s721_s6, 64  }
 0x215   : > { %4632 = vsyncadd (%p5710_p6), %s721_s6, 4294967232  ;;  %p5712_p12 = scmp.eq.s32.totalorder %s5711_s5, 0 }
 0x217   : > { %4634 = dma.done.wait (%p5712_p12), [#allocation6], 16   ;;  %p5713_p8 = pmov %p5712_p12 }
 0x219   : > { %4636 = vsyncadd (%p5713_p8), [#allocation6], 4294967280  ;;  %p5714_p9 = pmov %p5713_p8 }
 0x21a   : > { %p5715_p4 = pmov %p5713_p8 }
 0x21b   : > { %4638 = dma.done.wait (%p5714_p9), [#allocation9], 2064  }
 0x21c   : > { %4640 = vsyncadd (%p5715_p4), [#allocation9], 4294965232  ;;  %p5716_p1 = pmov %p5715_p4 }
 0x21e   : > { %4642 = dma.done.wait (%p5716_p1), [#allocation12], 2112   ;;  %p5717_p13 = pmov %p5716_p1 }
 0x21f   : > { %p5718_p0 = pmov %p5716_p1 }
 0x220   : > { %4644 = vsyncadd (%p5717_p13), [#allocation12], 4294965184 }
 0x221   : > { %4646 = dma.done.wait (%p5718_p0), [#allocation15], 2112   ;;  %p5719_p2 = pmov %p5718_p0 }
 0x222   : > { %p5720_p10 = pmov %p5718_p0 }
 0x223   : > { %4648 = vsyncadd (%p5719_p2), [#allocation15], 4294965184 }
 0x224   : > { %4650 = dma.done.wait (%p5720_p10), [#allocation18], 576   ;;  %p5721_p11 = pmov %p5718_p0 }
 0x225   : > { %p5722_p5 = pmov %p5718_p0 }
 0x226   : > { %4652 = vsyncadd (%p5721_p11), [#allocation18], 4294966720 }
 0x227   : > { %4654 = dma.done.wait (%p5722_p5), [#allocation21], 32   ;;  %p5723_p7 = pmov %p5718_p0 }
 0x228   : > { %p5724_p3 = pmov %p5718_p0 }
 0x229   : > { %4656 = vsyncadd (%p5723_p7), [#allocation21], 4294967264 }
 0x22a   : > { %4658 = dma.done.wait (%p5724_p3), [#allocation24], 1040   ;;  %p5725_p6 = pmov %p5718_p0 }
 0x22b   : > { %p5726_p12 = pmov %p5718_p0 }
 0x22c   : > { %4660 = vsyncadd (%p5725_p6), [#allocation24], 4294966256 }
 0x22d   : > { %4662 = dma.done.wait (%p5726_p12), [#allocation27], 2080   ;;  %p5727_p8 = pmov %p5718_p0 }
 0x22e   : > { %p5728_p9 = pmov %p5718_p0 }
 0x22f   : > { %4664 = vsyncadd (%p5727_p8), [#allocation27], 4294965216 }
 0x230   : > { %4666 = dma.done.wait (%p5728_p9), [#allocation30], 16   ;;  %p5729_p4 = pmov %p5718_p0 }
 0x231   : > { %vm851_vm0 = vcmask 523264   ;;  %vm855_vm1 = vcmask 519168   ;;  %v847_v0 = vld [vmem:[%s5319_s21] sm:$0xff]  ;;  %v848_v1 = vld [vmem:[%s5327_s17] sm:$0xf]  ;;  %v4713_v15 = vmov 0.0  }
 0x232   : > { %4668 = vsyncadd (%p5729_p4), [#allocation30], 4294967280  ;;  %v852_v2 = vsel %vm851_vm0, %v847_v0, 0.0  ;;  %v856_v3 = vsel %vm855_vm1, %v848_v1, 0.0  ;;  %v3935_v14 = vld [vmem:[#allocation10] sm:$0xff]   ;;  %3498 = vmatprep.subr.bf16.mxu0 %v4713_v15  ;;  %3510 = vmatprep.subr.bf16.mxu1 %v4713_v15  ;;  %v3937_v17 = vld [vmem:[#allocation10 + $0x8] sm:$0xff]  }
 0x233   : > { %853 = vadd.xlane.f32.xlu0 %v852_v2  ;;  %v3936_v16 = vld [vmem:[#allocation13] sm:$0xff]   ;;  %3499 = vmatpush3.bf16.msra.mxu0 %v3935_v14  ;;  %v3938_v18 = vld [vmem:[#allocation13 + $0x8] sm:$0xff]   ;;  %v3940_v20 = vld [vmem:[#allocation13 + $0x10] sm:$0xff]   ;;  %vm4714_vm2 = vmmov 0   ;;  %vm1144_vm3 = vcmask 130048   ;;  %vm1221_vm4 = vcmask 1045504  }
 0x234   : > { %3511 = vmatpush3.bf16.msra.mxu1 %v3936_v16  ;;  %3500 = vmatprep.subr.bf16.mxu0 %v4713_v15  ;;  %v3939_v19 = vld [vmem:[#allocation10 + $0x10] sm:$0xff]   ;;  %v3941_v21 = vld [vmem:[#allocation10 + $0x18] sm:$0xff]   ;;  %v3943_v39 = vld [vmem:[#allocation16] sm:$0xff]   ;;  %vm1192_vm5 = vcmask 97280   ;;  %vm1196_vm6 = vcmask 93184   ;;  %s3389_s3 = sshll.u32 %s5711_s5, 7 }
 0x235   : > { %3512 = vmatprep.subr.bf16.mxu1 %v4713_v15  ;;  %v3942_v22 = vld [vmem:[#allocation13 + $0x18] sm:$0xff]   ;;  %3506 = vmatprep.mubr.msk.bf16.mxu0 %vm4714_vm2, %v4713_v15  ;;  %v3944_v41 = vld [vmem:[#allocation16 + $0x8] sm:$0xff]   ;;  %v3273_v46 = vld [vmem:[#allocation14] ss:$0 sm:$0xff]  ;;  %s845_s0 = scalar_lea.vmem [#allocation31], %s3246_s24  ;;  %s5730_s1 = sld [smem:[#allocation60_spill]] }
 0x236   : > { %3518 = vmatprep.mubr.msk.bf16.mxu1 %vm4714_vm2, %v4713_v15  ;;  %v3265_v31 = vld [vmem:[#allocation7] ss:$0 sm:$0xff]  ;;  %v3266_v35 = vld [vmem:[#allocation8] ss:$0 sm:$0xff]  ;;  %v3946_v43 = vld [vmem:[#allocation16 + $0x18] sm:$0xff]   ;;  %s2977_s23 = sshll.u32 %s845_s0, 4  ;;  %s5583_s23 = int_to_ptr.vmem [resolvable:$true] %s2977_s23 }
 0x237   : > { %857 = vadd.xlane.f32.xlu0 %v856_v3  ;;  %3501 = vmatpush3.bf16.msra.mxu0 %v3937_v17  ;;  %v3945_v42 = vld [vmem:[#allocation16 + $0x10] sm:$0xff]   ;;  %v3267_v44 = vld [vmem:[#allocation11] ss:$0 sm:$0xff]  ;;  %v3948_v2 = vld [vmem:[#allocation10 + $0x28] sm:$0xff]   ;;  %s2964_s20 = scalar_lea.sflag [#allocation4], %s5313_s4  ;;  %s4581_s25 = scalar_lea.vmem %s5583_s23, 128 }
 0x238   : > { %3513 = vmatpush3.bf16.msra.mxu1 %v3938_v18  ;;  %3502 = vmatprep.subr.bf16.mxu0 %v4713_v15  ;;  %v3947_v63 = vld [vmem:[#allocation10 + $0x20] sm:$0xff]   ;;  %v3953_v14 = vld [vmem:[#allocation16 + $0x30] sm:$0xff]   ;;  %p4582_p1 = scmp.ne.s32.totalorder %s5583_s23, %s4581_s25  ;;  %p5731_p13 = scmp.ne.s32.totalorder %s5700_s29, 0 }
 0x239   : > { %3514 = vmatprep.subr.bf16.mxu1 %v4713_v15  ;;  %v3954_v16 = vld [vmem:[#allocation16 + $0x38] sm:$0xff]   ;;  %s4716_s24 = smov [#allocation31]  }
 0x23a   : > { %p4583_p0 = pnand %p4582_p1, %p5731_p13 }
 0x23b   : > { %3503 = vmatpush3.bf16.msra.mxu0 %v3939_v19  ;;  %s5581_s8 = scalar_lea.hbm %s5730_s1, %s3389_s3 }
 0x23c   : > { %3515 = vmatpush3.bf16.msra.mxu1 %v3940_v20  ;;  %3504 = vmatprep.subr.bf16.mxu0 %v4713_v15  ;;  %p4584_p2 = pneg %p4583_p0 }
 0x23d   : > { %3516 = vmatprep.subr.bf16.mxu1 %v4713_v15 }
 0x23f   : > { %3505 = vmatpush3.bf16.msra.mxu0 %v3941_v21 }
 0x240   : > { %3517 = vmatpush3.bf16.msra.mxu1 %v3942_v22  ;;  %3522 = vmatprep.subr.bf16.mxu0 %v4713_v15 }
 0x241   : > { %3540 = vmatprep.subr.bf16.mxu1 %v4713_v15 }
 0x2c0   : > { %v854_v4 = vpop.xlane.xlu0 %853 }
 0x2c1   : > { %v860_v5 = vmul.f32 0.015625, %v854_v4 }
 0x2c3   : > { %v862_v6 = vsub.f32 %v847_v0, %v860_v5  ;;  %v3279_v0 = vld [vmem:[#allocation17] ss:$0 sm:$0xff] }
 0x2c4   : > { %v858_v7 = vpop.xlane.xlu0 %857 }
 0x2c5   : > { %v861_v8 = vmul.f32 0.015625, %v858_v7  ;;  %v864_v9 = vmul.f32 %v862_v6, %v862_v6 }
 0x2c7   : > { %v863_v10 = vsub.f32 %v848_v1, %v861_v8  ;;  %v866_v11 = vsel %vm851_vm0, %v864_v9, 0.0  ;;  %v3949_v8 = vld [vmem:[#allocation10 + $0x30] sm:$0xff]  }
 0x2c8   : > { %867 = vadd.xlane.f32.xlu1 %v866_v11  ;;  %v3950_v11 = vld [vmem:[#allocation10 + $0x38] sm:$0xff]  }
 0x2c9   : > { %v865_v12 = vmul.f32 %v863_v10, %v863_v10 }
 0x2cb   : > { %v869_v13 = vsel %vm855_vm1, %v865_v12, 0.0  ;;  %v3951_v12 = vld [vmem:[#allocation16 + $0x20] sm:$0xff]  }
 0x2cc   : > { %870 = vadd.xlane.f32.xlu1 %v869_v13  ;;  %v3952_v13 = vld [vmem:[#allocation16 + $0x28] sm:$0xff]  }
 0x355   : > { %v868_v23 = vpop.xlane.xlu1 %867 }
 0x356   : > { %v872_v24 = vmul.f32 0.015625, %v868_v23  ;;  %v3287_v23 = vld [vmem:[#allocation11 + $0x1] ss:$0 sm:$0xff] }
 0x358   : > { %v874_v25 = vadd.f32 1e-05, %v872_v24 }
 0x359   : > { %v871_v26 = vpop.xlane.xlu1 %870 }
 0x35a   : > { %4015 = vrsqrt.f32 %v874_v25  ;;  %v873_v27 = vmul.f32 0.015625, %v871_v26 }
 0x35c   : > { %v875_v28 = vadd.f32 1e-05, %v873_v27 }
 0x35e   : > { %4017 = vrsqrt.f32 %v875_v28 }
 0x364   : > { %v4016_v29 = vpop.eup %4015 }
 0x365   : > { %v878_v30 = vmul.f32 %v4016_v29, %v862_v6 }
 0x367   : > { %v886_v33 = vmul.f32 %v3265_v31, %v878_v30 }
 0x368   : > { %v4018_v32 = vpop.eup %4017 }
 0x369   : > { %v879_v34 = vmul.f32 %v4018_v32, %v863_v10  ;;  %v894_v37 = vadd.f32 %v3266_v35, %v886_v33  ;;  %v3299_v33 = vld [vmem:[#allocation17 + $0x1] ss:$0 sm:$0xff] }
 0x36b   : > { %v887_v36 = vmul.f32 %v3265_v31, %v879_v34 }
 0x36d   : > { %v895_v38 = vadd.f32 %v3266_v35, %v887_v36 }
 0x36f   : > { %v5389_v40 = vpack.c.bf16 %v895_v38, %v894_v37 }
 0x371   : > { %3507 = vmatmul.mubr.msk.bf16.vlgmr.msra.gmra.mrb[0].mxu0 %vm851_vm0, %v5389_v40  ;;  %3519 = vmatmul.mubr.msk.bf16.vlgmr.msra.gmra.mrb[0].mxu1 %vm851_vm0, %v5389_v40 }
 0x372   : > { %3523 = vmatpush3.bf16.msra.mxu0 %v3943_v39  ;;  %3530 = vmatprep.mubr.msk.bf16.mxu0 %vm4714_vm2, %v4713_v15 }
 0x373   : > { %3524 = vmatprep.subr.bf16.mxu0 %v4713_v15  ;;  %3542 = vmatprep.mubr.msk.bf16.mxu1 %vm4714_vm2, %v4713_v15 }
 0x376   : > { %3525 = vmatpush3.bf16.msra.mxu0 %v3944_v41 }
 0x377   : > { %3526 = vmatprep.subr.bf16.mxu0 %v4713_v15 }
 0x37a   : > { %3527 = vmatpush3.bf16.msra.mxu0 %v3945_v42 }
 0x37b   : > { %3528 = vmatprep.subr.bf16.mxu0 %v4713_v15 }
 0x37e   : > { %3529 = vmatpush3.bf16.msra.mxu0 %v3946_v43 }
 0x37f   : > { %3534 = vmatprep.subr.bf16.mxu0 %v4713_v15 }
 0x381   : > { %3531 = vmatmul.mubr.msk.bf16.vlgmr.msra.gmra.mrb[4].mxu0 %vm851_vm0, %v5389_v40 }
 0x382   : > { %3536 = vmatprep.mubr.msk.bf16.mxu0 %vm4714_vm2, %v4713_v15 }
 0x444   : > { %v973_v45 = vpop.f32.mrb[0].mxu0  ;;  %v1053_v47 = vpop.f32.mrb[0].mxu1 }
 0x445   : > { %v974_v48 = vadd.f32 %v3267_v44, %v973_v45  ;;  %v3508_v49 = vpop.f32.mrb[1].mxu0  ;;  %v3520_v50 = vpop.f32.mrb[1].mxu1  ;;  %v1054_v53 = vadd.f32 %v3273_v46, %v1053_v47 }
 0x446   : > { %v976_v51 = vpop.f32.mrb[2].mxu0  ;;  %v1056_v52 = vpop.f32.mrb[2].mxu1 }
 0x447   : > { %v977_v54 = vadd.f32 %v3267_v44, %v976_v51  ;;  %v1057_v55 = vadd.f32 %v3273_v46, %v1056_v52  ;;  %v3509_v56 = vpop.f32.mrb[3].mxu0  ;;  %v3521_v57 = vpop.f32.mrb[3].mxu1  ;;  %v1140_v58 = vmul.f32 0.25, %v974_v48 }
 0x449   : > { %v1141_v59 = vmul.f32 0.25, %v977_v54  ;;  %v1143_v60 = vpack.c.bf16 %v1057_v55, %v1054_v53 }
 0x44b   : > { %v1142_v61 = vpack.c.bf16 %v1141_v59, %v1140_v58  ;;  %v1149_v62 = vsel %vm1144_vm3, %v1143_v60, 0  ;;  %v3955_v58 = vld [vmem:[#allocation13 + $0x20] sm:$0xff]   ;;  %v3956_v60 = vld [vmem:[#allocation13 + $0x28] sm:$0xff]  }
 0x44c   : > { %3535 = vmatpush3.bf16.xpose.msra.mxu0 %v1149_v62  ;;  %v3958_v62 = vld [vmem:[#allocation13 + $0x38] sm:$0xff]  }
 0x44d   : > { %3546 = vmatprep.subr.bf16.mxu0 %v4713_v15 }
 0x453   : > { %3537 = vmatmul.mubr.msk.bf16.vlgmr.msra.gmra.mrb[8].mxu0 %vm1144_vm3, %v1142_v61  ;;  %v3957_v61 = vld [vmem:[#allocation13 + $0x30] sm:$0xff]  }
 0x454   : > { %v1133_v1 = vpop.f32.mrb[4].mxu0  ;;  %3547 = vmatpush3.bf16.msra.mxu0 %v3947_v63  ;;  %3554 = vmatprep.mubr.msk.bf16.mxu0 %vm4714_vm2, %v4713_v15 }
 0x455   : > { %v3532_v3 = vpop.f32.mrb[5].mxu0  ;;  %3548 = vmatprep.subr.bf16.mxu0 %v4713_v15  ;;  %v1134_v5 = vadd.f32 %v3279_v0, %v1133_v1 }
 0x456   : > { %v1136_v4 = vpop.f32.mrb[6].mxu0 }
 0x457   : > { %v1137_v6 = vadd.f32 %v3279_v0, %v1136_v4  ;;  %v3533_v7 = vpop.f32.mrb[7].mxu0  ;;  %v3293_v4 = vld [vmem:[#allocation14 + $0x1] ss:$0 sm:$0xff] }
 0x458   : > { %3549 = vmatpush3.bf16.msra.mxu0 %v3948_v2 }
 0x459   : > { %v1217_v9 = vpack.c.bf16 %v1137_v6, %v1134_v5  ;;  %3550 = vmatprep.subr.bf16.mxu0 %v4713_v15 }
 0x45b   : > { %v1223_v10 = vsel %vm1221_vm4, %v1217_v9, 0 }
 0x45c   : > { %3541 = vmatpush3.bf16.msra.mxu1 %v1223_v10  ;;  %3551 = vmatpush3.bf16.msra.mxu0 %v3949_v8 }
 0x45d   : > { %3552 = vmatprep.subr.bf16.mxu0 %v4713_v15  ;;  %3558 = vmatprep.subr.bf16.mxu1 %v4713_v15 }
 0x460   : > { %3553 = vmatpush3.bf16.msra.mxu0 %v3950_v11 }
 0x461   : > { %3570 = vmatprep.subr.bf16.mxu0 %v4713_v15 }
 0x463   : > { %3555 = vmatmul.mubr.msk.bf16.vlgmr.msra.gmra.mrb[12].mxu0 %vm851_vm0, %v5389_v40 }
 0x464   : > { %3571 = vmatpush3.bf16.msra.mxu0 %v3951_v12  ;;  %3578 = vmatprep.mubr.msk.bf16.mxu0 %vm4714_vm2, %v4713_v15 }
 0x465   : > { %3572 = vmatprep.subr.bf16.mxu0 %v4713_v15 }
 0x468   : > { %3573 = vmatpush3.bf16.msra.mxu0 %v3952_v13 }
 0x469   : > { %3574 = vmatprep.subr.bf16.mxu0 %v4713_v15 }
 0x46c   : > { %3575 = vmatpush3.bf16.msra.mxu0 %v3953_v14 }
 0x46d   : > { %3576 = vmatprep.subr.bf16.mxu0 %v4713_v15 }
 0x470   : > { %3577 = vmatpush3.bf16.msra.mxu0 %v3954_v16 }
 0x471   : > { %3594 = vmatprep.subr.bf16.mxu0 %v4713_v15 }
 0x473   : > { %3579 = vmatmul.mubr.msk.bf16.vlgmr.msra.gmra.mrb[16].mxu0 %vm851_vm0, %v5389_v40 }
 0x474   : > { %3596 = vmatprep.mubr.msk.bf16.mxu0 %vm4714_vm2, %v4713_v15 }
 0x526   : > { %v1185_v17 = vpop.f32.mrb[8].mxu0 }
 0x527   : > { %v3538_v18 = vpop.f32.mrb[9].mxu0  ;;  %v1193_v19 = vsel %vm1192_vm5, %v1185_v17, -inf }
 0x528   : > { %1194 = vmax.xlane.f32.xlu0 %v1193_v19  ;;  %v1188_v20 = vpop.f32.mrb[10].mxu0 }
 0x529   : > { %v3539_v21 = vpop.f32.mrb[11].mxu0  ;;  %v1197_v22 = vsel %vm1196_vm6, %v1188_v20, -inf }
 0x52a   : > { %1198 = vmax.xlane.f32.xlu1 %v1197_v22 }
 0x536   : > { %v1344_v24 = vpop.f32.mrb[12].mxu0 }
 0x537   : > { %v1345_v25 = vadd.f32 %v3287_v23, %v1344_v24  ;;  %v3556_v26 = vpop.f32.mrb[13].mxu0 }
 0x538   : > { %v1347_v27 = vpop.f32.mrb[14].mxu0 }
 0x539   : > { %v1348_v28 = vadd.f32 %v3287_v23, %v1347_v27  ;;  %v3557_v29 = vpop.f32.mrb[15].mxu0  ;;  %v5432_v30 = vmul.f32 0.25, %v1345_v25 }
 0x53b   : > { %v5434_v31 = vmul.f32 0.25, %v1348_v28 }
 0x53d   : > { %v1517_v32 = vpack.c.bf16 %v5434_v31, %v5432_v30  ;;  %v3964_v31 = vld [vmem:[#allocation19 + $0x8] sm:$0xff]  }
 0x53e   : > { %3595 = vmatpush3.bf16.msra.mxu0 %v3964_v31 }
 0x53f   : > { %3606 = vmatprep.subr.bf16.mxu0 %v4713_v15 }
 0x546   : > { %v1508_v34 = vpop.f32.mrb[16].mxu0 }
 0x547   : > { %v3580_v35 = vpop.f32.mrb[17].mxu0  ;;  %v1509_v37 = vadd.f32 %v3299_v33, %v1508_v34 }
 0x548   : > { %v1511_v36 = vpop.f32.mrb[18].mxu0 }
 0x549   : > { %v1512_v38 = vadd.f32 %v3299_v33, %v1511_v36  ;;  %v3581_v39 = vpop.f32.mrb[19].mxu0 }
 0x54b   : > { %v1589_v41 = vpack.c.bf16 %v1512_v38, %v1509_v37  ;;  %v3959_v38 = vld [vmem:[#allocation19] sm:$0xff]  }
 0x54d   : > { %v1594_v13 = vsel %vm1221_vm4, %v1589_v41, 0  ;;  %v3960_v41 = vld [vmem:[#allocation13 + $0x40] sm:$0xff]  }
 0x5b5   : > { %v1195_v42 = vpop.xlane.xlu0 %1194 }
 0x5b6   : > { %v1200_v43 = vsub.f32 %v1185_v17, %v1195_v42  ;;  %v3961_v42 = vld [vmem:[#allocation13 + $0x48] sm:$0xff]  }
 0x5b7   : > { %v1199_v44 = vpop.xlane.xlu1 %1198 }
 0x5b8   : > { %v1202_v45 = vmul.f32 1.442695, %v1200_v43  ;;  %v1201_v46 = vsub.f32 %v1188_v20, %v1199_v44  ;;  %v3962_v43 = vld [vmem:[#allocation13 + $0x50] sm:$0xff]   ;;  %v3963_v44 = vld [vmem:[#allocation13 + $0x58] sm:$0xff]  }
 0x5ba   : > { %4019 = vpow2.f32 %v1202_v45  ;;  %v1204_v47 = vmul.f32 1.442695, %v1201_v46 }
 0x5bc   : > { %4021 = vpow2.f32 %v1204_v47 }
 0x5c4   : > { %v4020_v48 = vpop.eup %4019 }
 0x5c5   : > { %v1206_v49 = vsel %vm1192_vm5, %v4020_v48, 0.0 }
 0x5c6   : > { %v4022_v50 = vpop.eup %4021  ;;  %1207 = vadd.xlane.f32.xlu0 %v1206_v49 }
 0x5c7   : > { %v1209_v51 = vsel %vm1196_vm6, %v4022_v50, 0.0 }
 0x5c8   : > { %1210 = vadd.xlane.f32.xlu1 %v1209_v51  ;;  %v3966_v51 = vld [vmem:[#allocation10 + $0x48] sm:$0xff]  }
 0x653   : > { %v1208_v52 = vpop.xlane.xlu0 %1207 }
 0x654   : > { %4023 = vrcp.f32 %v1208_v52 }
 0x655   : > { %v1211_v53 = vpop.xlane.xlu1 %1210 }
 0x656   : > { %4025 = vrcp.f32 %v1211_v53 }
 0x65e   : > { %v4024_v54 = vpop.eup %4023 }
 0x65f   : > { %v1214_v56 = vmul.f32 %v4024_v54, %v4020_v48  ;;  %v3965_v48 = vld [vmem:[#allocation10 + $0x40] sm:$0xff]  }
 0x660   : > { %v4026_v55 = vpop.eup %4025 }
 0x661   : > { %v1215_v57 = vmul.f32 %v4026_v55, %v4022_v50  ;;  %v3967_v55 = vld [vmem:[#allocation10 + $0x50] sm:$0xff]  }
 0x663   : > { %v1216_v59 = vpack.c.bf16 %v1215_v57, %v1214_v56  ;;  %v3968_v57 = vld [vmem:[#allocation10 + $0x58] sm:$0xff]  }
 0x665   : > { %3543 = vmatmul.mubr.msk.bf16.vlgmr.msra.gmra.mrb[4].mxu1 %vm1192_vm5, %v1216_v59  ;;  %v3970_v59 = vld [vmem:[#allocation16 + $0x48] sm:$0xff]  }
 0x666   : > { %3559 = vmatpush3.bf16.msra.mxu1 %v3955_v58  ;;  %3566 = vmatprep.mubr.msk.bf16.mxu1 %vm4714_vm2, %v4713_v15  ;;  %v3969_v58 = vld [vmem:[#allocation16 + $0x40] sm:$0xff]  }
 0x667   : > { %3560 = vmatprep.subr.bf16.mxu1 %v4713_v15 }
 0x66a   : > { %3561 = vmatpush3.bf16.msra.mxu1 %v3956_v60  ;;  %v3317_v60 = vld [vmem:[#allocation14 + $0x2] ss:$0 sm:$0xff] }
 0x66b   : > { %3562 = vmatprep.subr.bf16.mxu1 %v4713_v15 }
 0x66e   : > { %3563 = vmatpush3.bf16.msra.mxu1 %v3957_v61 }
 0x66f   : > { %3564 = vmatprep.subr.bf16.mxu1 %v4713_v15 }
 0x672   : > { %3565 = vmatpush3.bf16.msra.mxu1 %v3958_v62 }
 0x673   : > { %3582 = vmatprep.subr.bf16.mxu1 %v4713_v15 }
 0x675   : > { %3567 = vmatmul.mubr.msk.bf16.vlgmr.msra.gmra.mrb[8].mxu1 %vm851_vm0, %v5389_v40 }
 0x676   : > { %3584 = vmatprep.mubr.msk.bf16.mxu1 %vm4714_vm2, %v4713_v15 }
 0x738   : > { %v1259_v63 = vpop.f32.mrb[4].mxu1 }
 0x739   : > { %v3544_v0 = vpop.f32.mrb[5].mxu1 }
 0x73a   : > { %v1262_v1 = vpop.f32.mrb[6].mxu1  ;;  %v3971_v0 = vld [vmem:[#allocation16 + $0x50] sm:$0xff]  }
 0x73b   : > { %v1266_v2 = vpack.c.bf16 %v1262_v1, %v1259_v63  ;;  %v3545_v3 = vpop.f32.mrb[7].mxu1 }
 0x748   : > { %v1426_v5 = vpop.f32.mrb[8].mxu1 }
 0x749   : > { %v3568_v6 = vpop.f32.mrb[9].mxu1  ;;  %v1427_v8 = vadd.f32 %v3293_v4, %v1426_v5  ;;  %v3972_v5 = vld [vmem:[#allocation16 + $0x58] sm:$0xff]  }
 0x74a   : > { %v1429_v7 = vpop.f32.mrb[10].mxu1 }
 0x74b   : > { %v1430_v9 = vadd.f32 %v3293_v4, %v1429_v7  ;;  %v3569_v10 = vpop.f32.mrb[11].mxu1 }
 0x74d   : > { %v1518_v11 = vpack.c.bf16 %v1430_v9, %v1427_v8 }
 0x74f   : > { %v1523_v12 = vsel %vm1144_vm3, %v1518_v11, 0 }
 0x750   : > { %3583 = vmatpush3.bf16.xpose.msra.mxu1 %v1523_v12 }
 0x751   : > { %3588 = vmatprep.subr.bf16.mxu1 %v4713_v15 }
 0x757   : > { %3585 = vmatmul.mubr.msk.bf16.vlgmr.msra.gmra.mrb[12].mxu1 %vm1144_vm3, %v1517_v32 }
 0x758   : > { %3589 = vmatpush3.bf16.msra.mxu1 %v1594_v13  ;;  %3590 = vmatprep.mubr.msk.bf16.mxu1 %vm4714_vm2, %v4713_v15  ;;  %v3311_v13 = vld [vmem:[#allocation11 + $0x2] ss:$0 sm:$0xff] }
 0x759   : > { %3600 = vmatprep.subr.bf16.mxu1 %v4713_v15 }
 0x82a   : > { %v1559_v14 = vpop.f32.mrb[12].mxu1 }
 0x82b   : > { %v3586_v16 = vpop.f32.mrb[13].mxu1  ;;  %v1566_v17 = vsel %vm1192_vm5, %v1559_v14, -inf }
 0x82c   : > { %1567 = vmax.xlane.f32.xlu0 %v1566_v17  ;;  %v1562_v18 = vpop.f32.mrb[14].mxu1 }
 0x82d   : > { %v3587_v19 = vpop.f32.mrb[15].mxu1  ;;  %v1569_v20 = vsel %vm1196_vm6, %v1562_v18, -inf }
 0x82e   : > { %1570 = vmax.xlane.f32.xlu1 %v1569_v20 }
 0x8b9   : > { %v1568_v21 = vpop.xlane.xlu0 %1567 }
 0x8ba   : > { %v1572_v22 = vsub.f32 %v1559_v14, %v1568_v21 }
 0x8bb   : > { %v1571_v23 = vpop.xlane.xlu1 %1570 }
 0x8bc   : > { %v1574_v24 = vmul.f32 1.442695, %v1572_v22  ;;  %v1573_v25 = vsub.f32 %v1562_v18, %v1571_v23 }
 0x8be   : > { %4027 = vpow2.f32 %v1574_v24  ;;  %v1576_v26 = vmul.f32 1.442695, %v1573_v25  ;;  %v3323_v24 = vld [vmem:[#allocation17 + $0x2] ss:$0 sm:$0xff] }
 0x8c0   : > { %4029 = vpow2.f32 %v1576_v26 }
 0x8c8   : > { %v4028_v27 = vpop.eup %4027 }
 0x8c9   : > { %v1578_v28 = vsel %vm1192_vm5, %v4028_v27, 0.0 }
 0x8ca   : > { %v4030_v29 = vpop.eup %4029  ;;  %1579 = vadd.xlane.f32.xlu0 %v1578_v28 }
 0x8cb   : > { %v1581_v30 = vsel %vm1196_vm6, %v4030_v29, 0.0 }
 0x8cc   : > { %1582 = vadd.xlane.f32.xlu1 %v1581_v30 }
 0x957   : > { %v1580_v32 = vpop.xlane.xlu0 %1579 }
 0x958   : > { %4031 = vrcp.f32 %v1580_v32 }
 0x959   : > { %v1583_v33 = vpop.xlane.xlu1 %1582 }
 0x95a   : > { %4033 = vrcp.f32 %v1583_v33 }
 0x962   : > { %v4032_v34 = vpop.eup %4031 }
 0x963   : > { %v1586_v36 = vmul.f32 %v4032_v34, %v4028_v27 }
 0x964   : > { %v4034_v35 = vpop.eup %4033 }
 0x965   : > { %v1587_v37 = vmul.f32 %v4034_v35, %v4030_v29 }
 0x967   : > { %v1588_v39 = vpack.c.bf16 %v1587_v37, %v1586_v36 }
 0x969   : > { %3591 = vmatmul.mubr.msk.bf16.vlgmr.msra.gmra.mrb[16].mxu1 %vm1192_vm5, %v1588_v39 }
 0x96a   : > { %3601 = vmatpush3.bf16.msra.mxu1 %v3959_v38  ;;  %3602 = vmatprep.mubr.msk.bf16.mxu1 %vm4714_vm2, %v4713_v15 }
 0x96b   : > { %3618 = vmatprep.subr.bf16.mxu1 %v4713_v15 }
 0x971   : > { %3603 = vmatmul.mubr.msk.bf16.vlgmr.msra.gmra.mrb[20].mxu1 %vm1144_vm3, %v1266_v2 }
 0x972   : > { %3619 = vmatpush3.bf16.msra.mxu1 %v3960_v41  ;;  %3626 = vmatprep.mubr.msk.bf16.mxu1 %vm4714_vm2, %v4713_v15 }
 0x973   : > { %3620 = vmatprep.subr.bf16.mxu1 %v4713_v15 }
 0x976   : > { %3621 = vmatpush3.bf16.msra.mxu1 %v3961_v42 }
 0x977   : > { %3622 = vmatprep.subr.bf16.mxu1 %v4713_v15 }
 0x97a   : > { %3623 = vmatpush3.bf16.msra.mxu1 %v3962_v43 }
 0x97b   : > { %3624 = vmatprep.subr.bf16.mxu1 %v4713_v15 }
 0x97e   : > { %3625 = vmatpush3.bf16.msra.mxu1 %v3963_v44 }
 0x97f   : > { %3642 = vmatprep.subr.bf16.mxu1 %v4713_v15 }
 0x981   : > { %3627 = vmatmul.mubr.msk.bf16.vlgmr.msra.gmra.mrb[24].mxu1 %vm851_vm0, %v5389_v40 }
 0x982   : > { %3644 = vmatprep.mubr.msk.bf16.mxu1 %vm4714_vm2, %v4713_v15 }
 0xa3c   : > { %v1630_v45 = vpop.f32.mrb[16].mxu1 }
 0xa3d   : > { %v3592_v46 = vpop.f32.mrb[17].mxu1 }
 0xa3e   : > { %v1633_v47 = vpop.f32.mrb[18].mxu1 }
 0xa3f   : > { %v1637_v49 = vpack.c.bf16 %v1633_v47, %v1630_v45  ;;  %v3593_v50 = vpop.f32.mrb[19].mxu1 }
 0xa40   : > { %v3981_v50 = vld [vmem:[#allocation19 + $0x10] sm:$0xff]  }
 0xa41   : > { %3597 = vmatmul.mubr.msk.bf16.vlgmr.msra.gmra.mrb[20].mxu0 %vm1144_vm3, %v1637_v49 }
 0xa42   : > { %3607 = vmatpush3.bf16.msra.mxu0 %v3965_v48  ;;  %3614 = vmatprep.mubr.msk.bf16.mxu0 %vm4714_vm2, %v4713_v15 }
 0xa43   : > { %3608 = vmatprep.subr.bf16.mxu0 %v4713_v15 }
 0xa44   : > { %v1734_v52 = vpop.f32.mrb[20].mxu1 }
 0xa45   : > { %v3604_v53 = vpop.f32.mrb[21].mxu1 }
 0xa46   : > { %3609 = vmatpush3.bf16.msra.mxu0 %v3966_v51  ;;  %v1737_v54 = vpop.f32.mrb[22].mxu1 }
 0xa47   : > { %v3605_v56 = vpop.f32.mrb[23].mxu1  ;;  %3610 = vmatprep.subr.bf16.mxu0 %v4713_v15 }
 0xa4a   : > { %3611 = vmatpush3.bf16.msra.mxu0 %v3967_v55 }
 0xa4b   : > { %3612 = vmatprep.subr.bf16.mxu0 %v4713_v15 }
 0xa4e   : > { %3613 = vmatpush3.bf16.msra.mxu0 %v3968_v57  ;;  %v3973_v57 = vld [vmem:[#allocation10 + $0x60] sm:$0xff]  }
 0xa4f   : > { %3630 = vmatprep.subr.bf16.mxu0 %v4713_v15 }
 0xa51   : > { %3615 = vmatmul.mubr.msk.bf16.vlgmr.msra.gmra.mrb[24].mxu0 %vm851_vm0, %v5389_v40 }
 0xa52   : > { %3631 = vmatpush3.bf16.msra.mxu0 %v3969_v58  ;;  %3638 = vmatprep.mubr.msk.bf16.mxu0 %vm4714_vm2, %v4713_v15 }
 0xa53   : > { %3632 = vmatprep.subr.bf16.mxu0 %v4713_v15 }
 0xa54   : > { %v1898_v61 = vpop.f32.mrb[24].mxu1 }
 0xa55   : > { %v3628_v62 = vpop.f32.mrb[25].mxu1  ;;  %v1899_v1 = vadd.f32 %v3317_v60, %v1898_v61  ;;  %v3976_v61 = vld [vmem:[#allocation10 + $0x78] sm:$0xff]  }
 0xa56   : > { %v1901_v63 = vpop.f32.mrb[26].mxu1  ;;  %3633 = vmatpush3.bf16.msra.mxu0 %v3970_v59  ;;  %v3974_v59 = vld [vmem:[#allocation10 + $0x68] sm:$0xff]  }
 0xa57   : > { %v1902_v2 = vadd.f32 %v3317_v60, %v1901_v63  ;;  %v3629_v3 = vpop.f32.mrb[27].mxu1  ;;  %3634 = vmatprep.subr.bf16.mxu0 %v4713_v15  ;;  %v3975_v60 = vld [vmem:[#allocation10 + $0x70] sm:$0xff]   ;;  %v3977_v62 = vld [vmem:[#allocation16 + $0x60] sm:$0xff]  }
 0xa58   : > { %v3978_v63 = vld [vmem:[#allocation16 + $0x68] sm:$0xff]  }
 0xa59   : > { %v1990_v4 = vpack.c.bf16 %v1902_v2, %v1899_v1  ;;  %v3980_v1 = vld [vmem:[#allocation16 + $0x78] sm:$0xff]  }
 0xa5a   : > { %3635 = vmatpush3.bf16.msra.mxu0 %v3971_v0  ;;  %v3979_v0 = vld [vmem:[#allocation16 + $0x70] sm:$0xff]  }
 0xa5b   : > { %v1995_v6 = vsel %vm1144_vm3, %v1990_v4, 0  ;;  %3636 = vmatprep.subr.bf16.mxu0 %v4713_v15 }
 0xa5c   : > { %3643 = vmatpush3.bf16.xpose.msra.mxu1 %v1995_v6 }
 0xa5d   : > { %3648 = vmatprep.subr.bf16.mxu1 %v4713_v15 }
 0xa5e   : > { %3637 = vmatpush3.bf16.msra.mxu0 %v3972_v5  ;;  %v3982_v5 = vld [vmem:[#allocation13 + $0x60] sm:$0xff]  }
 0xa5f   : > { %3654 = vmatprep.subr.bf16.mxu0 %v4713_v15 }
 0xa61   : > { %3639 = vmatmul.mubr.msk.bf16.vlgmr.msra.gmra.mrb[28].mxu0 %vm851_vm0, %v5389_v40 }
 0xa62   : > { %3656 = vmatprep.mubr.msk.bf16.mxu0 %vm4714_vm2, %v4713_v15  ;;  %3655 = vmatpush3.bf16.msra.mxu0 %v3981_v50 }
 0xa63   : > { %3672 = vmatprep.subr.bf16.mxu0 %v4713_v15 }
 0xb14   : > { %v1684_v7 = vpop.f32.mrb[20].mxu0 }
 0xb15   : > { %v5502_v8 = vadd.f32 %v1734_v52, %v1684_v7  ;;  %v3598_v9 = vpop.f32.mrb[21].mxu0 }
 0xb16   : > { %v1687_v10 = vpop.f32.mrb[22].mxu0  ;;  %v3983_v9 = vld [vmem:[#allocation13 + $0x68] sm:$0xff]  }
 0xb17   : > { %v5504_v11 = vadd.f32 %v1737_v54, %v1687_v10  ;;  %v3599_v12 = vpop.f32.mrb[23].mxu0  ;;  %v3984_v10 = vld [vmem:[#allocation13 + $0x70] sm:$0xff]  }
 0xb18   : > { %v3333_v12 = vld [vmem:[#allocation11 + $0x3] ss:$0 sm:$0xff] }
 0xb24   : > { %v1816_v14 = vpop.f32.mrb[24].mxu0 }
 0xb25   : > { %v1817_v16 = vadd.f32 %v3311_v13, %v1816_v14  ;;  %v3616_v17 = vpop.f32.mrb[25].mxu0 }
 0xb26   : > { %v1819_v18 = vpop.f32.mrb[26].mxu0 }
 0xb27   : > { %v1820_v19 = vadd.f32 %v3311_v13, %v1819_v18  ;;  %v3617_v20 = vpop.f32.mrb[27].mxu0  ;;  %v1987_v21 = vmul.f32 0.25, %v1817_v16  ;;  %v3985_v13 = vld [vmem:[#allocation13 + $0x78] sm:$0xff]  }
 0xb29   : > { %v1988_v22 = vmul.f32 0.25, %v1820_v19 }
 0xb2b   : > { %v1989_v23 = vpack.c.bf16 %v1988_v22, %v1987_v21 }
 0xb2d   : > { %3645 = vmatmul.mubr.msk.bf16.vlgmr.msra.gmra.mrb[28].mxu1 %vm1144_vm3, %v1989_v23 }
 0xb2e   : > { %3650 = vmatprep.mubr.msk.bf16.mxu1 %vm4714_vm2, %v4713_v15 }
 0xb34   : > { %v1980_v25 = vpop.f32.mrb[28].mxu0 }
 0xb35   : > { %v3640_v26 = vpop.f32.mrb[29].mxu0  ;;  %v1981_v28 = vadd.f32 %v3323_v24, %v1980_v25 }
 0xb36   : > { %v1983_v27 = vpop.f32.mrb[30].mxu0 }
 0xb37   : > { %v1984_v29 = vadd.f32 %v3323_v24, %v1983_v27  ;;  %v3641_v30 = vpop.f32.mrb[31].mxu0  ;;  %v3345_v24 = vld [vmem:[#allocation17 + $0x3] ss:$0 sm:$0xff] }
 0xb39   : > { %v2061_v31 = vpack.c.bf16 %v1984_v29, %v1981_v28 }
 0xb3b   : > { %v2066_v32 = vsel %vm1221_vm4, %v2061_v31, 0 }
 0xb3c   : > { %3649 = vmatpush3.bf16.msra.mxu1 %v2066_v32 }
 0xb3d   : > { %3660 = vmatprep.subr.bf16.mxu1 %v4713_v15 }
 0xc00   : > { %v2031_v33 = vpop.f32.mrb[28].mxu1 }
 0xc01   : > { %v3646_v34 = vpop.f32.mrb[29].mxu1  ;;  %v2038_v35 = vsel %vm1192_vm5, %v2031_v33, -inf }
 0xc02   : > { %2039 = vmax.xlane.f32.xlu0 %v2038_v35  ;;  %v2034_v36 = vpop.f32.mrb[30].mxu1 }
 0xc03   : > { %v3647_v37 = vpop.f32.mrb[31].mxu1  ;;  %v2041_v38 = vsel %vm1196_vm6, %v2034_v36, -inf }
 0xc04   : > { %2042 = vmax.xlane.f32.xlu1 %v2041_v38  ;;  %v3339_v37 = vld [vmem:[#allocation14 + $0x3] ss:$0 sm:$0xff] }
 0xc8f   : > { %v2040_v39 = vpop.xlane.xlu0 %2039 }
 0xc90   : > { %v2044_v41 = vsub.f32 %v2031_v33, %v2040_v39 }
 0xc91   : > { %v2043_v42 = vpop.xlane.xlu1 %2042 }
 0xc92   : > { %v2046_v43 = vmul.f32 1.442695, %v2044_v41  ;;  %v2045_v44 = vsub.f32 %v2034_v36, %v2043_v42 }
 0xc94   : > { %4035 = vpow2.f32 %v2046_v43  ;;  %v2048_v45 = vmul.f32 1.442695, %v2045_v44 }
 0xc96   : > { %4037 = vpow2.f32 %v2048_v45 }
 0xc9e   : > { %v4036_v46 = vpop.eup %4035 }
 0xc9f   : > { %v2050_v47 = vsel %vm1192_vm5, %v4036_v46, 0.0 }
 0xca0   : > { %v4038_v48 = vpop.eup %4037  ;;  %2051 = vadd.xlane.f32.xlu0 %v2050_v47 }
 0xca1   : > { %v2053_v49 = vsel %vm1196_vm6, %v4038_v48, 0.0 }
 0xca2   : > { %2054 = vadd.xlane.f32.xlu1 %v2053_v49 }
 0xd2d   : > { %v2052_v51 = vpop.xlane.xlu0 %2051 }
 0xd2e   : > { %4039 = vrcp.f32 %v2052_v51 }
 0xd2f   : > { %v2055_v52 = vpop.xlane.xlu1 %2054 }
 0xd30   : > { %4041 = vrcp.f32 %v2055_v52 }
 0xd38   : > { %v4040_v53 = vpop.eup %4039 }
 0xd39   : > { %v2058_v55 = vmul.f32 %v4040_v53, %v4036_v46 }
 0xd3a   : > { %v4042_v54 = vpop.eup %4041 }
 0xd3b   : > { %v2059_v56 = vmul.f32 %v4042_v54, %v4038_v48 }
 0xd3d   : > { %v2060_v58 = vpack.c.bf16 %v2059_v56, %v2058_v55 }
 0xd3f   : > { %3651 = vmatmul.mubr.msk.bf16.vlgmr.msra.gmra.mrb[32].mxu1 %vm1192_vm5, %v2060_v58 }
 0xd40   : > { %3661 = vmatpush3.bf16.msra.mxu1 %v3973_v57  ;;  %3668 = vmatprep.mubr.msk.bf16.mxu1 %vm4714_vm2, %v4713_v15 }
 0xd41   : > { %3662 = vmatprep.subr.bf16.mxu1 %v4713_v15 }
 0xd44   : > { %3663 = vmatpush3.bf16.msra.mxu1 %v3974_v59 }
 0xd45   : > { %3664 = vmatprep.subr.bf16.mxu1 %v4713_v15 }
 0xd48   : > { %3665 = vmatpush3.bf16.msra.mxu1 %v3975_v60 }
 0xd49   : > { %3666 = vmatprep.subr.bf16.mxu1 %v4713_v15 }
 0xd4c   : > { %3667 = vmatpush3.bf16.msra.mxu1 %v3976_v61  ;;  %v3986_v61 = vld [vmem:[#allocation19 + $0x18] sm:$0xff]  }
 0xd4d   : > { %3684 = vmatprep.subr.bf16.mxu1 %v4713_v15 }
 0xd4f   : > { %3669 = vmatmul.mubr.msk.bf16.vlgmr.msra.gmra.mrb[36].mxu1 %vm851_vm0, %v5389_v40 }
 0xd50   : > { %3685 = vmatpush3.bf16.msra.mxu1 %v3977_v62  ;;  %3692 = vmatprep.mubr.msk.bf16.mxu1 %vm4714_vm2, %v4713_v15 }
 0xd51   : > { %3686 = vmatprep.subr.bf16.mxu1 %v4713_v15 }
 0xd54   : > { %3687 = vmatpush3.bf16.msra.mxu1 %v3978_v63 }
 0xd55   : > { %3688 = vmatprep.subr.bf16.mxu1 %v4713_v15 }
 0xd58   : > { %3689 = vmatpush3.bf16.msra.mxu1 %v3979_v0 }
 0xd59   : > { %3690 = vmatprep.subr.bf16.mxu1 %v4713_v15 }
 0xd5c   : > { %3691 = vmatpush3.bf16.msra.mxu1 %v3980_v1 }
 0xd5d   : > { %3708 = vmatprep.subr.bf16.mxu1 %v4713_v15 }
 0xd5f   : > { %3693 = vmatmul.mubr.msk.bf16.vlgmr.msra.gmra.mrb[40].mxu1 %vm851_vm0, %v5389_v40 }
 0xd60   : > { %3710 = vmatprep.mubr.msk.bf16.mxu1 %vm4714_vm2, %v4713_v15  ;;  %3709 = vmatpush3.bf16.msra.mxu1 %v3986_v61  ;;  %v3999_v61 = vld [vmem:[#allocation28 + $0x40] sm:$0xff]  }
 0xd61   : > { %3476 = vmatprep.subr.bf16.mxu1 %v3999_v61 }
 0xe12   : > { %v2102_v2 = vpop.f32.mrb[32].mxu1 }
 0xe13   : > { %v3652_v3 = vpop.f32.mrb[33].mxu1 }
 0xe14   : > { %v2105_v4 = vpop.f32.mrb[34].mxu1 }
 0xe15   : > { %v2109_v6 = vpack.c.bf16 %v2105_v4, %v2102_v2  ;;  %v3653_v7 = vpop.f32.mrb[35].mxu1 }
 0xe17   : > { %3657 = vmatmul.mubr.msk.bf16.vlgmr.msra.gmra.mrb[32].mxu0 %vm1144_vm3, %v2109_v6 }
 0xe18   : > { %3673 = vmatpush3.bf16.msra.mxu0 %v3982_v5  ;;  %3680 = vmatprep.mubr.msk.bf16.mxu0 %vm4714_vm2, %v4713_v15 }
 0xe19   : > { %3674 = vmatprep.subr.bf16.mxu0 %v4713_v15 }
 0xe1c   : > { %3675 = vmatpush3.bf16.msra.mxu0 %v3983_v9 }
 0xe1d   : > { %3676 = vmatprep.subr.bf16.mxu0 %v4713_v15 }
 0xe20   : > { %3677 = vmatpush3.bf16.msra.mxu0 %v3984_v10 }
 0xe21   : > { %3678 = vmatprep.subr.bf16.mxu0 %v4713_v15 }
 0xe22   : > { %v2240_v14 = vpop.f32.mrb[36].mxu1 }
 0xe23   : > { %v2241_v16 = vadd.f32 %v3333_v12, %v2240_v14  ;;  %v3670_v17 = vpop.f32.mrb[37].mxu1 }
 0xe24   : > { %v2243_v18 = vpop.f32.mrb[38].mxu1  ;;  %3679 = vmatpush3.bf16.msra.mxu0 %v3985_v13 }
 0xe25   : > { %v2244_v19 = vadd.f32 %v3333_v12, %v2243_v18  ;;  %v3671_v20 = vpop.f32.mrb[39].mxu1  ;;  %3696 = vmatprep.subr.bf16.mxu0 %v4713_v15  ;;  %v2411_v21 = vmul.f32 0.25, %v2241_v16  ;;  %v3355_v16 = vld [vmem:[#allocation20] ss:$0 sm:$0xff] }
 0xe26   : > { %v4071_v18 = vld [vmem:[%s5319_s21] sm:$0xff]  ;;  %s4585_s21 = sshll.u32 %s4716_s24, 4  ;;  %s4586_s21 = int_to_ptr.vmem [resolvable:$false] %s4585_s21 }
 0xe27   : > { %v2412_v22 = vmul.f32 0.25, %v2244_v19  ;;  %3681 = vmatmul.mubr.msk.bf16.vlgmr.msra.gmra.mrb[36].mxu0 %vm851_vm0, %v5389_v40  ;;  %s4587_s5 = scalar_lea.vmem %s4586_s21, 256  ;;  %p4588_p10 = scmp.lt.s32.totalorder %s5583_s23, %s4586_s21 }
 0xe28   : > { %3698 = vmatprep.mubr.msk.bf16.mxu0 %vm4714_vm2, %v4713_v15  ;;  %p4589_p11 = scmp.lt.s32.totalorder %s4587_s5, %s4581_s25 }
 0xe29   : > { %v2413_v23 = vpack.c.bf16 %v2412_v22, %v2411_v21 }
 0xe2a   : > { %p4590_p5 = por %p4589_p11, %p4588_p10 }
 0xe2c   : > { %p4591_p7 = pnand %p4590_p5, %p4584_p2 }
 0xe32   : > { %v2404_v25 = vpop.f32.mrb[40].mxu1 }
 0xe33   : > { %v3694_v26 = vpop.f32.mrb[41].mxu1  ;;  %v2405_v28 = vadd.f32 %v3345_v24, %v2404_v25 }
 0xe34   : > { %v2407_v27 = vpop.f32.mrb[42].mxu1 }
 0xe35   : > { %v2408_v29 = vadd.f32 %v3345_v24, %v2407_v27  ;;  %v3695_v30 = vpop.f32.mrb[43].mxu1 }
 0xe37   : > { %v2485_v31 = vpack.c.bf16 %v2408_v29, %v2405_v28 }
 0xeea   : > { %v2156_v32 = vpop.f32.mrb[32].mxu0 }
 0xeeb   : > { %v2163_v33 = vadd.f32 %v2156_v32, %v5502_v8  ;;  %v3658_v34 = vpop.f32.mrb[33].mxu0  ;;  %v2490_v8 = vsel %vm1221_vm4, %v2485_v31, 0 }
 0xeec   : > { %v2159_v35 = vpop.f32.mrb[34].mxu0 }
 0xeed   : > { %v5548_v36 = vadd.f32 %v2159_v35, %v5504_v11  ;;  %v3659_v40 = vpop.f32.mrb[35].mxu0 }
 0xefa   : > { %v2322_v38 = vpop.f32.mrb[36].mxu0 }
 0xefb   : > { %v3682_v39 = vpop.f32.mrb[37].mxu0  ;;  %v2323_v42 = vadd.f32 %v3339_v37, %v2322_v38  ;;  %v3987_v38 = vld [vmem:[#allocation25] ss:$8 sps:$4 sm:$0xff]  }
 0xefc   : > { %v2325_v41 = vpop.f32.mrb[38].mxu0  ;;  %v3992_v39 = vld [vmem:[#allocation25 + $0x14] ss:$8 sps:$4 sm:$0xff]  }
 0xefd   : > { %v2326_v43 = vadd.f32 %v3339_v37, %v2325_v41  ;;  %v3683_v44 = vpop.f32.mrb[39].mxu0  ;;  %v3989_v37 = vld [vmem:[#allocation25 + $0x4] ss:$8 sps:$4 sm:$0xff]   ;;  %v3990_v41 = vld [vmem:[#allocation25 + $0x10] ss:$8 sps:$4 sm:$0xff]  }
 0xefe   : > { %v3996_v44 = vld [vmem:[#allocation25 + $0x30] ss:$8 sps:$4 sm:$0xff]  }
 0xeff   : > { %v2414_v45 = vpack.c.bf16 %v2326_v43, %v2323_v42  ;;  %v3995_v42 = vld [vmem:[#allocation25 + $0x24] ss:$8 sps:$4 sm:$0xff]   ;;  %v3993_v43 = vld [vmem:[#allocation25 + $0x20] ss:$8 sps:$4 sm:$0xff]  }
 0xf01   : > { %v2419_v46 = vsel %vm1144_vm3, %v2414_v45, 0  ;;  %v3998_v45 = vld [vmem:[#allocation25 + $0x34] ss:$8 sps:$4 sm:$0xff]  }
 0xf02   : > { %3697 = vmatpush3.bf16.xpose.msra.mxu0 %v2419_v46  ;;  %v4715_v46 = vmov 0  }
 0xf03   : > { %3702 = vmatprep.subr.bf16.mxu0 %v4713_v15 }
 0xf09   : > { %3699 = vmatmul.mubr.msk.bf16.vlgmr.msra.gmra.mrb[40].mxu0 %vm1144_vm3, %v2413_v23  ;;  %v4072_v23 = vld [vmem:[%s5327_s17] sm:$0xf] }
 0xf0a   : > { %3703 = vmatpush3.bf16.msra.mxu0 %v2490_v8  ;;  %3704 = vmatprep.mubr.msk.bf16.mxu0 %vm4714_vm2, %v4713_v15 }
 0xf0b   : > { %2708 = vmatprep.subr.bf16.mxu0 %v3989_v37 }
 0xfdc   : > { %v2455_v11 = vpop.f32.mrb[40].mxu0 }
 0xfdd   : > { %v3700_v47 = vpop.f32.mrb[41].mxu0  ;;  %v2462_v48 = vsel %vm1192_vm5, %v2455_v11, -inf }
 0xfde   : > { %2463 = vmax.xlane.f32.xlu0 %v2462_v48  ;;  %v2458_v49 = vpop.f32.mrb[42].mxu0 }
 0xfdf   : > { %v3701_v50 = vpop.f32.mrb[43].mxu0  ;;  %v2465_v51 = vsel %vm1196_vm6, %v2458_v49, -inf }
 0xfe0   : > { %2466 = vmax.xlane.f32.xlu1 %v2465_v51 }
0x106b   : > { %v2464_v52 = vpop.xlane.xlu0 %2463 }
0x106c   : > { %v2468_v53 = vsub.f32 %v2455_v11, %v2464_v52  ;;  %v3356_v52 = vld [vmem:[#allocation22] ss:$0 sm:$0xff] }
0x106d   : > { %v2467_v54 = vpop.xlane.xlu1 %2466 }
0x106e   : > { %v2470_v55 = vmul.f32 1.442695, %v2468_v53  ;;  %v2469_v56 = vsub.f32 %v2458_v49, %v2467_v54 }
0x1070   : > { %4043 = vpow2.f32 %v2470_v55  ;;  %v2472_v57 = vmul.f32 1.442695, %v2469_v56 }
0x1072   : > { %4045 = vpow2.f32 %v2472_v57  ;;  %v3357_v57 = vld [vmem:[#allocation23] ss:$0 sm:$0xff] }
0x107a   : > { %v4044_v58 = vpop.eup %4043 }
0x107b   : > { %v2474_v15 = vsel %vm1192_vm5, %v4044_v58, 0.0 }
0x107c   : > { %v4046_v59 = vpop.eup %4045  ;;  %2475 = vadd.xlane.f32.xlu0 %v2474_v15 }
0x107d   : > { %v2477_v60 = vsel %vm1196_vm6, %v4046_v59, 0.0 }
0x107e   : > { %2478 = vadd.xlane.f32.xlu1 %v2477_v60 }
0x1109   : > { %v2476_v62 = vpop.xlane.xlu0 %2475 }
0x110a   : > { %4047 = vrcp.f32 %v2476_v62  ;;  %v4000_v62 = vld [vmem:[#allocation28] sm:$0xff]  }
0x110b   : > { %v2479_v63 = vpop.xlane.xlu1 %2478 }
0x110c   : > { %4049 = vrcp.f32 %v2479_v63  ;;  %v4001_v63 = vld [vmem:[#allocation28 + $0x48] sm:$0xff]  }
0x1114   : > { %v4048_v0 = vpop.eup %4047 }
0x1115   : > { %v2482_v2 = vmul.f32 %v4048_v0, %v4044_v58  ;;  %v4002_v0 = vld [vmem:[#allocation28 + $0x8] sm:$0xff]  }
0x1116   : > { %v4050_v1 = vpop.eup %4049 }
0x1117   : > { %v2483_v3 = vmul.f32 %v4050_v1, %v4046_v59  ;;  %v4003_v1 = vld [vmem:[#allocation28 + $0x50] sm:$0xff]  }
0x1119   : > { %v2484_v4 = vpack.c.bf16 %v2483_v3, %v2482_v2  ;;  %v4004_v2 = vld [vmem:[#allocation28 + $0x10] sm:$0xff]   ;;  %v4005_v3 = vld [vmem:[#allocation28 + $0x58] sm:$0xff]  }
0x111b   : > { %3705 = vmatmul.mubr.msk.bf16.vlgmr.msra.gmra.mrb[44].mxu0 %vm1192_vm5, %v2484_v4  ;;  %v4006_v4 = vld [vmem:[#allocation28 + $0x18] sm:$0xff]  }
0x111c   : > { %2709 = vmatpush1.bf16.msra.mxu0 %v3987_v38  ;;  %2740 = vmatprep.mubr.bf16.mxu0 %v4715_v46 }
0x111d   : > { %2710 = vmatprep.subr.bf16.mxu0 %v3992_v39 }
0x1120   : > { %2711 = vmatpush1.bf16.msra.mxu0 %v3990_v41 }
0x1121   : > { %2712 = vmatprep.subr.bf16.mxu0 %v3995_v42 }
0x1124   : > { %2713 = vmatpush1.bf16.msra.mxu0 %v3993_v43 }
0x1125   : > { %2714 = vmatprep.subr.bf16.mxu0 %v3998_v45 }
0x1128   : > { %2715 = vmatpush1.bf16.msra.mxu0 %v3996_v44 }
0x11ee   : > { %v2526_v5 = vpop.f32.mrb[44].mxu0 }
0x11ef   : > { %v3706_v6 = vpop.f32.mrb[45].mxu0 }
0x11f0   : > { %v2529_v7 = vpop.f32.mrb[46].mxu0  ;;  %v4008_v6 = vld [vmem:[#allocation28 + $0x20] sm:$0xff]  }
0x11f1   : > { %v2533_v9 = vpack.c.bf16 %v2529_v7, %v2526_v5  ;;  %v3707_v10 = vpop.f32.mrb[47].mxu0  ;;  %v4007_v5 = vld [vmem:[#allocation28 + $0x60] sm:$0xff]   ;;  %v4009_v7 = vld [vmem:[#allocation28 + $0x68] sm:$0xff]  }
0x11f2   : > { %v4011_v10 = vld [vmem:[#allocation28 + $0x70] sm:$0xff]  }
0x11f3   : > { %3711 = vmatmul.mubr.msk.bf16.vlgmr.msra.gmra.mrb[44].mxu1 %vm1144_vm3, %v2533_v9  ;;  %v4010_v9 = vld [vmem:[#allocation28 + $0x28] sm:$0xff]  }
0x11f4   : > { %3477 = vmatpush3.bf16.msra.mxu1 %v4000_v62 }
0x11f5   : > { %3478 = vmatprep.subr.bf16.mxu1 %v4001_v63 }
0x11f8   : > { %3479 = vmatpush3.bf16.msra.mxu1 %v4002_v0 }
0x11f9   : > { %3480 = vmatprep.subr.bf16.mxu1 %v4003_v1 }
0x11fc   : > { %3481 = vmatpush3.bf16.msra.mxu1 %v4004_v2 }
0x11fd   : > { %3482 = vmatprep.subr.bf16.mxu1 %v4005_v3 }
0x1200   : > { %3483 = vmatpush3.bf16.msra.mxu1 %v4006_v4 }
0x1201   : > { %3484 = vmatprep.subr.bf16.mxu1 %v4007_v5 }
0x1204   : > { %3485 = vmatpush3.bf16.msra.mxu1 %v4008_v6 }
0x1205   : > { %3486 = vmatprep.subr.bf16.mxu1 %v4009_v7 }
0x1208   : > { %3487 = vmatpush3.bf16.msra.mxu1 %v4010_v9 }
0x1209   : > { %3488 = vmatprep.subr.bf16.mxu1 %v4011_v10 }
0x12c6   : > { %v2580_v12 = vpop.f32.mrb[44].mxu1 }
0x12c7   : > { %v2587_v13 = vadd.f32 %v2580_v12, %v2163_v33  ;;  %v3712_v14 = vpop.f32.mrb[45].mxu1  ;;  %v4012_v12 = vld [vmem:[#allocation28 + $0x30] sm:$0xff]  }
0x12c8   : > { %v2583_v17 = vpop.f32.mrb[46].mxu1  ;;  %3489 = vmatpush3.bf16.msra.mxu1 %v4012_v12  ;;  %v4014_v14 = vld [vmem:[#allocation28 + $0x38] sm:$0xff]  }
0x12c9   : > { %v2589_v19 = vadd.f32 %v4071_v18, %v2587_v13  ;;  %v2588_v20 = vadd.f32 %v2583_v17, %v5548_v36  ;;  %v3713_v21 = vpop.f32.mrb[47].mxu1  ;;  %v4013_v13 = vld [vmem:[#allocation28 + $0x78] sm:$0xff]  }
0x12ca   : > { %3490 = vmatprep.subr.bf16.mxu1 %v4013_v13 }
0x12cb   : > { %v5564_v22 = vadd.f32 %v3355_v16, %v2589_v19  ;;  %v2590_v24 = vadd.f32 %v4072_v23, %v2588_v20  ;;  %v2653_v19 = vld [vmem:[#allocation26] sm:$0x3] }
0x12cc   : > { %3491 = vmatpush3.bf16.msra.mxu1 %v4014_v14 }
0x12cd   : > { %v2602_v25 = vsel %vm851_vm0, %v5564_v22, 0.0  ;;  %v2599_v26 = vadd.f32 %v3355_v16, %v2590_v24  ;;  %v2655_v16 = vlaneseq }
0x12ce   : > { %2603 = vadd.xlane.f32.xlu0 %v2602_v25 }
0x12cf   : > { %v2605_v27 = vsel %vm855_vm1, %v2599_v26, 0.0  ;;  %v2656_v17 = vshrl.u32 %v2655_v16, 7 }
0x12d0   : > { %2606 = vadd.xlane.f32.xlu1 %v2605_v27 }
0x12d1   : > { %v2657_v18 = vsub.s32 0, %v2656_v17  ;;  %v2661_v20 = vsub.s32 1, %v2656_v17 }
0x12d3   : > { %v2658_v21 = vrot.slane %v2653_v19, %v2657_v18  ;;  %v2662_v23 = vrot.slane %v2653_v19, %v2661_v20 }
0x135b   : > { %v2604_v28 = vpop.xlane.xlu0 %2603 }
0x135c   : > { %v2608_v29 = vmul.f32 0.015625, %v2604_v28 }
0x135d   : > { %v2607_v30 = vpop.xlane.xlu1 %2606 }
0x135e   : > { %v2610_v31 = vsub.f32 %v5564_v22, %v2608_v29  ;;  %v2609_v32 = vmul.f32 0.015625, %v2607_v30 }
0x1360   : > { %v2611_v33 = vsub.f32 %v2599_v26, %v2609_v32  ;;  %v2612_v34 = vmul.f32 %v2610_v31, %v2610_v31 }
0x1362   : > { %v2614_v35 = vsel %vm851_vm0, %v2612_v34, 0.0  ;;  %v2613_v36 = vmul.f32 %v2611_v33, %v2611_v33 }
0x1363   : > { %2615 = vadd.xlane.f32.xlu0 %v2614_v35 }
0x1364   : > { %v2617_v40 = vsel %vm855_vm1, %v2613_v36, 0.0 }
0x1365   : > { %2618 = vadd.xlane.f32.xlu1 %v2617_v40 }
0x13f0   : > { %v2616_v8 = vpop.xlane.xlu0 %2615 }
0x13f1   : > { %v2620_v11 = vmul.f32 0.015625, %v2616_v8 }
0x13f2   : > { %v2619_v47 = vpop.xlane.xlu1 %2618 }
0x13f3   : > { %v2622_v48 = vadd.f32 1e-05, %v2620_v11  ;;  %v2621_v49 = vmul.f32 0.015625, %v2619_v47 }
0x13f5   : > { %4051 = vrsqrt.f32 %v2622_v48  ;;  %v2623_v50 = vadd.f32 1e-05, %v2621_v49 }
0x13f7   : > { %4053 = vrsqrt.f32 %v2623_v50 }
0x13ff   : > { %v4052_v51 = vpop.eup %4051 }
0x1400   : > { %v2626_v53 = vmul.f32 %v4052_v51, %v2610_v31 }
0x1401   : > { %v4054_v54 = vpop.eup %4053 }
0x1402   : > { %v2634_v55 = vmul.f32 %v3356_v52, %v2626_v53  ;;  %v2627_v56 = vmul.f32 %v4054_v54, %v2611_v33 }
0x1404   : > { %v2635_v58 = vmul.f32 %v3356_v52, %v2627_v56  ;;  %v2642_v15 = vadd.f32 %v3357_v57, %v2634_v55 }
0x1406   : > { %v2643_v59 = vadd.f32 %v3357_v57, %v2635_v58 }
0x1408   : > { %v2644_v60 = vpack.c.bf16 %v2643_v59, %v2642_v15  ;;  %v3387_v59 = vld [vmem:[#allocation29] ss:$0 sm:$0xff] }
0x140a   : > { %3366 = vmatmul.mubr.msk.bf16.vlgmr.msra.gmra.mrb[48].mxu0 %vm851_vm0, %v2644_v60 }
0x14dd   : > { %v2742_v24 = vpop.f32.mrb[48].mxu0 }
0x14de   : > { %v2743_v25 = vadd.f32 %v2742_v24, %v2658_v21  ;;  %v2744_v26 = vpop.f32.mrb[49].mxu0 }
0x14df   : > { %v2745_v27 = vadd.f32 %v2744_v26, %v2662_v23  ;;  %v2746_v28 = vpop.f32.mrb[50].mxu0 }
0x14e0   : > { %v3367_v29 = vmul.f32 -1.702, %v2743_v25  ;;  %v2747_v30 = vadd.f32 %v2746_v28, %v2658_v21  ;;  %v2748_v31 = vpop.f32.mrb[51].mxu0 }
0x14e1   : > { %v3368_v32 = vmul.f32 -1.702, %v2745_v27  ;;  %v2749_v33 = vadd.f32 %v2748_v31, %v2662_v23 }
0x14e2   : > { %v2759_v34 = vmul.f32 1.442695, %v3367_v29  ;;  %v3369_v35 = vmul.f32 -1.702, %v2747_v30 }
0x14e3   : > { %v2761_v36 = vmul.f32 1.442695, %v3368_v32  ;;  %v3370_v40 = vmul.f32 -1.702, %v2749_v33 }
0x14e4   : > { %4055 = vpow2.f32 %v2759_v34  ;;  %v2763_v37 = vmul.f32 1.442695, %v3369_v35 }
0x14e5   : > { %4057 = vpow2.f32 %v2761_v36  ;;  %v2765_v38 = vmul.f32 1.442695, %v3370_v40 }
0x14e6   : > { %4059 = vpow2.f32 %v2763_v37 }
0x14e7   : > { %4061 = vpow2.f32 %v2765_v38 }
0x14ee   : > { %v4056_v39 = vpop.eup %4055 }
0x14ef   : > { %v4058_v41 = vpop.eup %4057  ;;  %v2767_v42 = vadd.f32 1.0, %v4056_v39 }
0x14f0   : > { %v4060_v43 = vpop.eup %4059  ;;  %v2768_v44 = vadd.f32 1.0, %v4058_v41 }
0x14f1   : > { %v4062_v45 = vpop.eup %4061  ;;  %4063 = vrcp.f32 %v2767_v42  ;;  %v2769_v46 = vadd.f32 1.0, %v4060_v43 }
0x14f2   : > { %4065 = vrcp.f32 %v2768_v44  ;;  %v2770_v8 = vadd.f32 1.0, %v4062_v45 }
0x14f3   : > { %4067 = vrcp.f32 %v2769_v46 }
0x14f4   : > { %4069 = vrcp.f32 %v2770_v8 }
0x14fb   : > { %v4064_v11 = vpop.eup %4063 }
0x14fc   : > { %v4066_v47 = vpop.eup %4065  ;;  %v2779_v50 = vmul.f32 %v4064_v11, %v2743_v25 }
0x14fd   : > { %v4068_v48 = vpop.eup %4067  ;;  %v2780_v52 = vmul.f32 %v4066_v47, %v2745_v27 }
0x14fe   : > { %v4070_v49 = vpop.eup %4069  ;;  %v2781_v51 = vmul.f32 %v4068_v48, %v2747_v30 }
0x14ff   : > { %v2782_v53 = vmul.f32 %v4070_v49, %v2749_v33 }
0x1500   : > { %v2783_v54 = vpack.c.bf16 %v2781_v51, %v2779_v50 }
0x1501   : > { %v2784_v55 = vpack.c.bf16 %v2782_v53, %v2780_v52 }
0x1503   : > { %2945 = vmatprep.mubr.bf16.mxu1 %v2784_v55 }
0x1504   : > { %2946 = vmatmul.mubr.bf16.vlgmr.msra.gmra.mrb[48].mxu1 %v2783_v54 }
0x15d7   : > { %v3492_v56 = vpop.f32.mrb[48].mxu1 }
0x15d8   : > { %v3493_v57 = vpop.f32.mrb[49].mxu1 }
0x15d9   : > { %v3494_v58 = vadd.f32 %v3493_v57, %v3492_v56  ;;  %v3495_v15 = vpop.f32.mrb[50].mxu1 }
0x15da   : > { %v3496_v60 = vpop.f32.mrb[51].mxu1 }
0x15db   : > { %v2953_v61 = vadd.f32 %v3494_v58, %v5564_v22 }
0x15dd   : > { %v2961_v62 = vadd.f32 %v3387_v59, %v2953_v61 }
0x15df   : > { %2962 = vst.msk [vmem:[%s845_s0] sm:$0xff] %vm851_vm0, %v2961_v62 }
0x15e0   : > { %4594 = shalt.err (!%p4591_p7)
}
0x15e1   : > { %s4595_s4 = scalar_lea.hbm %s5581_s8, 128  ;;  %s4599_s6 = scalar_lea.hbm %s5730_s1, 256 }
0x15e2   : > { %p4596_p3 = scmp.ne.s32.totalorder %s5581_s8, %s4595_s4  ;;  %p4600_p8 = scmp.lt.u32.totalorder %s5581_s8, %s5730_s1 }
0x15e3   : > { %p4601_p9 = scmp.lt.u32.totalorder %s4599_s6, %s4595_s4  ;;  %p4603_p1 = scmp.lt.u32.totalorder %s4595_s4, %s5581_s8 }
0x15e4   : > { %p4597_p6 = pnand %p4596_p3, %p5731_p13 }
0x15e5   : > { %p4602_p4 = por %p4601_p9, %p4600_p8 }
0x15e6   : > { %p4598_p12 = pneg %p4597_p6 }
0x15e7   : > { %p4604_p0 = por %p4603_p1, %p4602_p4 }
0x15e9   : > { %p4605_p2 = pnand %p4604_p0, %p4598_p12 }
0x15eb   : > { %4608 = shalt.err (!%p4605_p2)
}
0x15ec   : > { %3782 = dma.vmem_to_hbm [thread:$0]  (%p5731_p13), %s5583_s23, 128, %s5581_s8, %s2964_s20  }
0x15ed PF: > { %s5732_s0 = sld [smem:[#allocation44_spill]]  ;;  %s5733_s2 = sld [smem:[#allocation47_spill]] }
0x15ee   : > { %p5734_p10 = scmp.ne.s32.totalorder %s5701_s18, 0 }
0x15f3   : > { %s2989_s22 = sand.u32 1, %s5732_s0   ;;  %p5735_p11 = scmp.ge.s32.totalorder %s5733_s2, 2 }
0x15f4   : > { %s2990_s25 = scalar_lea.sflag [#allocation4], %s2989_s22 }
0x15f5   : > { %p3841_p5 = pnand %p5735_p11, %p5734_p10 }
0x15f7   : > { %4670 = dma.done.wait (!%p3841_p5), %s2990_s25, 128  }
0x15f8   : > { %4672 = vsyncadd (!%p3841_p5), %s2990_s25, 4294967168  ;;  %s5736_s24 = sld [smem:[#allocation45_spill]]  ;;  %s5737_s28 = sld [smem:[#allocation46_spill]] }
0x15f9   : > { %s5738_s21 = smov %s5213_s27  ;;  %p42_p7 = scmp.ge.s32.totalorder %s5202_s30, 4  }
0x15fa   : > { %s5740_s29 = smov %s5738_s21 }
0x15fb   :  { %44 = sbr.rel (!%p42_p7) target bundleno = 27 (0x1b), region = 235 }
0x15fe   : > { %s5739_s27 = smov %s5736_s24 }
0x1602   :  { %2995 = vsyncpa [#allocation3], 1 }
0x1603   :  { %2997 = vsyncpa [#allocation3 + $0x1], 1 }
0x1604   :  { %2998 = vsyncpa [#allocation6], 1 }
0x1605   :  { %3000 = vsyncpa [#allocation6 + $0x1], 1 }
0x1606   :  { %3001 = vsyncpa [#allocation9], 1 }
0x1607   :  { %3002 = vsyncpa [#allocation12], 1 }
0x1608   :  { %3003 = vsyncpa [#allocation15], 1 }
0x1609   :  { %3004 = vsyncpa [#allocation18], 1 }
0x160a   :  { %3005 = vsyncpa [#allocation21], 1 }
0x160b   :  { %3006 = vsyncpa [#allocation24], 1 }
0x160c   :  { %3007 = vsyncpa [#allocation27], 1 }
0x160d   :  { %3008 = vsyncpa [#allocation30], 1 }
0x160e   :  { %3009 = vsyncpa [#allocation4], 1 }
0x160f   :  { %3011 = vsyncpa [#allocation4 + $0x1], 1 }

// kernel: transformer_vptd_forward.7
= control target key start
LH: loop header
LB: loop body
LE: loop exit
PB: predicated region body
PF: predicated region fallthrough
CT: control target
= control target key end

     0   :  { %s5629_s0 = inlined_call_operand.hbm [shape: f32[2,8,64], index: 0, kind: input, shape index: {}, may-alias: {0,18}]   ;;  %s5630_s1 = inlined_call_operand.hbm [shape: f32[2,5,64], index: 1, kind: input, shape index: {}]   ;;  %s5631_s2 = inlined_call_operand.hbm [shape: f32[1,64], index: 2, kind: input, shape index: {}]   ;;  %s5632_s3 = inlined_call_operand.hbm [shape: f32[1,64], index: 3, kind: input, shape index: {}]   ;;  %s5633_s4 = inlined_call_operand.hbm [shape: bf16[4,64,16], index: 4, kind: input, shape index: {}]   ;;  %s5634_s5 = inlined_call_operand.hbm [shape: f32[4,1,16], index: 5, kind: input, shape index: {}]   ;;  %s5635_s6 = inlined_call_operand.hbm [shape: bf16[4,64,16], index: 6, kind: input, shape index: {}]   ;;  %s5636_s7 = inlined_call_operand.hbm [shape: f32[4,1,16], index: 7, kind: input, shape index: {}]   ;;  %s5637_s8 = inlined_call_operand.hbm [shape: bf16[4,64,16], index: 8, kind: input, shape index: {}]   ;;  %s5638_s9 = inlined_call_operand.hbm [shape: f32[4,1,16], index: 9, kind: input, shape index: {}]   ;;  %s5639_s10 = inlined_call_operand.hbm [shape: bf16[4,16,64], index: 10, kind: input, shape index: {}]   ;;  %s5640_s11 = inlined_call_operand.hbm [shape: f32[1,64], index: 11, kind: input, shape index: {}]   ;;  %s5641_s12 = inlined_call_operand.hbm [shape: f32[1,64], index: 12, kind: input, shape index: {}]   ;;  %s5642_s13 = inlined_call_operand.hbm [shape: f32[1,64], index: 13, kind: input, shape index: {}]   ;;  %s5643_s14 = inlined_call_operand.hbm [shape: bf16[64,256], index: 14, kind: input, shape index: {}]   ;;  %s5644_s15 = inlined_call_operand.hbm [shape: f32[1,256], index: 15, kind: input, shape index: {}]   ;;  %s5645_s16 = inlined_call_operand.hbm [shape: bf16[256,64], index: 16, kind: input, shape index: {}]   ;;  %s5646_s17 = inlined_call_operand.hbm [shape: f32[1,64], index: 17, kind: input, shape index: {}]   ;;  %s5647_s18 = inlined_call_operand.hbm [shape: f32[2,8,64], index: 18, kind: output, shape index: {}, may-alias: {0,18}]  }
   0x1   :  { %5666 = sst [smem:[#allocation50_spill]] %s5629_s0 }
   0x2   :  { %5667 = sst [smem:[#allocation51_spill]] %s5630_s1 }
   0x3   :  { %5668 = sst [smem:[#allocation52_spill]] %s5631_s2 }
   0x4   :  { %5669 = sst [smem:[#allocation53_spill]] %s5632_s3 }
   0x5   :  { %5670 = sst [smem:[#allocation54_spill]] %s5633_s4 }
   0x6   :  { %5671 = sst [smem:[#allocation55_spill]] %s5634_s5 }
   0x7   :  { %5672 = sst [smem:[#allocation56_spill]] %s5635_s6 }
   0x8   :  { %5673 = sst [smem:[#allocation57_spill]] %s5636_s7 }
   0x9   :  { %5674 = sst [smem:[#allocation58_spill]] %s5637_s8 }
   0xa   :  { %5675 = sst [smem:[#allocation59_spill]] %s5638_s9 }
   0xb   :  { %5676 = sst [smem:[#allocation60_spill]] %s5639_s10 }
   0xc   :  { %5677 = sst [smem:[#allocation61_spill]] %s5646_s17 }
   0xd   :  { %5678 = sst [smem:[#allocation62_spill]] %s5647_s18 }
   0xe   :  { %23 = vsyncpa [#allocation3], 0 }
   0xf   :  { %25 = vsyncpa [#allocation3 + $0x1], 0 }
  0x10   :  { %26 = vsyncpa [#allocation6], 0 }
  0x11   :  { %28 = vsyncpa [#allocation6 + $0x1], 0 }
  0x12   :  { %29 = vsyncpa [#allocation9], 0 }
  0x13   :  { %30 = vsyncpa [#allocation12], 0 }
  0x14   :  { %31 = vsyncpa [#allocation15], 0 }
  0x15   :  { %32 = vsyncpa [#allocation18], 0 }
  0x16   :  { %33 = vsyncpa [#allocation21], 0 }
  0x17   :  { %34 = vsyncpa [#allocation24], 0 }
  0x18   :  { %35 = vsyncpa [#allocation27], 0 }
  0x19   :  { %36 = vsyncpa [#allocation30], 0 }
  0x1a   :  { %37 = vsyncpa [#allocation4], 0 }
  0x1b   :  { %39 = vsyncpa [#allocation4 + $0x1], 0  ;;  %s4817_s27 = smov 0   ;;  %s4819_s28 = smov 0  }
  0x1c   :  { %s4821_s29 = smov 0   ;;  %s4823_s30 = smov 0  }
  0x1d LB: > { %5679 = sst [smem:[#allocation44_spill]] %s4679_s27  ;;  %s4693_s0 = smov [#allocation7]   ;;  %s4691_s30 = sphi %s4823_s30, %s5207_s30   ;;  %s4687_s29 = sphi %s4821_s29, %s5744_s29   ;;  %s4683_s28 = sphi %s4819_s28, %s5741_s28   ;;  %s4679_s27 = sphi %s4817_s27, %s5743_s27  }
  0x1e   : > { %5680 = sst [smem:[#allocation45_spill]] %s4683_s28  ;;  %s477_s19 = sshll.u32 %s4693_s0, 4  ;;  %s4843_s19 = int_to_ptr.vmem [resolvable:$true] %s477_s19 }
  0x1f   : > { %5681 = sst [smem:[#allocation46_spill]] %s4687_s29  ;;  %s4838_s1 = sadd.s32 4294967295, %s4691_s30  }
  0x20   : > { %5682 = sst [smem:[#allocation47_spill]] %s4691_s30  ;;  %p3226_p0 = scmp.ge.s32.totalorder %s4691_s30, 1 }
  0x21   : > { %5683 = sst [smem:[#allocation48_spill]] %s4838_s1  ;;  %p5662_p1 = scmp.eq.s32.totalorder %s4838_s1, 0 }
  0x22   : > { %p464_p2 = scmp.lt.s32.totalorder %s4691_s30, 3  ;;  %s4694_s21 = smov [#allocation8]  }
  0x23   : > { %s488_s22 = sshll.u32 %s4694_s21, 4  ;;  %s4695_s2 = smov [#allocation11]   ;;  %s4852_s22 = int_to_ptr.vmem [resolvable:$true] %s488_s22 }
  0x24   : > { %p4845_p3 = pnand %p3226_p0, %p464_p2  ;;  %s511_s23 = sshll.u32 %s4695_s2, 4  ;;  %s4860_s23 = int_to_ptr.vmem [resolvable:$true] %s511_s23 }
  0x25   : > { %s5687_s0 = sld [smem:[#allocation52_spill]] }
  0x26   : > { %s5684_s20 = scalar_select %p4845_p3, 1, 0 }
  0x27   : > { %p3787_p5 = pneg %p4845_p3 }
  0x28   : > { %5685 = sst [smem:[#allocation49_spill]] %s5684_s20 }
  0x29   : > { %p4856_p6 = pnand %p3787_p5, %p5662_p1 }
  0x2b   : > { %s4077_s18 = scalar_lea.hbm %s5687_s0, 16  ;;  %p4870_p8 = pneg %p4856_p6 }
  0x2c   : > { %p4078_p7 = scmp.ne.s32.totalorder %s5687_s0, %s4077_s18  ;;  %p4084_p11 = scmp.lt.u32.totalorder %s4077_s18, %s5687_s0 }
  0x2e   : > { %p4080_p9 = pnand %p4870_p8, %p4078_p7 }
  0x30   : > { %p4081_p10 = pneg %p4080_p9 }
  0x32   : > { %p4086_p12 = pnand %p4084_p11, %p4081_p10 }
  0x34   : > { %4089 = shalt.err (!%p4086_p12)
}
  0x35   : > { %s4090_s27 = scalar_lea.vmem %s4843_s19, 16  ;;  %s4097_s20 = scalar_lea.vmem %s4843_s19, 32 }
  0x36   : > { %p4091_p13 = scmp.ne.s32.totalorder %s4843_s19, %s4090_s27  ;;  %p4098_p5 = scmp.lt.s32.totalorder %s4843_s19, %s4843_s19 }
  0x37   : > { %p4099_p7 = scmp.lt.s32.totalorder %s4097_s20, %s4090_s27 }
  0x38   : > { %p4093_p0 = pnand %p4091_p13, %p4870_p8 }
  0x39   : > { %p4100_p9 = por %p4099_p7, %p4098_p5 }
  0x3a   : > { %p4094_p2 = pneg %p4093_p0 }
  0x3c   : > { %p4101_p4 = pnand %p4100_p9, %p4094_p2 }
  0x3e   : > { %4104 = shalt.err (!%p4101_p4)
}
  0x3f   : > { %3790 = dma.hbm_to_vmem [thread:$0]  (!%p4856_p6), %s5687_s0, 16, %s4843_s19, [#allocation6]  }
  0x40   : > { %s5689_s3 = sld [smem:[#allocation53_spill]] }
  0x46   : > { %s4105_s2 = scalar_lea.hbm %s5689_s3, 16 }
  0x47   : > { %p4106_p10 = scmp.ne.s32.totalorder %s5689_s3, %s4105_s2  ;;  %p4112_p4 = scmp.lt.u32.totalorder %s4105_s2, %s5689_s3 }
  0x49   : > { %p4108_p11 = pnand %p4106_p10, %p4870_p8 }
  0x4b   : > { %p4109_p12 = pneg %p4108_p11 }
  0x4d   : > { %p4114_p13 = pnand %p4112_p4, %p4109_p12 }
  0x4f   : > { %4117 = shalt.err (!%p4114_p13)
}
  0x50   : > { %s4118_s19 = scalar_lea.vmem %s4852_s22, 16  ;;  %s4125_s28 = scalar_lea.vmem %s4852_s22, 32 }
  0x51   : > { %p4119_p0 = scmp.ne.s32.totalorder %s4852_s22, %s4118_s19  ;;  %p4126_p7 = scmp.lt.s32.totalorder %s4852_s22, %s4852_s22 }
  0x52   : > { %p4127_p9 = scmp.lt.s32.totalorder %s4125_s28, %s4118_s19 }
  0x53   : > { %p4121_p2 = pnand %p4119_p0, %p4870_p8 }
  0x54   : > { %p4128_p10 = por %p4127_p9, %p4126_p7 }
  0x55   : > { %p4122_p5 = pneg %p4121_p2 }
  0x57   : > { %p4129_p11 = pnand %p4128_p10, %p4122_p5 }
  0x59   : > { %4132 = shalt.err (!%p4129_p11)
}
  0x5a   : > { %3793 = dma.hbm_to_vmem [thread:$0]  (!%p4856_p6), %s5689_s3, 16, %s4852_s22, [#allocation9]  }
  0x5b   : > { %s5690_s5 = sld [smem:[#allocation55_spill]] }
  0x61   : > { %s4133_s26 = scalar_lea.hbm %s5690_s5, 64 }
  0x62   : > { %p4134_p12 = scmp.ne.s32.totalorder %s5690_s5, %s4133_s26  ;;  %p4140_p0 = scmp.lt.u32.totalorder %s4133_s26, %s5690_s5 }
  0x64   : > { %p4136_p4 = pnand %p4134_p12, %p4870_p8 }
  0x66   : > { %p4137_p13 = pneg %p4136_p4 }
  0x68   : > { %p4142_p2 = pnand %p4140_p0, %p4137_p13 }
  0x6a   : > { %4145 = shalt.err (!%p4142_p2)
}
  0x6b   : > { %s4146_s22 = scalar_lea.vmem %s4860_s23, 64  ;;  %p4154_p10 = scmp.lt.s32.totalorder %s4860_s23, %s4860_s23 }
  0x6c   : > { %p4147_p5 = scmp.ne.s32.totalorder %s4860_s23, %s4146_s22  ;;  %p4155_p11 = scmp.lt.s32.totalorder %s4146_s22, %s4146_s22 }
  0x6e   : > { %p4149_p7 = pnand %p4147_p5, %p4870_p8  ;;  %p4156_p12 = por %p4155_p11, %p4154_p10 }
  0x70   : > { %p4150_p9 = pneg %p4149_p7 }
  0x72   : > { %p4157_p4 = pnand %p4156_p12, %p4150_p9 }
  0x74   : > { %4160 = shalt.err (!%p4157_p4)
}
  0x75   : > { %s4696_s28 = smov 16   ;;  %s4697_s29 = smov 1  }
  0x76   : > { %3799 = dma.hbm_to_vmem [thread:$0]  (!%p4856_p6), %s5690_s5, 64, %s4860_s23, [#allocation12], %s4696_s28, %s4696_s28, %s4697_s29  }
  0x77   : > { %s4698_s25 = smov [#allocation14]   ;;  %s4699_s2 = smov [#allocation17]  }
  0x78   : > { %s537_s26 = sshll.u32 %s4698_s25, 4  ;;  %s563_s27 = sshll.u32 %s4699_s2, 4  ;;  %s538_s26 = int_to_ptr.vmem [resolvable:$true] %s537_s26  ;;  %s564_s27 = int_to_ptr.vmem [resolvable:$true] %s563_s27 }
  0x79   : > { %s5691_s7 = sld [smem:[#allocation57_spill]] }
  0x7f   : > { %s4161_s22 = scalar_lea.hbm %s5691_s7, 64 }
  0x80   : > { %p4162_p13 = scmp.ne.s32.totalorder %s5691_s7, %s4161_s22  ;;  %p4168_p5 = scmp.lt.u32.totalorder %s4161_s22, %s5691_s7 }
  0x82   : > { %p4164_p0 = pnand %p4162_p13, %p4870_p8 }
  0x84   : > { %p4165_p2 = pneg %p4164_p0 }
  0x86   : > { %p4170_p7 = pnand %p4168_p5, %p4165_p2 }
  0x88   : > { %4173 = shalt.err (!%p4170_p7)
}
  0x89   : > { %s4174_s23 = scalar_lea.vmem %s538_s26, 64  ;;  %p4182_p12 = scmp.lt.s32.totalorder %s538_s26, %s538_s26 }
  0x8a   : > { %p4175_p9 = scmp.ne.s32.totalorder %s538_s26, %s4174_s23  ;;  %p4183_p4 = scmp.lt.s32.totalorder %s4174_s23, %s4174_s23 }
  0x8c   : > { %p4177_p10 = pnand %p4175_p9, %p4870_p8  ;;  %p4184_p1 = por %p4183_p4, %p4182_p12 }
  0x8e   : > { %p4178_p11 = pneg %p4177_p10 }
  0x90   : > { %p4185_p3 = pnand %p4184_p1, %p4178_p11 }
  0x92   : > { %4188 = shalt.err (!%p4185_p3)
}
  0x93   : > { %3805 = dma.hbm_to_vmem [thread:$0]  (!%p4856_p6), %s5691_s7, 64, %s538_s26, [#allocation15], %s4696_s28, %s4696_s28, %s4697_s29  }
  0x94   : > { %s5692_s9 = sld [smem:[#allocation59_spill]] }
  0x9a   : > { %s4189_s18 = scalar_lea.hbm %s5692_s9, 64 }
  0x9b   : > { %p4190_p1 = scmp.ne.s32.totalorder %s5692_s9, %s4189_s18  ;;  %p4196_p0 = scmp.lt.u32.totalorder %s4189_s18, %s5692_s9 }
  0x9d   : > { %p4192_p3 = pnand %p4190_p1, %p4870_p8 }
  0x9f   : > { %p4193_p13 = pneg %p4192_p3 }
  0xa1   : > { %p4198_p2 = pnand %p4196_p0, %p4193_p13 }
  0xa3   : > { %4201 = shalt.err (!%p4198_p2)
}
  0xa4   : > { %s4202_s19 = scalar_lea.vmem %s564_s27, 64  ;;  %p4210_p10 = scmp.lt.s32.totalorder %s564_s27, %s564_s27 }
  0xa5   : > { %p4203_p5 = scmp.ne.s32.totalorder %s564_s27, %s4202_s19  ;;  %p4211_p11 = scmp.lt.s32.totalorder %s4202_s19, %s4202_s19 }
  0xa7   : > { %p4205_p7 = pnand %p4203_p5, %p4870_p8  ;;  %p4212_p12 = por %p4211_p11, %p4210_p10 }
  0xa9   : > { %p4206_p9 = pneg %p4205_p7 }
  0xab   : > { %p4213_p4 = pnand %p4212_p12, %p4206_p9 }
  0xad   : > { %4216 = shalt.err (!%p4213_p4)
}
  0xae   : > { %3811 = dma.hbm_to_vmem [thread:$0]  (!%p4856_p6), %s5692_s9, 64, %s564_s27, [#allocation18], %s4696_s28, %s4696_s28, %s4697_s29  }
  0xaf   : > { %s4700_s23 = smov [#allocation20]   ;;  %s4701_s17 = smov [#allocation23]  }
  0xb0   : > { %s590_s3 = sshll.u32 %s4700_s23, 4  ;;  %s612_s30 = sshll.u32 %s4701_s17, 4  ;;  %s591_s3 = int_to_ptr.vmem [resolvable:$true] %s590_s3  ;;  %s613_s30 = int_to_ptr.vmem [resolvable:$true] %s612_s30 }
  0xb1   : > { %s4217_s1 = scalar_lea.hbm %s5640_s11, 16 }
  0xb2   : > { %p4218_p1 = scmp.ne.s32.totalorder %s5640_s11, %s4217_s1  ;;  %p4224_p0 = scmp.lt.u32.totalorder %s4217_s1, %s5640_s11 }
  0xb4   : > { %p4220_p3 = pnand %p4218_p1, %p4870_p8 }
  0xb6   : > { %p4221_p13 = pneg %p4220_p3 }
  0xb8   : > { %p4226_p2 = pnand %p4224_p0, %p4221_p13 }
  0xba   : > { %4229 = shalt.err (!%p4226_p2)
}
  0xbb   : > { %s4230_s28 = scalar_lea.vmem %s591_s3, 16  ;;  %s4237_s29 = scalar_lea.vmem %s591_s3, 32 }
  0xbc   : > { %p4231_p5 = scmp.ne.s32.totalorder %s591_s3, %s4230_s28  ;;  %p4238_p10 = scmp.lt.s32.totalorder %s591_s3, %s591_s3 }
  0xbd   : > { %p4239_p11 = scmp.lt.s32.totalorder %s4237_s29, %s4230_s28 }
  0xbe   : > { %p4233_p7 = pnand %p4231_p5, %p4870_p8 }
  0xbf   : > { %p4240_p12 = por %p4239_p11, %p4238_p10 }
  0xc0   : > { %p4234_p9 = pneg %p4233_p7 }
  0xc2   : > { %p4241_p4 = pnand %p4240_p12, %p4234_p9 }
  0xc4   : > { %4244 = shalt.err (!%p4241_p4)
}
  0xc5   : > { %3817 = dma.hbm_to_vmem [thread:$0]  (!%p4856_p6), %s5640_s11, 16, %s591_s3, [#allocation21]  }
  0xc6   : > { %s4245_s17 = scalar_lea.hbm %s5642_s13, 16 }
  0xc7   : > { %p4246_p1 = scmp.ne.s32.totalorder %s5642_s13, %s4245_s17  ;;  %p4252_p0 = scmp.lt.u32.totalorder %s4245_s17, %s5642_s13 }
  0xc9   : > { %p4248_p3 = pnand %p4246_p1, %p4870_p8 }
  0xcb   : > { %p4249_p13 = pneg %p4248_p3 }
  0xcd   : > { %p4254_p2 = pnand %p4252_p0, %p4249_p13 }
  0xcf   : > { %4257 = shalt.err (!%p4254_p2)
}
  0xd0   : > { %s4258_s2 = scalar_lea.vmem %s613_s30, 16  ;;  %s4265_s3 = scalar_lea.vmem %s613_s30, 32 }
  0xd1   : > { %p4259_p5 = scmp.ne.s32.totalorder %s613_s30, %s4258_s2  ;;  %p4266_p10 = scmp.lt.s32.totalorder %s613_s30, %s613_s30 }
  0xd2   : > { %p4267_p11 = scmp.lt.s32.totalorder %s4265_s3, %s4258_s2 }
  0xd3   : > { %p4261_p7 = pnand %p4259_p5, %p4870_p8 }
  0xd4   : > { %p4268_p12 = por %p4267_p11, %p4266_p10 }
  0xd5   : > { %p4262_p9 = pneg %p4261_p7 }
  0xd7   : > { %p4269_p4 = pnand %p4268_p12, %p4262_p9 }
  0xd9   : > { %4272 = shalt.err (!%p4269_p4)
}
  0xda   : > { %3823 = dma.hbm_to_vmem [thread:$0]  (!%p4856_p6), %s5642_s13, 16, %s613_s30, [#allocation24]  }
  0xdb   : > { %s4702_s28 = smov [#allocation26]   ;;  %s4703_s27 = smov [#allocation10]  }
  0xdc   : > { %s636_s29 = sshll.u32 %s4702_s28, 4  ;;  %s498_s26 = sshll.u32 %s4703_s27, 4  ;;  %s637_s29 = int_to_ptr.vmem [resolvable:$true] %s636_s29  ;;  %s499_s26 = int_to_ptr.vmem [resolvable:$true] %s498_s26 }
  0xdd   : > { %s4273_s17 = scalar_lea.hbm %s5644_s15, 32 }
  0xde   : > { %p4274_p1 = scmp.ne.s32.totalorder %s5644_s15, %s4273_s17  ;;  %p4280_p0 = scmp.lt.u32.totalorder %s4273_s17, %s5644_s15 }
  0xe0   : > { %p4276_p3 = pnand %p4274_p1, %p4870_p8 }
  0xe2   : > { %p4277_p13 = pneg %p4276_p3 }
  0xe4   : > { %p4282_p2 = pnand %p4280_p0, %p4277_p13 }
  0xe6   : > { %4285 = shalt.err (!%p4282_p2)
}
  0xe7   : > { %s4286_s30 = scalar_lea.vmem %s637_s29, 32  ;;  %p4294_p10 = scmp.lt.s32.totalorder %s637_s29, %s637_s29 }
  0xe8   : > { %p4287_p5 = scmp.ne.s32.totalorder %s637_s29, %s4286_s30  ;;  %p4295_p11 = scmp.lt.s32.totalorder %s4286_s30, %s4286_s30 }
  0xea   : > { %p4289_p7 = pnand %p4287_p5, %p4870_p8  ;;  %p4296_p12 = por %p4295_p11, %p4294_p10 }
  0xec   : > { %p4290_p9 = pneg %p4289_p7 }
  0xee   : > { %p4297_p4 = pnand %p4296_p12, %p4290_p9 }
  0xf0   : > { %4300 = shalt.err (!%p4297_p4)
}
  0xf1   : > { %3829 = dma.hbm_to_vmem [thread:$0]  (!%p4856_p6), %s5644_s15, 32, %s637_s29, [#allocation27]  }
  0xf2   : > { %s5693_s4 = sld [smem:[#allocation54_spill]] }
  0xf8   : > { %s4301_s28 = scalar_lea.hbm %s5693_s4, 2048 }
  0xf9   : > { %p4302_p1 = scmp.ne.s32.totalorder %s5693_s4, %s4301_s28  ;;  %p4308_p0 = scmp.lt.u32.totalorder %s4301_s28, %s5693_s4 }
  0xfb   : > { %p4304_p3 = pnand %p4302_p1, %p4870_p8 }
  0xfd   : > { %p4305_p13 = pneg %p4304_p3 }
  0xff   : > { %p4310_p2 = pnand %p4308_p0, %p4305_p13 }
 0x101   : > { %4313 = shalt.err (!%p4310_p2)
}
 0x102   : > { %s4314_s0 = scalar_lea.vmem %s499_s26, 2048  ;;  %p4322_p10 = scmp.lt.s32.totalorder %s499_s26, %s499_s26 }
 0x103   : > { %p4315_p5 = scmp.ne.s32.totalorder %s499_s26, %s4314_s0  ;;  %p4323_p11 = scmp.lt.s32.totalorder %s4314_s0, %s4314_s0 }
 0x105   : > { %p4317_p7 = pnand %p4315_p5, %p4870_p8  ;;  %p4324_p12 = por %p4323_p11, %p4322_p10 }
 0x107   : > { %p4318_p9 = pneg %p4317_p7 }
 0x109   : > { %p4325_p4 = pnand %p4324_p12, %p4318_p9 }
 0x10b   : > { %4328 = shalt.err (!%p4325_p4)
}
 0x10c   : > { %s4704_s29 = smov 64   ;;  %s4705_s18 = smov 4  }
 0x10d   : > { %3796 = dma.hbm_to_vmem [thread:$0]  (!%p4856_p6), %s5693_s4, 2048, %s499_s26, [#allocation9], %s4704_s29, %s4704_s29, %s4705_s18  }
 0x10e   : > { %s4706_s30 = smov [#allocation13]   ;;  %s4707_s3 = smov [#allocation16]  }
 0x10f   : > { %s524_s2 = sshll.u32 %s4706_s30, 4  ;;  %s550_s20 = sshll.u32 %s4707_s3, 4  ;;  %s525_s2 = int_to_ptr.vmem [resolvable:$true] %s524_s2  ;;  %s551_s20 = int_to_ptr.vmem [resolvable:$true] %s550_s20 }
 0x110   : > { %s5694_s6 = sld [smem:[#allocation56_spill]] }
 0x116   : > { %s4329_s27 = scalar_lea.hbm %s5694_s6, 2048 }
 0x117   : > { %p4330_p1 = scmp.ne.s32.totalorder %s5694_s6, %s4329_s27  ;;  %p4336_p0 = scmp.lt.u32.totalorder %s4329_s27, %s5694_s6 }
 0x119   : > { %p4332_p3 = pnand %p4330_p1, %p4870_p8 }
 0x11b   : > { %p4333_p13 = pneg %p4332_p3 }
 0x11d   : > { %p4338_p2 = pnand %p4336_p0, %p4333_p13 }
 0x11f   : > { %4341 = shalt.err (!%p4338_p2)
}
 0x120   : > { %s4342_s26 = scalar_lea.vmem %s525_s2, 2048  ;;  %p4350_p10 = scmp.lt.s32.totalorder %s525_s2, %s525_s2 }
 0x121   : > { %p4343_p5 = scmp.ne.s32.totalorder %s525_s2, %s4342_s26  ;;  %p4351_p11 = scmp.lt.s32.totalorder %s4342_s26, %s4342_s26 }
 0x123   : > { %p4345_p7 = pnand %p4343_p5, %p4870_p8  ;;  %p4352_p12 = por %p4351_p11, %p4350_p10 }
 0x125   : > { %p4346_p9 = pneg %p4345_p7 }
 0x127   : > { %p4353_p4 = pnand %p4352_p12, %p4346_p9 }
 0x129   : > { %4356 = shalt.err (!%p4353_p4)
}
 0x12a   : > { %3802 = dma.hbm_to_vmem [thread:$0]  (!%p4856_p6), %s5694_s6, 2048, %s525_s2, [#allocation12], %s4704_s29, %s4704_s29, %s4705_s18  }
 0x12b   : > { %s5695_s8 = sld [smem:[#allocation58_spill]] }
 0x131   : > { %s4357_s19 = scalar_lea.hbm %s5695_s8, 2048 }
 0x132   : > { %p4358_p1 = scmp.ne.s32.totalorder %s5695_s8, %s4357_s19  ;;  %p4364_p0 = scmp.lt.u32.totalorder %s4357_s19, %s5695_s8 }
 0x134   : > { %p4360_p3 = pnand %p4358_p1, %p4870_p8 }
 0x136   : > { %p4361_p13 = pneg %p4360_p3 }
 0x138   : > { %p4366_p2 = pnand %p4364_p0, %p4361_p13 }
 0x13a   : > { %4369 = shalt.err (!%p4366_p2)
}
 0x13b   : > { %s4370_s17 = scalar_lea.vmem %s551_s20, 2048  ;;  %p4378_p10 = scmp.lt.s32.totalorder %s551_s20, %s551_s20 }
 0x13c   : > { %p4371_p5 = scmp.ne.s32.totalorder %s551_s20, %s4370_s17  ;;  %p4379_p11 = scmp.lt.s32.totalorder %s4370_s17, %s4370_s17 }
 0x13e   : > { %p4373_p7 = pnand %p4371_p5, %p4870_p8  ;;  %p4380_p12 = por %p4379_p11, %p4378_p10 }
 0x140   : > { %p4374_p9 = pneg %p4373_p7 }
 0x142   : > { %p4381_p4 = pnand %p4380_p12, %p4374_p9 }
 0x144   : > { %4384 = shalt.err (!%p4381_p4)
}
 0x145   : > { %3808 = dma.hbm_to_vmem [thread:$0]  (!%p4856_p6), %s5695_s8, 2048, %s551_s20, [#allocation15], %s4704_s29, %s4704_s29, %s4705_s18  }
 0x146   : > { %s4708_s26 = smov [#allocation19]   ;;  %s4709_s25 = smov [#allocation22]  }
 0x147   : > { %s576_s1 = sshll.u32 %s4708_s26, 4  ;;  %s601_s30 = sshll.u32 %s4709_s25, 4  ;;  %s577_s1 = int_to_ptr.vmem [resolvable:$true] %s576_s1  ;;  %s602_s30 = int_to_ptr.vmem [resolvable:$true] %s601_s30 }
 0x148   : > { %s5696_s10 = sld [smem:[#allocation60_spill]] }
 0x14e   : > { %s4385_s28 = scalar_lea.hbm %s5696_s10, 512 }
 0x14f   : > { %p4386_p1 = scmp.ne.s32.totalorder %s5696_s10, %s4385_s28  ;;  %p4392_p0 = scmp.lt.u32.totalorder %s4385_s28, %s5696_s10 }
 0x151   : > { %p4388_p3 = pnand %p4386_p1, %p4870_p8 }
 0x153   : > { %p4389_p13 = pneg %p4388_p3 }
 0x155   : > { %p4394_p2 = pnand %p4392_p0, %p4389_p13 }
 0x157   : > { %4397 = shalt.err (!%p4394_p2)
}
 0x158   : > { %s4398_s20 = scalar_lea.vmem %s577_s1, 512  ;;  %p4406_p10 = scmp.lt.s32.totalorder %s577_s1, %s577_s1 }
 0x159   : > { %p4399_p5 = scmp.ne.s32.totalorder %s577_s1, %s4398_s20  ;;  %p4407_p11 = scmp.lt.s32.totalorder %s4398_s20, %s4398_s20 }
 0x15b   : > { %p4401_p7 = pnand %p4399_p5, %p4870_p8  ;;  %p4408_p12 = por %p4407_p11, %p4406_p10 }
 0x15d   : > { %p4402_p9 = pneg %p4401_p7 }
 0x15f   : > { %p4409_p4 = pnand %p4408_p12, %p4402_p9 }
 0x161   : > { %4412 = shalt.err (!%p4409_p4)
}
 0x162   : > { %3814 = dma.hbm_to_vmem [thread:$0]  (!%p4856_p6), %s5696_s10, 512, %s577_s1, [#allocation18], %s4704_s29, %s4704_s29, %s4705_s18  }
 0x163   : > { %s4413_s3 = scalar_lea.hbm %s5641_s12, 16 }
 0x164   : > { %p4414_p1 = scmp.ne.s32.totalorder %s5641_s12, %s4413_s3  ;;  %p4420_p0 = scmp.lt.u32.totalorder %s4413_s3, %s5641_s12 }
 0x166   : > { %p4416_p3 = pnand %p4414_p1, %p4870_p8 }
 0x168   : > { %p4417_p13 = pneg %p4416_p3 }
 0x16a   : > { %p4422_p2 = pnand %p4420_p0, %p4417_p13 }
 0x16c   : > { %4425 = shalt.err (!%p4422_p2)
}
 0x16d   : > { %s4426_s23 = scalar_lea.vmem %s602_s30, 16  ;;  %s4433_s1 = scalar_lea.vmem %s602_s30, 32 }
 0x16e   : > { %p4427_p5 = scmp.ne.s32.totalorder %s602_s30, %s4426_s23  ;;  %p4434_p10 = scmp.lt.s32.totalorder %s602_s30, %s602_s30 }
 0x16f   : > { %p4435_p11 = scmp.lt.s32.totalorder %s4433_s1, %s4426_s23 }
 0x170   : > { %p4429_p7 = pnand %p4427_p5, %p4870_p8 }
 0x171   : > { %p4436_p12 = por %p4435_p11, %p4434_p10 }
 0x172   : > { %p4430_p9 = pneg %p4429_p7 }
 0x174   : > { %p4437_p4 = pnand %p4436_p12, %p4430_p9 }
 0x176   : > { %4440 = shalt.err (!%p4437_p4)
}
 0x177   : > { %3820 = dma.hbm_to_vmem [thread:$0]  (!%p4856_p6), %s5641_s12, 16, %s602_s30, [#allocation21]  }
 0x178   : > { %s4710_s2 = smov [#allocation25]   ;;  %s4441_s3 = scalar_lea.hbm %s5643_s14, 1024 }
 0x179   : > { %s622_s0 = sshll.u32 %s4710_s2, 4  ;;  %p4442_p1 = scmp.ne.s32.totalorder %s5643_s14, %s4441_s3  ;;  %s623_s0 = int_to_ptr.vmem [resolvable:$true] %s622_s0 }
 0x17a   : > { %p4448_p0 = scmp.lt.u32.totalorder %s4441_s3, %s5643_s14 }
 0x17b   : > { %p4444_p3 = pnand %p4442_p1, %p4870_p8 }
 0x17d   : > { %p4445_p13 = pneg %p4444_p3 }
 0x17f   : > { %p4450_p2 = pnand %p4448_p0, %p4445_p13 }
 0x181   : > { %4453 = shalt.err (!%p4450_p2)
}
 0x182   : > { %s4454_s30 = scalar_lea.vmem %s623_s0, 1024  ;;  %p4462_p10 = scmp.lt.s32.totalorder %s623_s0, %s623_s0 }
 0x183   : > { %p4455_p5 = scmp.ne.s32.totalorder %s623_s0, %s4454_s30  ;;  %p4463_p11 = scmp.lt.s32.totalorder %s4454_s30, %s4454_s30 }
 0x185   : > { %p4457_p7 = pnand %p4455_p5, %p4870_p8  ;;  %p4464_p12 = por %p4463_p11, %p4462_p10 }
 0x187   : > { %p4458_p9 = pneg %p4457_p7 }
 0x189   : > { %p4465_p4 = pnand %p4464_p12, %p4458_p9 }
 0x18b   : > { %4468 = shalt.err (!%p4465_p4)
}
 0x18c   : > { %s4711_s23 = smov 128   ;;  %s4712_s1 = smov 8  }
 0x18d   : > { %3826 = dma.hbm_to_vmem [thread:$0]  (!%p4856_p6), %s5643_s14, 1024, %s623_s0, [#allocation24], %s4711_s23, %s4711_s23, %s4712_s1  }
 0x18e   : > { %s4713_s2 = smov [#allocation28]   ;;  %s4714_s25 = smov [#allocation29]  }
 0x18f   : > { %s646_s26 = sshll.u32 %s4713_s2, 4  ;;  %s660_s3 = sshll.u32 %s4714_s25, 4  ;;  %s647_s26 = int_to_ptr.vmem [resolvable:$true] %s646_s26  ;;  %s5158_s3 = int_to_ptr.vmem [resolvable:$true] %s660_s3 }
 0x190   : > { %s4469_s27 = scalar_lea.hbm %s5645_s16, 2048 }
 0x191   : > { %p4470_p1 = scmp.ne.s32.totalorder %s5645_s16, %s4469_s27  ;;  %p4476_p0 = scmp.lt.u32.totalorder %s4469_s27, %s5645_s16 }
 0x193   : > { %p4472_p3 = pnand %p4470_p1, %p4870_p8 }
 0x195   : > { %p4473_p13 = pneg %p4472_p3 }
 0x197   : > { %p4478_p2 = pnand %p4476_p0, %p4473_p13 }
 0x199   : > { %4481 = shalt.err (!%p4478_p2)
}
 0x19a   : > { %s4482_s23 = scalar_lea.vmem %s647_s26, 2048  ;;  %p4490_p10 = scmp.lt.s32.totalorder %s647_s26, %s647_s26 }
 0x19b   : > { %p4483_p5 = scmp.ne.s32.totalorder %s647_s26, %s4482_s23  ;;  %p4491_p11 = scmp.lt.s32.totalorder %s4482_s23, %s4482_s23 }
 0x19d   : > { %p4485_p7 = pnand %p4483_p5, %p4870_p8  ;;  %p4492_p12 = por %p4491_p11, %p4490_p10 }
 0x19f   : > { %p4486_p9 = pneg %p4485_p7 }
 0x1a1   : > { %p4493_p4 = pnand %p4492_p12, %p4486_p9 }
 0x1a3   : > { %4496 = shalt.err (!%p4493_p4)
}
 0x1a4   : > { %3832 = dma.hbm_to_vmem [thread:$0]  (!%p4856_p6), %s5645_s16, 2048, %s647_s26, [#allocation27], %s4704_s29, %s4704_s29, %s4705_s18  }
 0x1a5   : > { %s5697_s19 = sld [smem:[#allocation61_spill]] }
 0x1ab   : > { %s4497_s28 = scalar_lea.hbm %s5697_s19, 16 }
 0x1ac   : > { %p4498_p1 = scmp.ne.s32.totalorder %s5697_s19, %s4497_s28  ;;  %p4504_p0 = scmp.lt.u32.totalorder %s4497_s28, %s5697_s19 }
 0x1ae   : > { %p4500_p3 = pnand %p4498_p1, %p4870_p8 }
 0x1b0   : > { %p4501_p13 = pneg %p4500_p3 }
 0x1b2   : > { %p4506_p2 = pnand %p4504_p0, %p4501_p13 }
 0x1b4   : > { %4509 = shalt.err (!%p4506_p2)
}
 0x1b5   : > { %s4510_s29 = scalar_lea.vmem %s5158_s3, 16  ;;  %s4517_s18 = scalar_lea.vmem %s5158_s3, 32 }
 0x1b6   : > { %p4511_p5 = scmp.ne.s32.totalorder %s5158_s3, %s4510_s29  ;;  %p4518_p10 = scmp.lt.s32.totalorder %s5158_s3, %s5158_s3 }
 0x1b7   : > { %p4519_p11 = scmp.lt.s32.totalorder %s4517_s18, %s4510_s29 }
 0x1b8   : > { %p4513_p7 = pnand %p4511_p5, %p4870_p8 }
 0x1b9   : > { %p4520_p12 = por %p4519_p11, %p4518_p10 }
 0x1ba   : > { %p4514_p9 = pneg %p4513_p7 }
 0x1bc   : > { %p4521_p4 = pnand %p4520_p12, %p4514_p9 }
 0x1be   : > { %4524 = shalt.err (!%p4521_p4)
}
 0x1bf   : > { %s5698_s23 = sld [smem:[#allocation47_spill]]  ;;  %s5699_s1 = sld [smem:[#allocation46_spill]] }
 0x1c0   : > { %s5700_s21 = sld [smem:[#allocation45_spill]]  ;;  %s5701_s20 = sld [smem:[#allocation44_spill]] }
 0x1c1   : > { %s5702_s2 = sld [smem:[#allocation48_spill]] }
 0x1c2   : > { %3835 = dma.hbm_to_vmem [thread:$0]  (!%p4856_p6), %s5697_s19, 16, %s5158_s3, [#allocation30]  }
 0x1c3   : > { %s5710_s6 = sld [smem:[#allocation51_spill]] }
 0x1c5   : > { %s3225_s24 = sadd.s32 4294967294, %s5698_s23   ;;  %s5207_s30 = sadd.s32 1, %s5698_s23  }
 0x1c6   : > { %s49_s25 = ssub.s32 %s5698_s23, %s5207_s30  ;;  %s52_s28 = sadd.s32 1, %s5699_s1 }
 0x1c7   : > { %p50_p8 = scmp.eq.s32.totalorder %s49_s25, 0  ;;  %p59_p1 = scmp.ne.s32.totalorder %s5699_s1, %s5700_s21 }
 0x1c8   : > { %p60_p3 = scmp.eq.s32.totalorder %s5698_s23, 0  ;;  %p65_p13 = scmp.ne.s32.totalorder %s5700_s21, %s5701_s20 }
 0x1c9   : > { %s5218_s27 = scalar_select %p50_p8, %s5699_s1, %s52_s28  }
 0x1ca   : > { %p5220_p0 = por %p60_p3, %p59_p1  ;;  %p5704_p2 = scmp.eq.s32.totalorder %s5702_s2, 0 }
 0x1cb   : > { %p451_p5 = scmp.eq.s32.totalorder %s5702_s2, 1  ;;  %p457_p7 = scmp.eq.s32.totalorder %s3225_s24, 1 }
 0x1cc   : > { %p5226_p6 = por %p5704_p2, %p65_p13  ;;  %p3863_p9 = scmp.lt.s32.totalorder %s5698_s23, 2 }
 0x1cd   : > { %s671_s17 = sand.u32 1, %s5699_s1   ;;  %p5233_p10 = por %p451_p5, %p59_p1 }
 0x1ce   : > { %s5705_s3 = scalar_select %p5226_p6, 1, 0 }
 0x1cf   : > { %s5706_s29 = scalar_select %p5233_p10, 1, 0 }
 0x1d0   : > { %p5237_p11 = por %p457_p7, %p65_p13  ;;  %s5241_s26 = sshll.u32 %s671_s17, 3 }
 0x1d1   : > { %s3245_s0 = sshll.u32 %s5698_s23, 7  ;;  %s5708_s25 = sld [smem:[#allocation50_spill]] }
 0x1d2   : > { %s5707_s18 = scalar_select %p5237_p11, 1, 0 }
 0x1d3   : > { %s675_s1 = scalar_lea.vmem [#allocation2], %s5241_s26  ;;  %p5254_p12 = pnand %p3863_p9, %p5220_p0 }
 0x1d4   : > { %s682_s2 = sshll.u32 %s675_s1, 4  ;;  %s5261_s21 = scalar_lea.hbm %s5710_s6, %s3245_s0  ;;  %s5250_s2 = int_to_ptr.vmem [resolvable:$true] %s682_s2 }
 0x1d5   : > { %s689_s20 = sand.u32 1, %s5698_s23   ;;  %s672_s7 = scalar_lea.sflag [#allocation3], %s671_s17 }
 0x1d6   : > { %p4527_p8 = pneg %p5254_p12 }
 0x1d7   : > { %s5247_s28 = scalar_lea.hbm %s5708_s25, %s3245_s0  ;;  %s4530_s9 = scalar_lea.hbm %s5708_s25, 256 }
 0x1d8   : > { %s4525_s8 = scalar_lea.hbm %s5247_s28, 128  ;;  %p4531_p13 = scmp.lt.u32.totalorder %s5247_s28, %s5708_s25 }
 0x1d9   : > { %p4526_p4 = scmp.ne.s32.totalorder %s5247_s28, %s4525_s8  ;;  %p4532_p0 = scmp.lt.u32.totalorder %s4530_s9, %s4525_s8 }
 0x1da   : > { %p4534_p5 = scmp.lt.u32.totalorder %s4525_s8, %s5247_s28 }
 0x1db   : > { %p4528_p1 = pnand %p4527_p8, %p4526_p4  ;;  %p4533_p2 = por %p4532_p0, %p4531_p13 }
 0x1dd   : > { %p4529_p3 = pneg %p4528_p1  ;;  %p4535_p7 = por %p4534_p5, %p4533_p2 }
 0x1df   : > { %p4536_p9 = pnand %p4535_p7, %p4529_p3 }
 0x1e1   : > { %4539 = shalt.err (!%p4536_p9)
}
 0x1e2   : > { %s4540_s5 = scalar_lea.vmem %s5250_s2, 128  ;;  %s4715_s17 = smov [#allocation2]  }
 0x1e3   : > { %p4541_p4 = scmp.ne.s32.totalorder %s5250_s2, %s4540_s5  ;;  %s4545_s0 = sshll.u32 %s4715_s17, 4  ;;  %s4546_s0 = int_to_ptr.vmem [resolvable:$false] %s4545_s0 }
 0x1e4   : > { %s4547_s10 = scalar_lea.vmem %s4546_s0, 256  ;;  %p4548_p10 = scmp.lt.s32.totalorder %s5250_s2, %s4546_s0 }
 0x1e5   : > { %p4543_p1 = pnand %p4541_p4, %p4527_p8  ;;  %p4549_p13 = scmp.lt.s32.totalorder %s4547_s10, %s4540_s5 }
 0x1e7   : > { %p4544_p11 = pneg %p4543_p1  ;;  %p4550_p0 = por %p4549_p13, %p4548_p10 }
 0x1e9   : > { %p4551_p2 = pnand %p4550_p0, %p4544_p11 }
 0x1eb   : > { %4554 = shalt.err (!%p4551_p2)
}
 0x1ec   : > { %3839 = dma.hbm_to_vmem [thread:$0]  (!%p5254_p12), %s5247_s28, 128, %s5250_s2, %s672_s7  }
 0x1ed   : > { %s693_s8 = scalar_lea.vmem [#allocation5], %s5241_s26  ;;  %s690_s22 = scalar_lea.sflag [#allocation6], %s689_s20 }
 0x1ee   : > { %s700_s9 = sshll.u32 %s693_s8, 4  ;;  %s4555_s1 = scalar_lea.hbm %s5261_s21, 128  ;;  %s701_s9 = int_to_ptr.vmem [resolvable:$true] %s700_s9 }
 0x1ef   : > { %p4556_p10 = scmp.ne.s32.totalorder %s5261_s21, %s4555_s1  ;;  %s4560_s17 = scalar_lea.hbm %s5710_s6, 256 }
 0x1f0   : > { %p4561_p5 = scmp.lt.u32.totalorder %s5261_s21, %s5710_s6  ;;  %p4562_p7 = scmp.lt.u32.totalorder %s4560_s17, %s4555_s1 }
 0x1f1   : > { %p4558_p11 = pnand %p4556_p10, %p4527_p8  ;;  %p4564_p4 = scmp.lt.u32.totalorder %s4555_s1, %s5261_s21 }
 0x1f2   : > { %p4563_p9 = por %p4562_p7, %p4561_p5 }
 0x1f3   : > { %p4559_p3 = pneg %p4558_p11 }
 0x1f4   : > { %p4565_p1 = por %p4564_p4, %p4563_p9 }
 0x1f6   : > { %p4566_p13 = pnand %p4565_p1, %p4559_p3 }
 0x1f8   : > { %4569 = shalt.err (!%p4566_p13)
}
 0x1f9   : > { %s4570_s7 = scalar_lea.vmem %s701_s9, 128  ;;  %s4716_s23 = smov [#allocation5]  }
 0x1fa   : > { %p4571_p0 = scmp.ne.s32.totalorder %s701_s9, %s4570_s7  ;;  %s4575_s26 = sshll.u32 %s4716_s23, 4  ;;  %s4576_s26 = int_to_ptr.vmem [resolvable:$false] %s4575_s26 }
 0x1fb   : > { %s4577_s28 = scalar_lea.vmem %s4576_s26, 256  ;;  %p4578_p11 = scmp.lt.s32.totalorder %s701_s9, %s4576_s26 }
 0x1fc   : > { %p4573_p2 = pnand %p4571_p0, %p4527_p8  ;;  %p4579_p6 = scmp.lt.s32.totalorder %s4577_s28, %s4570_s7 }
 0x1fe   : > { %p4574_p10 = pneg %p4573_p2  ;;  %p4580_p5 = por %p4579_p6, %p4578_p11 }
 0x200   : > { %p4581_p7 = pnand %p4580_p5, %p4574_p10 }
 0x202   : > { %4584 = shalt.err (!%p4581_p7)
}
 0x203   : > { %3842 = dma.hbm_to_vmem [thread:$0]  (!%p5254_p12), %s5261_s21, 128, %s701_s9, %s690_s22  }
 0x204   : > { %s5711_s2 = sld [smem:[#allocation49_spill]] }
 0x20a   : > { %p5712_p3 = scmp.ne.s32.totalorder %s5711_s2, 0 }
 0x20b   : > { %s5713_s20 = sld [smem:[#allocation45_spill]] (!%p5712_p3)  ;;  %p5714_p6 = scmp.ne.s32.totalorder (!%p5712_p3), %s5705_s3, 0 }
 0x20c   : > { %709 = sbr.rel (%p5712_p3) target bundleno = 5622 (0x15f6), region = 92 }
 0x211   : > { %s5314_s8 = sand.u32 (!%p5712_p3), 1, %s5713_s20  }
 0x212   : > { %s5317_s1 = sshll.u32 (!%p5712_p3), %s5314_s8, 3  ;;  %s712_s4 = scalar_lea.sflag (!%p5712_p3), [#allocation3], %s5314_s8 }
 0x213   : > { %s715_s5 = scalar_lea.vmem [#allocation2], %s5317_s1 }
 0x214   : > { %4630 = dma.done.wait (%p5714_p6), %s712_s4, 128  }
 0x215   : > { %4632 = vsyncadd (%p5714_p6), %s712_s4, 4294967168  ;;  %s5715_s24 = sld [smem:[#allocation48_spill]]  ;;  %s724_s22 = scalar_lea.vmem [#allocation5], %s5317_s1 }
 0x21b   : > { %s720_s21 = sand.u32 1, %s5715_s24  }
 0x21c   : > { %s721_s9 = scalar_lea.sflag [#allocation6], %s720_s21 }
 0x21d   : > { %4634 = dma.done.wait (%p5714_p6), %s721_s9, 128  }
 0x21e   : > { %4636 = vsyncadd (%p5714_p6), %s721_s9, 4294967168  ;;  %p5716_p12 = scmp.eq.s32.totalorder %s5715_s24, 0 }
 0x220   : > { %4638 = dma.done.wait (%p5716_p12), [#allocation6], 16   ;;  %p5717_p8 = pmov %p5716_p12 }
 0x222   : > { %4640 = vsyncadd (%p5717_p8), [#allocation6], 4294967280  ;;  %p5718_p9 = pmov %p5717_p8 }
 0x223   : > { %p5719_p4 = pmov %p5717_p8 }
 0x224   : > { %4642 = dma.done.wait (%p5718_p9), [#allocation9], 2064  }
 0x225   : > { %4644 = vsyncadd (%p5719_p4), [#allocation9], 4294965232  ;;  %p5720_p1 = pmov %p5719_p4 }
 0x227   : > { %4646 = dma.done.wait (%p5720_p1), [#allocation12], 2112   ;;  %p5721_p13 = pmov %p5720_p1 }
 0x228   : > { %p5722_p0 = pmov %p5720_p1 }
 0x229   : > { %4648 = vsyncadd (%p5721_p13), [#allocation12], 4294965184 }
 0x22a   : > { %4650 = dma.done.wait (%p5722_p0), [#allocation15], 2112   ;;  %p5723_p2 = pmov %p5722_p0 }
 0x22b   : > { %p5724_p10 = pmov %p5722_p0 }
 0x22c   : > { %4652 = vsyncadd (%p5723_p2), [#allocation15], 4294965184 }
 0x22d   : > { %4654 = dma.done.wait (%p5724_p10), [#allocation18], 576   ;;  %p5725_p11 = pmov %p5722_p0 }
 0x22e   : > { %p5726_p5 = pmov %p5722_p0 }
 0x22f   : > { %4656 = vsyncadd (%p5725_p11), [#allocation18], 4294966720 }
 0x230   : > { %4658 = dma.done.wait (%p5726_p5), [#allocation21], 32   ;;  %p5727_p7 = pmov %p5722_p0 }
 0x231   : > { %p5728_p3 = pmov %p5722_p0 }
 0x232   : > { %4660 = vsyncadd (%p5727_p7), [#allocation21], 4294967264 }
 0x233   : > { %4662 = dma.done.wait (%p5728_p3), [#allocation24], 1040   ;;  %p5729_p6 = pmov %p5722_p0 }
 0x234   : > { %p5730_p12 = pmov %p5722_p0 }
 0x235   : > { %4664 = vsyncadd (%p5729_p6), [#allocation24], 4294966256 }
 0x236   : > { %4666 = dma.done.wait (%p5730_p12), [#allocation27], 2080   ;;  %p5731_p8 = pmov %p5722_p0 }
 0x237   : > { %p5732_p9 = pmov %p5722_p0 }
 0x238   : > { %4668 = vsyncadd (%p5731_p8), [#allocation27], 4294965216 }
 0x239   : > { %4670 = dma.done.wait (%p5732_p9), [#allocation30], 16   ;;  %p5733_p4 = pmov %p5722_p0 }
 0x23a   : > { %vm851_vm0 = vcmask 523264   ;;  %vm855_vm1 = vcmask 520192   ;;  %v847_v0 = vld [vmem:[%s715_s5] sm:$0xff]  ;;  %v848_v1 = vld [vmem:[%s724_s22] sm:$0x1f]  ;;  %v4717_v15 = vmov 0.0  }
 0x23b   : > { %4672 = vsyncadd (%p5733_p4), [#allocation30], 4294967280  ;;  %v852_v2 = vsel %vm851_vm0, %v847_v0, 0.0  ;;  %v856_v3 = vsel %vm855_vm1, %v848_v1, 0.0  ;;  %v3939_v14 = vld [vmem:[#allocation10] sm:$0xff]   ;;  %3501 = vmatprep.subr.bf16.mxu0 %v4717_v15  ;;  %3513 = vmatprep.subr.bf16.mxu1 %v4717_v15  ;;  %v3941_v17 = vld [vmem:[#allocation10 + $0x8] sm:$0xff]  }
 0x23c   : > { %853 = vadd.xlane.f32.xlu0 %v852_v2  ;;  %v3940_v16 = vld [vmem:[#allocation13] sm:$0xff]   ;;  %3502 = vmatpush3.bf16.msra.mxu0 %v3939_v14  ;;  %v3942_v18 = vld [vmem:[#allocation13 + $0x8] sm:$0xff]   ;;  %v3944_v20 = vld [vmem:[#allocation13 + $0x10] sm:$0xff]   ;;  %vm4718_vm2 = vmmov 0   ;;  %vm1144_vm3 = vcmask 130048   ;;  %vm1221_vm4 = vcmask 1045504  }
 0x23d   : > { %3514 = vmatpush3.bf16.msra.mxu1 %v3940_v16  ;;  %3503 = vmatprep.subr.bf16.mxu0 %v4717_v15  ;;  %v3943_v19 = vld [vmem:[#allocation10 + $0x10] sm:$0xff]   ;;  %v3945_v21 = vld [vmem:[#allocation10 + $0x18] sm:$0xff]   ;;  %v3947_v39 = vld [vmem:[#allocation16] sm:$0xff]   ;;  %vm1222_vm5 = vcmask 1046528   ;;  %vm1192_vm6 = vcmask 105472   ;;  %vm1196_vm7 = vcmask 102400  }
 0x23e   : > { %3515 = vmatprep.subr.bf16.mxu1 %v4717_v15  ;;  %v3946_v22 = vld [vmem:[#allocation13 + $0x18] sm:$0xff]   ;;  %3509 = vmatprep.mubr.msk.bf16.mxu0 %vm4718_vm2, %v4717_v15  ;;  %v3948_v41 = vld [vmem:[#allocation16 + $0x8] sm:$0xff]   ;;  %v3276_v46 = vld [vmem:[#allocation14] ss:$0 sm:$0xff]  ;;  %s3392_s3 = sshll.u32 %s5715_s24, 7  ;;  %s845_s17 = scalar_lea.vmem [#allocation31], %s5317_s1 }
 0x23f   : > { %3521 = vmatprep.mubr.msk.bf16.mxu1 %vm4718_vm2, %v4717_v15  ;;  %v3268_v31 = vld [vmem:[#allocation7] ss:$0 sm:$0xff]  ;;  %v3269_v35 = vld [vmem:[#allocation8] ss:$0 sm:$0xff]  ;;  %v3950_v43 = vld [vmem:[#allocation16 + $0x18] sm:$0xff]   ;;  %s2980_s0 = sshll.u32 %s845_s17, 4  ;;  %s5586_s0 = int_to_ptr.vmem [resolvable:$true] %s2980_s0 }
 0x240   : > { %857 = vadd.xlane.f32.xlu0 %v856_v3  ;;  %3504 = vmatpush3.bf16.msra.mxu0 %v3941_v17  ;;  %v3949_v42 = vld [vmem:[#allocation16 + $0x10] sm:$0xff]   ;;  %v3270_v44 = vld [vmem:[#allocation11] ss:$0 sm:$0xff]  ;;  %v3952_v2 = vld [vmem:[#allocation10 + $0x28] sm:$0xff]   ;;  %s5734_s23 = sld [smem:[#allocation62_spill]]  ;;  %s2967_s28 = scalar_lea.sflag [#allocation4], %s5314_s8 }
 0x241   : > { %3516 = vmatpush3.bf16.msra.mxu1 %v3942_v18  ;;  %3505 = vmatprep.subr.bf16.mxu0 %v4717_v15  ;;  %v3951_v63 = vld [vmem:[#allocation10 + $0x20] sm:$0xff]   ;;  %v3954_v14 = vld [vmem:[#allocation10 + $0x38] sm:$0xff]   ;;  %v3955_v16 = vld [vmem:[#allocation16 + $0x20] sm:$0xff]   ;;  %s4585_s2 = scalar_lea.vmem %s5586_s0, 128  ;;  %p5735_p13 = scmp.ne.s32.totalorder %s5706_s29, 0 }
 0x242   : > { %3517 = vmatprep.subr.bf16.mxu1 %v4717_v15  ;;  %v3956_v17 = vld [vmem:[#allocation16 + $0x28] sm:$0xff]   ;;  %v3957_v18 = vld [vmem:[#allocation16 + $0x30] sm:$0xff]   ;;  %p4586_p1 = scmp.ne.s32.totalorder %s5586_s0, %s4585_s2  ;;  %s4721_s20 = smov [#allocation31]  }
 0x243   : > { %s4589_s1 = sshll.u32 %s4721_s20, 4  ;;  %s4590_s1 = int_to_ptr.vmem [resolvable:$false] %s4589_s1 }
 0x244   : > { %3506 = vmatpush3.bf16.msra.mxu0 %v3943_v19  ;;  %v3958_v19 = vld [vmem:[#allocation16 + $0x38] sm:$0xff]   ;;  %p4587_p0 = pnand %p4586_p1, %p5735_p13  ;;  %s4591_s4 = scalar_lea.vmem %s4590_s1, 256 }
 0x245   : > { %3518 = vmatpush3.bf16.msra.mxu1 %v3944_v20  ;;  %3507 = vmatprep.subr.bf16.mxu0 %v4717_v15  ;;  %p4592_p10 = scmp.lt.s32.totalorder %s5586_s0, %s4590_s1  ;;  %p4593_p11 = scmp.lt.s32.totalorder %s4591_s4, %s4585_s2 }
 0x246   : > { %3519 = vmatprep.subr.bf16.mxu1 %v4717_v15  ;;  %s5584_s26 = scalar_lea.hbm %s5734_s23, %s3392_s3  ;;  %p4588_p2 = pneg %p4587_p0 }
 0x247   : > { %p4594_p5 = por %p4593_p11, %p4592_p10 }
 0x248   : > { %3508 = vmatpush3.bf16.msra.mxu0 %v3945_v21 }
 0x249   : > { %3520 = vmatpush3.bf16.msra.mxu1 %v3946_v22  ;;  %3525 = vmatprep.subr.bf16.mxu0 %v4717_v15  ;;  %p4595_p7 = pnand %p4594_p5, %p4588_p2 }
 0x24a   : > { %3543 = vmatprep.subr.bf16.mxu1 %v4717_v15 }
 0x2c9   : > { %v854_v4 = vpop.xlane.xlu0 %853 }
 0x2ca   : > { %v860_v5 = vmul.f32 0.015625, %v854_v4  ;;  %v4719_v4 = vmov 65535  }
 0x2cc   : > { %v862_v6 = vsub.f32 %v847_v0, %v860_v5  ;;  %v3282_v0 = vld [vmem:[#allocation17] ss:$0 sm:$0xff]  ;;  %v1223_v5 = vsel %vm1221_vm4, 4294967295, %v4719_v4 }
 0x2cd   : > { %v858_v7 = vpop.xlane.xlu0 %857 }
 0x2ce   : > { %v861_v8 = vmul.f32 0.015625, %v858_v7  ;;  %v864_v9 = vmul.f32 %v862_v6, %v862_v6 }
 0x2d0   : > { %v863_v10 = vsub.f32 %v848_v1, %v861_v8  ;;  %v866_v11 = vsel %vm851_vm0, %v864_v9, 0.0 }
 0x2d1   : > { %867 = vadd.xlane.f32.xlu1 %v866_v11  ;;  %v3953_v11 = vld [vmem:[#allocation10 + $0x30] sm:$0xff]  }
 0x2d2   : > { %v865_v12 = vmul.f32 %v863_v10, %v863_v10 }
 0x2d4   : > { %v869_v13 = vsel %vm855_vm1, %v865_v12, 0.0 }
 0x2d5   : > { %870 = vadd.xlane.f32.xlu1 %v869_v13 }
 0x35e   : > { %v868_v23 = vpop.xlane.xlu1 %867 }
 0x35f   : > { %v872_v24 = vmul.f32 0.015625, %v868_v23 }
 0x361   : > { %v874_v25 = vadd.f32 1e-05, %v872_v24 }
 0x362   : > { %v871_v26 = vpop.xlane.xlu1 %870 }
 0x363   : > { %4019 = vrsqrt.f32 %v874_v25  ;;  %v873_v27 = vmul.f32 0.015625, %v871_v26  ;;  %v3290_v26 = vld [vmem:[#allocation11 + $0x1] ss:$0 sm:$0xff] }
 0x365   : > { %v875_v28 = vadd.f32 1e-05, %v873_v27 }
 0x367   : > { %4021 = vrsqrt.f32 %v875_v28 }
 0x36d   : > { %v4020_v29 = vpop.eup %4019 }
 0x36e   : > { %v878_v30 = vmul.f32 %v4020_v29, %v862_v6 }
 0x370   : > { %v886_v33 = vmul.f32 %v3268_v31, %v878_v30 }
 0x371   : > { %v4022_v32 = vpop.eup %4021 }
 0x372   : > { %v879_v34 = vmul.f32 %v4022_v32, %v863_v10  ;;  %v894_v37 = vadd.f32 %v3269_v35, %v886_v33  ;;  %v5413_v10 = vsel %vm1222_vm5, %v1223_v5, 0 }
 0x374   : > { %v887_v36 = vmul.f32 %v3268_v31, %v879_v34 }
 0x376   : > { %v895_v38 = vadd.f32 %v3269_v35, %v887_v36  ;;  %v3302_v36 = vld [vmem:[#allocation17 + $0x1] ss:$0 sm:$0xff] }
 0x378   : > { %v5389_v40 = vpack.c.bf16 %v895_v38, %v894_v37 }
 0x37a   : > { %3510 = vmatmul.mubr.msk.bf16.vlgmr.msra.gmra.mrb[0].mxu0 %vm851_vm0, %v5389_v40  ;;  %3522 = vmatmul.mubr.msk.bf16.vlgmr.msra.gmra.mrb[0].mxu1 %vm851_vm0, %v5389_v40 }
 0x37b   : > { %3526 = vmatpush3.bf16.msra.mxu0 %v3947_v39  ;;  %3533 = vmatprep.mubr.msk.bf16.mxu0 %vm4718_vm2, %v4717_v15 }
 0x37c   : > { %3527 = vmatprep.subr.bf16.mxu0 %v4717_v15  ;;  %3545 = vmatprep.mubr.msk.bf16.mxu1 %vm4718_vm2, %v4717_v15 }
 0x37f   : > { %3528 = vmatpush3.bf16.msra.mxu0 %v3948_v41 }
 0x380   : > { %3529 = vmatprep.subr.bf16.mxu0 %v4717_v15 }
 0x383   : > { %3530 = vmatpush3.bf16.msra.mxu0 %v3949_v42 }
 0x384   : > { %3531 = vmatprep.subr.bf16.mxu0 %v4717_v15 }
 0x387   : > { %3532 = vmatpush3.bf16.msra.mxu0 %v3950_v43 }
 0x388   : > { %3537 = vmatprep.subr.bf16.mxu0 %v4717_v15 }
 0x38a   : > { %3534 = vmatmul.mubr.msk.bf16.vlgmr.msra.gmra.mrb[4].mxu0 %vm851_vm0, %v5389_v40 }
 0x38b   : > { %3539 = vmatprep.mubr.msk.bf16.mxu0 %vm4718_vm2, %v4717_v15 }
 0x44d   : > { %v973_v45 = vpop.f32.mrb[0].mxu0  ;;  %v1053_v47 = vpop.f32.mrb[0].mxu1 }
 0x44e   : > { %v974_v48 = vadd.f32 %v3270_v44, %v973_v45  ;;  %v3511_v49 = vpop.f32.mrb[1].mxu0  ;;  %v3523_v50 = vpop.f32.mrb[1].mxu1  ;;  %v1054_v53 = vadd.f32 %v3276_v46, %v1053_v47 }
 0x44f   : > { %v976_v51 = vpop.f32.mrb[2].mxu0  ;;  %v1056_v52 = vpop.f32.mrb[2].mxu1 }
 0x450   : > { %v977_v54 = vadd.f32 %v3270_v44, %v976_v51  ;;  %v1057_v55 = vadd.f32 %v3276_v46, %v1056_v52  ;;  %v3512_v56 = vpop.f32.mrb[3].mxu0  ;;  %v3524_v57 = vpop.f32.mrb[3].mxu1  ;;  %v1140_v58 = vmul.f32 0.25, %v974_v48 }
 0x452   : > { %v1141_v59 = vmul.f32 0.25, %v977_v54  ;;  %v1143_v60 = vpack.c.bf16 %v1057_v55, %v1054_v53 }
 0x454   : > { %v1142_v61 = vpack.c.bf16 %v1141_v59, %v1140_v58  ;;  %v1149_v62 = vsel %vm1144_vm3, %v1143_v60, 0 }
 0x455   : > { %3538 = vmatpush3.bf16.xpose.msra.mxu0 %v1149_v62 }
 0x456   : > { %3549 = vmatprep.subr.bf16.mxu0 %v4717_v15 }
 0x45c   : > { %3540 = vmatmul.mubr.msk.bf16.vlgmr.msra.gmra.mrb[8].mxu0 %vm1144_vm3, %v1142_v61  ;;  %v3959_v61 = vld [vmem:[#allocation13 + $0x20] sm:$0xff]  }
 0x45d   : > { %v1133_v1 = vpop.f32.mrb[4].mxu0  ;;  %3550 = vmatpush3.bf16.msra.mxu0 %v3951_v63  ;;  %3557 = vmatprep.mubr.msk.bf16.mxu0 %vm4718_vm2, %v4717_v15  ;;  %v3960_v63 = vld [vmem:[#allocation13 + $0x28] sm:$0xff]  }
 0x45e   : > { %v3535_v3 = vpop.f32.mrb[5].mxu0  ;;  %3551 = vmatprep.subr.bf16.mxu0 %v4717_v15  ;;  %v1134_v7 = vadd.f32 %v3282_v0, %v1133_v1  ;;  %v3962_v1 = vld [vmem:[#allocation13 + $0x38] sm:$0xff]  }
 0x45f   : > { %v1136_v6 = vpop.f32.mrb[6].mxu0 }
 0x460   : > { %v1137_v8 = vadd.f32 %v3282_v0, %v1136_v6  ;;  %v3536_v9 = vpop.f32.mrb[7].mxu0  ;;  %v3961_v0 = vld [vmem:[#allocation13 + $0x30] sm:$0xff]  }
 0x461   : > { %3552 = vmatpush3.bf16.msra.mxu0 %v3952_v2 }
 0x462   : > { %v1217_v12 = vpack.c.bf16 %v1137_v8, %v1134_v7  ;;  %3553 = vmatprep.subr.bf16.mxu0 %v4717_v15  ;;  %v3296_v7 = vld [vmem:[#allocation14 + $0x1] ss:$0 sm:$0xff] }
 0x464   : > { %v1226_v13 = vand.u32 %v5413_v10, %v1217_v12 }
 0x465   : > { %3554 = vmatpush3.bf16.msra.mxu0 %v3953_v11 }
 0x466   : > { %3544 = vmatpush3.bf16.msra.mxu1 %v1226_v13  ;;  %3555 = vmatprep.subr.bf16.mxu0 %v4717_v15 }
 0x467   : > { %3561 = vmatprep.subr.bf16.mxu1 %v4717_v15 }
 0x469   : > { %3556 = vmatpush3.bf16.msra.mxu0 %v3954_v14 }
 0x46a   : > { %3573 = vmatprep.subr.bf16.mxu0 %v4717_v15 }
 0x46c   : > { %3558 = vmatmul.mubr.msk.bf16.vlgmr.msra.gmra.mrb[12].mxu0 %vm851_vm0, %v5389_v40 }
 0x46d   : > { %3574 = vmatpush3.bf16.msra.mxu0 %v3955_v16  ;;  %3581 = vmatprep.mubr.msk.bf16.mxu0 %vm4718_vm2, %v4717_v15 }
 0x46e   : > { %3575 = vmatprep.subr.bf16.mxu0 %v4717_v15 }
 0x471   : > { %3576 = vmatpush3.bf16.msra.mxu0 %v3956_v17 }
 0x472   : > { %3577 = vmatprep.subr.bf16.mxu0 %v4717_v15 }
 0x475   : > { %3578 = vmatpush3.bf16.msra.mxu0 %v3957_v18 }
 0x476   : > { %3579 = vmatprep.subr.bf16.mxu0 %v4717_v15 }
 0x479   : > { %3580 = vmatpush3.bf16.msra.mxu0 %v3958_v19 }
 0x47a   : > { %3597 = vmatprep.subr.bf16.mxu0 %v4717_v15 }
 0x47c   : > { %3582 = vmatmul.mubr.msk.bf16.vlgmr.msra.gmra.mrb[16].mxu0 %vm851_vm0, %v5389_v40 }
 0x47d   : > { %3599 = vmatprep.mubr.msk.bf16.mxu0 %vm4718_vm2, %v4717_v15 }
 0x52f   : > { %v1185_v20 = vpop.f32.mrb[8].mxu0 }
 0x530   : > { %v3541_v21 = vpop.f32.mrb[9].mxu0  ;;  %v1193_v22 = vsel %vm1192_vm6, %v1185_v20, -inf }
 0x531   : > { %1194 = vmax.xlane.f32.xlu0 %v1193_v22  ;;  %v1188_v23 = vpop.f32.mrb[10].mxu0 }
 0x532   : > { %v3542_v24 = vpop.f32.mrb[11].mxu0  ;;  %v1197_v25 = vsel %vm1196_vm7, %v1188_v23, -inf }
 0x533   : > { %1198 = vmax.xlane.f32.xlu1 %v1197_v25 }
 0x53f   : > { %v1347_v27 = vpop.f32.mrb[12].mxu0 }
 0x540   : > { %v1348_v28 = vadd.f32 %v3290_v26, %v1347_v27  ;;  %v3559_v29 = vpop.f32.mrb[13].mxu0 }
 0x541   : > { %v1350_v30 = vpop.f32.mrb[14].mxu0 }
 0x542   : > { %v1351_v31 = vadd.f32 %v3290_v26, %v1350_v30  ;;  %v3560_v32 = vpop.f32.mrb[15].mxu0  ;;  %v5434_v33 = vmul.f32 0.25, %v1348_v28 }
 0x544   : > { %v5436_v34 = vmul.f32 0.25, %v1351_v31 }
 0x546   : > { %v1520_v35 = vpack.c.bf16 %v5436_v34, %v5434_v33 }
 0x54f   : > { %v1511_v37 = vpop.f32.mrb[16].mxu0 }
 0x550   : > { %v3583_v38 = vpop.f32.mrb[17].mxu0  ;;  %v1512_v41 = vadd.f32 %v3302_v36, %v1511_v37 }
 0x551   : > { %v1514_v39 = vpop.f32.mrb[18].mxu0 }
 0x552   : > { %v1515_v42 = vadd.f32 %v3302_v36, %v1514_v39  ;;  %v3584_v43 = vpop.f32.mrb[19].mxu0 }
 0x553   : > { %v3963_v43 = vld [vmem:[#allocation19] sm:$0xff]  }
 0x554   : > { %v1592_v44 = vpack.c.bf16 %v1515_v42, %v1512_v41 }
 0x556   : > { %v1597_v18 = vand.u32 %v1592_v44, %v5413_v10 }
 0x5be   : > { %v1195_v45 = vpop.xlane.xlu0 %1194 }
 0x5bf   : > { %v1200_v46 = vsub.f32 %v1185_v20, %v1195_v45  ;;  %v3964_v45 = vld [vmem:[#allocation13 + $0x40] sm:$0xff]  }
 0x5c0   : > { %v1199_v47 = vpop.xlane.xlu1 %1198 }
 0x5c1   : > { %v1202_v48 = vmul.f32 1.442695, %v1200_v46  ;;  %v1201_v49 = vsub.f32 %v1188_v23, %v1199_v47  ;;  %v3965_v46 = vld [vmem:[#allocation13 + $0x48] sm:$0xff]   ;;  %v3966_v47 = vld [vmem:[#allocation13 + $0x50] sm:$0xff]  }
 0x5c3   : > { %4023 = vpow2.f32 %v1202_v48  ;;  %v1204_v50 = vmul.f32 1.442695, %v1201_v49  ;;  %v3967_v48 = vld [vmem:[#allocation13 + $0x58] sm:$0xff]  }
 0x5c5   : > { %4025 = vpow2.f32 %v1204_v50 }
 0x5cd   : > { %v4024_v51 = vpop.eup %4023 }
 0x5ce   : > { %v1206_v52 = vsel %vm1192_vm6, %v4024_v51, 0.0 }
 0x5cf   : > { %v4026_v53 = vpop.eup %4025  ;;  %1207 = vadd.xlane.f32.xlu0 %v1206_v52  ;;  %v3969_v52 = vld [vmem:[#allocation10 + $0x40] sm:$0xff]  }
 0x5d0   : > { %v1209_v54 = vsel %vm1196_vm7, %v4026_v53, 0.0 }
 0x5d1   : > { %1210 = vadd.xlane.f32.xlu1 %v1209_v54 }
 0x65c   : > { %v1208_v55 = vpop.xlane.xlu0 %1207 }
 0x65d   : > { %4027 = vrcp.f32 %v1208_v55  ;;  %v3970_v55 = vld [vmem:[#allocation10 + $0x48] sm:$0xff]  }
 0x65e   : > { %v1211_v56 = vpop.xlane.xlu1 %1210 }
 0x65f   : > { %4029 = vrcp.f32 %v1211_v56 }
 0x667   : > { %v4028_v57 = vpop.eup %4027 }
 0x668   : > { %v1214_v59 = vmul.f32 %v4028_v57, %v4024_v51 }
 0x669   : > { %v4030_v58 = vpop.eup %4029 }
 0x66a   : > { %v1215_v60 = vmul.f32 %v4030_v58, %v4026_v53 }
 0x66c   : > { %v1216_v62 = vpack.c.bf16 %v1215_v60, %v1214_v59  ;;  %v3971_v59 = vld [vmem:[#allocation10 + $0x50] sm:$0xff]  }
 0x66e   : > { %3546 = vmatmul.mubr.msk.bf16.vlgmr.msra.gmra.mrb[4].mxu1 %vm1192_vm6, %v1216_v62  ;;  %v3973_v62 = vld [vmem:[#allocation16 + $0x40] sm:$0xff]  }
 0x66f   : > { %3562 = vmatpush3.bf16.msra.mxu1 %v3959_v61  ;;  %3569 = vmatprep.mubr.msk.bf16.mxu1 %vm4718_vm2, %v4717_v15  ;;  %v3972_v61 = vld [vmem:[#allocation10 + $0x58] sm:$0xff]  }
 0x670   : > { %3563 = vmatprep.subr.bf16.mxu1 %v4717_v15 }
 0x673   : > { %3564 = vmatpush3.bf16.msra.mxu1 %v3960_v63  ;;  %v3974_v63 = vld [vmem:[#allocation16 + $0x48] sm:$0xff]  }
 0x674   : > { %3565 = vmatprep.subr.bf16.mxu1 %v4717_v15 }
 0x677   : > { %3566 = vmatpush3.bf16.msra.mxu1 %v3961_v0  ;;  %v3320_v0 = vld [vmem:[#allocation14 + $0x2] ss:$0 sm:$0xff] }
 0x678   : > { %3567 = vmatprep.subr.bf16.mxu1 %v4717_v15 }
 0x67b   : > { %3568 = vmatpush3.bf16.msra.mxu1 %v3962_v1 }
 0x67c   : > { %3585 = vmatprep.subr.bf16.mxu1 %v4717_v15 }
 0x67e   : > { %3570 = vmatmul.mubr.msk.bf16.vlgmr.msra.gmra.mrb[8].mxu1 %vm851_vm0, %v5389_v40 }
 0x67f   : > { %3587 = vmatprep.mubr.msk.bf16.mxu1 %vm4718_vm2, %v4717_v15 }
 0x741   : > { %v1262_v2 = vpop.f32.mrb[4].mxu1 }
 0x742   : > { %v3547_v3 = vpop.f32.mrb[5].mxu1 }
 0x743   : > { %v1265_v4 = vpop.f32.mrb[6].mxu1 }
 0x744   : > { %v1269_v5 = vpack.c.bf16 %v1265_v4, %v1262_v2  ;;  %v3548_v6 = vpop.f32.mrb[7].mxu1  ;;  %v3975_v4 = vld [vmem:[#allocation16 + $0x50] sm:$0xff]  }
 0x751   : > { %v1429_v8 = vpop.f32.mrb[8].mxu1 }
 0x752   : > { %v3571_v9 = vpop.f32.mrb[9].mxu1  ;;  %v1430_v12 = vadd.f32 %v3296_v7, %v1429_v8 }
 0x753   : > { %v1432_v11 = vpop.f32.mrb[10].mxu1  ;;  %v3976_v9 = vld [vmem:[#allocation16 + $0x58] sm:$0xff]  }
 0x754   : > { %v1433_v13 = vadd.f32 %v3296_v7, %v1432_v11  ;;  %v3572_v14 = vpop.f32.mrb[11].mxu1 }
 0x756   : > { %v1521_v16 = vpack.c.bf16 %v1433_v13, %v1430_v12 }
 0x758   : > { %v1526_v17 = vsel %vm1144_vm3, %v1521_v16, 0 }
 0x759   : > { %3586 = vmatpush3.bf16.xpose.msra.mxu1 %v1526_v17 }
 0x75a   : > { %3591 = vmatprep.subr.bf16.mxu1 %v4717_v15 }
 0x760   : > { %3588 = vmatmul.mubr.msk.bf16.vlgmr.msra.gmra.mrb[12].mxu1 %vm1144_vm3, %v1520_v35  ;;  %v3968_v35 = vld [vmem:[#allocation19 + $0x8] sm:$0xff]  }
 0x761   : > { %3592 = vmatpush3.bf16.msra.mxu1 %v1597_v18  ;;  %3593 = vmatprep.mubr.msk.bf16.mxu1 %vm4718_vm2, %v4717_v15 }
 0x762   : > { %3603 = vmatprep.subr.bf16.mxu1 %v4717_v15  ;;  %3598 = vmatpush3.bf16.msra.mxu0 %v3968_v35 }
 0x763   : > { %3609 = vmatprep.subr.bf16.mxu0 %v4717_v15 }
 0x833   : > { %v1562_v19 = vpop.f32.mrb[12].mxu1 }
 0x834   : > { %v3589_v20 = vpop.f32.mrb[13].mxu1  ;;  %v1569_v21 = vsel %vm1192_vm6, %v1562_v19, -inf }
 0x835   : > { %1570 = vmax.xlane.f32.xlu0 %v1569_v21  ;;  %v1565_v22 = vpop.f32.mrb[14].mxu1 }
 0x836   : > { %v3590_v23 = vpop.f32.mrb[15].mxu1  ;;  %v1572_v24 = vsel %vm1196_vm7, %v1565_v22, -inf }
 0x837   : > { %1573 = vmax.xlane.f32.xlu1 %v1572_v24 }
 0x8c2   : > { %v1571_v25 = vpop.xlane.xlu0 %1570 }
 0x8c3   : > { %v1575_v26 = vsub.f32 %v1562_v19, %v1571_v25  ;;  %v3314_v19 = vld [vmem:[#allocation11 + $0x2] ss:$0 sm:$0xff] }
 0x8c4   : > { %v1574_v27 = vpop.xlane.xlu1 %1573 }
 0x8c5   : > { %v1577_v28 = vmul.f32 1.442695, %v1575_v26  ;;  %v1576_v29 = vsub.f32 %v1565_v22, %v1574_v27 }
 0x8c7   : > { %4031 = vpow2.f32 %v1577_v28  ;;  %v1579_v30 = vmul.f32 1.442695, %v1576_v29  ;;  %v3326_v29 = vld [vmem:[#allocation17 + $0x2] ss:$0 sm:$0xff] }
 0x8c9   : > { %4033 = vpow2.f32 %v1579_v30 }
 0x8d1   : > { %v4032_v31 = vpop.eup %4031 }
 0x8d2   : > { %v1581_v32 = vsel %vm1192_vm6, %v4032_v31, 0.0 }
 0x8d3   : > { %v4034_v33 = vpop.eup %4033  ;;  %1582 = vadd.xlane.f32.xlu0 %v1581_v32 }
 0x8d4   : > { %v1584_v34 = vsel %vm1196_vm7, %v4034_v33, 0.0 }
 0x8d5   : > { %1585 = vadd.xlane.f32.xlu1 %v1584_v34 }
 0x960   : > { %v1583_v36 = vpop.xlane.xlu0 %1582 }
 0x961   : > { %4035 = vrcp.f32 %v1583_v36 }
 0x962   : > { %v1586_v37 = vpop.xlane.xlu1 %1585 }
 0x963   : > { %4037 = vrcp.f32 %v1586_v37 }
 0x96b   : > { %v4036_v38 = vpop.eup %4035 }
 0x96c   : > { %v1589_v41 = vmul.f32 %v4036_v38, %v4032_v31 }
 0x96d   : > { %v4038_v39 = vpop.eup %4037 }
 0x96e   : > { %v1590_v42 = vmul.f32 %v4038_v39, %v4034_v33 }
 0x970   : > { %v1591_v44 = vpack.c.bf16 %v1590_v42, %v1589_v41 }
 0x972   : > { %3594 = vmatmul.mubr.msk.bf16.vlgmr.msra.gmra.mrb[16].mxu1 %vm1192_vm6, %v1591_v44 }
 0x973   : > { %3604 = vmatpush3.bf16.msra.mxu1 %v3963_v43  ;;  %3605 = vmatprep.mubr.msk.bf16.mxu1 %vm4718_vm2, %v4717_v15 }
 0x974   : > { %3621 = vmatprep.subr.bf16.mxu1 %v4717_v15 }
 0x97a   : > { %3606 = vmatmul.mubr.msk.bf16.vlgmr.msra.gmra.mrb[20].mxu1 %vm1144_vm3, %v1269_v5 }
 0x97b   : > { %3622 = vmatpush3.bf16.msra.mxu1 %v3964_v45  ;;  %3629 = vmatprep.mubr.msk.bf16.mxu1 %vm4718_vm2, %v4717_v15 }
 0x97c   : > { %3623 = vmatprep.subr.bf16.mxu1 %v4717_v15 }
 0x97f   : > { %3624 = vmatpush3.bf16.msra.mxu1 %v3965_v46 }
 0x980   : > { %3625 = vmatprep.subr.bf16.mxu1 %v4717_v15 }
 0x983   : > { %3626 = vmatpush3.bf16.msra.mxu1 %v3966_v47 }
 0x984   : > { %3627 = vmatprep.subr.bf16.mxu1 %v4717_v15 }
 0x987   : > { %3628 = vmatpush3.bf16.msra.mxu1 %v3967_v48 }
 0x988   : > { %3645 = vmatprep.subr.bf16.mxu1 %v4717_v15 }
 0x98a   : > { %3630 = vmatmul.mubr.msk.bf16.vlgmr.msra.gmra.mrb[24].mxu1 %vm851_vm0, %v5389_v40 }
 0x98b   : > { %3647 = vmatprep.mubr.msk.bf16.mxu1 %vm4718_vm2, %v4717_v15 }
 0xa45   : > { %v1633_v49 = vpop.f32.mrb[16].mxu1 }
 0xa46   : > { %v3595_v50 = vpop.f32.mrb[17].mxu1 }
 0xa47   : > { %v1636_v51 = vpop.f32.mrb[18].mxu1 }
 0xa48   : > { %v1640_v53 = vpack.c.bf16 %v1636_v51, %v1633_v49  ;;  %v3596_v54 = vpop.f32.mrb[19].mxu1 }
 0xa4a   : > { %3600 = vmatmul.mubr.msk.bf16.vlgmr.msra.gmra.mrb[20].mxu0 %vm1144_vm3, %v1640_v53 }
 0xa4b   : > { %3610 = vmatpush3.bf16.msra.mxu0 %v3969_v52  ;;  %3617 = vmatprep.mubr.msk.bf16.mxu0 %vm4718_vm2, %v4717_v15 }
 0xa4c   : > { %3611 = vmatprep.subr.bf16.mxu0 %v4717_v15 }
 0xa4d   : > { %v1737_v56 = vpop.f32.mrb[20].mxu1 }
 0xa4e   : > { %v3607_v57 = vpop.f32.mrb[21].mxu1 }
 0xa4f   : > { %3612 = vmatpush3.bf16.msra.mxu0 %v3970_v55  ;;  %v1740_v58 = vpop.f32.mrb[22].mxu1  ;;  %v3985_v55 = vld [vmem:[#allocation19 + $0x10] sm:$0xff]  }
 0xa50   : > { %v3608_v60 = vpop.f32.mrb[23].mxu1  ;;  %3613 = vmatprep.subr.bf16.mxu0 %v4717_v15 }
 0xa53   : > { %3614 = vmatpush3.bf16.msra.mxu0 %v3971_v59 }
 0xa54   : > { %3615 = vmatprep.subr.bf16.mxu0 %v4717_v15 }
 0xa57   : > { %3616 = vmatpush3.bf16.msra.mxu0 %v3972_v61 }
 0xa58   : > { %3633 = vmatprep.subr.bf16.mxu0 %v4717_v15 }
 0xa5a   : > { %3618 = vmatmul.mubr.msk.bf16.vlgmr.msra.gmra.mrb[24].mxu0 %vm851_vm0, %v5389_v40 }
 0xa5b   : > { %3634 = vmatpush3.bf16.msra.mxu0 %v3973_v62  ;;  %3641 = vmatprep.mubr.msk.bf16.mxu0 %vm4718_vm2, %v4717_v15  ;;  %v3977_v62 = vld [vmem:[#allocation10 + $0x60] sm:$0xff]  }
 0xa5c   : > { %3635 = vmatprep.subr.bf16.mxu0 %v4717_v15 }
 0xa5d   : > { %v1901_v1 = vpop.f32.mrb[24].mxu1 }
 0xa5e   : > { %v3631_v2 = vpop.f32.mrb[25].mxu1  ;;  %v1902_v5 = vadd.f32 %v3320_v0, %v1901_v1  ;;  %v3979_v1 = vld [vmem:[#allocation10 + $0x70] sm:$0xff]  }
 0xa5f   : > { %v1904_v3 = vpop.f32.mrb[26].mxu1  ;;  %3636 = vmatpush3.bf16.msra.mxu0 %v3974_v63  ;;  %v3980_v2 = vld [vmem:[#allocation10 + $0x78] sm:$0xff]  }
 0xa60   : > { %v1905_v6 = vadd.f32 %v3320_v0, %v1904_v3  ;;  %v3632_v7 = vpop.f32.mrb[27].mxu1  ;;  %3637 = vmatprep.subr.bf16.mxu0 %v4717_v15  ;;  %v3978_v0 = vld [vmem:[#allocation10 + $0x68] sm:$0xff]  }
 0xa61   : > { %v3981_v3 = vld [vmem:[#allocation16 + $0x60] sm:$0xff]  }
 0xa62   : > { %v1993_v8 = vpack.c.bf16 %v1905_v6, %v1902_v5  ;;  %v3983_v5 = vld [vmem:[#allocation16 + $0x70] sm:$0xff]   ;;  %v3984_v6 = vld [vmem:[#allocation16 + $0x78] sm:$0xff]  }
 0xa63   : > { %3638 = vmatpush3.bf16.msra.mxu0 %v3975_v4  ;;  %v3982_v4 = vld [vmem:[#allocation16 + $0x68] sm:$0xff]  }
 0xa64   : > { %v1998_v11 = vsel %vm1144_vm3, %v1993_v8, 0  ;;  %3639 = vmatprep.subr.bf16.mxu0 %v4717_v15 }
 0xa65   : > { %3646 = vmatpush3.bf16.xpose.msra.mxu1 %v1998_v11  ;;  %v3986_v11 = vld [vmem:[#allocation13 + $0x60] sm:$0xff]  }
 0xa66   : > { %3651 = vmatprep.subr.bf16.mxu1 %v4717_v15 }
 0xa67   : > { %3640 = vmatpush3.bf16.msra.mxu0 %v3976_v9 }
 0xa68   : > { %3657 = vmatprep.subr.bf16.mxu0 %v4717_v15 }
 0xa6a   : > { %3642 = vmatmul.mubr.msk.bf16.vlgmr.msra.gmra.mrb[28].mxu0 %vm851_vm0, %v5389_v40 }
 0xa6b   : > { %3659 = vmatprep.mubr.msk.bf16.mxu0 %vm4718_vm2, %v4717_v15  ;;  %3658 = vmatpush3.bf16.msra.mxu0 %v3985_v55 }
 0xa6c   : > { %3675 = vmatprep.subr.bf16.mxu0 %v4717_v15 }
 0xb1d   : > { %v1687_v12 = vpop.f32.mrb[20].mxu0 }
 0xb1e   : > { %v5504_v13 = vadd.f32 %v1737_v56, %v1687_v12  ;;  %v3601_v14 = vpop.f32.mrb[21].mxu0 }
 0xb1f   : > { %v1690_v16 = vpop.f32.mrb[22].mxu0 }
 0xb20   : > { %v5506_v17 = vadd.f32 %v1740_v58, %v1690_v16  ;;  %v3602_v18 = vpop.f32.mrb[23].mxu0  ;;  %v3987_v16 = vld [vmem:[#allocation13 + $0x68] sm:$0xff]  }
 0xb21   : > { %v3988_v18 = vld [vmem:[#allocation13 + $0x70] sm:$0xff]  }
 0xb2d   : > { %v1819_v20 = vpop.f32.mrb[24].mxu0 }
 0xb2e   : > { %v1820_v21 = vadd.f32 %v3314_v19, %v1819_v20  ;;  %v3619_v22 = vpop.f32.mrb[25].mxu0  ;;  %v3989_v20 = vld [vmem:[#allocation13 + $0x78] sm:$0xff]  }
 0xb2f   : > { %v1822_v23 = vpop.f32.mrb[26].mxu0 }
 0xb30   : > { %v1823_v24 = vadd.f32 %v3314_v19, %v1822_v23  ;;  %v3620_v25 = vpop.f32.mrb[27].mxu0  ;;  %v1990_v26 = vmul.f32 0.25, %v1820_v21  ;;  %v3336_v19 = vld [vmem:[#allocation11 + $0x3] ss:$0 sm:$0xff] }
 0xb32   : > { %v1991_v27 = vmul.f32 0.25, %v1823_v24 }
 0xb34   : > { %v1992_v28 = vpack.c.bf16 %v1991_v27, %v1990_v26 }
 0xb36   : > { %3648 = vmatmul.mubr.msk.bf16.vlgmr.msra.gmra.mrb[28].mxu1 %vm1144_vm3, %v1992_v28 }
 0xb37   : > { %3653 = vmatprep.mubr.msk.bf16.mxu1 %vm4718_vm2, %v4717_v15 }
 0xb3d   : > { %v1983_v30 = vpop.f32.mrb[28].mxu0 }
 0xb3e   : > { %v3643_v31 = vpop.f32.mrb[29].mxu0  ;;  %v1984_v33 = vadd.f32 %v3326_v29, %v1983_v30  ;;  %v3348_v30 = vld [vmem:[#allocation17 + $0x3] ss:$0 sm:$0xff] }
 0xb3f   : > { %v1986_v32 = vpop.f32.mrb[30].mxu0 }
 0xb40   : > { %v1987_v34 = vadd.f32 %v3326_v29, %v1986_v32  ;;  %v3644_v35 = vpop.f32.mrb[31].mxu0 }
 0xb42   : > { %v2064_v36 = vpack.c.bf16 %v1987_v34, %v1984_v33 }
 0xb44   : > { %v2069_v37 = vand.u32 %v2064_v36, %v5413_v10 }
 0xb46   : > { %3652 = vmatpush3.bf16.msra.mxu1 %v2069_v37 }
 0xb47   : > { %3663 = vmatprep.subr.bf16.mxu1 %v4717_v15 }
 0xc09   : > { %v2034_v38 = vpop.f32.mrb[28].mxu1 }
 0xc0a   : > { %v3649_v39 = vpop.f32.mrb[29].mxu1  ;;  %v2041_v41 = vsel %vm1192_vm6, %v2034_v38, -inf }
 0xc0b   : > { %2042 = vmax.xlane.f32.xlu0 %v2041_v41  ;;  %v2037_v42 = vpop.f32.mrb[30].mxu1 }
 0xc0c   : > { %v3650_v43 = vpop.f32.mrb[31].mxu1  ;;  %v2044_v44 = vsel %vm1196_vm7, %v2037_v42, -inf }
 0xc0d   : > { %2045 = vmax.xlane.f32.xlu1 %v2044_v44  ;;  %v3342_v44 = vld [vmem:[#allocation14 + $0x3] ss:$0 sm:$0xff] }
 0xc98   : > { %v2043_v45 = vpop.xlane.xlu0 %2042 }
 0xc99   : > { %v2047_v46 = vsub.f32 %v2034_v38, %v2043_v45 }
 0xc9a   : > { %v2046_v47 = vpop.xlane.xlu1 %2045 }
 0xc9b   : > { %v2049_v48 = vmul.f32 1.442695, %v2047_v46  ;;  %v2048_v49 = vsub.f32 %v2037_v42, %v2046_v47 }
 0xc9d   : > { %4039 = vpow2.f32 %v2049_v48  ;;  %v2051_v50 = vmul.f32 1.442695, %v2048_v49 }
 0xc9f   : > { %4041 = vpow2.f32 %v2051_v50 }
 0xca7   : > { %v4040_v51 = vpop.eup %4039 }
 0xca8   : > { %v2053_v52 = vsel %vm1192_vm6, %v4040_v51, 0.0 }
 0xca9   : > { %v4042_v53 = vpop.eup %4041  ;;  %2054 = vadd.xlane.f32.xlu0 %v2053_v52 }
 0xcaa   : > { %v2056_v54 = vsel %vm1196_vm7, %v4042_v53, 0.0 }
 0xcab   : > { %2057 = vadd.xlane.f32.xlu1 %v2056_v54 }
 0xd36   : > { %v2055_v56 = vpop.xlane.xlu0 %2054 }
 0xd37   : > { %4043 = vrcp.f32 %v2055_v56 }
 0xd38   : > { %v2058_v57 = vpop.xlane.xlu1 %2057 }
 0xd39   : > { %4045 = vrcp.f32 %v2058_v57 }
 0xd41   : > { %v4044_v58 = vpop.eup %4043 }
 0xd42   : > { %v2061_v60 = vmul.f32 %v4044_v58, %v4040_v51 }
 0xd43   : > { %v4046_v59 = vpop.eup %4045 }
 0xd44   : > { %v2062_v61 = vmul.f32 %v4046_v59, %v4042_v53 }
 0xd46   : > { %v2063_v63 = vpack.c.bf16 %v2062_v61, %v2061_v60 }
 0xd48   : > { %3654 = vmatmul.mubr.msk.bf16.vlgmr.msra.gmra.mrb[32].mxu1 %vm1192_vm6, %v2063_v63 }
 0xd49   : > { %3664 = vmatpush3.bf16.msra.mxu1 %v3977_v62  ;;  %3671 = vmatprep.mubr.msk.bf16.mxu1 %vm4718_vm2, %v4717_v15 }
 0xd4a   : > { %3665 = vmatprep.subr.bf16.mxu1 %v4717_v15 }
 0xd4d   : > { %3666 = vmatpush3.bf16.msra.mxu1 %v3978_v0 }
 0xd4e   : > { %3667 = vmatprep.subr.bf16.mxu1 %v4717_v15 }
 0xd51   : > { %3668 = vmatpush3.bf16.msra.mxu1 %v3979_v1 }
 0xd52   : > { %3669 = vmatprep.subr.bf16.mxu1 %v4717_v15 }
 0xd55   : > { %3670 = vmatpush3.bf16.msra.mxu1 %v3980_v2  ;;  %v3990_v2 = vld [vmem:[#allocation19 + $0x18] sm:$0xff]  }
 0xd56   : > { %3687 = vmatprep.subr.bf16.mxu1 %v4717_v15 }
 0xd58   : > { %3672 = vmatmul.mubr.msk.bf16.vlgmr.msra.gmra.mrb[36].mxu1 %vm851_vm0, %v5389_v40 }
 0xd59   : > { %3688 = vmatpush3.bf16.msra.mxu1 %v3981_v3  ;;  %3695 = vmatprep.mubr.msk.bf16.mxu1 %vm4718_vm2, %v4717_v15 }
 0xd5a   : > { %3689 = vmatprep.subr.bf16.mxu1 %v4717_v15 }
 0xd5d   : > { %3690 = vmatpush3.bf16.msra.mxu1 %v3982_v4 }
 0xd5e   : > { %3691 = vmatprep.subr.bf16.mxu1 %v4717_v15 }
 0xd61   : > { %3692 = vmatpush3.bf16.msra.mxu1 %v3983_v5 }
 0xd62   : > { %3693 = vmatprep.subr.bf16.mxu1 %v4717_v15 }
 0xd65   : > { %3694 = vmatpush3.bf16.msra.mxu1 %v3984_v6 }
 0xd66   : > { %3711 = vmatprep.subr.bf16.mxu1 %v4717_v15 }
 0xd68   : > { %3696 = vmatmul.mubr.msk.bf16.vlgmr.msra.gmra.mrb[40].mxu1 %vm851_vm0, %v5389_v40 }
 0xd69   : > { %3713 = vmatprep.mubr.msk.bf16.mxu1 %vm4718_vm2, %v4717_v15  ;;  %3712 = vmatpush3.bf16.msra.mxu1 %v3990_v2  ;;  %v4003_v2 = vld [vmem:[#allocation28 + $0x40] sm:$0xff]  }
 0xd6a   : > { %3479 = vmatprep.subr.bf16.mxu1 %v4003_v2 }
 0xe1b   : > { %v2105_v7 = vpop.f32.mrb[32].mxu1 }
 0xe1c   : > { %v3655_v8 = vpop.f32.mrb[33].mxu1 }
 0xe1d   : > { %v2108_v9 = vpop.f32.mrb[34].mxu1 }
 0xe1e   : > { %v2112_v12 = vpack.c.bf16 %v2108_v9, %v2105_v7  ;;  %v3656_v14 = vpop.f32.mrb[35].mxu1 }
 0xe20   : > { %3660 = vmatmul.mubr.msk.bf16.vlgmr.msra.gmra.mrb[32].mxu0 %vm1144_vm3, %v2112_v12 }
 0xe21   : > { %3676 = vmatpush3.bf16.msra.mxu0 %v3986_v11  ;;  %3683 = vmatprep.mubr.msk.bf16.mxu0 %vm4718_vm2, %v4717_v15 }
 0xe22   : > { %3677 = vmatprep.subr.bf16.mxu0 %v4717_v15 }
 0xe25   : > { %3678 = vmatpush3.bf16.msra.mxu0 %v3987_v16 }
 0xe26   : > { %3679 = vmatprep.subr.bf16.mxu0 %v4717_v15 }
 0xe29   : > { %3680 = vmatpush3.bf16.msra.mxu0 %v3988_v18 }
 0xe2a   : > { %3681 = vmatprep.subr.bf16.mxu0 %v4717_v15 }
 0xe2b   : > { %v2243_v21 = vpop.f32.mrb[36].mxu1 }
 0xe2c   : > { %v2244_v22 = vadd.f32 %v3336_v19, %v2243_v21  ;;  %v3673_v23 = vpop.f32.mrb[37].mxu1 }
 0xe2d   : > { %v2246_v24 = vpop.f32.mrb[38].mxu1  ;;  %3682 = vmatpush3.bf16.msra.mxu0 %v3989_v20 }
 0xe2e   : > { %v2247_v25 = vadd.f32 %v3336_v19, %v2246_v24  ;;  %v3674_v26 = vpop.f32.mrb[39].mxu1  ;;  %3699 = vmatprep.subr.bf16.mxu0 %v4717_v15  ;;  %v2414_v27 = vmul.f32 0.25, %v2244_v22  ;;  %v3358_v22 = vld [vmem:[#allocation20] ss:$0 sm:$0xff]  ;;  %v4075_v24 = vld [vmem:[%s715_s5] sm:$0xff] }
 0xe30   : > { %v2415_v28 = vmul.f32 0.25, %v2247_v25  ;;  %3684 = vmatmul.mubr.msk.bf16.vlgmr.msra.gmra.mrb[36].mxu0 %vm851_vm0, %v5389_v40 }
 0xe31   : > { %3701 = vmatprep.mubr.msk.bf16.mxu0 %vm4718_vm2, %v4717_v15 }
 0xe32   : > { %v2416_v29 = vpack.c.bf16 %v2415_v28, %v2414_v27 }
 0xe3b   : > { %v2407_v31 = vpop.f32.mrb[40].mxu1 }
 0xe3c   : > { %v3697_v32 = vpop.f32.mrb[41].mxu1  ;;  %v2408_v34 = vadd.f32 %v3348_v30, %v2407_v31 }
 0xe3d   : > { %v2410_v33 = vpop.f32.mrb[42].mxu1 }
 0xe3e   : > { %v2411_v35 = vadd.f32 %v3348_v30, %v2410_v33  ;;  %v3698_v36 = vpop.f32.mrb[43].mxu1 }
 0xe40   : > { %v2488_v37 = vpack.c.bf16 %v2411_v35, %v2408_v34 }
 0xef3   : > { %v2159_v38 = vpop.f32.mrb[32].mxu0 }
 0xef4   : > { %v2166_v39 = vadd.f32 %v2159_v38, %v5504_v13  ;;  %v3661_v41 = vpop.f32.mrb[33].mxu0  ;;  %v2493_v13 = vand.u32 %v2488_v37, %v5413_v10 }
 0xef5   : > { %v2162_v42 = vpop.f32.mrb[34].mxu0 }
 0xef6   : > { %v5550_v43 = vadd.f32 %v2162_v42, %v5506_v17  ;;  %v3662_v40 = vpop.f32.mrb[35].mxu0 }
 0xf03   : > { %v2325_v45 = vpop.f32.mrb[36].mxu0 }
 0xf04   : > { %v3685_v46 = vpop.f32.mrb[37].mxu0  ;;  %v2326_v48 = vadd.f32 %v3342_v44, %v2325_v45  ;;  %v3991_v45 = vld [vmem:[#allocation25] ss:$8 sps:$4 sm:$0xff]  }
 0xf05   : > { %v2328_v47 = vpop.f32.mrb[38].mxu0  ;;  %v3996_v46 = vld [vmem:[#allocation25 + $0x14] ss:$8 sps:$4 sm:$0xff]  }
 0xf06   : > { %v2329_v49 = vadd.f32 %v3342_v44, %v2328_v47  ;;  %v3686_v50 = vpop.f32.mrb[39].mxu0  ;;  %v3993_v44 = vld [vmem:[#allocation25 + $0x4] ss:$8 sps:$4 sm:$0xff]   ;;  %v3994_v47 = vld [vmem:[#allocation25 + $0x10] ss:$8 sps:$4 sm:$0xff]  }
 0xf07   : > { %v4000_v50 = vld [vmem:[#allocation25 + $0x30] ss:$8 sps:$4 sm:$0xff]  }
 0xf08   : > { %v2417_v51 = vpack.c.bf16 %v2329_v49, %v2326_v48  ;;  %v3999_v48 = vld [vmem:[#allocation25 + $0x24] ss:$8 sps:$4 sm:$0xff]   ;;  %v3997_v49 = vld [vmem:[#allocation25 + $0x20] ss:$8 sps:$4 sm:$0xff]  }
 0xf0a   : > { %v2422_v52 = vsel %vm1144_vm3, %v2417_v51, 0  ;;  %v4002_v51 = vld [vmem:[#allocation25 + $0x34] ss:$8 sps:$4 sm:$0xff]  }
 0xf0b   : > { %3700 = vmatpush3.bf16.xpose.msra.mxu0 %v2422_v52  ;;  %v4720_v52 = vmov 0  }
 0xf0c   : > { %3705 = vmatprep.subr.bf16.mxu0 %v4717_v15 }
 0xf12   : > { %3702 = vmatmul.mubr.msk.bf16.vlgmr.msra.gmra.mrb[40].mxu0 %vm1144_vm3, %v2416_v29  ;;  %v4076_v29 = vld [vmem:[%s724_s22] sm:$0x1f] }
 0xf13   : > { %3706 = vmatpush3.bf16.msra.mxu0 %v2493_v13  ;;  %3707 = vmatprep.mubr.msk.bf16.mxu0 %vm4718_vm2, %v4717_v15 }
 0xf14   : > { %2711 = vmatprep.subr.bf16.mxu0 %v3993_v44 }
 0xfe5   : > { %v2458_v17 = vpop.f32.mrb[40].mxu0 }
 0xfe6   : > { %v3703_v53 = vpop.f32.mrb[41].mxu0  ;;  %v2465_v54 = vsel %vm1192_vm6, %v2458_v17, -inf }
 0xfe7   : > { %2466 = vmax.xlane.f32.xlu0 %v2465_v54  ;;  %v2461_v55 = vpop.f32.mrb[42].mxu0 }
 0xfe8   : > { %v3704_v56 = vpop.f32.mrb[43].mxu0  ;;  %v2468_v57 = vsel %vm1196_vm7, %v2461_v55, -inf }
 0xfe9   : > { %2469 = vmax.xlane.f32.xlu1 %v2468_v57 }
0x1074   : > { %v2467_v58 = vpop.xlane.xlu0 %2466 }
0x1075   : > { %v2471_v59 = vsub.f32 %v2458_v17, %v2467_v58  ;;  %v3359_v58 = vld [vmem:[#allocation22] ss:$0 sm:$0xff] }
0x1076   : > { %v2470_v60 = vpop.xlane.xlu1 %2469 }
0x1077   : > { %v2473_v10 = vmul.f32 1.442695, %v2471_v59  ;;  %v2472_v61 = vsub.f32 %v2461_v55, %v2470_v60 }
0x1079   : > { %4047 = vpow2.f32 %v2473_v10  ;;  %v2475_v62 = vmul.f32 1.442695, %v2472_v61 }
0x107b   : > { %4049 = vpow2.f32 %v2475_v62  ;;  %v3360_v62 = vld [vmem:[#allocation23] ss:$0 sm:$0xff] }
0x1083   : > { %v4048_v63 = vpop.eup %4047 }
0x1084   : > { %v2477_v15 = vsel %vm1192_vm6, %v4048_v63, 0.0 }
0x1085   : > { %v4050_v0 = vpop.eup %4049  ;;  %2478 = vadd.xlane.f32.xlu0 %v2477_v15 }
0x1086   : > { %v2480_v1 = vsel %vm1196_vm7, %v4050_v0, 0.0 }
0x1087   : > { %2481 = vadd.xlane.f32.xlu1 %v2480_v1 }
0x1112   : > { %v2479_v3 = vpop.xlane.xlu0 %2478 }
0x1113   : > { %4051 = vrcp.f32 %v2479_v3  ;;  %v4004_v3 = vld [vmem:[#allocation28] sm:$0xff]  }
0x1114   : > { %v2482_v4 = vpop.xlane.xlu1 %2481 }
0x1115   : > { %4053 = vrcp.f32 %v2482_v4  ;;  %v4005_v4 = vld [vmem:[#allocation28 + $0x48] sm:$0xff]  }
0x111d   : > { %v4052_v5 = vpop.eup %4051 }
0x111e   : > { %v2485_v7 = vmul.f32 %v4052_v5, %v4048_v63  ;;  %v4006_v5 = vld [vmem:[#allocation28 + $0x8] sm:$0xff]  }
0x111f   : > { %v4054_v6 = vpop.eup %4053 }
0x1120   : > { %v2486_v8 = vmul.f32 %v4054_v6, %v4050_v0  ;;  %v4007_v6 = vld [vmem:[#allocation28 + $0x50] sm:$0xff]  }
0x1122   : > { %v2487_v9 = vpack.c.bf16 %v2486_v8, %v2485_v7  ;;  %v4008_v7 = vld [vmem:[#allocation28 + $0x10] sm:$0xff]   ;;  %v4009_v8 = vld [vmem:[#allocation28 + $0x58] sm:$0xff]  }
0x1124   : > { %3708 = vmatmul.mubr.msk.bf16.vlgmr.msra.gmra.mrb[44].mxu0 %vm1192_vm6, %v2487_v9  ;;  %v4010_v9 = vld [vmem:[#allocation28 + $0x18] sm:$0xff]  }
0x1125   : > { %2712 = vmatpush1.bf16.msra.mxu0 %v3991_v45  ;;  %2743 = vmatprep.mubr.bf16.mxu0 %v4720_v52 }
0x1126   : > { %2713 = vmatprep.subr.bf16.mxu0 %v3996_v46 }
0x1129   : > { %2714 = vmatpush1.bf16.msra.mxu0 %v3994_v47 }
0x112a   : > { %2715 = vmatprep.subr.bf16.mxu0 %v3999_v48 }
0x112d   : > { %2716 = vmatpush1.bf16.msra.mxu0 %v3997_v49 }
0x112e   : > { %2717 = vmatprep.subr.bf16.mxu0 %v4002_v51 }
0x1131   : > { %2718 = vmatpush1.bf16.msra.mxu0 %v4000_v50 }
0x11f7   : > { %v2529_v11 = vpop.f32.mrb[44].mxu0 }
0x11f8   : > { %v3709_v12 = vpop.f32.mrb[45].mxu0 }
0x11f9   : > { %v2532_v14 = vpop.f32.mrb[46].mxu0  ;;  %v4012_v12 = vld [vmem:[#allocation28 + $0x20] sm:$0xff]  }
0x11fa   : > { %v2536_v16 = vpack.c.bf16 %v2532_v14, %v2529_v11  ;;  %v3710_v18 = vpop.f32.mrb[47].mxu0  ;;  %v4011_v11 = vld [vmem:[#allocation28 + $0x60] sm:$0xff]   ;;  %v4013_v14 = vld [vmem:[#allocation28 + $0x68] sm:$0xff]  }
0x11fb   : > { %v4015_v18 = vld [vmem:[#allocation28 + $0x70] sm:$0xff]  }
0x11fc   : > { %3714 = vmatmul.mubr.msk.bf16.vlgmr.msra.gmra.mrb[44].mxu1 %vm1144_vm3, %v2536_v16  ;;  %v4014_v16 = vld [vmem:[#allocation28 + $0x28] sm:$0xff]  }
0x11fd   : > { %3480 = vmatpush3.bf16.msra.mxu1 %v4004_v3 }
0x11fe   : > { %3481 = vmatprep.subr.bf16.mxu1 %v4005_v4 }
0x1201   : > { %3482 = vmatpush3.bf16.msra.mxu1 %v4006_v5 }
0x1202   : > { %3483 = vmatprep.subr.bf16.mxu1 %v4007_v6 }
0x1205   : > { %3484 = vmatpush3.bf16.msra.mxu1 %v4008_v7 }
0x1206   : > { %3485 = vmatprep.subr.bf16.mxu1 %v4009_v8 }
0x1209   : > { %3486 = vmatpush3.bf16.msra.mxu1 %v4010_v9 }
0x120a   : > { %3487 = vmatprep.subr.bf16.mxu1 %v4011_v11 }
0x120d   : > { %3488 = vmatpush3.bf16.msra.mxu1 %v4012_v12 }
0x120e   : > { %3489 = vmatprep.subr.bf16.mxu1 %v4013_v14 }
0x1211   : > { %3490 = vmatpush3.bf16.msra.mxu1 %v4014_v16 }
0x1212   : > { %3491 = vmatprep.subr.bf16.mxu1 %v4015_v18 }
0x12cf   : > { %v2583_v19 = vpop.f32.mrb[44].mxu1 }
0x12d0   : > { %v2590_v20 = vadd.f32 %v2583_v19, %v2166_v39  ;;  %v3715_v21 = vpop.f32.mrb[45].mxu1  ;;  %v4016_v19 = vld [vmem:[#allocation28 + $0x30] sm:$0xff]  }
0x12d1   : > { %v2586_v23 = vpop.f32.mrb[46].mxu1  ;;  %3492 = vmatpush3.bf16.msra.mxu1 %v4016_v19  ;;  %v4018_v21 = vld [vmem:[#allocation28 + $0x38] sm:$0xff]  }
0x12d2   : > { %v2592_v25 = vadd.f32 %v4075_v24, %v2590_v20  ;;  %v2591_v26 = vadd.f32 %v2586_v23, %v5550_v43  ;;  %v3716_v27 = vpop.f32.mrb[47].mxu1  ;;  %v4017_v20 = vld [vmem:[#allocation28 + $0x78] sm:$0xff]  }
0x12d3   : > { %3493 = vmatprep.subr.bf16.mxu1 %v4017_v20 }
0x12d4   : > { %v5567_v28 = vadd.f32 %v3358_v22, %v2592_v25  ;;  %v2593_v30 = vadd.f32 %v4076_v29, %v2591_v26  ;;  %v2656_v25 = vld [vmem:[#allocation26] sm:$0x3] }
0x12d5   : > { %3494 = vmatpush3.bf16.msra.mxu1 %v4018_v21 }
0x12d6   : > { %v2605_v31 = vsel %vm851_vm0, %v5567_v28, 0.0  ;;  %v2602_v32 = vadd.f32 %v3358_v22, %v2593_v30  ;;  %v2658_v22 = vlaneseq }
0x12d7   : > { %2606 = vadd.xlane.f32.xlu0 %v2605_v31 }
0x12d8   : > { %v2608_v33 = vsel %vm855_vm1, %v2602_v32, 0.0  ;;  %v2659_v23 = vshrl.u32 %v2658_v22, 7 }
0x12d9   : > { %2609 = vadd.xlane.f32.xlu1 %v2608_v33 }
0x12da   : > { %v2660_v24 = vsub.s32 0, %v2659_v23  ;;  %v2664_v26 = vsub.s32 1, %v2659_v23 }
0x12dc   : > { %v2661_v27 = vrot.slane %v2656_v25, %v2660_v24  ;;  %v2665_v29 = vrot.slane %v2656_v25, %v2664_v26 }
0x1364   : > { %v2607_v34 = vpop.xlane.xlu0 %2606 }
0x1365   : > { %v2611_v35 = vmul.f32 0.015625, %v2607_v34 }
0x1366   : > { %v2610_v36 = vpop.xlane.xlu1 %2609 }
0x1367   : > { %v2613_v37 = vsub.f32 %v5567_v28, %v2611_v35  ;;  %v2612_v38 = vmul.f32 0.015625, %v2610_v36 }
0x1369   : > { %v2614_v39 = vsub.f32 %v2602_v32, %v2612_v38  ;;  %v2615_v41 = vmul.f32 %v2613_v37, %v2613_v37 }
0x136b   : > { %v2617_v42 = vsel %vm851_vm0, %v2615_v41, 0.0  ;;  %v2616_v43 = vmul.f32 %v2614_v39, %v2614_v39 }
0x136c   : > { %2618 = vadd.xlane.f32.xlu0 %v2617_v42 }
0x136d   : > { %v2620_v40 = vsel %vm855_vm1, %v2616_v43, 0.0 }
0x136e   : > { %2621 = vadd.xlane.f32.xlu1 %v2620_v40 }
0x13f9   : > { %v2619_v13 = vpop.xlane.xlu0 %2618 }
0x13fa   : > { %v2623_v17 = vmul.f32 0.015625, %v2619_v13 }
0x13fb   : > { %v2622_v53 = vpop.xlane.xlu1 %2621 }
0x13fc   : > { %v2625_v54 = vadd.f32 1e-05, %v2623_v17  ;;  %v2624_v55 = vmul.f32 0.015625, %v2622_v53 }
0x13fe   : > { %4055 = vrsqrt.f32 %v2625_v54  ;;  %v2626_v56 = vadd.f32 1e-05, %v2624_v55 }
0x1400   : > { %4057 = vrsqrt.f32 %v2626_v56 }
0x1408   : > { %v4056_v57 = vpop.eup %4055 }
0x1409   : > { %v2629_v59 = vmul.f32 %v4056_v57, %v2613_v37 }
0x140a   : > { %v4058_v60 = vpop.eup %4057 }
0x140b   : > { %v2637_v10 = vmul.f32 %v3359_v58, %v2629_v59  ;;  %v2630_v61 = vmul.f32 %v4058_v60, %v2614_v39 }
0x140d   : > { %v2638_v63 = vmul.f32 %v3359_v58, %v2630_v61  ;;  %v2645_v15 = vadd.f32 %v3360_v62, %v2637_v10 }
0x140f   : > { %v2646_v0 = vadd.f32 %v3360_v62, %v2638_v63 }
0x1411   : > { %v2647_v1 = vpack.c.bf16 %v2646_v0, %v2645_v15  ;;  %v3390_v0 = vld [vmem:[#allocation29] ss:$0 sm:$0xff] }
0x1413   : > { %3369 = vmatmul.mubr.msk.bf16.vlgmr.msra.gmra.mrb[48].mxu0 %vm851_vm0, %v2647_v1 }
0x14e6   : > { %v2745_v30 = vpop.f32.mrb[48].mxu0 }
0x14e7   : > { %v2746_v31 = vadd.f32 %v2745_v30, %v2661_v27  ;;  %v2747_v32 = vpop.f32.mrb[49].mxu0 }
0x14e8   : > { %v2748_v33 = vadd.f32 %v2747_v32, %v2665_v29  ;;  %v2749_v34 = vpop.f32.mrb[50].mxu0 }
0x14e9   : > { %v3370_v35 = vmul.f32 -1.702, %v2746_v31  ;;  %v2750_v36 = vadd.f32 %v2749_v34, %v2661_v27  ;;  %v2751_v37 = vpop.f32.mrb[51].mxu0 }
0x14ea   : > { %v3371_v38 = vmul.f32 -1.702, %v2748_v33  ;;  %v2752_v39 = vadd.f32 %v2751_v37, %v2665_v29 }
0x14eb   : > { %v2762_v41 = vmul.f32 1.442695, %v3370_v35  ;;  %v3372_v42 = vmul.f32 -1.702, %v2750_v36 }
0x14ec   : > { %v2764_v43 = vmul.f32 1.442695, %v3371_v38  ;;  %v3373_v40 = vmul.f32 -1.702, %v2752_v39 }
0x14ed   : > { %4059 = vpow2.f32 %v2762_v41  ;;  %v2766_v44 = vmul.f32 1.442695, %v3372_v42 }
0x14ee   : > { %4061 = vpow2.f32 %v2764_v43  ;;  %v2768_v45 = vmul.f32 1.442695, %v3373_v40 }
0x14ef   : > { %4063 = vpow2.f32 %v2766_v44 }
0x14f0   : > { %4065 = vpow2.f32 %v2768_v45 }
0x14f7   : > { %v4060_v46 = vpop.eup %4059 }
0x14f8   : > { %v4062_v47 = vpop.eup %4061  ;;  %v2770_v48 = vadd.f32 1.0, %v4060_v46 }
0x14f9   : > { %v4064_v49 = vpop.eup %4063  ;;  %v2771_v50 = vadd.f32 1.0, %v4062_v47 }
0x14fa   : > { %v4066_v51 = vpop.eup %4065  ;;  %4067 = vrcp.f32 %v2770_v48  ;;  %v2772_v52 = vadd.f32 1.0, %v4064_v49 }
0x14fb   : > { %4069 = vrcp.f32 %v2771_v50  ;;  %v2773_v13 = vadd.f32 1.0, %v4066_v51 }
0x14fc   : > { %4071 = vrcp.f32 %v2772_v52 }
0x14fd   : > { %4073 = vrcp.f32 %v2773_v13 }
0x1504   : > { %v4068_v17 = vpop.eup %4067 }
0x1505   : > { %v4070_v53 = vpop.eup %4069  ;;  %v2782_v56 = vmul.f32 %v4068_v17, %v2746_v31 }
0x1506   : > { %v4072_v54 = vpop.eup %4071  ;;  %v2783_v58 = vmul.f32 %v4070_v53, %v2748_v33 }
0x1507   : > { %v4074_v55 = vpop.eup %4073  ;;  %v2784_v57 = vmul.f32 %v4072_v54, %v2750_v36 }
0x1508   : > { %v2785_v59 = vmul.f32 %v4074_v55, %v2752_v39 }
0x1509   : > { %v2786_v60 = vpack.c.bf16 %v2784_v57, %v2782_v56 }
0x150a   : > { %v2787_v10 = vpack.c.bf16 %v2785_v59, %v2783_v58 }
0x150c   : > { %2948 = vmatprep.mubr.bf16.mxu1 %v2787_v10 }
0x150d   : > { %2949 = vmatmul.mubr.bf16.vlgmr.msra.gmra.mrb[48].mxu1 %v2786_v60 }
0x15e0   : > { %v3495_v61 = vpop.f32.mrb[48].mxu1 }
0x15e1   : > { %v3496_v62 = vpop.f32.mrb[49].mxu1 }
0x15e2   : > { %v3497_v63 = vadd.f32 %v3496_v62, %v3495_v61  ;;  %v3498_v15 = vpop.f32.mrb[50].mxu1 }
0x15e3   : > { %v3499_v1 = vpop.f32.mrb[51].mxu1 }
0x15e4   : > { %v2956_v2 = vadd.f32 %v3497_v63, %v5567_v28 }
0x15e6   : > { %v2964_v3 = vadd.f32 %v3390_v0, %v2956_v2 }
0x15e8   : > { %2965 = vst.msk [vmem:[%s845_s17] sm:$0xff] %vm851_vm0, %v2964_v3 }
0x15e9   : > { %4598 = shalt.err (!%p4595_p7)
}
0x15ea   : > { %s4599_s8 = scalar_lea.hbm %s5584_s26, 128  ;;  %s4603_s21 = scalar_lea.hbm %s5734_s23, 256 }
0x15eb   : > { %p4600_p3 = scmp.ne.s32.totalorder %s5584_s26, %s4599_s8  ;;  %p4604_p8 = scmp.lt.u32.totalorder %s5584_s26, %s5734_s23 }
0x15ec   : > { %p4605_p9 = scmp.lt.u32.totalorder %s4603_s21, %s4599_s8  ;;  %p4607_p1 = scmp.lt.u32.totalorder %s4599_s8, %s5584_s26 }
0x15ed   : > { %p4601_p6 = pnand %p4600_p3, %p5735_p13 }
0x15ee   : > { %p4606_p4 = por %p4605_p9, %p4604_p8 }
0x15ef   : > { %p4602_p12 = pneg %p4601_p6 }
0x15f0   : > { %p4608_p0 = por %p4607_p1, %p4606_p4 }
0x15f2   : > { %p4609_p2 = pnand %p4608_p0, %p4602_p12 }
0x15f4   : > { %4612 = shalt.err (!%p4609_p2)
}
0x15f5   : > { %3785 = dma.vmem_to_hbm [thread:$0]  (%p5735_p13), %s5586_s0, 128, %s5584_s26, %s2967_s28  }
0x15f6 PF: > { %s5736_s3 = sld [smem:[#allocation44_spill]]  ;;  %s5737_s17 = sld [smem:[#allocation47_spill]] }
0x15f7   : > { %p5738_p10 = scmp.ne.s32.totalorder %s5707_s18, 0 }
0x15fc   : > { %s2992_s10 = sand.u32 1, %s5736_s3   ;;  %p5739_p11 = scmp.ge.s32.totalorder %s5737_s17, 2 }
0x15fd   : > { %s2993_s7 = scalar_lea.sflag [#allocation4], %s2992_s10 }
0x15fe   : > { %p3844_p5 = pnand %p5739_p11, %p5738_p10 }
0x1600   : > { %4674 = dma.done.wait (!%p3844_p5), %s2993_s7, 128  }
0x1601   : > { %4676 = vsyncadd (!%p3844_p5), %s2993_s7, 4294967168  ;;  %s5740_s2 = sld [smem:[#allocation45_spill]]  ;;  %s5741_s28 = sld [smem:[#allocation46_spill]] }
0x1602   : > { %s5742_s20 = smov %s5218_s27  ;;  %p42_p7 = scmp.ge.s32.totalorder %s5207_s30, 4  }
0x1603   : > { %s5744_s29 = smov %s5742_s20 }
0x1604   :  { %44 = sbr.rel (!%p42_p7) target bundleno = 29 (0x1d), region = 235 }
0x1607   : > { %s5743_s27 = smov %s5740_s2 }
0x160b   :  { %2998 = vsyncpa [#allocation3], 1 }
0x160c   :  { %3000 = vsyncpa [#allocation3 + $0x1], 1 }
0x160d   :  { %3001 = vsyncpa [#allocation6], 1 }
0x160e   :  { %3003 = vsyncpa [#allocation6 + $0x1], 1 }
0x160f   :  { %3004 = vsyncpa [#allocation9], 1 }
0x1610   :  { %3005 = vsyncpa [#allocation12], 1 }
0x1611   :  { %3006 = vsyncpa [#allocation15], 1 }
0x1612   :  { %3007 = vsyncpa [#allocation18], 1 }
0x1613   :  { %3008 = vsyncpa [#allocation21], 1 }
0x1614   :  { %3009 = vsyncpa [#allocation24], 1 }
0x1615   :  { %3010 = vsyncpa [#allocation27], 1 }
0x1616   :  { %3011 = vsyncpa [#allocation30], 1 }
0x1617   :  { %3012 = vsyncpa [#allocation4], 1 }
0x1618   :  { %3014 = vsyncpa [#allocation4 + $0x1], 1 }

</bundles_post_ra>
